<compile_context>
chip_gen: v7x
topology: tpu7x:2x2x1
jax: 0.10.0
libtpu: 0.0.40
codegen_flags: <defaults>
</compile_context>

<pallas_src>
import functools

import jax
import jax.numpy as jnp
from jax.experimental import pallas as pl
from jax.experimental.pallas import tpu as pltpu


def _drb_kernel(x_ref, w_ref, b_ref, o_ref, cat_ref, *, filters, res_scale):
    """Fused DenseResidualBlock for one batch element.

    x_ref   : (1, H, W, F)        input image (unpadded, NHWC)
    w_ref   : (5, 9, 5F, F)       per-stage / per-tap weights, K zero-padded
    b_ref   : (5, F)              per-stage bias (f32)
    o_ref   : (1, H, W, F)        output = conv5 * res_scale + x
    cat_ref : VMEM (H+2, W+2, 5F) zero-bordered dense concatenation buffer
    """
    F = filters
    H = o_ref.shape[1]
    W = o_ref.shape[2]
    HW = H * W

    # Zero once per invocation: the 1-pixel border never gets overwritten and
    # provides the SAME padding for every stage's 3x3 taps.
    cat_ref[...] = jnp.zeros(cat_ref.shape, cat_ref.dtype)

    # Channel block 0 of the dense concatenation = the input x.
    cat_ref[1:H + 1, 1:W + 1, 0:F] = x_ref[0]

    out = None
    for k in range(5):                              # 5 conv stages, unrolled
        cin = (k + 1) * F
        acc = jnp.zeros((HW, F), jnp.float32)
        for dy in range(3):                         # 3x3 taps, unrolled
            for dx in range(3):
                # Shifted view of the dense concatenation built so far.
                lhs = cat_ref[dy:dy + H, dx:dx + W, 0:cin]      # (H, W, cin)
                lhs = lhs.reshape(HW, cin)
                rhs = w_ref[k, dy * 3 + dx, 0:cin, :]           # (cin, F)
                acc = acc + jnp.dot(lhs, rhs,
                                    preferred_element_type=jnp.float32)
        z = acc + b_ref[k:k + 1, :]                 # (HW, F) + (1, F)
        if k < 4:
            # nn.LeakyReLU() default negative_slope = 0.01 (VPU math, f32).
            z = jnp.where(z > 0, z, 0.01 * z)
            cat_ref[1:H + 1, 1:W + 1, cin:cin + F] = (
                z.reshape(H, W, F).astype(cat_ref.dtype))
        else:
            out = z

    x0 = x_ref[0].astype(jnp.float32).reshape(HW, F)
    res = out * res_scale + x0
    o_ref[0] = res.reshape(H, W, F).astype(o_ref.dtype)


def init_dense_residual_block_params(key, filters):
    """Deterministic synthetic params.  Weight layout HWIO = (3,3,Cin,Cout)."""
    params = []
    for k in range(1, 6):
        cin = k * filters
        key, kw, kb = jax.random.split(key, 3)
        fan_in = cin * 3 * 3
        bound = 1.0 / jnp.sqrt(fan_in)
        w = jax.random.uniform(kw, (3, 3, cin, filters), jnp.float32,
                               minval=-bound, maxval=bound)
        b = jax.random.uniform(kb, (filters,), jnp.float32,
                               minval=-bound, maxval=bound)
        params.append((w, b))
    return params


def _pack_weights(params, filters, dtype):
    """Repack each stage's HWIO weight into (tap, cin, cout) with cin
    zero-padded to 5*filters, stacked over stages -> (5, 9, 5F, F)."""
    F = filters
    cmax = 5 * F
    w_list, b_list = [], []
    for k, (w, b) in enumerate(params):
        cin = (k + 1) * F
        wk = w.reshape(9, cin, F)                        # (dy*3+dx, cin, F)
        wk = jnp.pad(wk, ((0, 0), (0, cmax - cin), (0, 0)))
        w_list.append(wk)
        b_list.append(b)
    w_all = jnp.stack(w_list).astype(dtype)              # (5, 9, 5F, F)
    b_all = jnp.stack(b_list).astype(jnp.float32)        # (5, F)
    return w_all, b_all


def dense_residual_block(x_nchw, params, res_scale=0.2):
    """Forward pass matching the PyTorch DenseResidualBlock.  Input NCHW."""
    x = jnp.transpose(x_nchw, (0, 2, 3, 1))  # NCHW -> NHWC
    N, H, W, F = x.shape
    w_all, b_all = _pack_weights(params, F, x.dtype)

    kernel = functools.partial(_drb_kernel, filters=F, res_scale=res_scale)

    y = pl.pallas_call(
        kernel,
        out_shape=jax.ShapeDtypeStruct((N, H, W, F), x.dtype),
        grid_spec=pltpu.PrefetchScalarGridSpec(
            num_scalar_prefetch=0,
            grid=(N,),
            in_specs=[
                pl.BlockSpec((1, H, W, F), lambda n: (n, 0, 0, 0)),
                pl.BlockSpec((5, 9, 5 * F, F), lambda n: (0, 0, 0, 0)),
                pl.BlockSpec((5, F), lambda n: (0, 0)),
            ],
            out_specs=pl.BlockSpec((1, H, W, F), lambda n: (n, 0, 0, 0)),
            scratch_shapes=[
                pltpu.VMEM((H + 2, W + 2, 5 * F), x.dtype),  # padded concat
            ],
        ),
        compiler_params=pltpu.CompilerParams(
            dimension_semantics=("parallel",)),
    )(x, w_all, b_all)

    return jnp.transpose(y, (0, 3, 1, 2))  # NHWC -> NCHW


def _reference(x_nchw, params, res_scale=0.2):
    """Pure-JAX reference (lax.conv) for a correctness sanity check."""
    x = jnp.transpose(x_nchw, (0, 2, 3, 1))
    inputs = x
    out = None
    for i, (w, b) in enumerate(params):
        out = jax.lax.conv_general_dilated(
            inputs, w, window_strides=(1, 1), padding="SAME",
            dimension_numbers=("NHWC", "HWIO", "NHWC"))
        out = out + b[None, None, None, :]
        if i < 4:
            out = jnp.where(out > 0, out, 0.01 * out)
        inputs = jnp.concatenate([inputs, out], axis=-1)
    y = out * res_scale + x
    return jnp.transpose(y, (0, 3, 1, 2))


if __name__ == "__main__":
    key = jax.random.PRNGKey(0)
    filters = 4
    N, H, W = 2, 16, 16

    key, kx = jax.random.split(key)
    x = jax.random.normal(kx, (N, filters, H, W), jnp.float32)  # NCHW
    params = init_dense_residual_block_params(key, filters)

    y = dense_residual_block(x, params)
    y = jax.block_until_ready(y)

    y_ref = _reference(x, params)
    assert y.shape == (N, filters, H, W)
    assert jnp.allclose(y, y_ref, atol=1e-3, rtol=1e-3), "mismatch vs reference"

    print("KERNEL_OK")
</pallas_src>

<mosaic_0001>
module attributes {stable_mosaic.version = 11 : i64} {
  func.func @_drb_kernel(%arg0: i32, %arg1: memref<1x16x16x4xf32, #tpu.memory_space<vmem>>, %arg2: memref<5x9x20x4xf32, #tpu.memory_space<vmem>>, %arg3: memref<5x4xf32, #tpu.memory_space<vmem>>, %arg4: memref<1x16x16x4xf32, #tpu.memory_space<vmem>>, %arg5: memref<18x18x20xf32, #tpu.memory_space<vmem>>) attributes {dimension_semantics = [#tpu.dimension_semantics<parallel>], iteration_bounds = array<i64: 2>, scalar_prefetch = 0 : i64, scratch_operands = 1 : i64, tpu.core_type = #tpu.core_type<tc>, window_params = [{transform_indices = @transform_0, window_bounds = array<i64: 1, 16, 16, 4>}, {pipeline_mode = #tpu.pipeline_mode<synchronous>, transform_indices = @transform_1, window_bounds = array<i64: 5, 9, 20, 4>}, {pipeline_mode = #tpu.pipeline_mode<synchronous>, transform_indices = @transform_2, window_bounds = array<i64: 5, 4>}, {transform_indices = @transform_3, window_bounds = array<i64: 1, 16, 16, 4>}]} {
    %cst = arith.constant 0.000000e+00 : f32
    %0 = vector.broadcast %cst : f32 to vector<18x18x20xf32>
    %c0 = arith.constant 0 : index
    %c0_0 = arith.constant 0 : index
    %c0_1 = arith.constant 0 : index
    %1 = vector.load %arg5[%c0, %c0_0, %c0_1] : memref<18x18x20xf32, #tpu.memory_space<vmem>>, vector<18x18x20xf32>
    tpu.vector_store %arg5[%c0, %c0_0, %c0_1], %0 {strides = array<i32>} : memref<18x18x20xf32, #tpu.memory_space<vmem>>, vector<18x18x20xf32>,
    %c0_2 = arith.constant 0 : index
    %c0_3 = arith.constant 0 : index
    %c0_4 = arith.constant 0 : index
    %c0_5 = arith.constant 0 : index
    %2 = vector.load %arg1[%c0_2, %c0_3, %c0_4, %c0_5] : memref<1x16x16x4xf32, #tpu.memory_space<vmem>>, vector<1x16x16x4xf32>
    %3 = vector.shape_cast %2 : vector<1x16x16x4xf32> to vector<16x16x4xf32>
    %c1 = arith.constant 1 : index
    %c1_6 = arith.constant 1 : index
    %c0_7 = arith.constant 0 : index
    %4 = vector.load %arg5[%c1, %c1_6, %c0_7] : memref<18x18x20xf32, #tpu.memory_space<vmem>>, vector<16x16x4xf32>
    tpu.vector_store %arg5[%c1, %c1_6, %c0_7], %3 {strides = array<i32>} : memref<18x18x20xf32, #tpu.memory_space<vmem>>, vector<16x16x4xf32>,
    %cst_8 = arith.constant 0.000000e+00 : f32
    %5 = vector.broadcast %cst_8 : f32 to vector<256x4xf32>
    %c0_9 = arith.constant 0 : index
    %c0_10 = arith.constant 0 : index
    %c0_11 = arith.constant 0 : index
    %6 = vector.load %arg5[%c0_9, %c0_10, %c0_11] : memref<18x18x20xf32, #tpu.memory_space<vmem>>, vector<16x16x4xf32>
    %7 = vector.shape_cast %6 : vector<16x16x4xf32> to vector<256x4xf32>
    %c0_12 = arith.constant 0 : index
    %c0_13 = arith.constant 0 : index
    %c0_14 = arith.constant 0 : index
    %c0_15 = arith.constant 0 : index
    %8 = vector.load %arg2[%c0_12, %c0_13, %c0_14, %c0_15] : memref<5x9x20x4xf32, #tpu.memory_space<vmem>>, vector<1x1x4x4xf32>
    %9 = vector.shape_cast %8 : vector<1x1x4x4xf32> to vector<4x4xf32>
    %cst_16 = arith.constant dense<0.000000e+00> : vector<256x4xf32>
    %10 = tpu.matmul %7, %9, %cst_16 {dimension_numbers = #tpu.dot_dimension_numbers<[1], [0], [0], [1], [0, 0, 1, 1], [], []>} : vector<256x4xf32>, vector<4x4xf32>, vector<256x4xf32> -> vector<256x4xf32>
    %11 = arith.addf %5, %10 : vector<256x4xf32>
    %c0_17 = arith.constant 0 : index
    %c1_18 = arith.constant 1 : index
    %c0_19 = arith.constant 0 : index
    %12 = vector.load %arg5[%c0_17, %c1_18, %c0_19] : memref<18x18x20xf32, #tpu.memory_space<vmem>>, vector<16x16x4xf32>
    %13 = vector.shape_cast %12 : vector<16x16x4xf32> to vector<256x4xf32>
    %c0_20 = arith.constant 0 : index
    %c1_21 = arith.constant 1 : index
    %c0_22 = arith.constant 0 : index
    %c0_23 = arith.constant 0 : index
    %14 = vector.load %arg2[%c0_20, %c1_21, %c0_22, %c0_23] : memref<5x9x20x4xf32, #tpu.memory_space<vmem>>, vector<1x1x4x4xf32>
    %15 = vector.shape_cast %14 : vector<1x1x4x4xf32> to vector<4x4xf32>
    %cst_24 = arith.constant dense<0.000000e+00> : vector<256x4xf32>
    %16 = tpu.matmul %13, %15, %cst_24 {dimension_numbers = #tpu.dot_dimension_numbers<[1], [0], [0], [1], [0, 0, 1, 1], [], []>} : vector<256x4xf32>, vector<4x4xf32>, vector<256x4xf32> -> vector<256x4xf32>
    %17 = arith.addf %11, %16 : vector<256x4xf32>
    %c0_25 = arith.constant 0 : index
    %c2 = arith.constant 2 : index
    %c0_26 = arith.constant 0 : index
    %18 = vector.load %arg5[%c0_25, %c2, %c0_26] : memref<18x18x20xf32, #tpu.memory_space<vmem>>, vector<16x16x4xf32>
    %19 = vector.shape_cast %18 : vector<16x16x4xf32> to vector<256x4xf32>
    %c0_27 = arith.constant 0 : index
    %c2_28 = arith.constant 2 : index
    %c0_29 = arith.constant 0 : index
    %c0_30 = arith.constant 0 : index
    %20 = vector.load %arg2[%c0_27, %c2_28, %c0_29, %c0_30] : memref<5x9x20x4xf32, #tpu.memory_space<vmem>>, vector<1x1x4x4xf32>
    %21 = vector.shape_cast %20 : vector<1x1x4x4xf32> to vector<4x4xf32>
    %cst_31 = arith.constant dense<0.000000e+00> : vector<256x4xf32>
    %22 = tpu.matmul %19, %21, %cst_31 {dimension_numbers = #tpu.dot_dimension_numbers<[1], [0], [0], [1], [0, 0, 1, 1], [], []>} : vector<256x4xf32>, vector<4x4xf32>, vector<256x4xf32> -> vector<256x4xf32>
    %23 = arith.addf %17, %22 : vector<256x4xf32>
    %c1_32 = arith.constant 1 : index
    %c0_33 = arith.constant 0 : index
    %c0_34 = arith.constant 0 : index
    %24 = vector.load %arg5[%c1_32, %c0_33, %c0_34] : memref<18x18x20xf32, #tpu.memory_space<vmem>>, vector<16x16x4xf32>
    %25 = vector.shape_cast %24 : vector<16x16x4xf32> to vector<256x4xf32>
    %c0_35 = arith.constant 0 : index
    %c3 = arith.constant 3 : index
    %c0_36 = arith.constant 0 : index
    %c0_37 = arith.constant 0 : index
    %26 = vector.load %arg2[%c0_35, %c3, %c0_36, %c0_37] : memref<5x9x20x4xf32, #tpu.memory_space<vmem>>, vector<1x1x4x4xf32>
    %27 = vector.shape_cast %26 : vector<1x1x4x4xf32> to vector<4x4xf32>
    %cst_38 = arith.constant dense<0.000000e+00> : vector<256x4xf32>
    %28 = tpu.matmul %25, %27, %cst_38 {dimension_numbers = #tpu.dot_dimension_numbers<[1], [0], [0], [1], [0, 0, 1, 1], [], []>} : vector<256x4xf32>, vector<4x4xf32>, vector<256x4xf32> -> vector<256x4xf32>
    %29 = arith.addf %23, %28 : vector<256x4xf32>
    %c1_39 = arith.constant 1 : index
    %c1_40 = arith.constant 1 : index
    %c0_41 = arith.constant 0 : index
    %30 = vector.load %arg5[%c1_39, %c1_40, %c0_41] : memref<18x18x20xf32, #tpu.memory_space<vmem>>, vector<16x16x4xf32>
    %31 = vector.shape_cast %30 : vector<16x16x4xf32> to vector<256x4xf32>
    %c0_42 = arith.constant 0 : index
    %c4 = arith.constant 4 : index
    %c0_43 = arith.constant 0 : index
    %c0_44 = arith.constant 0 : index
    %32 = vector.load %arg2[%c0_42, %c4, %c0_43, %c0_44] : memref<5x9x20x4xf32, #tpu.memory_space<vmem>>, vector<1x1x4x4xf32>
    %33 = vector.shape_cast %32 : vector<1x1x4x4xf32> to vector<4x4xf32>
    %cst_45 = arith.constant dense<0.000000e+00> : vector<256x4xf32>
    %34 = tpu.matmul %31, %33, %cst_45 {dimension_numbers = #tpu.dot_dimension_numbers<[1], [0], [0], [1], [0, 0, 1, 1], [], []>} : vector<256x4xf32>, vector<4x4xf32>, vector<256x4xf32> -> vector<256x4xf32>
    %35 = arith.addf %29, %34 : vector<256x4xf32>
    %c1_46 = arith.constant 1 : index
    %c2_47 = arith.constant 2 : index
    %c0_48 = arith.constant 0 : index
    %36 = vector.load %arg5[%c1_46, %c2_47, %c0_48] : memref<18x18x20xf32, #tpu.memory_space<vmem>>, vector<16x16x4xf32>
    %37 = vector.shape_cast %36 : vector<16x16x4xf32> to vector<256x4xf32>
    %c0_49 = arith.constant 0 : index
    %c5 = arith.constant 5 : index
    %c0_50 = arith.constant 0 : index
    %c0_51 = arith.constant 0 : index
    %38 = vector.load %arg2[%c0_49, %c5, %c0_50, %c0_51] : memref<5x9x20x4xf32, #tpu.memory_space<vmem>>, vector<1x1x4x4xf32>
    %39 = vector.shape_cast %38 : vector<1x1x4x4xf32> to vector<4x4xf32>
    %cst_52 = arith.constant dense<0.000000e+00> : vector<256x4xf32>
    %40 = tpu.matmul %37, %39, %cst_52 {dimension_numbers = #tpu.dot_dimension_numbers<[1], [0], [0], [1], [0, 0, 1, 1], [], []>} : vector<256x4xf32>, vector<4x4xf32>, vector<256x4xf32> -> vector<256x4xf32>
    %41 = arith.addf %35, %40 : vector<256x4xf32>
    %c2_53 = arith.constant 2 : index
    %c0_54 = arith.constant 0 : index
    %c0_55 = arith.constant 0 : index
    %42 = vector.load %arg5[%c2_53, %c0_54, %c0_55] : memref<18x18x20xf32, #tpu.memory_space<vmem>>, vector<16x16x4xf32>
    %43 = vector.shape_cast %42 : vector<16x16x4xf32> to vector<256x4xf32>
    %c0_56 = arith.constant 0 : index
    %c6 = arith.constant 6 : index
    %c0_57 = arith.constant 0 : index
    %c0_58 = arith.constant 0 : index
    %44 = vector.load %arg2[%c0_56, %c6, %c0_57, %c0_58] : memref<5x9x20x4xf32, #tpu.memory_space<vmem>>, vector<1x1x4x4xf32>
    %45 = vector.shape_cast %44 : vector<1x1x4x4xf32> to vector<4x4xf32>
    %cst_59 = arith.constant dense<0.000000e+00> : vector<256x4xf32>
    %46 = tpu.matmul %43, %45, %cst_59 {dimension_numbers = #tpu.dot_dimension_numbers<[1], [0], [0], [1], [0, 0, 1, 1], [], []>} : vector<256x4xf32>, vector<4x4xf32>, vector<256x4xf32> -> vector<256x4xf32>
    %47 = arith.addf %41, %46 : vector<256x4xf32>
    %c2_60 = arith.constant 2 : index
    %c1_61 = arith.constant 1 : index
    %c0_62 = arith.constant 0 : index
    %48 = vector.load %arg5[%c2_60, %c1_61, %c0_62] : memref<18x18x20xf32, #tpu.memory_space<vmem>>, vector<16x16x4xf32>
    %49 = vector.shape_cast %48 : vector<16x16x4xf32> to vector<256x4xf32>
    %c0_63 = arith.constant 0 : index
    %c7 = arith.constant 7 : index
    %c0_64 = arith.constant 0 : index
    %c0_65 = arith.constant 0 : index
    %50 = vector.load %arg2[%c0_63, %c7, %c0_64, %c0_65] : memref<5x9x20x4xf32, #tpu.memory_space<vmem>>, vector<1x1x4x4xf32>
    %51 = vector.shape_cast %50 : vector<1x1x4x4xf32> to vector<4x4xf32>
    %cst_66 = arith.constant dense<0.000000e+00> : vector<256x4xf32>
    %52 = tpu.matmul %49, %51, %cst_66 {dimension_numbers = #tpu.dot_dimension_numbers<[1], [0], [0], [1], [0, 0, 1, 1], [], []>} : vector<256x4xf32>, vector<4x4xf32>, vector<256x4xf32> -> vector<256x4xf32>
    %53 = arith.addf %47, %52 : vector<256x4xf32>
    %c2_67 = arith.constant 2 : index
    %c2_68 = arith.constant 2 : index
    %c0_69 = arith.constant 0 : index
    %54 = vector.load %arg5[%c2_67, %c2_68, %c0_69] : memref<18x18x20xf32, #tpu.memory_space<vmem>>, vector<16x16x4xf32>
    %55 = vector.shape_cast %54 : vector<16x16x4xf32> to vector<256x4xf32>
    %c0_70 = arith.constant 0 : index
    %c8 = arith.constant 8 : index
    %c0_71 = arith.constant 0 : index
    %c0_72 = arith.constant 0 : index
    %56 = vector.load %arg2[%c0_70, %c8, %c0_71, %c0_72] : memref<5x9x20x4xf32, #tpu.memory_space<vmem>>, vector<1x1x4x4xf32>
    %57 = vector.shape_cast %56 : vector<1x1x4x4xf32> to vector<4x4xf32>
    %cst_73 = arith.constant dense<0.000000e+00> : vector<256x4xf32>
    %58 = tpu.matmul %55, %57, %cst_73 {dimension_numbers = #tpu.dot_dimension_numbers<[1], [0], [0], [1], [0, 0, 1, 1], [], []>} : vector<256x4xf32>, vector<4x4xf32>, vector<256x4xf32> -> vector<256x4xf32>
    %59 = arith.addf %53, %58 : vector<256x4xf32>
    %c0_74 = arith.constant 0 : index
    %c0_75 = arith.constant 0 : index
    %60 = vector.load %arg3[%c0_74, %c0_75] : memref<5x4xf32, #tpu.memory_space<vmem>>, vector<1x4xf32>
    %61 = vector.broadcast %60 : vector<1x4xf32> to vector<256x4xf32>
    %62 = arith.addf %59, %61 : vector<256x4xf32>
    %cst_76 = arith.constant 0.000000e+00 : f32
    %63 = vector.broadcast %cst_76 : f32 to vector<256x4xf32>
    %64 = arith.cmpf ogt, %62, %63 : vector<256x4xf32>
    %cst_77 = arith.constant 0.00999999977 : f32
    %65 = vector.broadcast %cst_77 : f32 to vector<256x4xf32>
    %66 = arith.mulf %65, %62 : vector<256x4xf32>
    %67 = arith.select %64, %62, %66 : vector<256x4xi1>, vector<256x4xf32>
    %68 = vector.shape_cast %67 : vector<256x4xf32> to vector<16x16x4xf32>
    %c1_78 = arith.constant 1 : index
    %c1_79 = arith.constant 1 : index
    %c4_80 = arith.constant 4 : index
    %69 = vector.load %arg5[%c1_78, %c1_79, %c4_80] : memref<18x18x20xf32, #tpu.memory_space<vmem>>, vector<16x16x4xf32>
    tpu.vector_store %arg5[%c1_78, %c1_79, %c4_80], %68 {strides = array<i32>} : memref<18x18x20xf32, #tpu.memory_space<vmem>>, vector<16x16x4xf32>,
    %cst_81 = arith.constant 0.000000e+00 : f32
    %70 = vector.broadcast %cst_81 : f32 to vector<256x4xf32>
    %c0_82 = arith.constant 0 : index
    %c0_83 = arith.constant 0 : index
    %c0_84 = arith.constant 0 : index
    %71 = vector.load %arg5[%c0_82, %c0_83, %c0_84] : memref<18x18x20xf32, #tpu.memory_space<vmem>>, vector<16x16x8xf32>
    %72 = vector.shape_cast %71 : vector<16x16x8xf32> to vector<256x8xf32>
    %c1_85 = arith.constant 1 : index
    %c0_86 = arith.constant 0 : index
    %c0_87 = arith.constant 0 : index
    %c0_88 = arith.constant 0 : index
    %73 = vector.load %arg2[%c1_85, %c0_86, %c0_87, %c0_88] : memref<5x9x20x4xf32, #tpu.memory_space<vmem>>, vector<1x1x8x4xf32>
    %74 = vector.shape_cast %73 : vector<1x1x8x4xf32> to vector<8x4xf32>
    %cst_89 = arith.constant dense<0.000000e+00> : vector<256x4xf32>
    %75 = tpu.matmul %72, %74, %cst_89 {dimension_numbers = #tpu.dot_dimension_numbers<[1], [0], [0], [1], [0, 0, 1, 1], [], []>} : vector<256x8xf32>, vector<8x4xf32>, vector<256x4xf32> -> vector<256x4xf32>
    %76 = arith.addf %70, %75 : vector<256x4xf32>
    %c0_90 = arith.constant 0 : index
    %c1_91 = arith.constant 1 : index
    %c0_92 = arith.constant 0 : index
    %77 = vector.load %arg5[%c0_90, %c1_91, %c0_92] : memref<18x18x20xf32, #tpu.memory_space<vmem>>, vector<16x16x8xf32>
    %78 = vector.shape_cast %77 : vector<16x16x8xf32> to vector<256x8xf32>
    %c1_93 = arith.constant 1 : index
    %c1_94 = arith.constant 1 : index
    %c0_95 = arith.constant 0 : index
    %c0_96 = arith.constant 0 : index
    %79 = vector.load %arg2[%c1_93, %c1_94, %c0_95, %c0_96] : memref<5x9x20x4xf32, #tpu.memory_space<vmem>>, vector<1x1x8x4xf32>
    %80 = vector.shape_cast %79 : vector<1x1x8x4xf32> to vector<8x4xf32>
    %cst_97 = arith.constant dense<0.000000e+00> : vector<256x4xf32>
    %81 = tpu.matmul %78, %80, %cst_97 {dimension_numbers = #tpu.dot_dimension_numbers<[1], [0], [0], [1], [0, 0, 1, 1], [], []>} : vector<256x8xf32>, vector<8x4xf32>, vector<256x4xf32> -> vector<256x4xf32>
    %82 = arith.addf %76, %81 : vector<256x4xf32>
    %c0_98 = arith.constant 0 : index
    %c2_99 = arith.constant 2 : index
    %c0_100 = arith.constant 0 : index
    %83 = vector.load %arg5[%c0_98, %c2_99, %c0_100] : memref<18x18x20xf32, #tpu.memory_space<vmem>>, vector<16x16x8xf32>
    %84 = vector.shape_cast %83 : vector<16x16x8xf32> to vector<256x8xf32>
    %c1_101 = arith.constant 1 : index
    %c2_102 = arith.constant 2 : index
    %c0_103 = arith.constant 0 : index
    %c0_104 = arith.constant 0 : index
    %85 = vector.load %arg2[%c1_101, %c2_102, %c0_103, %c0_104] : memref<5x9x20x4xf32, #tpu.memory_space<vmem>>, vector<1x1x8x4xf32>
    %86 = vector.shape_cast %85 : vector<1x1x8x4xf32> to vector<8x4xf32>
    %cst_105 = arith.constant dense<0.000000e+00> : vector<256x4xf32>
    %87 = tpu.matmul %84, %86, %cst_105 {dimension_numbers = #tpu.dot_dimension_numbers<[1], [0], [0], [1], [0, 0, 1, 1], [], []>} : vector<256x8xf32>, vector<8x4xf32>, vector<256x4xf32> -> vector<256x4xf32>
    %88 = arith.addf %82, %87 : vector<256x4xf32>
    %c1_106 = arith.constant 1 : index
    %c0_107 = arith.constant 0 : index
    %c0_108 = arith.constant 0 : index
    %89 = vector.load %arg5[%c1_106, %c0_107, %c0_108] : memref<18x18x20xf32, #tpu.memory_space<vmem>>, vector<16x16x8xf32>
    %90 = vector.shape_cast %89 : vector<16x16x8xf32> to vector<256x8xf32>
    %c1_109 = arith.constant 1 : index
    %c3_110 = arith.constant 3 : index
    %c0_111 = arith.constant 0 : index
    %c0_112 = arith.constant 0 : index
    %91 = vector.load %arg2[%c1_109, %c3_110, %c0_111, %c0_112] : memref<5x9x20x4xf32, #tpu.memory_space<vmem>>, vector<1x1x8x4xf32>
    %92 = vector.shape_cast %91 : vector<1x1x8x4xf32> to vector<8x4xf32>
    %cst_113 = arith.constant dense<0.000000e+00> : vector<256x4xf32>
    %93 = tpu.matmul %90, %92, %cst_113 {dimension_numbers = #tpu.dot_dimension_numbers<[1], [0], [0], [1], [0, 0, 1, 1], [], []>} : vector<256x8xf32>, vector<8x4xf32>, vector<256x4xf32> -> vector<256x4xf32>
    %94 = arith.addf %88, %93 : vector<256x4xf32>
    %c1_114 = arith.constant 1 : index
    %c1_115 = arith.constant 1 : index
    %c0_116 = arith.constant 0 : index
    %95 = vector.load %arg5[%c1_114, %c1_115, %c0_116] : memref<18x18x20xf32, #tpu.memory_space<vmem>>, vector<16x16x8xf32>
    %96 = vector.shape_cast %95 : vector<16x16x8xf32> to vector<256x8xf32>
    %c1_117 = arith.constant 1 : index
    %c4_118 = arith.constant 4 : index
    %c0_119 = arith.constant 0 : index
    %c0_120 = arith.constant 0 : index
    %97 = vector.load %arg2[%c1_117, %c4_118, %c0_119, %c0_120] : memref<5x9x20x4xf32, #tpu.memory_space<vmem>>, vector<1x1x8x4xf32>
    %98 = vector.shape_cast %97 : vector<1x1x8x4xf32> to vector<8x4xf32>
    %cst_121 = arith.constant dense<0.000000e+00> : vector<256x4xf32>
    %99 = tpu.matmul %96, %98, %cst_121 {dimension_numbers = #tpu.dot_dimension_numbers<[1], [0], [0], [1], [0, 0, 1, 1], [], []>} : vector<256x8xf32>, vector<8x4xf32>, vector<256x4xf32> -> vector<256x4xf32>
    %100 = arith.addf %94, %99 : vector<256x4xf32>
    %c1_122 = arith.constant 1 : index
    %c2_123 = arith.constant 2 : index
    %c0_124 = arith.constant 0 : index
    %101 = vector.load %arg5[%c1_122, %c2_123, %c0_124] : memref<18x18x20xf32, #tpu.memory_space<vmem>>, vector<16x16x8xf32>
    %102 = vector.shape_cast %101 : vector<16x16x8xf32> to vector<256x8xf32>
    %c1_125 = arith.constant 1 : index
    %c5_126 = arith.constant 5 : index
    %c0_127 = arith.constant 0 : index
    %c0_128 = arith.constant 0 : index
    %103 = vector.load %arg2[%c1_125, %c5_126, %c0_127, %c0_128] : memref<5x9x20x4xf32, #tpu.memory_space<vmem>>, vector<1x1x8x4xf32>
    %104 = vector.shape_cast %103 : vector<1x1x8x4xf32> to vector<8x4xf32>
    %cst_129 = arith.constant dense<0.000000e+00> : vector<256x4xf32>
    %105 = tpu.matmul %102, %104, %cst_129 {dimension_numbers = #tpu.dot_dimension_numbers<[1], [0], [0], [1], [0, 0, 1, 1], [], []>} : vector<256x8xf32>, vector<8x4xf32>, vector<256x4xf32> -> vector<256x4xf32>
    %106 = arith.addf %100, %105 : vector<256x4xf32>
    %c2_130 = arith.constant 2 : index
    %c0_131 = arith.constant 0 : index
    %c0_132 = arith.constant 0 : index
    %107 = vector.load %arg5[%c2_130, %c0_131, %c0_132] : memref<18x18x20xf32, #tpu.memory_space<vmem>>, vector<16x16x8xf32>
    %108 = vector.shape_cast %107 : vector<16x16x8xf32> to vector<256x8xf32>
    %c1_133 = arith.constant 1 : index
    %c6_134 = arith.constant 6 : index
    %c0_135 = arith.constant 0 : index
    %c0_136 = arith.constant 0 : index
    %109 = vector.load %arg2[%c1_133, %c6_134, %c0_135, %c0_136] : memref<5x9x20x4xf32, #tpu.memory_space<vmem>>, vector<1x1x8x4xf32>
    %110 = vector.shape_cast %109 : vector<1x1x8x4xf32> to vector<8x4xf32>
    %cst_137 = arith.constant dense<0.000000e+00> : vector<256x4xf32>
    %111 = tpu.matmul %108, %110, %cst_137 {dimension_numbers = #tpu.dot_dimension_numbers<[1], [0], [0], [1], [0, 0, 1, 1], [], []>} : vector<256x8xf32>, vector<8x4xf32>, vector<256x4xf32> -> vector<256x4xf32>
    %112 = arith.addf %106, %111 : vector<256x4xf32>
    %c2_138 = arith.constant 2 : index
    %c1_139 = arith.constant 1 : index
    %c0_140 = arith.constant 0 : index
    %113 = vector.load %arg5[%c2_138, %c1_139, %c0_140] : memref<18x18x20xf32, #tpu.memory_space<vmem>>, vector<16x16x8xf32>
    %114 = vector.shape_cast %113 : vector<16x16x8xf32> to vector<256x8xf32>
    %c1_141 = arith.constant 1 : index
    %c7_142 = arith.constant 7 : index
    %c0_143 = arith.constant 0 : index
    %c0_144 = arith.constant 0 : index
    %115 = vector.load %arg2[%c1_141, %c7_142, %c0_143, %c0_144] : memref<5x9x20x4xf32, #tpu.memory_space<vmem>>, vector<1x1x8x4xf32>
    %116 = vector.shape_cast %115 : vector<1x1x8x4xf32> to vector<8x4xf32>
    %cst_145 = arith.constant dense<0.000000e+00> : vector<256x4xf32>
    %117 = tpu.matmul %114, %116, %cst_145 {dimension_numbers = #tpu.dot_dimension_numbers<[1], [0], [0], [1], [0, 0, 1, 1], [], []>} : vector<256x8xf32>, vector<8x4xf32>, vector<256x4xf32> -> vector<256x4xf32>
    %118 = arith.addf %112, %117 : vector<256x4xf32>
    %c2_146 = arith.constant 2 : index
    %c2_147 = arith.constant 2 : index
    %c0_148 = arith.constant 0 : index
    %119 = vector.load %arg5[%c2_146, %c2_147, %c0_148] : memref<18x18x20xf32, #tpu.memory_space<vmem>>, vector<16x16x8xf32>
    %120 = vector.shape_cast %119 : vector<16x16x8xf32> to vector<256x8xf32>
    %c1_149 = arith.constant 1 : index
    %c8_150 = arith.constant 8 : index
    %c0_151 = arith.constant 0 : index
    %c0_152 = arith.constant 0 : index
    %121 = vector.load %arg2[%c1_149, %c8_150, %c0_151, %c0_152] : memref<5x9x20x4xf32, #tpu.memory_space<vmem>>, vector<1x1x8x4xf32>
    %122 = vector.shape_cast %121 : vector<1x1x8x4xf32> to vector<8x4xf32>
    %cst_153 = arith.constant dense<0.000000e+00> : vector<256x4xf32>
    %123 = tpu.matmul %120, %122, %cst_153 {dimension_numbers = #tpu.dot_dimension_numbers<[1], [0], [0], [1], [0, 0, 1, 1], [], []>} : vector<256x8xf32>, vector<8x4xf32>, vector<256x4xf32> -> vector<256x4xf32>
    %124 = arith.addf %118, %123 : vector<256x4xf32>
    %c1_154 = arith.constant 1 : index
    %c0_155 = arith.constant 0 : index
    %125 = vector.load %arg3[%c1_154, %c0_155] : memref<5x4xf32, #tpu.memory_space<vmem>>, vector<1x4xf32>
    %126 = vector.broadcast %125 : vector<1x4xf32> to vector<256x4xf32>
    %127 = arith.addf %124, %126 : vector<256x4xf32>
    %cst_156 = arith.constant 0.000000e+00 : f32
    %128 = vector.broadcast %cst_156 : f32 to vector<256x4xf32>
    %129 = arith.cmpf ogt, %127, %128 : vector<256x4xf32>
    %cst_157 = arith.constant 0.00999999977 : f32
    %130 = vector.broadcast %cst_157 : f32 to vector<256x4xf32>
    %131 = arith.mulf %130, %127 : vector<256x4xf32>
    %132 = arith.select %129, %127, %131 : vector<256x4xi1>, vector<256x4xf32>
    %133 = vector.shape_cast %132 : vector<256x4xf32> to vector<16x16x4xf32>
    %c1_158 = arith.constant 1 : index
    %c1_159 = arith.constant 1 : index
    %c8_160 = arith.constant 8 : index
    %134 = vector.load %arg5[%c1_158, %c1_159, %c8_160] : memref<18x18x20xf32, #tpu.memory_space<vmem>>, vector<16x16x4xf32>
    tpu.vector_store %arg5[%c1_158, %c1_159, %c8_160], %133 {strides = array<i32>} : memref<18x18x20xf32, #tpu.memory_space<vmem>>, vector<16x16x4xf32>,
    %cst_161 = arith.constant 0.000000e+00 : f32
    %135 = vector.broadcast %cst_161 : f32 to vector<256x4xf32>
    %c0_162 = arith.constant 0 : index
    %c0_163 = arith.constant 0 : index
    %c0_164 = arith.constant 0 : index
    %136 = vector.load %arg5[%c0_162, %c0_163, %c0_164] : memref<18x18x20xf32, #tpu.memory_space<vmem>>, vector<16x16x12xf32>
    %137 = vector.shape_cast %136 : vector<16x16x12xf32> to vector<256x12xf32>
    %c2_165 = arith.constant 2 : index
    %c0_166 = arith.constant 0 : index
    %c0_167 = arith.constant 0 : index
    %c0_168 = arith.constant 0 : index
    %138 = vector.load %arg2[%c2_165, %c0_166, %c0_167, %c0_168] : memref<5x9x20x4xf32, #tpu.memory_space<vmem>>, vector<1x1x12x4xf32>
    %139 = vector.shape_cast %138 : vector<1x1x12x4xf32> to vector<12x4xf32>
    %cst_169 = arith.constant dense<0.000000e+00> : vector<256x4xf32>
    %140 = tpu.matmul %137, %139, %cst_169 {dimension_numbers = #tpu.dot_dimension_numbers<[1], [0], [0], [1], [0, 0, 1, 1], [], []>} : vector<256x12xf32>, vector<12x4xf32>, vector<256x4xf32> -> vector<256x4xf32>
    %141 = arith.addf %135, %140 : vector<256x4xf32>
    %c0_170 = arith.constant 0 : index
    %c1_171 = arith.constant 1 : index
    %c0_172 = arith.constant 0 : index
    %142 = vector.load %arg5[%c0_170, %c1_171, %c0_172] : memref<18x18x20xf32, #tpu.memory_space<vmem>>, vector<16x16x12xf32>
    %143 = vector.shape_cast %142 : vector<16x16x12xf32> to vector<256x12xf32>
    %c2_173 = arith.constant 2 : index
    %c1_174 = arith.constant 1 : index
    %c0_175 = arith.constant 0 : index
    %c0_176 = arith.constant 0 : index
    %144 = vector.load %arg2[%c2_173, %c1_174, %c0_175, %c0_176] : memref<5x9x20x4xf32, #tpu.memory_space<vmem>>, vector<1x1x12x4xf32>
    %145 = vector.shape_cast %144 : vector<1x1x12x4xf32> to vector<12x4xf32>
    %cst_177 = arith.constant dense<0.000000e+00> : vector<256x4xf32>
    %146 = tpu.matmul %143, %145, %cst_177 {dimension_numbers = #tpu.dot_dimension_numbers<[1], [0], [0], [1], [0, 0, 1, 1], [], []>} : vector<256x12xf32>, vector<12x4xf32>, vector<256x4xf32> -> vector<256x4xf32>
    %147 = arith.addf %141, %146 : vector<256x4xf32>
    %c0_178 = arith.constant 0 : index
    %c2_179 = arith.constant 2 : index
    %c0_180 = arith.constant 0 : index
    %148 = vector.load %arg5[%c0_178, %c2_179, %c0_180] : memref<18x18x20xf32, #tpu.memory_space<vmem>>, vector<16x16x12xf32>
    %149 = vector.shape_cast %148 : vector<16x16x12xf32> to vector<256x12xf32>
    %c2_181 = arith.constant 2 : index
    %c2_182 = arith.constant 2 : index
    %c0_183 = arith.constant 0 : index
    %c0_184 = arith.constant 0 : index
    %150 = vector.load %arg2[%c2_181, %c2_182, %c0_183, %c0_184] : memref<5x9x20x4xf32, #tpu.memory_space<vmem>>, vector<1x1x12x4xf32>
    %151 = vector.shape_cast %150 : vector<1x1x12x4xf32> to vector<12x4xf32>
    %cst_185 = arith.constant dense<0.000000e+00> : vector<256x4xf32>
    %152 = tpu.matmul %149, %151, %cst_185 {dimension_numbers = #tpu.dot_dimension_numbers<[1], [0], [0], [1], [0, 0, 1, 1], [], []>} : vector<256x12xf32>, vector<12x4xf32>, vector<256x4xf32> -> vector<256x4xf32>
    %153 = arith.addf %147, %152 : vector<256x4xf32>
    %c1_186 = arith.constant 1 : index
    %c0_187 = arith.constant 0 : index
    %c0_188 = arith.constant 0 : index
    %154 = vector.load %arg5[%c1_186, %c0_187, %c0_188] : memref<18x18x20xf32, #tpu.memory_space<vmem>>, vector<16x16x12xf32>
    %155 = vector.shape_cast %154 : vector<16x16x12xf32> to vector<256x12xf32>
    %c2_189 = arith.constant 2 : index
    %c3_190 = arith.constant 3 : index
    %c0_191 = arith.constant 0 : index
    %c0_192 = arith.constant 0 : index
    %156 = vector.load %arg2[%c2_189, %c3_190, %c0_191, %c0_192] : memref<5x9x20x4xf32, #tpu.memory_space<vmem>>, vector<1x1x12x4xf32>
    %157 = vector.shape_cast %156 : vector<1x1x12x4xf32> to vector<12x4xf32>
    %cst_193 = arith.constant dense<0.000000e+00> : vector<256x4xf32>
    %158 = tpu.matmul %155, %157, %cst_193 {dimension_numbers = #tpu.dot_dimension_numbers<[1], [0], [0], [1], [0, 0, 1, 1], [], []>} : vector<256x12xf32>, vector<12x4xf32>, vector<256x4xf32> -> vector<256x4xf32>
    %159 = arith.addf %153, %158 : vector<256x4xf32>
    %c1_194 = arith.constant 1 : index
    %c1_195 = arith.constant 1 : index
    %c0_196 = arith.constant 0 : index
    %160 = vector.load %arg5[%c1_194, %c1_195, %c0_196] : memref<18x18x20xf32, #tpu.memory_space<vmem>>, vector<16x16x12xf32>
    %161 = vector.shape_cast %160 : vector<16x16x12xf32> to vector<256x12xf32>
    %c2_197 = arith.constant 2 : index
    %c4_198 = arith.constant 4 : index
    %c0_199 = arith.constant 0 : index
    %c0_200 = arith.constant 0 : index
    %162 = vector.load %arg2[%c2_197, %c4_198, %c0_199, %c0_200] : memref<5x9x20x4xf32, #tpu.memory_space<vmem>>, vector<1x1x12x4xf32>
    %163 = vector.shape_cast %162 : vector<1x1x12x4xf32> to vector<12x4xf32>
    %cst_201 = arith.constant dense<0.000000e+00> : vector<256x4xf32>
    %164 = tpu.matmul %161, %163, %cst_201 {dimension_numbers = #tpu.dot_dimension_numbers<[1], [0], [0], [1], [0, 0, 1, 1], [], []>} : vector<256x12xf32>, vector<12x4xf32>, vector<256x4xf32> -> vector<256x4xf32>
    %165 = arith.addf %159, %164 : vector<256x4xf32>
    %c1_202 = arith.constant 1 : index
    %c2_203 = arith.constant 2 : index
    %c0_204 = arith.constant 0 : index
    %166 = vector.load %arg5[%c1_202, %c2_203, %c0_204] : memref<18x18x20xf32, #tpu.memory_space<vmem>>, vector<16x16x12xf32>
    %167 = vector.shape_cast %166 : vector<16x16x12xf32> to vector<256x12xf32>
    %c2_205 = arith.constant 2 : index
    %c5_206 = arith.constant 5 : index
    %c0_207 = arith.constant 0 : index
    %c0_208 = arith.constant 0 : index
    %168 = vector.load %arg2[%c2_205, %c5_206, %c0_207, %c0_208] : memref<5x9x20x4xf32, #tpu.memory_space<vmem>>, vector<1x1x12x4xf32>
    %169 = vector.shape_cast %168 : vector<1x1x12x4xf32> to vector<12x4xf32>
    %cst_209 = arith.constant dense<0.000000e+00> : vector<256x4xf32>
    %170 = tpu.matmul %167, %169, %cst_209 {dimension_numbers = #tpu.dot_dimension_numbers<[1], [0], [0], [1], [0, 0, 1, 1], [], []>} : vector<256x12xf32>, vector<12x4xf32>, vector<256x4xf32> -> vector<256x4xf32>
    %171 = arith.addf %165, %170 : vector<256x4xf32>
    %c2_210 = arith.constant 2 : index
    %c0_211 = arith.constant 0 : index
    %c0_212 = arith.constant 0 : index
    %172 = vector.load %arg5[%c2_210, %c0_211, %c0_212] : memref<18x18x20xf32, #tpu.memory_space<vmem>>, vector<16x16x12xf32>
    %173 = vector.shape_cast %172 : vector<16x16x12xf32> to vector<256x12xf32>
    %c2_213 = arith.constant 2 : index
    %c6_214 = arith.constant 6 : index
    %c0_215 = arith.constant 0 : index
    %c0_216 = arith.constant 0 : index
    %174 = vector.load %arg2[%c2_213, %c6_214, %c0_215, %c0_216] : memref<5x9x20x4xf32, #tpu.memory_space<vmem>>, vector<1x1x12x4xf32>
    %175 = vector.shape_cast %174 : vector<1x1x12x4xf32> to vector<12x4xf32>
    %cst_217 = arith.constant dense<0.000000e+00> : vector<256x4xf32>
    %176 = tpu.matmul %173, %175, %cst_217 {dimension_numbers = #tpu.dot_dimension_numbers<[1], [0], [0], [1], [0, 0, 1, 1], [], []>} : vector<256x12xf32>, vector<12x4xf32>, vector<256x4xf32> -> vector<256x4xf32>
    %177 = arith.addf %171, %176 : vector<256x4xf32>
    %c2_218 = arith.constant 2 : index
    %c1_219 = arith.constant 1 : index
    %c0_220 = arith.constant 0 : index
    %178 = vector.load %arg5[%c2_218, %c1_219, %c0_220] : memref<18x18x20xf32, #tpu.memory_space<vmem>>, vector<16x16x12xf32>
    %179 = vector.shape_cast %178 : vector<16x16x12xf32> to vector<256x12xf32>
    %c2_221 = arith.constant 2 : index
    %c7_222 = arith.constant 7 : index
    %c0_223 = arith.constant 0 : index
    %c0_224 = arith.constant 0 : index
    %180 = vector.load %arg2[%c2_221, %c7_222, %c0_223, %c0_224] : memref<5x9x20x4xf32, #tpu.memory_space<vmem>>, vector<1x1x12x4xf32>
    %181 = vector.shape_cast %180 : vector<1x1x12x4xf32> to vector<12x4xf32>
    %cst_225 = arith.constant dense<0.000000e+00> : vector<256x4xf32>
    %182 = tpu.matmul %179, %181, %cst_225 {dimension_numbers = #tpu.dot_dimension_numbers<[1], [0], [0], [1], [0, 0, 1, 1], [], []>} : vector<256x12xf32>, vector<12x4xf32>, vector<256x4xf32> -> vector<256x4xf32>
    %183 = arith.addf %177, %182 : vector<256x4xf32>
    %c2_226 = arith.constant 2 : index
    %c2_227 = arith.constant 2 : index
    %c0_228 = arith.constant 0 : index
    %184 = vector.load %arg5[%c2_226, %c2_227, %c0_228] : memref<18x18x20xf32, #tpu.memory_space<vmem>>, vector<16x16x12xf32>
    %185 = vector.shape_cast %184 : vector<16x16x12xf32> to vector<256x12xf32>
    %c2_229 = arith.constant 2 : index
    %c8_230 = arith.constant 8 : index
    %c0_231 = arith.constant 0 : index
    %c0_232 = arith.constant 0 : index
    %186 = vector.load %arg2[%c2_229, %c8_230, %c0_231, %c0_232] : memref<5x9x20x4xf32, #tpu.memory_space<vmem>>, vector<1x1x12x4xf32>
    %187 = vector.shape_cast %186 : vector<1x1x12x4xf32> to vector<12x4xf32>
    %cst_233 = arith.constant dense<0.000000e+00> : vector<256x4xf32>
    %188 = tpu.matmul %185, %187, %cst_233 {dimension_numbers = #tpu.dot_dimension_numbers<[1], [0], [0], [1], [0, 0, 1, 1], [], []>} : vector<256x12xf32>, vector<12x4xf32>, vector<256x4xf32> -> vector<256x4xf32>
    %189 = arith.addf %183, %188 : vector<256x4xf32>
    %c2_234 = arith.constant 2 : index
    %c0_235 = arith.constant 0 : index
    %190 = vector.load %arg3[%c2_234, %c0_235] : memref<5x4xf32, #tpu.memory_space<vmem>>, vector<1x4xf32>
    %191 = vector.broadcast %190 : vector<1x4xf32> to vector<256x4xf32>
    %192 = arith.addf %189, %191 : vector<256x4xf32>
    %cst_236 = arith.constant 0.000000e+00 : f32
    %193 = vector.broadcast %cst_236 : f32 to vector<256x4xf32>
    %194 = arith.cmpf ogt, %192, %193 : vector<256x4xf32>
    %cst_237 = arith.constant 0.00999999977 : f32
    %195 = vector.broadcast %cst_237 : f32 to vector<256x4xf32>
    %196 = arith.mulf %195, %192 : vector<256x4xf32>
    %197 = arith.select %194, %192, %196 : vector<256x4xi1>, vector<256x4xf32>
    %198 = vector.shape_cast %197 : vector<256x4xf32> to vector<16x16x4xf32>
    %c1_238 = arith.constant 1 : index
    %c1_239 = arith.constant 1 : index
    %c12 = arith.constant 12 : index
    %199 = vector.load %arg5[%c1_238, %c1_239, %c12] : memref<18x18x20xf32, #tpu.memory_space<vmem>>, vector<16x16x4xf32>
    tpu.vector_store %arg5[%c1_238, %c1_239, %c12], %198 {strides = array<i32>} : memref<18x18x20xf32, #tpu.memory_space<vmem>>, vector<16x16x4xf32>,
    %cst_240 = arith.constant 0.000000e+00 : f32
    %200 = vector.broadcast %cst_240 : f32 to vector<256x4xf32>
    %c0_241 = arith.constant 0 : index
    %c0_242 = arith.constant 0 : index
    %c0_243 = arith.constant 0 : index
    %201 = vector.load %arg5[%c0_241, %c0_242, %c0_243] : memref<18x18x20xf32, #tpu.memory_space<vmem>>, vector<16x16x16xf32>
    %202 = vector.shape_cast %201 : vector<16x16x16xf32> to vector<256x16xf32>
    %c3_244 = arith.constant 3 : index
    %c0_245 = arith.constant 0 : index
    %c0_246 = arith.constant 0 : index
    %c0_247 = arith.constant 0 : index
    %203 = vector.load %arg2[%c3_244, %c0_245, %c0_246, %c0_247] : memref<5x9x20x4xf32, #tpu.memory_space<vmem>>, vector<1x1x16x4xf32>
    %204 = vector.shape_cast %203 : vector<1x1x16x4xf32> to vector<16x4xf32>
    %cst_248 = arith.constant dense<0.000000e+00> : vector<256x4xf32>
    %205 = tpu.matmul %202, %204, %cst_248 {dimension_numbers = #tpu.dot_dimension_numbers<[1], [0], [0], [1], [0, 0, 1, 1], [], []>} : vector<256x16xf32>, vector<16x4xf32>, vector<256x4xf32> -> vector<256x4xf32>
    %206 = arith.addf %200, %205 : vector<256x4xf32>
    %c0_249 = arith.constant 0 : index
    %c1_250 = arith.constant 1 : index
    %c0_251 = arith.constant 0 : index
    %207 = vector.load %arg5[%c0_249, %c1_250, %c0_251] : memref<18x18x20xf32, #tpu.memory_space<vmem>>, vector<16x16x16xf32>
    %208 = vector.shape_cast %207 : vector<16x16x16xf32> to vector<256x16xf32>
    %c3_252 = arith.constant 3 : index
    %c1_253 = arith.constant 1 : index
    %c0_254 = arith.constant 0 : index
    %c0_255 = arith.constant 0 : index
    %209 = vector.load %arg2[%c3_252, %c1_253, %c0_254, %c0_255] : memref<5x9x20x4xf32, #tpu.memory_space<vmem>>, vector<1x1x16x4xf32>
    %210 = vector.shape_cast %209 : vector<1x1x16x4xf32> to vector<16x4xf32>
    %cst_256 = arith.constant dense<0.000000e+00> : vector<256x4xf32>
    %211 = tpu.matmul %208, %210, %cst_256 {dimension_numbers = #tpu.dot_dimension_numbers<[1], [0], [0], [1], [0, 0, 1, 1], [], []>} : vector<256x16xf32>, vector<16x4xf32>, vector<256x4xf32> -> vector<256x4xf32>
    %212 = arith.addf %206, %211 : vector<256x4xf32>
    %c0_257 = arith.constant 0 : index
    %c2_258 = arith.constant 2 : index
    %c0_259 = arith.constant 0 : index
    %213 = vector.load %arg5[%c0_257, %c2_258, %c0_259] : memref<18x18x20xf32, #tpu.memory_space<vmem>>, vector<16x16x16xf32>
    %214 = vector.shape_cast %213 : vector<16x16x16xf32> to vector<256x16xf32>
    %c3_260 = arith.constant 3 : index
    %c2_261 = arith.constant 2 : index
    %c0_262 = arith.constant 0 : index
    %c0_263 = arith.constant 0 : index
    %215 = vector.load %arg2[%c3_260, %c2_261, %c0_262, %c0_263] : memref<5x9x20x4xf32, #tpu.memory_space<vmem>>, vector<1x1x16x4xf32>
    %216 = vector.shape_cast %215 : vector<1x1x16x4xf32> to vector<16x4xf32>
    %cst_264 = arith.constant dense<0.000000e+00> : vector<256x4xf32>
    %217 = tpu.matmul %214, %216, %cst_264 {dimension_numbers = #tpu.dot_dimension_numbers<[1], [0], [0], [1], [0, 0, 1, 1], [], []>} : vector<256x16xf32>, vector<16x4xf32>, vector<256x4xf32> -> vector<256x4xf32>
    %218 = arith.addf %212, %217 : vector<256x4xf32>
    %c1_265 = arith.constant 1 : index
    %c0_266 = arith.constant 0 : index
    %c0_267 = arith.constant 0 : index
    %219 = vector.load %arg5[%c1_265, %c0_266, %c0_267] : memref<18x18x20xf32, #tpu.memory_space<vmem>>, vector<16x16x16xf32>
    %220 = vector.shape_cast %219 : vector<16x16x16xf32> to vector<256x16xf32>
    %c3_268 = arith.constant 3 : index
    %c3_269 = arith.constant 3 : index
    %c0_270 = arith.constant 0 : index
    %c0_271 = arith.constant 0 : index
    %221 = vector.load %arg2[%c3_268, %c3_269, %c0_270, %c0_271] : memref<5x9x20x4xf32, #tpu.memory_space<vmem>>, vector<1x1x16x4xf32>
    %222 = vector.shape_cast %221 : vector<1x1x16x4xf32> to vector<16x4xf32>
    %cst_272 = arith.constant dense<0.000000e+00> : vector<256x4xf32>
    %223 = tpu.matmul %220, %222, %cst_272 {dimension_numbers = #tpu.dot_dimension_numbers<[1], [0], [0], [1], [0, 0, 1, 1], [], []>} : vector<256x16xf32>, vector<16x4xf32>, vector<256x4xf32> -> vector<256x4xf32>
    %224 = arith.addf %218, %223 : vector<256x4xf32>
    %c1_273 = arith.constant 1 : index
    %c1_274 = arith.constant 1 : index
    %c0_275 = arith.constant 0 : index
    %225 = vector.load %arg5[%c1_273, %c1_274, %c0_275] : memref<18x18x20xf32, #tpu.memory_space<vmem>>, vector<16x16x16xf32>
    %226 = vector.shape_cast %225 : vector<16x16x16xf32> to vector<256x16xf32>
    %c3_276 = arith.constant 3 : index
    %c4_277 = arith.constant 4 : index
    %c0_278 = arith.constant 0 : index
    %c0_279 = arith.constant 0 : index
    %227 = vector.load %arg2[%c3_276, %c4_277, %c0_278, %c0_279] : memref<5x9x20x4xf32, #tpu.memory_space<vmem>>, vector<1x1x16x4xf32>
    %228 = vector.shape_cast %227 : vector<1x1x16x4xf32> to vector<16x4xf32>
    %cst_280 = arith.constant dense<0.000000e+00> : vector<256x4xf32>
    %229 = tpu.matmul %226, %228, %cst_280 {dimension_numbers = #tpu.dot_dimension_numbers<[1], [0], [0], [1], [0, 0, 1, 1], [], []>} : vector<256x16xf32>, vector<16x4xf32>, vector<256x4xf32> -> vector<256x4xf32>
    %230 = arith.addf %224, %229 : vector<256x4xf32>
    %c1_281 = arith.constant 1 : index
    %c2_282 = arith.constant 2 : index
    %c0_283 = arith.constant 0 : index
    %231 = vector.load %arg5[%c1_281, %c2_282, %c0_283] : memref<18x18x20xf32, #tpu.memory_space<vmem>>, vector<16x16x16xf32>
    %232 = vector.shape_cast %231 : vector<16x16x16xf32> to vector<256x16xf32>
    %c3_284 = arith.constant 3 : index
    %c5_285 = arith.constant 5 : index
    %c0_286 = arith.constant 0 : index
    %c0_287 = arith.constant 0 : index
    %233 = vector.load %arg2[%c3_284, %c5_285, %c0_286, %c0_287] : memref<5x9x20x4xf32, #tpu.memory_space<vmem>>, vector<1x1x16x4xf32>
    %234 = vector.shape_cast %233 : vector<1x1x16x4xf32> to vector<16x4xf32>
    %cst_288 = arith.constant dense<0.000000e+00> : vector<256x4xf32>
    %235 = tpu.matmul %232, %234, %cst_288 {dimension_numbers = #tpu.dot_dimension_numbers<[1], [0], [0], [1], [0, 0, 1, 1], [], []>} : vector<256x16xf32>, vector<16x4xf32>, vector<256x4xf32> -> vector<256x4xf32>
    %236 = arith.addf %230, %235 : vector<256x4xf32>
    %c2_289 = arith.constant 2 : index
    %c0_290 = arith.constant 0 : index
    %c0_291 = arith.constant 0 : index
    %237 = vector.load %arg5[%c2_289, %c0_290, %c0_291] : memref<18x18x20xf32, #tpu.memory_space<vmem>>, vector<16x16x16xf32>
    %238 = vector.shape_cast %237 : vector<16x16x16xf32> to vector<256x16xf32>
    %c3_292 = arith.constant 3 : index
    %c6_293 = arith.constant 6 : index
    %c0_294 = arith.constant 0 : index
    %c0_295 = arith.constant 0 : index
    %239 = vector.load %arg2[%c3_292, %c6_293, %c0_294, %c0_295] : memref<5x9x20x4xf32, #tpu.memory_space<vmem>>, vector<1x1x16x4xf32>
    %240 = vector.shape_cast %239 : vector<1x1x16x4xf32> to vector<16x4xf32>
    %cst_296 = arith.constant dense<0.000000e+00> : vector<256x4xf32>
    %241 = tpu.matmul %238, %240, %cst_296 {dimension_numbers = #tpu.dot_dimension_numbers<[1], [0], [0], [1], [0, 0, 1, 1], [], []>} : vector<256x16xf32>, vector<16x4xf32>, vector<256x4xf32> -> vector<256x4xf32>
    %242 = arith.addf %236, %241 : vector<256x4xf32>
    %c2_297 = arith.constant 2 : index
    %c1_298 = arith.constant 1 : index
    %c0_299 = arith.constant 0 : index
    %243 = vector.load %arg5[%c2_297, %c1_298, %c0_299] : memref<18x18x20xf32, #tpu.memory_space<vmem>>, vector<16x16x16xf32>
    %244 = vector.shape_cast %243 : vector<16x16x16xf32> to vector<256x16xf32>
    %c3_300 = arith.constant 3 : index
    %c7_301 = arith.constant 7 : index
    %c0_302 = arith.constant 0 : index
    %c0_303 = arith.constant 0 : index
    %245 = vector.load %arg2[%c3_300, %c7_301, %c0_302, %c0_303] : memref<5x9x20x4xf32, #tpu.memory_space<vmem>>, vector<1x1x16x4xf32>
    %246 = vector.shape_cast %245 : vector<1x1x16x4xf32> to vector<16x4xf32>
    %cst_304 = arith.constant dense<0.000000e+00> : vector<256x4xf32>
    %247 = tpu.matmul %244, %246, %cst_304 {dimension_numbers = #tpu.dot_dimension_numbers<[1], [0], [0], [1], [0, 0, 1, 1], [], []>} : vector<256x16xf32>, vector<16x4xf32>, vector<256x4xf32> -> vector<256x4xf32>
    %248 = arith.addf %242, %247 : vector<256x4xf32>
    %c2_305 = arith.constant 2 : index
    %c2_306 = arith.constant 2 : index
    %c0_307 = arith.constant 0 : index
    %249 = vector.load %arg5[%c2_305, %c2_306, %c0_307] : memref<18x18x20xf32, #tpu.memory_space<vmem>>, vector<16x16x16xf32>
    %250 = vector.shape_cast %249 : vector<16x16x16xf32> to vector<256x16xf32>
    %c3_308 = arith.constant 3 : index
    %c8_309 = arith.constant 8 : index
    %c0_310 = arith.constant 0 : index
    %c0_311 = arith.constant 0 : index
    %251 = vector.load %arg2[%c3_308, %c8_309, %c0_310, %c0_311] : memref<5x9x20x4xf32, #tpu.memory_space<vmem>>, vector<1x1x16x4xf32>
    %252 = vector.shape_cast %251 : vector<1x1x16x4xf32> to vector<16x4xf32>
    %cst_312 = arith.constant dense<0.000000e+00> : vector<256x4xf32>
    %253 = tpu.matmul %250, %252, %cst_312 {dimension_numbers = #tpu.dot_dimension_numbers<[1], [0], [0], [1], [0, 0, 1, 1], [], []>} : vector<256x16xf32>, vector<16x4xf32>, vector<256x4xf32> -> vector<256x4xf32>
    %254 = arith.addf %248, %253 : vector<256x4xf32>
    %c3_313 = arith.constant 3 : index
    %c0_314 = arith.constant 0 : index
    %255 = vector.load %arg3[%c3_313, %c0_314] : memref<5x4xf32, #tpu.memory_space<vmem>>, vector<1x4xf32>
    %256 = vector.broadcast %255 : vector<1x4xf32> to vector<256x4xf32>
    %257 = arith.addf %254, %256 : vector<256x4xf32>
    %cst_315 = arith.constant 0.000000e+00 : f32
    %258 = vector.broadcast %cst_315 : f32 to vector<256x4xf32>
    %259 = arith.cmpf ogt, %257, %258 : vector<256x4xf32>
    %cst_316 = arith.constant 0.00999999977 : f32
    %260 = vector.broadcast %cst_316 : f32 to vector<256x4xf32>
    %261 = arith.mulf %260, %257 : vector<256x4xf32>
    %262 = arith.select %259, %257, %261 : vector<256x4xi1>, vector<256x4xf32>
    %263 = vector.shape_cast %262 : vector<256x4xf32> to vector<16x16x4xf32>
    %c1_317 = arith.constant 1 : index
    %c1_318 = arith.constant 1 : index
    %c16 = arith.constant 16 : index
    %264 = vector.load %arg5[%c1_317, %c1_318, %c16] : memref<18x18x20xf32, #tpu.memory_space<vmem>>, vector<16x16x4xf32>
    tpu.vector_store %arg5[%c1_317, %c1_318, %c16], %263 {strides = array<i32>} : memref<18x18x20xf32, #tpu.memory_space<vmem>>, vector<16x16x4xf32>,
    %cst_319 = arith.constant 0.000000e+00 : f32
    %265 = vector.broadcast %cst_319 : f32 to vector<256x4xf32>
    %c0_320 = arith.constant 0 : index
    %c0_321 = arith.constant 0 : index
    %c0_322 = arith.constant 0 : index
    %266 = vector.load %arg5[%c0_320, %c0_321, %c0_322] : memref<18x18x20xf32, #tpu.memory_space<vmem>>, vector<16x16x20xf32>
    %267 = vector.shape_cast %266 : vector<16x16x20xf32> to vector<256x20xf32>
    %c4_323 = arith.constant 4 : index
    %c0_324 = arith.constant 0 : index
    %c0_325 = arith.constant 0 : index
    %c0_326 = arith.constant 0 : index
    %268 = vector.load %arg2[%c4_323, %c0_324, %c0_325, %c0_326] : memref<5x9x20x4xf32, #tpu.memory_space<vmem>>, vector<1x1x20x4xf32>
    %269 = vector.shape_cast %268 : vector<1x1x20x4xf32> to vector<20x4xf32>
    %cst_327 = arith.constant dense<0.000000e+00> : vector<256x4xf32>
    %270 = tpu.matmul %267, %269, %cst_327 {dimension_numbers = #tpu.dot_dimension_numbers<[1], [0], [0], [1], [0, 0, 1, 1], [], []>} : vector<256x20xf32>, vector<20x4xf32>, vector<256x4xf32> -> vector<256x4xf32>
    %271 = arith.addf %265, %270 : vector<256x4xf32>
    %c0_328 = arith.constant 0 : index
    %c1_329 = arith.constant 1 : index
    %c0_330 = arith.constant 0 : index
    %272 = vector.load %arg5[%c0_328, %c1_329, %c0_330] : memref<18x18x20xf32, #tpu.memory_space<vmem>>, vector<16x16x20xf32>
    %273 = vector.shape_cast %272 : vector<16x16x20xf32> to vector<256x20xf32>
    %c4_331 = arith.constant 4 : index
    %c1_332 = arith.constant 1 : index
    %c0_333 = arith.constant 0 : index
    %c0_334 = arith.constant 0 : index
    %274 = vector.load %arg2[%c4_331, %c1_332, %c0_333, %c0_334] : memref<5x9x20x4xf32, #tpu.memory_space<vmem>>, vector<1x1x20x4xf32>
    %275 = vector.shape_cast %274 : vector<1x1x20x4xf32> to vector<20x4xf32>
    %cst_335 = arith.constant dense<0.000000e+00> : vector<256x4xf32>
    %276 = tpu.matmul %273, %275, %cst_335 {dimension_numbers = #tpu.dot_dimension_numbers<[1], [0], [0], [1], [0, 0, 1, 1], [], []>} : vector<256x20xf32>, vector<20x4xf32>, vector<256x4xf32> -> vector<256x4xf32>
    %277 = arith.addf %271, %276 : vector<256x4xf32>
    %c0_336 = arith.constant 0 : index
    %c2_337 = arith.constant 2 : index
    %c0_338 = arith.constant 0 : index
    %278 = vector.load %arg5[%c0_336, %c2_337, %c0_338] : memref<18x18x20xf32, #tpu.memory_space<vmem>>, vector<16x16x20xf32>
    %279 = vector.shape_cast %278 : vector<16x16x20xf32> to vector<256x20xf32>
    %c4_339 = arith.constant 4 : index
    %c2_340 = arith.constant 2 : index
    %c0_341 = arith.constant 0 : index
    %c0_342 = arith.constant 0 : index
    %280 = vector.load %arg2[%c4_339, %c2_340, %c0_341, %c0_342] : memref<5x9x20x4xf32, #tpu.memory_space<vmem>>, vector<1x1x20x4xf32>
    %281 = vector.shape_cast %280 : vector<1x1x20x4xf32> to vector<20x4xf32>
    %cst_343 = arith.constant dense<0.000000e+00> : vector<256x4xf32>
    %282 = tpu.matmul %279, %281, %cst_343 {dimension_numbers = #tpu.dot_dimension_numbers<[1], [0], [0], [1], [0, 0, 1, 1], [], []>} : vector<256x20xf32>, vector<20x4xf32>, vector<256x4xf32> -> vector<256x4xf32>
    %283 = arith.addf %277, %282 : vector<256x4xf32>
    %c1_344 = arith.constant 1 : index
    %c0_345 = arith.constant 0 : index
    %c0_346 = arith.constant 0 : index
    %284 = vector.load %arg5[%c1_344, %c0_345, %c0_346] : memref<18x18x20xf32, #tpu.memory_space<vmem>>, vector<16x16x20xf32>
    %285 = vector.shape_cast %284 : vector<16x16x20xf32> to vector<256x20xf32>
    %c4_347 = arith.constant 4 : index
    %c3_348 = arith.constant 3 : index
    %c0_349 = arith.constant 0 : index
    %c0_350 = arith.constant 0 : index
    %286 = vector.load %arg2[%c4_347, %c3_348, %c0_349, %c0_350] : memref<5x9x20x4xf32, #tpu.memory_space<vmem>>, vector<1x1x20x4xf32>
    %287 = vector.shape_cast %286 : vector<1x1x20x4xf32> to vector<20x4xf32>
    %cst_351 = arith.constant dense<0.000000e+00> : vector<256x4xf32>
    %288 = tpu.matmul %285, %287, %cst_351 {dimension_numbers = #tpu.dot_dimension_numbers<[1], [0], [0], [1], [0, 0, 1, 1], [], []>} : vector<256x20xf32>, vector<20x4xf32>, vector<256x4xf32> -> vector<256x4xf32>
    %289 = arith.addf %283, %288 : vector<256x4xf32>
    %c1_352 = arith.constant 1 : index
    %c1_353 = arith.constant 1 : index
    %c0_354 = arith.constant 0 : index
    %290 = vector.load %arg5[%c1_352, %c1_353, %c0_354] : memref<18x18x20xf32, #tpu.memory_space<vmem>>, vector<16x16x20xf32>
    %291 = vector.shape_cast %290 : vector<16x16x20xf32> to vector<256x20xf32>
    %c4_355 = arith.constant 4 : index
    %c4_356 = arith.constant 4 : index
    %c0_357 = arith.constant 0 : index
    %c0_358 = arith.constant 0 : index
    %292 = vector.load %arg2[%c4_355, %c4_356, %c0_357, %c0_358] : memref<5x9x20x4xf32, #tpu.memory_space<vmem>>, vector<1x1x20x4xf32>
    %293 = vector.shape_cast %292 : vector<1x1x20x4xf32> to vector<20x4xf32>
    %cst_359 = arith.constant dense<0.000000e+00> : vector<256x4xf32>
    %294 = tpu.matmul %291, %293, %cst_359 {dimension_numbers = #tpu.dot_dimension_numbers<[1], [0], [0], [1], [0, 0, 1, 1], [], []>} : vector<256x20xf32>, vector<20x4xf32>, vector<256x4xf32> -> vector<256x4xf32>
    %295 = arith.addf %289, %294 : vector<256x4xf32>
    %c1_360 = arith.constant 1 : index
    %c2_361 = arith.constant 2 : index
    %c0_362 = arith.constant 0 : index
    %296 = vector.load %arg5[%c1_360, %c2_361, %c0_362] : memref<18x18x20xf32, #tpu.memory_space<vmem>>, vector<16x16x20xf32>
    %297 = vector.shape_cast %296 : vector<16x16x20xf32> to vector<256x20xf32>
    %c4_363 = arith.constant 4 : index
    %c5_364 = arith.constant 5 : index
    %c0_365 = arith.constant 0 : index
    %c0_366 = arith.constant 0 : index
    %298 = vector.load %arg2[%c4_363, %c5_364, %c0_365, %c0_366] : memref<5x9x20x4xf32, #tpu.memory_space<vmem>>, vector<1x1x20x4xf32>
    %299 = vector.shape_cast %298 : vector<1x1x20x4xf32> to vector<20x4xf32>
    %cst_367 = arith.constant dense<0.000000e+00> : vector<256x4xf32>
    %300 = tpu.matmul %297, %299, %cst_367 {dimension_numbers = #tpu.dot_dimension_numbers<[1], [0], [0], [1], [0, 0, 1, 1], [], []>} : vector<256x20xf32>, vector<20x4xf32>, vector<256x4xf32> -> vector<256x4xf32>
    %301 = arith.addf %295, %300 : vector<256x4xf32>
    %c2_368 = arith.constant 2 : index
    %c0_369 = arith.constant 0 : index
    %c0_370 = arith.constant 0 : index
    %302 = vector.load %arg5[%c2_368, %c0_369, %c0_370] : memref<18x18x20xf32, #tpu.memory_space<vmem>>, vector<16x16x20xf32>
    %303 = vector.shape_cast %302 : vector<16x16x20xf32> to vector<256x20xf32>
    %c4_371 = arith.constant 4 : index
    %c6_372 = arith.constant 6 : index
    %c0_373 = arith.constant 0 : index
    %c0_374 = arith.constant 0 : index
    %304 = vector.load %arg2[%c4_371, %c6_372, %c0_373, %c0_374] : memref<5x9x20x4xf32, #tpu.memory_space<vmem>>, vector<1x1x20x4xf32>
    %305 = vector.shape_cast %304 : vector<1x1x20x4xf32> to vector<20x4xf32>
    %cst_375 = arith.constant dense<0.000000e+00> : vector<256x4xf32>
    %306 = tpu.matmul %303, %305, %cst_375 {dimension_numbers = #tpu.dot_dimension_numbers<[1], [0], [0], [1], [0, 0, 1, 1], [], []>} : vector<256x20xf32>, vector<20x4xf32>, vector<256x4xf32> -> vector<256x4xf32>
    %307 = arith.addf %301, %306 : vector<256x4xf32>
    %c2_376 = arith.constant 2 : index
    %c1_377 = arith.constant 1 : index
    %c0_378 = arith.constant 0 : index
    %308 = vector.load %arg5[%c2_376, %c1_377, %c0_378] : memref<18x18x20xf32, #tpu.memory_space<vmem>>, vector<16x16x20xf32>
    %309 = vector.shape_cast %308 : vector<16x16x20xf32> to vector<256x20xf32>
    %c4_379 = arith.constant 4 : index
    %c7_380 = arith.constant 7 : index
    %c0_381 = arith.constant 0 : index
    %c0_382 = arith.constant 0 : index
    %310 = vector.load %arg2[%c4_379, %c7_380, %c0_381, %c0_382] : memref<5x9x20x4xf32, #tpu.memory_space<vmem>>, vector<1x1x20x4xf32>
    %311 = vector.shape_cast %310 : vector<1x1x20x4xf32> to vector<20x4xf32>
    %cst_383 = arith.constant dense<0.000000e+00> : vector<256x4xf32>
    %312 = tpu.matmul %309, %311, %cst_383 {dimension_numbers = #tpu.dot_dimension_numbers<[1], [0], [0], [1], [0, 0, 1, 1], [], []>} : vector<256x20xf32>, vector<20x4xf32>, vector<256x4xf32> -> vector<256x4xf32>
    %313 = arith.addf %307, %312 : vector<256x4xf32>
    %c2_384 = arith.constant 2 : index
    %c2_385 = arith.constant 2 : index
    %c0_386 = arith.constant 0 : index
    %314 = vector.load %arg5[%c2_384, %c2_385, %c0_386] : memref<18x18x20xf32, #tpu.memory_space<vmem>>, vector<16x16x20xf32>
    %315 = vector.shape_cast %314 : vector<16x16x20xf32> to vector<256x20xf32>
    %c4_387 = arith.constant 4 : index
    %c8_388 = arith.constant 8 : index
    %c0_389 = arith.constant 0 : index
    %c0_390 = arith.constant 0 : index
    %316 = vector.load %arg2[%c4_387, %c8_388, %c0_389, %c0_390] : memref<5x9x20x4xf32, #tpu.memory_space<vmem>>, vector<1x1x20x4xf32>
    %317 = vector.shape_cast %316 : vector<1x1x20x4xf32> to vector<20x4xf32>
    %cst_391 = arith.constant dense<0.000000e+00> : vector<256x4xf32>
    %318 = tpu.matmul %315, %317, %cst_391 {dimension_numbers = #tpu.dot_dimension_numbers<[1], [0], [0], [1], [0, 0, 1, 1], [], []>} : vector<256x20xf32>, vector<20x4xf32>, vector<256x4xf32> -> vector<256x4xf32>
    %319 = arith.addf %313, %318 : vector<256x4xf32>
    %c4_392 = arith.constant 4 : index
    %c0_393 = arith.constant 0 : index
    %320 = vector.load %arg3[%c4_392, %c0_393] : memref<5x4xf32, #tpu.memory_space<vmem>>, vector<1x4xf32>
    %321 = vector.broadcast %320 : vector<1x4xf32> to vector<256x4xf32>
    %322 = arith.addf %319, %321 : vector<256x4xf32>
    %c0_394 = arith.constant 0 : index
    %c0_395 = arith.constant 0 : index
    %c0_396 = arith.constant 0 : index
    %c0_397 = arith.constant 0 : index
    %323 = vector.load %arg1[%c0_394, %c0_395, %c0_396, %c0_397] : memref<1x16x16x4xf32, #tpu.memory_space<vmem>>, vector<1x16x16x4xf32>
    %324 = vector.shape_cast %323 : vector<1x16x16x4xf32> to vector<16x16x4xf32>
    %325 = vector.shape_cast %324 : vector<16x16x4xf32> to vector<256x4xf32>
    %cst_398 = arith.constant 2.000000e-01 : f32
    %326 = vector.broadcast %cst_398 : f32 to vector<256x4xf32>
    %327 = arith.mulf %322, %326 : vector<256x4xf32>
    %328 = arith.addf %327, %325 : vector<256x4xf32>
    %329 = vector.shape_cast %328 : vector<256x4xf32> to vector<16x16x4xf32>
    %c0_399 = arith.constant 0 : index
    %c0_400 = arith.constant 0 : index
    %c0_401 = arith.constant 0 : index
    %c0_402 = arith.constant 0 : index
    %330 = vector.load %arg4[%c0_399, %c0_400, %c0_401, %c0_402] : memref<1x16x16x4xf32, #tpu.memory_space<vmem>>, vector<1x16x16x4xf32>
    %331 = vector.shape_cast %330 : vector<1x16x16x4xf32> to vector<16x16x4xf32>
    %332 = vector.shape_cast %329 : vector<16x16x4xf32> to vector<1x16x16x4xf32>
    tpu.vector_store %arg4[%c0_399, %c0_400, %c0_401, %c0_402], %332 {strides = array<i32>} : memref<1x16x16x4xf32, #tpu.memory_space<vmem>>, vector<1x16x16x4xf32>,
    return
  }
  func.func @transform_0(%arg0: i32) -> (i32, i32, i32, i32) {
    %c0_i32 = arith.constant 0 : i32
    %c0_i32_0 = arith.constant 0 : i32
    %c0_i32_1 = arith.constant 0 : i32
    %c0_i32_2 = arith.constant 0 : i32
    return %arg0, %c0_i32, %c0_i32_0, %c0_i32_1 : i32, i32, i32, i32
  }
  func.func @transform_1(%arg0: i32) -> (i32, i32, i32, i32) {
    %c0_i32 = arith.constant 0 : i32
    %c0_i32_0 = arith.constant 0 : i32
    %c0_i32_1 = arith.constant 0 : i32
    %c0_i32_2 = arith.constant 0 : i32
    %c0_i32_3 = arith.constant 0 : i32
    return %c0_i32, %c0_i32_0, %c0_i32_1, %c0_i32_2 : i32, i32, i32, i32
  }
  func.func @transform_2(%arg0: i32) -> (i32, i32) {
    %c0_i32 = arith.constant 0 : i32
    %c0_i32_0 = arith.constant 0 : i32
    %c0_i32_1 = arith.constant 0 : i32
    return %c0_i32, %c0_i32_0 : i32, i32
  }
  func.func @transform_3(%arg0: i32) -> (i32, i32, i32, i32) {
    %c0_i32 = arith.constant 0 : i32
    %c0_i32_0 = arith.constant 0 : i32
    %c0_i32_1 = arith.constant 0 : i32
    %c0_i32_2 = arith.constant 0 : i32
    return %arg0, %c0_i32, %c0_i32_0, %c0_i32_1 : i32, i32, i32, i32
  }
}

</mosaic_0001>

<bundles_post_ra>
// kernel: tpu_custom_call.1
= control target key start
LH: loop header
LB: loop body
LE: loop exit
PB: predicated region body
PF: predicated region fallthrough
CT: control target
= control target key end

     0   :  { %s25769_s12 = smov 0   ;;  %s30627_s0 = inlined_call_operand.vmem [shape: f32[2,16,16,4], index: 0, kind: input, shape index: {}]   ;;  %s30628_s1 = inlined_call_operand.vmem [shape: f32[5,9,20,4], index: 1, kind: input, shape index: {}]   ;;  %s30629_s2 = inlined_call_operand.vmem [shape: f32[5,4], index: 2, kind: input, shape index: {}]   ;;  %s30630_s3 = inlined_call_operand.vmem [shape: f32[2,16,16,4], index: 3, kind: output, shape index: {}]  }
   0x1 LB: > { %s18905_s13 = sadd.s32 4294967295, %s25741_s12   ;;  %p18909_p0 = scmp.ge.s32.totalorder %s25741_s12, 1  ;;  %s25741_s12 = sphi %s25769_s12, %s13_s12  }
   0x2   : > { %p137_p1 = scmp.lt.s32.totalorder %s25741_s12, 3 }
   0x4   : > { %p138_p2 = pnand %p18909_p0, %p137_p1 }
   0x6   : > { %141 = sbr.rel (%p138_p2) target bundleno = 3960 (0xf78), region = 32 }
   0xd   : > { %v18914_v0 = vld [vmem:[%s30628_s1 + $0x18] sm:$0xf]  ;;  %vm456_vm0 = vcmask 1043456   ;;  %vm171_vm1 = vcmask 162816   ;;  %v25743_v1 = vmov 0.0   ;;  %vm174_vm2 = vcmask 156672  }
   0xe   : > { %21991 = vmatprep.subr.msk.mxu1 %vm456_vm0, %v18914_v0  ;;  %172 = vst.msk [vmem:[#allocation2] sm:$0xff] %vm171_vm1, %v25743_v1  ;;  %173 = vst.msk [vmem:[#allocation2 + $0x8] sm:$0xff] %vm171_vm1, %v25743_v1  ;;  %v25820_v2 = vld [vmem:[%s30628_s1 + $0x60] sm:$0xf]  ;;  %p25824_p3 = scmp.lt.s32.totalorder %s18905_s13, 1  ;;  %vm260_vm3 = vcmask 31744  }
   0xf   : > { %176 = vst.msk [vmem:[#allocation2 + $0x18] sm:$0xff] %vm171_vm1, %v25743_v1  ;;  %177 = vst.msk [vmem:[#allocation2 + $0x20] sm:$0xff] %vm171_vm1, %v25743_v1  ;;  %v25831_v3 = vld [vmem:[%s30628_s1 + $0x78] sm:$0xf]  ;;  %21992 = vmatpush3.msk.msra.mxu1 %vm456_vm0, %v18914_v0  ;;  %22191 = vmatprep.subr.msk.mxu0 %vm456_vm0, %v25820_v2  ;;  %v325_v4 = vld [vmem:[%s30628_s1] sm:$0xf] }
  0x10   : > { %179 = vst.msk [vmem:[#allocation2 + $0x30] sm:$0xff] %vm171_vm1, %v25743_v1  ;;  %180 = vst.msk [vmem:[#allocation2 + $0x38] sm:$0xff] %vm171_vm1, %v25743_v1  ;;  %22192 = vmatpush3.msk.msra.mxu0 %vm456_vm0, %v25820_v2  ;;  %s31340_s13 = smov (!%p25824_p3, %s18905_s13), 1  ;;  %22041 = vmatprep.subr.msk.mxu1 %vm456_vm0, %v325_v4  ;;  %v25882_v8 = vld [vmem:[%s30628_s1 + $0x30] sm:$0xf]  ;;  %vm4102_vm4 = vcmask 64512  }
  0x11   : > { %182 = vst.msk [vmem:[#allocation2 + $0x48] sm:$0xff] %vm171_vm1, %v25743_v1  ;;  %183 = vst.msk [vmem:[#allocation2 + $0x50] sm:$0xff] %vm171_vm1, %v25743_v1  ;;  %22241 = vmatprep.subr.msk.mxu0 %vm456_vm0, %v25831_v3  ;;  %s20468_s23 = sshll.u32 %s31340_s13, 8  ;;  %v25937_v33 = vld [vmem:[%s30628_s1 + $0x90] sm:$0xf]  ;;  %s25744_s18 = smov 4  }
  0x12   : > { %185 = vst.msk [vmem:[#allocation2 + $0x60] sm:$0xff] %vm171_vm1, %v25743_v1  ;;  %186 = vst.msk [vmem:[#allocation2 + $0x68] sm:$0xff] %vm171_vm1, %v25743_v1  ;;  %s25874_s26 = scalar_lea.vmem %s30627_s0, %s20468_s23  ;;  %v26066_v63 = vld [vmem:[%s30628_s1 + $0xa8] sm:$0xf]  ;;  %s25746_s20 = smov 8  }
  0x13   : > { %188 = vst.msk [vmem:[#allocation2 + $0x78] sm:$0xff] %vm171_vm1, %v25743_v1  ;;  %189 = vst.msk [vmem:[#allocation2 + $0x80] sm:$0xff] %vm171_vm1, %v25743_v1  ;;  %v227_v5 = vld [vmem:[%s25874_s26] sm:$0xff]  ;;  %v228_v6 = vld [vmem:[%s25874_s26 + $0x8] sm:$0xff]  ;;  %s25747_s11 = smov 12   ;;  %s25748_s6 = smov 16  }
  0x14   : > { %191 = vst.msk [vmem:[#allocation2 + $0x90] sm:$0xff] %vm171_vm1, %v25743_v1  ;;  %192 = vst.msk [vmem:[#allocation2 + $0x98] sm:$0xff] %vm171_vm1, %v25743_v1  ;;  %v229_v7 = vld [vmem:[%s25874_s26 + $0x10] sm:$0xff]  ;;  %v230_v10 = vld [vmem:[%s25874_s26 + $0x18] sm:$0xff]  ;;  %s30498_s9 = scalar_lea.vmem %s30630_s3, %s20468_s23 }
  0x15   : > { %194 = vst.msk [vmem:[#allocation2 + $0xa8] sm:$0xff] %vm171_vm1, %v25743_v1  ;;  %195 = vst.msk [vmem:[#allocation2 + $0xb0] sm:$0xff] %vm171_vm1, %v25743_v1  ;;  %v326_v9 = vld [vmem:[#allocation2 + $0x1] sm:$0xff]  ;;  %v233_v14 = vld [vmem:[%s25874_s26 + $0x30] sm:$0xff] }
  0x16   : > { %197 = vst.msk [vmem:[#allocation2 + $0xc0] sm:$0xff] %vm171_vm1, %v25743_v1  ;;  %198 = vst.msk [vmem:[#allocation2 + $0xc8] sm:$0xff] %vm171_vm1, %v25743_v1  ;;  %v231_v11 = vld [vmem:[%s25874_s26 + $0x20] sm:$0xff]  ;;  %21993 = vmatprep.mubr.msk.f32.mxu1 %vm260_vm3, %v326_v9  ;;  %v232_v13 = vld [vmem:[%s25874_s26 + $0x28] sm:$0xff] }
  0x17   : > { %200 = vst.msk [vmem:[#allocation2 + $0xd8] sm:$0xff] %vm171_vm1, %v25743_v1  ;;  %201 = vst.msk [vmem:[#allocation2 + $0xe0] sm:$0xff] %vm171_vm1, %v25743_v1  ;;  %v234_v15 = vld [vmem:[%s25874_s26 + $0x38] sm:$0xff]  ;;  %v235_v16 = vld [vmem:[%s25874_s26 + $0x40] sm:$0xff] }
  0x18   : > { %203 = vst.msk [vmem:[#allocation2 + $0xf0] sm:$0xff] %vm171_vm1, %v25743_v1  ;;  %204 = vst.msk [vmem:[#allocation2 + $0xf8] sm:$0xff] %vm171_vm1, %v25743_v1  ;;  %v236_v17 = vld [vmem:[%s25874_s26 + $0x48] sm:$0xff]  ;;  %v237_v18 = vld [vmem:[%s25874_s26 + $0x50] sm:$0xff] }
  0x19   : > { %206 = vst.msk [vmem:[#allocation2 + $0x108] sm:$0xff] %vm171_vm1, %v25743_v1  ;;  %207 = vst.msk [vmem:[#allocation2 + $0x110] sm:$0xff] %vm171_vm1, %v25743_v1  ;;  %v238_v19 = vld [vmem:[%s25874_s26 + $0x58] sm:$0xff]  ;;  %v239_v20 = vld [vmem:[%s25874_s26 + $0x60] sm:$0xff] }
  0x1a   : > { %209 = vst.msk [vmem:[#allocation2 + $0x120] sm:$0xff] %vm171_vm1, %v25743_v1  ;;  %210 = vst.msk [vmem:[#allocation2 + $0x128] sm:$0xff] %vm171_vm1, %v25743_v1  ;;  %v240_v21 = vld [vmem:[%s25874_s26 + $0x68] sm:$0xff]  ;;  %v241_v22 = vld [vmem:[%s25874_s26 + $0x70] sm:$0xff] }
  0x1b   : > { %212 = vst.msk [vmem:[#allocation2 + $0x138] sm:$0xff] %vm171_vm1, %v25743_v1  ;;  %213 = vst.msk [vmem:[#allocation2 + $0x140] sm:$0xff] %vm171_vm1, %v25743_v1  ;;  %v242_v23 = vld [vmem:[%s25874_s26 + $0x78] sm:$0xff]  ;;  %v243_v24 = vld [vmem:[%s25874_s26 + $0x80] sm:$0xff] }
  0x1c   : > { %215 = vst.msk [vmem:[#allocation2 + $0x150] sm:$0xff] %vm171_vm1, %v25743_v1  ;;  %216 = vst.msk [vmem:[#allocation2 + $0x158] sm:$0xff] %vm171_vm1, %v25743_v1  ;;  %v244_v25 = vld [vmem:[%s25874_s26 + $0x88] sm:$0xff]  ;;  %v245_v26 = vld [vmem:[%s25874_s26 + $0x90] sm:$0xff] }
  0x1d   : > { %218 = vst.msk [vmem:[#allocation2 + $0x168] sm:$0xff] %vm171_vm1, %v25743_v1  ;;  %219 = vst.msk [vmem:[#allocation2 + $0x170] sm:$0xff] %vm171_vm1, %v25743_v1  ;;  %v246_v27 = vld [vmem:[%s25874_s26 + $0x98] sm:$0xff]  ;;  %v247_v28 = vld [vmem:[%s25874_s26 + $0xa0] sm:$0xff] }
  0x1e   : > { %221 = vst.msk [vmem:[#allocation2 + $0x180] sm:$0xff] %vm171_vm1, %v25743_v1  ;;  %222 = vst.msk [vmem:[#allocation2 + $0x188] sm:$0xff] %vm171_vm1, %v25743_v1  ;;  %v248_v29 = vld [vmem:[%s25874_s26 + $0xa8] sm:$0xff]  ;;  %v249_v38 = vld [vmem:[%s25874_s26 + $0xb0] sm:$0xff] }
  0x1f   : > { %224 = vst.msk [vmem:[#allocation2 + $0x198] sm:$0xff] %vm171_vm1, %v25743_v1  ;;  %225 = vst.msk [vmem:[#allocation2 + $0x1a0] sm:$0xff] %vm171_vm1, %v25743_v1  ;;  %v250_v39 = vld [vmem:[%s25874_s26 + $0xb8] sm:$0xff]  ;;  %v251_v40 = vld [vmem:[%s25874_s26 + $0xc0] sm:$0xff] }
  0x20   : > { %175 = vst.msk [vmem:[#allocation2 + $0x10] sm:$0x3] %vm174_vm2, %v25743_v1  ;;  %178 = vst.msk [vmem:[#allocation2 + $0x28] sm:$0x3] %vm174_vm2, %v25743_v1  ;;  %v252_v42 = vld [vmem:[%s25874_s26 + $0xc8] sm:$0xff]  ;;  %v253_v44 = vld [vmem:[%s25874_s26 + $0xd0] sm:$0xff] }
  0x21   : > { %181 = vst.msk [vmem:[#allocation2 + $0x40] sm:$0x3] %vm174_vm2, %v25743_v1  ;;  %184 = vst.msk [vmem:[#allocation2 + $0x58] sm:$0x3] %vm174_vm2, %v25743_v1  ;;  %v254_v45 = vld [vmem:[%s25874_s26 + $0xd8] sm:$0xff]  ;;  %v255_v46 = vld [vmem:[%s25874_s26 + $0xe0] sm:$0xff] }
  0x22   : > { %187 = vst.msk [vmem:[#allocation2 + $0x70] sm:$0x3] %vm174_vm2, %v25743_v1  ;;  %190 = vst.msk [vmem:[#allocation2 + $0x88] sm:$0x3] %vm174_vm2, %v25743_v1  ;;  %v256_v47 = vld [vmem:[%s25874_s26 + $0xe8] sm:$0xff]  ;;  %v257_v57 = vld [vmem:[%s25874_s26 + $0xf0] sm:$0xff] }
  0x23   : > { %193 = vst.msk [vmem:[#allocation2 + $0xa0] sm:$0x3] %vm174_vm2, %v25743_v1  ;;  %196 = vst.msk [vmem:[#allocation2 + $0xb8] sm:$0x3] %vm174_vm2, %v25743_v1  ;;  %v258_v58 = vld [vmem:[%s25874_s26 + $0xf8] sm:$0xff] }
  0x24   : > { %199 = vst.msk [vmem:[#allocation2 + $0xd0] sm:$0x3] %vm174_vm2, %v25743_v1  ;;  %202 = vst.msk [vmem:[#allocation2 + $0xe8] sm:$0x3] %vm174_vm2, %v25743_v1 }
  0x25   : > { %205 = vst.msk [vmem:[#allocation2 + $0x100] sm:$0x3] %vm174_vm2, %v25743_v1  ;;  %208 = vst.msk [vmem:[#allocation2 + $0x118] sm:$0x3] %vm174_vm2, %v25743_v1 }
  0x26   : > { %211 = vst.msk [vmem:[#allocation2 + $0x130] sm:$0x3] %vm174_vm2, %v25743_v1  ;;  %214 = vst.msk [vmem:[#allocation2 + $0x148] sm:$0x3] %vm174_vm2, %v25743_v1 }
  0x27   : > { %217 = vst.msk [vmem:[#allocation2 + $0x160] sm:$0x3] %vm174_vm2, %v25743_v1  ;;  %220 = vst.msk [vmem:[#allocation2 + $0x178] sm:$0x3] %vm174_vm2, %v25743_v1  ;;  %v327_v12 = vld [vmem:[#allocation2 + $0x9] sm:$0xff] }
  0x28   : > { %223 = vst.msk [vmem:[#allocation2 + $0x190] sm:$0x3] %vm174_vm2, %v25743_v1  ;;  %226 = vst.msk [vmem:[#allocation2 + $0x1a8] sm:$0x3] %vm174_vm2, %v25743_v1  ;;  %21994 = vmatmul.mubr.msk.f32.vlgmr.msra.gmra.mrb[0].mxu1 %vm260_vm3, %v327_v12 }
  0x29   : > { %261 = vst.msk [vmem:[#allocation2 + $0x19] sm:$0xff] %vm260_vm3, %v227_v5  ;;  %262 = vst.msk [vmem:[#allocation2 + $0x21] sm:$0xff] %vm260_vm3, %v228_v6  ;;  %22042 = vmatpush3.msk.msra.mxu1 %vm456_vm0, %v325_v4 }
  0x2a   : > { %263 = vst.msk [vmem:[#allocation2 + $0x31] sm:$0xff] %vm260_vm3, %v229_v7  ;;  %264 = vst.msk [vmem:[#allocation2 + $0x39] sm:$0xff] %vm260_vm3, %v230_v10  ;;  %22091 = vmatprep.subr.msk.mxu1 %vm456_vm0, %v25882_v8 }
  0x2b   : > { %265 = vst.msk [vmem:[#allocation2 + $0x49] sm:$0xff] %vm260_vm3, %v231_v11  ;;  %266 = vst.msk [vmem:[#allocation2 + $0x51] sm:$0xff] %vm260_vm3, %v232_v13 }
  0x2c   : > { %267 = vst.msk [vmem:[#allocation2 + $0x61] sm:$0xff] %vm260_vm3, %v233_v14  ;;  %268 = vst.msk [vmem:[#allocation2 + $0x69] sm:$0xff] %vm260_vm3, %v234_v15 }
  0x2d   : > { %269 = vst.msk [vmem:[#allocation2 + $0x79] sm:$0xff] %vm260_vm3, %v235_v16  ;;  %270 = vst.msk [vmem:[#allocation2 + $0x81] sm:$0xff] %vm260_vm3, %v236_v17 }
  0x2e   : > { %271 = vst.msk [vmem:[#allocation2 + $0x91] sm:$0xff] %vm260_vm3, %v237_v18  ;;  %272 = vst.msk [vmem:[#allocation2 + $0x99] sm:$0xff] %vm260_vm3, %v238_v19 }
  0x2f   : > { %273 = vst.msk [vmem:[#allocation2 + $0xa9] sm:$0xff] %vm260_vm3, %v239_v20  ;;  %274 = vst.msk [vmem:[#allocation2 + $0xb1] sm:$0xff] %vm260_vm3, %v240_v21 }
  0x30   : > { %275 = vst.msk [vmem:[#allocation2 + $0xc1] sm:$0xff] %vm260_vm3, %v241_v22  ;;  %276 = vst.msk [vmem:[#allocation2 + $0xc9] sm:$0xff] %vm260_vm3, %v242_v23  ;;  %v328_v30 = vld [vmem:[#allocation2 + $0x19] sm:$0xff]  ;;  %v329_v31 = vld [vmem:[#allocation2 + $0x21] sm:$0xff] }
  0x31   : > { %277 = vst.msk [vmem:[#allocation2 + $0xd9] sm:$0xff] %vm260_vm3, %v243_v24  ;;  %278 = vst.msk [vmem:[#allocation2 + $0xe1] sm:$0xff] %vm260_vm3, %v244_v25  ;;  %v25927_v32 = vld [vmem:[#allocation2 + $0x31] sm:$0xff]  ;;  %21996 = vmatprep.mubr.msk.f32.mxu1 %vm260_vm3, %v328_v30  ;;  %22193 = vmatprep.mubr.msk.f32.mxu0 %vm260_vm3, %v328_v30  ;;  %v25945_v34 = vld [vmem:[#allocation2 + $0x39] sm:$0xff] }
  0x32   : > { %279 = vst.msk [vmem:[#allocation2 + $0xf1] sm:$0xff] %vm260_vm3, %v245_v26  ;;  %280 = vst.msk [vmem:[#allocation2 + $0xf9] sm:$0xff] %vm260_vm3, %v246_v27  ;;  %21997 = vmatmul.mubr.msk.f32.gmra.mrb[2].mxu1 %vm260_vm3, %v329_v31  ;;  %22194 = vmatmul.mubr.msk.f32.vlgmr.msra.gmra.mrb[0].mxu0 %vm260_vm3, %v329_v31  ;;  %v25949_v35 = vld [vmem:[#allocation2 + $0x49] sm:$0xff]  ;;  %v25961_v36 = vld [vmem:[#allocation2 + $0x51] sm:$0xff] }
  0x33   : > { %281 = vst.msk [vmem:[#allocation2 + $0x109] sm:$0xff] %vm260_vm3, %v247_v28  ;;  %282 = vst.msk [vmem:[#allocation2 + $0x111] sm:$0xff] %vm260_vm3, %v248_v29  ;;  %22242 = vmatpush3.msk.msra.mxu0 %vm456_vm0, %v25831_v3  ;;  %21999 = vmatprep.mubr.msk.f32.mxu1 %vm260_vm3, %v25927_v32  ;;  %v25963_v37 = vld [vmem:[#allocation2 + $0x61] sm:$0xff]  ;;  %v25977_v41 = vld [vmem:[#allocation2 + $0x69] sm:$0xff] }
  0x34   : > { %22196 = vmatprep.mubr.msk.f32.mxu0 %vm260_vm3, %v25927_v32  ;;  %22291 = vmatprep.subr.msk.mxu0 %vm456_vm0, %v25937_v33  ;;  %283 = vst.msk [vmem:[#allocation2 + $0x121] sm:$0xff] %vm260_vm3, %v249_v38  ;;  %284 = vst.msk [vmem:[#allocation2 + $0x129] sm:$0xff] %vm260_vm3, %v250_v39  ;;  %v25982_v43 = vld [vmem:[#allocation2 + $0x79] sm:$0xff]  ;;  %v26000_v48 = vld [vmem:[#allocation2 + $0x81] sm:$0xff] }
  0x35   : > { %285 = vst.msk [vmem:[#allocation2 + $0x139] sm:$0xff] %vm260_vm3, %v251_v40  ;;  %286 = vst.msk [vmem:[#allocation2 + $0x141] sm:$0xff] %vm260_vm3, %v252_v42  ;;  %v26003_v49 = vld [vmem:[#allocation2 + $0x91] sm:$0xff]  ;;  %v26013_v50 = vld [vmem:[#allocation2 + $0x99] sm:$0xff] }
  0x36   : > { %22000 = vmatmul.mubr.msk.f32.gmra.mrb[4].mxu1 %vm260_vm3, %v25945_v34  ;;  %22197 = vmatmul.mubr.msk.f32.gmra.mrb[2].mxu0 %vm260_vm3, %v25945_v34  ;;  %287 = vst.msk [vmem:[#allocation2 + $0x151] sm:$0xff] %vm260_vm3, %v253_v44  ;;  %288 = vst.msk [vmem:[#allocation2 + $0x159] sm:$0xff] %vm260_vm3, %v254_v45  ;;  %v26015_v51 = vld [vmem:[#allocation2 + $0xa9] sm:$0xff]  ;;  %v26025_v52 = vld [vmem:[#allocation2 + $0xb1] sm:$0xff] }
  0x37   : > { %22002 = vmatprep.mubr.msk.f32.mxu1 %vm260_vm3, %v25949_v35  ;;  %22199 = vmatprep.mubr.msk.f32.mxu0 %vm260_vm3, %v25949_v35  ;;  %289 = vst.msk [vmem:[#allocation2 + $0x169] sm:$0xff] %vm260_vm3, %v255_v46  ;;  %290 = vst.msk [vmem:[#allocation2 + $0x171] sm:$0xff] %vm260_vm3, %v256_v47  ;;  %v26027_v53 = vld [vmem:[#allocation2 + $0xc1] sm:$0xff]  ;;  %v26037_v54 = vld [vmem:[#allocation2 + $0xc9] sm:$0xff] }
  0x38   : > { %30930 = vst [vmem:[#allocation3_spill] sm:$0xff] %v26037_v54  ;;  %v26039_v55 = vld [vmem:[#allocation2 + $0x1a] sm:$0xff]  ;;  %291 = vst.msk [vmem:[#allocation2 + $0x181] sm:$0xff] %vm260_vm3, %v257_v57  ;;  %v26057_v60 = vld [vmem:[#allocation2 + $0x22] sm:$0xff] }
  0x39   : > { %v26041_v56 = vld [vmem:[#allocation2 + $0xd9] sm:$0xff]  ;;  %292 = vst.msk [vmem:[#allocation2 + $0x189] sm:$0xff] %vm260_vm3, %v258_v58  ;;  %v26055_v59 = vld [vmem:[#allocation2 + $0xe1] sm:$0xff]  ;;  %v26059_v61 = vld [vmem:[#allocation2 + $0xf1] sm:$0xff] }
  0x3a   : > { %22003 = vmatmul.mubr.msk.f32.gmra.mrb[6].mxu1 %vm260_vm3, %v25961_v36  ;;  %22200 = vmatmul.mubr.msk.f32.gmra.mrb[4].mxu0 %vm260_vm3, %v25961_v36  ;;  %30931 = vst [vmem:[#allocation4_spill] sm:$0xff] %v26041_v56  ;;  %30932 = vst [vmem:[#allocation5_spill] sm:$0xff] %v26055_v59  ;;  %v26061_v62 = vld [vmem:[#allocation2 + $0x32] sm:$0xff]  ;;  %v26078_v1 = vld [vmem:[#allocation2 + $0x3a] sm:$0xff] }
  0x3b   : > { %22005 = vmatprep.mubr.msk.f32.mxu1 %vm260_vm3, %v25963_v37  ;;  %22202 = vmatprep.mubr.msk.f32.mxu0 %vm260_vm3, %v25963_v37  ;;  %30933 = vst [vmem:[#allocation6_spill] sm:$0xff] %v26059_v61  ;;  %v26076_v0 = vld [vmem:[#allocation2 + $0xf9] sm:$0xff]  ;;  %v26082_v3 = vld [vmem:[#allocation2 + $0x109] sm:$0xff]  ;;  %v26096_v5 = vld [vmem:[#allocation2 + $0x111] sm:$0xff] }
  0x3c   : > { %30934 = vst [vmem:[#allocation7_spill] sm:$0xff] %v26076_v0  ;;  %30935 = vst [vmem:[#allocation8_spill] sm:$0xff] %v26082_v3  ;;  %v26084_v4 = vld [vmem:[#allocation2 + $0x4a] sm:$0xff]  ;;  %v26098_v6 = vld [vmem:[#allocation2 + $0x52] sm:$0xff] }
  0x3d   : > { %30936 = vst [vmem:[#allocation9_spill] sm:$0xff] %v26096_v5  ;;  %v26100_v7 = vld [vmem:[#allocation2 + $0x121] sm:$0xff]  ;;  %v26112_v10 = vld [vmem:[#allocation2 + $0x129] sm:$0xff]  ;;  %v26116_v12 = vld [vmem:[#allocation2 + $0x139] sm:$0xff] }
  0x3e   : > { %22006 = vmatmul.mubr.msk.f32.gmra.mrb[8].mxu1 %vm260_vm3, %v25977_v41  ;;  %22203 = vmatmul.mubr.msk.f32.gmra.mrb[6].mxu0 %vm260_vm3, %v25977_v41  ;;  %30937 = vst [vmem:[#allocation10_spill] sm:$0xff] %v26100_v7  ;;  %v26102_v9 = vld [vmem:[#allocation2 + $0x62] sm:$0xff]  ;;  %30938 = vst [vmem:[#allocation11_spill] sm:$0xff] %v26112_v10  ;;  %v26114_v11 = vld [vmem:[#allocation2 + $0x6a] sm:$0xff] }
  0x3f   : > { %22008 = vmatprep.mubr.msk.f32.mxu1 %vm260_vm3, %v25982_v43  ;;  %22205 = vmatprep.mubr.msk.f32.mxu0 %vm260_vm3, %v25982_v43  ;;  %30939 = vst [vmem:[#allocation12_spill] sm:$0xff] %v26116_v12  ;;  %v26118_v13 = vld [vmem:[#allocation2 + $0x7a] sm:$0xff]  ;;  %v26130_v15 = vld [vmem:[#allocation2 + $0x82] sm:$0xff]  ;;  %v26132_v16 = vld [vmem:[#allocation2 + $0x151] sm:$0xff] }
  0x40   : > { %v26128_v14 = vld [vmem:[#allocation2 + $0x141] sm:$0xff]  ;;  %30941 = vst [vmem:[#allocation14_spill] sm:$0xff] %v26132_v16  ;;  %v26134_v17 = vld [vmem:[#allocation2 + $0x92] sm:$0xff]  ;;  %v26148_v20 = vld [vmem:[#allocation2 + $0x169] sm:$0xff] }
  0x41   : > { %30940 = vst [vmem:[#allocation13_spill] sm:$0xff] %v26128_v14  ;;  %v26144_v18 = vld [vmem:[#allocation2 + $0x159] sm:$0xff]  ;;  %30943 = vst [vmem:[#allocation16_spill] sm:$0xff] %v26148_v20  ;;  %v26150_v21 = vld [vmem:[#allocation2 + $0xaa] sm:$0xff] }
  0x42   : > { %22009 = vmatmul.mubr.msk.f32.gmra.mrb[10].mxu1 %vm260_vm3, %v26000_v48  ;;  %22206 = vmatmul.mubr.msk.f32.gmra.mrb[8].mxu0 %vm260_vm3, %v26000_v48  ;;  %30942 = vst [vmem:[#allocation15_spill] sm:$0xff] %v26144_v18  ;;  %v26146_v19 = vld [vmem:[#allocation2 + $0x9a] sm:$0xff]  ;;  %v26160_v22 = vld [vmem:[#allocation2 + $0x171] sm:$0xff]  ;;  %v26164_v25 = vld [vmem:[#allocation2 + $0xc2] sm:$0xff] }
  0x43   : > { %22011 = vmatprep.mubr.msk.f32.mxu1 %vm260_vm3, %v26003_v49  ;;  %22208 = vmatprep.mubr.msk.f32.mxu0 %vm260_vm3, %v26003_v49  ;;  %30944 = vst [vmem:[#allocation17_spill] sm:$0xff] %v26160_v22  ;;  %v26162_v23 = vld [vmem:[#allocation2 + $0xb2] sm:$0xff]  ;;  %v293_v24 = vld [vmem:[#allocation2] sm:$0xff]  ;;  %v294_v26 = vld [vmem:[#allocation2 + $0x8] sm:$0xff] }
  0x44   : > { %v26173_v27 = vld [vmem:[#allocation2 + $0xca] sm:$0xff]  ;;  %v26175_v28 = vld [vmem:[#allocation2 + $0x18] sm:$0xff]  ;;  %v26191_v31 = vld [vmem:[#allocation2 + $0x20] sm:$0xff] }
  0x45   : > { %30945 = vst [vmem:[#allocation18_spill] sm:$0xff] %v26175_v28  ;;  %v26177_v29 = vld [vmem:[#allocation2 + $0xda] sm:$0xff]  ;;  %v26185_v30 = vld [vmem:[%s30628_s1 + $0x48] sm:$0xf]  ;;  %30946 = vst [vmem:[#allocation19_spill] sm:$0xff] %v26191_v31 }
  0x46   : > { %22012 = vmatmul.mubr.msk.f32.gmra.mrb[12].mxu1 %vm260_vm3, %v26013_v50  ;;  %22209 = vmatmul.mubr.msk.f32.gmra.mrb[10].mxu0 %vm260_vm3, %v26013_v50  ;;  %v26195_v38 = vld [vmem:[#allocation2 + $0x30] sm:$0xff]  ;;  %v26211_v40 = vld [vmem:[#allocation2 + $0x38] sm:$0xff]  ;;  %v26215_v42 = vld [vmem:[#allocation2 + $0x48] sm:$0xff] }
  0x47   : > { %22014 = vmatprep.mubr.msk.f32.mxu1 %vm260_vm3, %v26015_v51  ;;  %22211 = vmatprep.mubr.msk.f32.mxu0 %vm260_vm3, %v26015_v51  ;;  %30947 = vst [vmem:[#allocation20_spill] sm:$0xff] %v26195_v38  ;;  %v26199_v39 = vld [vmem:[#allocation2 + $0xf2] sm:$0xff]  ;;  %30948 = vst [vmem:[#allocation21_spill] sm:$0xff] %v26211_v40  ;;  %v26217_v44 = vld [vmem:[#allocation2 + $0x10a] sm:$0xff] }
  0x48   : > { %30949 = vst [vmem:[#allocation22_spill] sm:$0xff] %v26215_v42  ;;  %v26227_v45 = vld [vmem:[#allocation2 + $0x50] sm:$0xff]  ;;  %v26231_v47 = vld [vmem:[#allocation2 + $0x60] sm:$0xff]  ;;  %v26243_v58 = vld [vmem:[#allocation2 + $0x68] sm:$0xff] }
  0x49   : > { %30950 = vst [vmem:[#allocation23_spill] sm:$0xff] %v26227_v45  ;;  %v26229_v46 = vld [vmem:[#allocation2 + $0x112] sm:$0xff]  ;;  %30951 = vst [vmem:[#allocation24_spill] sm:$0xff] %v26231_v47  ;;  %v26233_v57 = vld [vmem:[#allocation2 + $0x122] sm:$0xff] }
  0x4a   : > { %22015 = vmatmul.mubr.msk.f32.gmra.mrb[14].mxu1 %vm260_vm3, %v26025_v52  ;;  %22212 = vmatmul.mubr.msk.f32.gmra.mrb[12].mxu0 %vm260_vm3, %v26025_v52  ;;  %30952 = vst [vmem:[#allocation25_spill] sm:$0xff] %v26243_v58 }
  0x4b   : > { %22017 = vmatprep.mubr.msk.f32.mxu1 %vm260_vm3, %v26027_v53  ;;  %22214 = vmatprep.mubr.msk.f32.mxu0 %vm260_vm3, %v26027_v53 }
  0x4e   : > { %22018 = vmatmul.mubr.msk.f32.gmra.mrb[16].mxu1 %vm260_vm3, %v26037_v54  ;;  %22215 = vmatmul.mubr.msk.f32.gmra.mrb[14].mxu0 %vm260_vm3, %v26037_v54  ;;  %v26321_v54 = vld [vmem:[#allocation2 + $0xe0] sm:$0xff] }
  0x4f   : > { %22020 = vmatprep.mubr.msk.f32.mxu1 %vm260_vm3, %v26041_v56  ;;  %22243 = vmatprep.mubr.msk.f32.mxu0 %vm260_vm3, %v26039_v55  ;;  %v26309_v56 = vld [vmem:[#allocation2 + $0x18a] sm:$0xff] }
  0x50   : > { %30960 = vst [vmem:[#allocation33_spill] sm:$0xff] %v26309_v56 }
  0x52   : > { %22021 = vmatmul.mubr.msk.f32.gmra.mrb[18].mxu1 %vm260_vm3, %v26055_v59  ;;  %22244 = vmatmul.mubr.msk.f32.vlgmr.msra.gmra.mrb[0].mxu0 %vm260_vm3, %v26057_v60  ;;  %v26297_v59 = vld [vmem:[#allocation2 + $0x182] sm:$0xff] }
  0x53   : > { %22292 = vmatpush3.msk.msra.mxu0 %vm456_vm0, %v25937_v33  ;;  %22023 = vmatprep.mubr.msk.f32.mxu1 %vm260_vm3, %v26059_v61  ;;  %v26193_v33 = vld [vmem:[#allocation2 + $0xe2] sm:$0xff]  ;;  %30959 = vst [vmem:[#allocation32_spill] sm:$0xff] %v26297_v59 }
  0x54   : > { %22246 = vmatprep.mubr.msk.f32.mxu0 %vm260_vm3, %v26061_v62  ;;  %22341 = vmatprep.subr.msk.mxu0 %vm456_vm0, %v26066_v63  ;;  %v26295_v61 = vld [vmem:[#allocation2 + $0xc0] sm:$0xff] }
  0x56   : > { %22024 = vmatmul.mubr.msk.f32.gmra.mrb[20].mxu1 %vm260_vm3, %v26076_v0  ;;  %22247 = vmatmul.mubr.msk.f32.gmra.mrb[2].mxu0 %vm260_vm3, %v26078_v1  ;;  %v26293_v0 = vld [vmem:[#allocation2 + $0x172] sm:$0xff] }
  0x57   : > { %22026 = vmatprep.mubr.msk.f32.mxu1 %vm260_vm3, %v26082_v3  ;;  %22249 = vmatprep.mubr.msk.f32.mxu0 %vm260_vm3, %v26084_v4  ;;  %v26291_v3 = vld [vmem:[#allocation2 + $0xb0] sm:$0xff]  ;;  %30958 = vst [vmem:[#allocation31_spill] sm:$0xff] %v26293_v0 }
  0x58   : > { %30957 = vst [vmem:[#allocation30_spill] sm:$0xff] %v26291_v3 }
  0x5a   : > { %22027 = vmatmul.mubr.msk.f32.gmra.mrb[22].mxu1 %vm260_vm3, %v26096_v5  ;;  %22250 = vmatmul.mubr.msk.f32.gmra.mrb[4].mxu0 %vm260_vm3, %v26098_v6  ;;  %v26281_v5 = vld [vmem:[#allocation2 + $0x16a] sm:$0xff] }
  0x5b   : > { %22029 = vmatprep.mubr.msk.f32.mxu1 %vm260_vm3, %v26100_v7  ;;  %22252 = vmatprep.mubr.msk.f32.mxu0 %vm260_vm3, %v26102_v9  ;;  %v26279_v7 = vld [vmem:[#allocation2 + $0xa8] sm:$0xff] }
  0x5e   : > { %22030 = vmatmul.mubr.msk.f32.gmra.mrb[24].mxu1 %vm260_vm3, %v26112_v10  ;;  %22253 = vmatmul.mubr.msk.f32.gmra.mrb[6].mxu0 %vm260_vm3, %v26114_v11  ;;  %v26277_v10 = vld [vmem:[#allocation2 + $0x15a] sm:$0xff] }
  0x5f   : > { %22032 = vmatprep.mubr.msk.f32.mxu1 %vm260_vm3, %v26116_v12  ;;  %22255 = vmatprep.mubr.msk.f32.mxu0 %vm260_vm3, %v26118_v13  ;;  %v26275_v12 = vld [vmem:[#allocation2 + $0x98] sm:$0xff] }
  0x60   : > { %30956 = vst [vmem:[#allocation29_spill] sm:$0xff] %v26275_v12 }
  0x62   : > { %22033 = vmatmul.mubr.msk.f32.gmra.mrb[26].mxu1 %vm260_vm3, %v26128_v14  ;;  %22256 = vmatmul.mubr.msk.f32.gmra.mrb[8].mxu0 %vm260_vm3, %v26130_v15  ;;  %v26265_v14 = vld [vmem:[#allocation2 + $0x152] sm:$0xff] }
  0x63   : > { %22035 = vmatprep.mubr.msk.f32.mxu1 %vm260_vm3, %v26132_v16  ;;  %22258 = vmatprep.mubr.msk.f32.mxu0 %vm260_vm3, %v26134_v17  ;;  %v26263_v16 = vld [vmem:[#allocation2 + $0x90] sm:$0xff] }
  0x64   : > { %30955 = vst [vmem:[#allocation28_spill] sm:$0xff] %v26263_v16 }
  0x66   : > { %22036 = vmatmul.mubr.msk.f32.gmra.mrb[28].mxu1 %vm260_vm3, %v26144_v18  ;;  %22259 = vmatmul.mubr.msk.f32.gmra.mrb[10].mxu0 %vm260_vm3, %v26146_v19  ;;  %v26261_v18 = vld [vmem:[#allocation2 + $0x142] sm:$0xff] }
  0x67   : > { %22038 = vmatprep.mubr.msk.f32.mxu1 %vm260_vm3, %v26148_v20  ;;  %22261 = vmatprep.mubr.msk.f32.mxu0 %vm260_vm3, %v26150_v21  ;;  %v26259_v20 = vld [vmem:[#allocation2 + $0x80] sm:$0xff] }
  0x68   : > { %30954 = vst [vmem:[#allocation27_spill] sm:$0xff] %v26259_v20 }
  0x6a   : > { %22039 = vmatmul.mubr.msk.f32.gmra.mrb[30].mxu1 %vm260_vm3, %v26160_v22  ;;  %22262 = vmatmul.mubr.msk.f32.gmra.mrb[12].mxu0 %vm260_vm3, %v26162_v23  ;;  %v26249_v22 = vld [vmem:[#allocation2 + $0x13a] sm:$0xff] }
  0x6b   : > { %22043 = vmatprep.mubr.msk.f32.mxu1 %vm260_vm3, %v293_v24  ;;  %22264 = vmatprep.mubr.msk.f32.mxu0 %vm260_vm3, %v26164_v25  ;;  %v26245_v24 = vld [vmem:[#allocation2 + $0x12a] sm:$0xff] }
  0x6e   : > { %22044 = vmatmul.mubr.msk.f32.vlgmr.msra.gmra.mrb[0].mxu1 %vm260_vm3, %v294_v26  ;;  %22265 = vmatmul.mubr.msk.f32.gmra.mrb[14].mxu0 %vm260_vm3, %v26173_v27  ;;  %v26247_v26 = vld [vmem:[#allocation2 + $0x78] sm:$0xff] }
  0x6f   : > { %22046 = vmatprep.mubr.msk.f32.mxu1 %vm260_vm3, %v26175_v28  ;;  %22267 = vmatprep.mubr.msk.f32.mxu0 %vm260_vm3, %v26177_v29  ;;  %30953 = vst [vmem:[#allocation26_spill] sm:$0xff] %v26247_v26  ;;  %v26311_v28 = vld [vmem:[#allocation2 + $0xd8] sm:$0xff] }
  0x70   : > { %22092 = vmatpush3.msk.msra.mxu1 %vm456_vm0, %v25882_v8  ;;  %v26213_v8 = vld [vmem:[#allocation2 + $0xfa] sm:$0xff] }
  0x71   : > { %22141 = vmatprep.subr.msk.mxu1 %vm456_vm0, %v26185_v30 }
  0x72   : > { %22047 = vmatmul.mubr.msk.f32.gmra.mrb[2].mxu1 %vm260_vm3, %v26191_v31  ;;  %22268 = vmatmul.mubr.msk.f32.gmra.mrb[16].mxu0 %vm260_vm3, %v26193_v33  ;;  %v26307_v31 = vld [vmem:[#allocation2 + $0xc8] sm:$0xff] }
  0x73   : > { %22049 = vmatprep.mubr.msk.f32.mxu1 %vm260_vm3, %v26195_v38  ;;  %22270 = vmatprep.mubr.msk.f32.mxu0 %vm260_vm3, %v26199_v39 }
  0x76   : > { %22050 = vmatmul.mubr.msk.f32.gmra.mrb[4].mxu1 %vm260_vm3, %v26211_v40  ;;  %22271 = vmatmul.mubr.msk.f32.gmra.mrb[18].mxu0 %vm260_vm3, %v26213_v8 }
  0x77   : > { %22052 = vmatprep.mubr.msk.f32.mxu1 %vm260_vm3, %v26215_v42  ;;  %22273 = vmatprep.mubr.msk.f32.mxu0 %vm260_vm3, %v26217_v44 }
  0x7a   : > { %22053 = vmatmul.mubr.msk.f32.gmra.mrb[6].mxu1 %vm260_vm3, %v26227_v45  ;;  %22274 = vmatmul.mubr.msk.f32.gmra.mrb[20].mxu0 %vm260_vm3, %v26229_v46 }
  0x7b   : > { %22055 = vmatprep.mubr.msk.f32.mxu1 %vm260_vm3, %v26231_v47  ;;  %22276 = vmatprep.mubr.msk.f32.mxu0 %vm260_vm3, %v26233_v57 }
  0x7e   : > { %22056 = vmatmul.mubr.msk.f32.gmra.mrb[8].mxu1 %vm260_vm3, %v26243_v58  ;;  %22277 = vmatmul.mubr.msk.f32.gmra.mrb[22].mxu0 %vm260_vm3, %v26245_v24 }
  0x7f   : > { %22058 = vmatprep.mubr.msk.f32.mxu1 %vm260_vm3, %v26247_v26  ;;  %22279 = vmatprep.mubr.msk.f32.mxu0 %vm260_vm3, %v26249_v22 }
  0x82   : > { %22059 = vmatmul.mubr.msk.f32.gmra.mrb[10].mxu1 %vm260_vm3, %v26259_v20  ;;  %22280 = vmatmul.mubr.msk.f32.gmra.mrb[24].mxu0 %vm260_vm3, %v26261_v18 }
  0x83   : > { %22061 = vmatprep.mubr.msk.f32.mxu1 %vm260_vm3, %v26263_v16  ;;  %22282 = vmatprep.mubr.msk.f32.mxu0 %vm260_vm3, %v26265_v14 }
  0x86   : > { %22062 = vmatmul.mubr.msk.f32.gmra.mrb[12].mxu1 %vm260_vm3, %v26275_v12  ;;  %22283 = vmatmul.mubr.msk.f32.gmra.mrb[26].mxu0 %vm260_vm3, %v26277_v10 }
  0x87   : > { %22064 = vmatprep.mubr.msk.f32.mxu1 %vm260_vm3, %v26279_v7  ;;  %22285 = vmatprep.mubr.msk.f32.mxu0 %vm260_vm3, %v26281_v5 }
  0x8a   : > { %22065 = vmatmul.mubr.msk.f32.gmra.mrb[14].mxu1 %vm260_vm3, %v26291_v3  ;;  %22286 = vmatmul.mubr.msk.f32.gmra.mrb[28].mxu0 %vm260_vm3, %v26293_v0  ;;  %v26328_v0 = vld [vmem:[%s30628_s1 + $0xc0] sm:$0xf] }
  0x8b   : > { %22067 = vmatprep.mubr.msk.f32.mxu1 %vm260_vm3, %v26295_v61  ;;  %22288 = vmatprep.mubr.msk.f32.mxu0 %vm260_vm3, %v26297_v59  ;;  %v26323_v59 = vld [vmem:[#allocation2 + $0xf0] sm:$0xff] }
  0x8e   : > { %22068 = vmatmul.mubr.msk.f32.gmra.mrb[16].mxu1 %vm260_vm3, %v26307_v31  ;;  %22289 = vmatmul.mubr.msk.f32.gmra.mrb[30].mxu0 %vm260_vm3, %v26309_v56  ;;  %v26338_v56 = vld [vmem:[#allocation2 + $0xf8] sm:$0xff] }
  0x8f   : > { %22070 = vmatprep.mubr.msk.f32.mxu1 %vm260_vm3, %v26311_v28  ;;  %22293 = vmatprep.mubr.msk.f32.mxu0 %vm260_vm3, %v26195_v38  ;;  %v26342_v38 = vld [vmem:[#allocation2 + $0x108] sm:$0xff] }
  0x92   : > { %22071 = vmatmul.mubr.msk.f32.gmra.mrb[18].mxu1 %vm260_vm3, %v26321_v54  ;;  %22294 = vmatmul.mubr.msk.f32.vlgmr.msra.gmra.mrb[0].mxu0 %vm260_vm3, %v26211_v40  ;;  %v26368_v40 = vld [vmem:[#allocation2 + $0x138] sm:$0xff] }
  0x93   : > { %22342 = vmatpush3.msk.msra.mxu0 %vm456_vm0, %v26066_v63  ;;  %22073 = vmatprep.mubr.msk.f32.mxu1 %vm260_vm3, %v26323_v59  ;;  %v26354_v63 = vld [vmem:[#allocation2 + $0x110] sm:$0xff] }
  0x94   : > { %22296 = vmatprep.mubr.msk.f32.mxu0 %vm260_vm3, %v26215_v42  ;;  %22391 = vmatprep.subr.msk.mxu0 %vm456_vm0, %v26328_v0  ;;  %v26356_v42 = vld [vmem:[#allocation2 + $0x120] sm:$0xff] }
  0x96   : > { %22074 = vmatmul.mubr.msk.f32.gmra.mrb[20].mxu1 %vm260_vm3, %v26338_v56  ;;  %22297 = vmatmul.mubr.msk.f32.gmra.mrb[2].mxu0 %vm260_vm3, %v26227_v45  ;;  %v26366_v45 = vld [vmem:[#allocation2 + $0x128] sm:$0xff] }
  0x97   : > { %22076 = vmatprep.mubr.msk.f32.mxu1 %vm260_vm3, %v26342_v38  ;;  %22299 = vmatprep.mubr.msk.f32.mxu0 %vm260_vm3, %v26231_v47  ;;  %v26380_v47 = vld [vmem:[#allocation2 + $0x150] sm:$0xff] }
  0x9a   : > { %22077 = vmatmul.mubr.msk.f32.gmra.mrb[22].mxu1 %vm260_vm3, %v26354_v63  ;;  %22300 = vmatmul.mubr.msk.f32.gmra.mrb[4].mxu0 %vm260_vm3, %v26243_v58  ;;  %v26378_v58 = vld [vmem:[#allocation2 + $0x140] sm:$0xff] }
  0x9b   : > { %22079 = vmatprep.mubr.msk.f32.mxu1 %vm260_vm3, %v26356_v42  ;;  %22302 = vmatprep.mubr.msk.f32.mxu0 %vm260_vm3, %v26247_v26  ;;  %v26392_v26 = vld [vmem:[#allocation2 + $0x168] sm:$0xff] }
  0x9e   : > { %22080 = vmatmul.mubr.msk.f32.gmra.mrb[24].mxu1 %vm260_vm3, %v26366_v45  ;;  %22303 = vmatmul.mubr.msk.f32.gmra.mrb[6].mxu0 %vm260_vm3, %v26259_v20  ;;  %v26390_v20 = vld [vmem:[#allocation2 + $0x158] sm:$0xff] }
  0x9f   : > { %22082 = vmatprep.mubr.msk.f32.mxu1 %vm260_vm3, %v26368_v40  ;;  %22305 = vmatprep.mubr.msk.f32.mxu0 %vm260_vm3, %v26263_v16  ;;  %v1009_v16 = vld [vmem:[#allocation2 + $0x2] sm:$0xff] }
  0xa2   : > { %22083 = vmatmul.mubr.msk.f32.gmra.mrb[26].mxu1 %vm260_vm3, %v26378_v58  ;;  %22306 = vmatmul.mubr.msk.f32.gmra.mrb[8].mxu0 %vm260_vm3, %v26275_v12  ;;  %v26402_v12 = vld [vmem:[#allocation2 + $0x170] sm:$0xff] }
  0xa3   : > { %22085 = vmatprep.mubr.msk.f32.mxu1 %vm260_vm3, %v26380_v47  ;;  %22308 = vmatprep.mubr.msk.f32.mxu0 %vm260_vm3, %v26279_v7 }
  0xa6   : > { %22086 = vmatmul.mubr.msk.f32.gmra.mrb[28].mxu1 %vm260_vm3, %v26390_v20  ;;  %22309 = vmatmul.mubr.msk.f32.gmra.mrb[10].mxu0 %vm260_vm3, %v26291_v3  ;;  %v1010_v3 = vld [vmem:[#allocation2 + $0xa] sm:$0xff] }
  0xa7   : > { %22088 = vmatprep.mubr.msk.f32.mxu1 %vm260_vm3, %v26392_v26  ;;  %22311 = vmatprep.mubr.msk.f32.mxu0 %vm260_vm3, %v26295_v61 }
  0xaa   : > { %22089 = vmatmul.mubr.msk.f32.gmra.mrb[30].mxu1 %vm260_vm3, %v26402_v12  ;;  %22312 = vmatmul.mubr.msk.f32.gmra.mrb[12].mxu0 %vm260_vm3, %v26307_v31 }
  0xab   : > { %22093 = vmatprep.mubr.msk.f32.mxu1 %vm260_vm3, %v1009_v16  ;;  %22314 = vmatprep.mubr.msk.f32.mxu0 %vm260_vm3, %v26311_v28  ;;  %v2601_v16 = vld [vmem:[#allocation2 + $0x1a0] sm:$0xff] }
  0xae   : > { %22094 = vmatmul.mubr.msk.f32.vlgmr.msra.gmra.mrb[0].mxu1 %vm260_vm3, %v1010_v3  ;;  %22315 = vmatmul.mubr.msk.f32.gmra.mrb[14].mxu0 %vm260_vm3, %v26321_v54  ;;  %v2600_v3 = vld [vmem:[#allocation2 + $0x198] sm:$0xff] }
  0xaf   : > { %22096 = vmatprep.mubr.msk.f32.mxu1 %vm260_vm3, %v26039_v55  ;;  %22317 = vmatprep.mubr.msk.f32.mxu0 %vm260_vm3, %v26323_v59  ;;  %v26462_v55 = vld [vmem:[#allocation2 + $0x180] sm:$0xff] }
  0xb0   : > { %22142 = vmatpush3.msk.msra.mxu1 %vm456_vm0, %v26185_v30  ;;  %v30975_v30 = vld [vmem:[#allocation24_spill] sm:$0xff] }
  0xb1   : > { %24439 = vmatprep.subr.msk.mxu1 %vm456_vm0, %v25820_v2 }
  0xb2   : > { %22097 = vmatmul.mubr.msk.f32.gmra.mrb[2].mxu1 %vm260_vm3, %v26057_v60  ;;  %22318 = vmatmul.mubr.msk.f32.gmra.mrb[16].mxu0 %vm260_vm3, %v26338_v56  ;;  %v26472_v60 = vld [vmem:[#allocation2 + $0x188] sm:$0xff] }
  0xb3   : > { %22099 = vmatprep.mubr.msk.f32.mxu1 %vm260_vm3, %v26061_v62  ;;  %22320 = vmatprep.mubr.msk.f32.mxu0 %vm260_vm3, %v26342_v38 }
  0xb6   : > { %22100 = vmatmul.mubr.msk.f32.gmra.mrb[4].mxu1 %vm260_vm3, %v26078_v1  ;;  %22321 = vmatmul.mubr.msk.f32.gmra.mrb[18].mxu0 %vm260_vm3, %v26354_v63 }
  0xb7   : > { %22102 = vmatprep.mubr.msk.f32.mxu1 %vm260_vm3, %v26084_v4  ;;  %22323 = vmatprep.mubr.msk.f32.mxu0 %vm260_vm3, %v26356_v42 }
  0xba   : > { %22103 = vmatmul.mubr.msk.f32.gmra.mrb[6].mxu1 %vm260_vm3, %v26098_v6  ;;  %22324 = vmatmul.mubr.msk.f32.gmra.mrb[20].mxu0 %vm260_vm3, %v26366_v45 }
  0xbb   : > { %22105 = vmatprep.mubr.msk.f32.mxu1 %vm260_vm3, %v26102_v9  ;;  %22326 = vmatprep.mubr.msk.f32.mxu0 %vm260_vm3, %v26368_v40 }
  0xbe   : > { %22106 = vmatmul.mubr.msk.f32.gmra.mrb[8].mxu1 %vm260_vm3, %v26114_v11  ;;  %22327 = vmatmul.mubr.msk.f32.gmra.mrb[22].mxu0 %vm260_vm3, %v26378_v58 }
  0xbf   : > { %22108 = vmatprep.mubr.msk.f32.mxu1 %vm260_vm3, %v26118_v13  ;;  %22329 = vmatprep.mubr.msk.f32.mxu0 %vm260_vm3, %v26380_v47 }
  0xc2   : > { %22109 = vmatmul.mubr.msk.f32.gmra.mrb[10].mxu1 %vm260_vm3, %v26130_v15  ;;  %22330 = vmatmul.mubr.msk.f32.gmra.mrb[24].mxu0 %vm260_vm3, %v26390_v20 }
  0xc3   : > { %22111 = vmatprep.mubr.msk.f32.mxu1 %vm260_vm3, %v26134_v17  ;;  %22332 = vmatprep.mubr.msk.f32.mxu0 %vm260_vm3, %v26392_v26 }
  0xc6   : > { %22112 = vmatmul.mubr.msk.f32.gmra.mrb[12].mxu1 %vm260_vm3, %v26146_v19  ;;  %22333 = vmatmul.mubr.msk.f32.gmra.mrb[26].mxu0 %vm260_vm3, %v26402_v12 }
  0xc7   : > { %22114 = vmatprep.mubr.msk.f32.mxu1 %vm260_vm3, %v26150_v21  ;;  %22335 = vmatprep.mubr.msk.f32.mxu0 %vm260_vm3, %v26462_v55 }
  0xca   : > { %22115 = vmatmul.mubr.msk.f32.gmra.mrb[14].mxu1 %vm260_vm3, %v26162_v23  ;;  %22336 = vmatmul.mubr.msk.f32.gmra.mrb[28].mxu0 %vm260_vm3, %v26472_v60 }
  0xcb   : > { %22117 = vmatprep.mubr.msk.f32.mxu1 %vm260_vm3, %v26164_v25  ;;  %22338 = vmatprep.mubr.msk.f32.mxu0 %vm260_vm3, %v2600_v3  ;;  %v30977_v3 = vld [vmem:[#allocation25_spill] sm:$0xff] }
  0xce   : > { %22118 = vmatmul.mubr.msk.f32.gmra.mrb[16].mxu1 %vm260_vm3, %v26173_v27  ;;  %22339 = vmatmul.mubr.msk.f32.gmra.mrb[30].mxu0 %vm260_vm3, %v2601_v16  ;;  %v30978_v16 = vld [vmem:[#allocation11_spill] sm:$0xff] }
  0xcf   : > { %22120 = vmatprep.mubr.msk.f32.mxu1 %vm260_vm3, %v26177_v29  ;;  %22343 = vmatprep.mubr.msk.f32.mxu0 %vm260_vm3, %v25927_v32  ;;  %v30961_v32 = vld [vmem:[#allocation31_spill] sm:$0xff] }
  0xd2   : > { %22121 = vmatmul.mubr.msk.f32.gmra.mrb[18].mxu1 %vm260_vm3, %v26193_v33  ;;  %22344 = vmatmul.mubr.msk.f32.vlgmr.msra.gmra.mrb[0].mxu0 %vm260_vm3, %v25945_v34  ;;  %v30962_v34 = vld [vmem:[#allocation3_spill] sm:$0xff] }
  0xd3   : > { %22392 = vmatpush3.msk.msra.mxu0 %vm456_vm0, %v26328_v0  ;;  %22123 = vmatprep.mubr.msk.f32.mxu1 %vm260_vm3, %v26199_v39  ;;  %v30974_v0 = vld [vmem:[#allocation9_spill] sm:$0xff] }
  0xd4   : > { %22346 = vmatprep.mubr.msk.f32.mxu0 %vm260_vm3, %v25949_v35  ;;  %v30963_v35 = vld [vmem:[#allocation18_spill] sm:$0xff] }
  0xd6   : > { %22124 = vmatmul.mubr.msk.f32.gmra.mrb[20].mxu1 %vm260_vm3, %v26213_v8  ;;  %22347 = vmatmul.mubr.msk.f32.gmra.mrb[2].mxu0 %vm260_vm3, %v25961_v36  ;;  %v30964_v36 = vld [vmem:[#allocation4_spill] sm:$0xff] }
  0xd7   : > { %22126 = vmatprep.mubr.msk.f32.mxu1 %vm260_vm3, %v26217_v44  ;;  %22349 = vmatprep.mubr.msk.f32.mxu0 %vm260_vm3, %v25963_v37  ;;  %v30965_v37 = vld [vmem:[#allocation19_spill] sm:$0xff] }
  0xda   : > { %22127 = vmatmul.mubr.msk.f32.gmra.mrb[22].mxu1 %vm260_vm3, %v26229_v46  ;;  %22350 = vmatmul.mubr.msk.f32.gmra.mrb[4].mxu0 %vm260_vm3, %v25977_v41  ;;  %v30966_v41 = vld [vmem:[#allocation5_spill] sm:$0xff] }
  0xdb   : > { %22129 = vmatprep.mubr.msk.f32.mxu1 %vm260_vm3, %v26233_v57  ;;  %22352 = vmatprep.mubr.msk.f32.mxu0 %vm260_vm3, %v25982_v43  ;;  %v30967_v43 = vld [vmem:[#allocation20_spill] sm:$0xff] }
  0xde   : > { %22130 = vmatmul.mubr.msk.f32.gmra.mrb[24].mxu1 %vm260_vm3, %v26245_v24  ;;  %22353 = vmatmul.mubr.msk.f32.gmra.mrb[6].mxu0 %vm260_vm3, %v26000_v48  ;;  %v30968_v48 = vld [vmem:[#allocation6_spill] sm:$0xff] }
  0xdf   : > { %22132 = vmatprep.mubr.msk.f32.mxu1 %vm260_vm3, %v26249_v22  ;;  %22355 = vmatprep.mubr.msk.f32.mxu0 %vm260_vm3, %v26003_v49  ;;  %v30969_v49 = vld [vmem:[#allocation21_spill] sm:$0xff] }
  0xe2   : > { %22133 = vmatmul.mubr.msk.f32.gmra.mrb[26].mxu1 %vm260_vm3, %v26261_v18  ;;  %22356 = vmatmul.mubr.msk.f32.gmra.mrb[8].mxu0 %vm260_vm3, %v26013_v50  ;;  %v30970_v50 = vld [vmem:[#allocation7_spill] sm:$0xff] }
  0xe3   : > { %22135 = vmatprep.mubr.msk.f32.mxu1 %vm260_vm3, %v26265_v14  ;;  %22358 = vmatprep.mubr.msk.f32.mxu0 %vm260_vm3, %v26015_v51  ;;  %v30971_v51 = vld [vmem:[#allocation22_spill] sm:$0xff] }
  0xe6   : > { %22136 = vmatmul.mubr.msk.f32.gmra.mrb[28].mxu1 %vm260_vm3, %v26277_v10  ;;  %22359 = vmatmul.mubr.msk.f32.gmra.mrb[10].mxu0 %vm260_vm3, %v26025_v52  ;;  %v30972_v52 = vld [vmem:[#allocation8_spill] sm:$0xff] }
  0xe7   : > { %22138 = vmatprep.mubr.msk.f32.mxu1 %vm260_vm3, %v26281_v5  ;;  %22361 = vmatprep.mubr.msk.f32.mxu0 %vm260_vm3, %v26027_v53  ;;  %v30973_v53 = vld [vmem:[#allocation23_spill] sm:$0xff] }
  0xea   : > { %22139 = vmatmul.mubr.msk.f32.gmra.mrb[30].mxu1 %vm260_vm3, %v30961_v32  ;;  %22362 = vmatmul.mubr.msk.f32.gmra.mrb[12].mxu0 %vm260_vm3, %v30962_v34  ;;  %v30979_v34 = vld [vmem:[#allocation26_spill] sm:$0xff] }
  0xeb   : > { %22143 = vmatprep.mubr.msk.f32.mxu1 %vm260_vm3, %v30963_v35  ;;  %22364 = vmatprep.mubr.msk.f32.mxu0 %vm260_vm3, %v30964_v36  ;;  %v30980_v35 = vld [vmem:[#allocation12_spill] sm:$0xff] }
  0xee   : > { %22144 = vmatmul.mubr.msk.f32.vlgmr.msra.gmra.mrb[0].mxu1 %vm260_vm3, %v30965_v37  ;;  %22365 = vmatmul.mubr.msk.f32.gmra.mrb[14].mxu0 %vm260_vm3, %v30966_v41  ;;  %v30981_v37 = vld [vmem:[#allocation27_spill] sm:$0xff] }
  0xef   : > { %22146 = vmatprep.mubr.msk.f32.mxu1 %vm260_vm3, %v30967_v43  ;;  %22367 = vmatprep.mubr.msk.f32.mxu0 %vm260_vm3, %v30968_v48  ;;  %v30982_v43 = vld [vmem:[#allocation13_spill] sm:$0xff] }
  0xf0   : > { %24440 = vmatpush3.msk.msra.mxu1 %vm456_vm0, %v25820_v2  ;;  %v30976_v2 = vld [vmem:[#allocation10_spill] sm:$0xff] }
  0xf2   : > { %22147 = vmatmul.mubr.msk.f32.gmra.mrb[2].mxu1 %vm260_vm3, %v30969_v49  ;;  %22368 = vmatmul.mubr.msk.f32.gmra.mrb[16].mxu0 %vm260_vm3, %v30970_v50  ;;  %v30983_v49 = vld [vmem:[#allocation28_spill] sm:$0xff] }
  0xf3   : > { %22149 = vmatprep.mubr.msk.f32.mxu1 %vm260_vm3, %v30971_v51  ;;  %22370 = vmatprep.mubr.msk.f32.mxu0 %vm260_vm3, %v30972_v52  ;;  %v30984_v51 = vld [vmem:[#allocation14_spill] sm:$0xff] }
  0xf6   : > { %22150 = vmatmul.mubr.msk.f32.gmra.mrb[4].mxu1 %vm260_vm3, %v30973_v53  ;;  %22371 = vmatmul.mubr.msk.f32.gmra.mrb[18].mxu0 %vm260_vm3, %v30974_v0  ;;  %v30985_v53 = vld [vmem:[#allocation29_spill] sm:$0xff] }
  0xf7   : > { %22152 = vmatprep.mubr.msk.f32.mxu1 %vm260_vm3, %v30975_v30  ;;  %22373 = vmatprep.mubr.msk.f32.mxu0 %vm260_vm3, %v30976_v2  ;;  %v30986_v30 = vld [vmem:[#allocation15_spill] sm:$0xff] }
  0xfa   : > { %22153 = vmatmul.mubr.msk.f32.gmra.mrb[6].mxu1 %vm260_vm3, %v30977_v3  ;;  %22374 = vmatmul.mubr.msk.f32.gmra.mrb[20].mxu0 %vm260_vm3, %v30978_v16  ;;  %v30987_v3 = vld [vmem:[#allocation16_spill] sm:$0xff] }
  0xfb   : > { %22155 = vmatprep.mubr.msk.f32.mxu1 %vm260_vm3, %v30979_v34  ;;  %22376 = vmatprep.mubr.msk.f32.mxu0 %vm260_vm3, %v30980_v35  ;;  %v26596_v34 = vld [vmem:[#allocation2 + $0x181] sm:$0xff] }
  0xfe   : > { %22156 = vmatmul.mubr.msk.f32.gmra.mrb[8].mxu1 %vm260_vm3, %v30981_v37  ;;  %22377 = vmatmul.mubr.msk.f32.gmra.mrb[22].mxu0 %vm260_vm3, %v30982_v43  ;;  %v30988_v37 = vld [vmem:[#allocation30_spill] sm:$0xff] }
  0xff   : > { %22158 = vmatprep.mubr.msk.f32.mxu1 %vm260_vm3, %v30983_v49  ;;  %22379 = vmatprep.mubr.msk.f32.mxu0 %vm260_vm3, %v30984_v51  ;;  %v30989_v49 = vld [vmem:[#allocation17_spill] sm:$0xff] }
 0x102   : > { %22159 = vmatmul.mubr.msk.f32.gmra.mrb[10].mxu1 %vm260_vm3, %v30985_v53  ;;  %22380 = vmatmul.mubr.msk.f32.gmra.mrb[24].mxu0 %vm260_vm3, %v30986_v30  ;;  %v26606_v53 = vld [vmem:[#allocation2 + $0x189] sm:$0xff] }
 0x103   : > { %22161 = vmatprep.mubr.msk.f32.mxu1 %vm260_vm3, %v26279_v7  ;;  %22382 = vmatprep.mubr.msk.f32.mxu0 %vm260_vm3, %v30987_v3  ;;  %v2990_v7 = vld [vmem:[#allocation2 + $0x199] sm:$0xff] }
 0x106   : > { %22162 = vmatmul.mubr.msk.f32.gmra.mrb[12].mxu1 %vm260_vm3, %v30988_v37  ;;  %22383 = vmatmul.mubr.msk.f32.gmra.mrb[26].mxu0 %vm260_vm3, %v30989_v49  ;;  %v2991_v37 = vld [vmem:[#allocation2 + $0x1a1] sm:$0xff] }
 0x107   : > { %22164 = vmatprep.mubr.msk.f32.mxu1 %vm260_vm3, %v26295_v61  ;;  %22385 = vmatprep.mubr.msk.f32.mxu0 %vm260_vm3, %v26596_v34  ;;  %v3381_v61 = vld [vmem:[#allocation2 + $0x1a2] sm:$0xff] }
 0x10a   : > { %22165 = vmatmul.mubr.msk.f32.gmra.mrb[14].mxu1 %vm260_vm3, %v26307_v31  ;;  %22386 = vmatmul.mubr.msk.f32.gmra.mrb[28].mxu0 %vm260_vm3, %v26606_v53 }
 0x10b   : > { %22167 = vmatprep.mubr.msk.f32.mxu1 %vm260_vm3, %v26311_v28  ;;  %22388 = vmatprep.mubr.msk.f32.mxu0 %vm260_vm3, %v2990_v7  ;;  %v19220_v28 = vld [vmem:[%s30628_s1 + $0xd8] sm:$0xff] }
 0x10e   : > { %22168 = vmatmul.mubr.msk.f32.gmra.mrb[16].mxu1 %vm260_vm3, %v26321_v54  ;;  %22389 = vmatmul.mubr.msk.f32.gmra.mrb[30].mxu0 %vm260_vm3, %v2991_v37  ;;  %v30990_v54 = vld [vmem:[#allocation32_spill] sm:$0xff] }
 0x10f   : > { %22170 = vmatprep.mubr.msk.f32.mxu1 %vm260_vm3, %v26323_v59  ;;  %22393 = vmatprep.mubr.msk.f32.mxu0 %vm260_vm3, %v26061_v62  ;;  %v30991_v59 = vld [vmem:[#allocation33_spill] sm:$0xff]  ;;  %v19221_v62 = vld [vmem:[%s30628_s1 + $0xf0] sm:$0xff] }
 0x110   : > { %22441 = vmatprep.subr.mxu1 %v19221_v62 }
 0x112   : > { %22171 = vmatmul.mubr.msk.f32.gmra.mrb[18].mxu1 %vm260_vm3, %v26338_v56  ;;  %22394 = vmatmul.mubr.msk.f32.vlgmr.msra.gmra.mrb[0].mxu0 %vm260_vm3, %v26078_v1  ;;  %v3380_v56 = vld [vmem:[#allocation2 + $0x19a] sm:$0xff] }
 0x113   : > { %22173 = vmatprep.mubr.msk.f32.mxu1 %vm260_vm3, %v26342_v38  ;;  %22396 = vmatprep.mubr.msk.f32.mxu0 %vm260_vm3, %v26084_v4 }
 0x116   : > { %22174 = vmatmul.mubr.msk.f32.gmra.mrb[20].mxu1 %vm260_vm3, %v26354_v63  ;;  %22397 = vmatmul.mubr.msk.f32.gmra.mrb[2].mxu0 %vm260_vm3, %v26098_v6 }
 0x117   : > { %22176 = vmatprep.mubr.msk.f32.mxu1 %vm260_vm3, %v26356_v42  ;;  %22399 = vmatprep.mubr.msk.f32.mxu0 %vm260_vm3, %v26102_v9 }
 0x11a   : > { %22177 = vmatmul.mubr.msk.f32.gmra.mrb[22].mxu1 %vm260_vm3, %v26366_v45  ;;  %22400 = vmatmul.mubr.msk.f32.gmra.mrb[4].mxu0 %vm260_vm3, %v26114_v11 }
 0x11b   : > { %22179 = vmatprep.mubr.msk.f32.mxu1 %vm260_vm3, %v26368_v40  ;;  %22402 = vmatprep.mubr.msk.f32.mxu0 %vm260_vm3, %v26118_v13 }
 0x11e   : > { %22180 = vmatmul.mubr.msk.f32.gmra.mrb[24].mxu1 %vm260_vm3, %v26378_v58  ;;  %22403 = vmatmul.mubr.msk.f32.gmra.mrb[6].mxu0 %vm260_vm3, %v26130_v15 }
 0x11f   : > { %22182 = vmatprep.mubr.msk.f32.mxu1 %vm260_vm3, %v26380_v47  ;;  %22405 = vmatprep.mubr.msk.f32.mxu0 %vm260_vm3, %v26134_v17 }
 0x122   : > { %22183 = vmatmul.mubr.msk.f32.gmra.mrb[26].mxu1 %vm260_vm3, %v26390_v20  ;;  %22406 = vmatmul.mubr.msk.f32.gmra.mrb[8].mxu0 %vm260_vm3, %v26146_v19 }
 0x123   : > { %22185 = vmatprep.mubr.msk.f32.mxu1 %vm260_vm3, %v26392_v26  ;;  %22408 = vmatprep.mubr.msk.f32.mxu0 %vm260_vm3, %v26150_v21 }
 0x126   : > { %22186 = vmatmul.mubr.msk.f32.gmra.mrb[28].mxu1 %vm260_vm3, %v26402_v12  ;;  %22409 = vmatmul.mubr.msk.f32.gmra.mrb[10].mxu0 %vm260_vm3, %v26162_v23 }
 0x127   : > { %22188 = vmatprep.mubr.msk.f32.mxu1 %vm260_vm3, %v26462_v55  ;;  %22411 = vmatprep.mubr.msk.f32.mxu0 %vm260_vm3, %v26164_v25  ;;  %v4068_v25 = vld [vmem:[#allocation2 + $0x1] sm:$0xff] }
 0x12a   : > { %22189 = vmatmul.mubr.msk.f32.gmra.mrb[30].mxu1 %vm260_vm3, %v26472_v60  ;;  %22412 = vmatmul.mubr.msk.f32.gmra.mrb[12].mxu0 %vm260_vm3, %v26173_v27  ;;  %v4069_v27 = vld [vmem:[#allocation2 + $0x9] sm:$0xff] }
 0x12b   : > { %22217 = vmatprep.mubr.msk.f32.mxu1 %vm260_vm3, %v30964_v36  ;;  %22414 = vmatprep.mubr.msk.f32.mxu0 %vm260_vm3, %v26177_v29 }
 0x12e   : > { %22218 = vmatmul.mubr.msk.f32.vlgmr.msra.gmra.mrb[16].mxu1 %vm260_vm3, %v30966_v41  ;;  %22415 = vmatmul.mubr.msk.f32.gmra.mrb[14].mxu0 %vm260_vm3, %v26193_v33 }
 0x12f   : > { %22220 = vmatprep.mubr.msk.f32.mxu1 %vm260_vm3, %v30968_v48  ;;  %22417 = vmatprep.mubr.msk.f32.mxu0 %vm260_vm3, %v26199_v39 }
 0x130   : > { %22442 = vmatpush3.msra.mxu1 %v19221_v62 }
 0x131   : > { %22491 = vmatprep.subr.mxu1 %v19220_v28 }
 0x132   : > { %22221 = vmatmul.mubr.msk.f32.gmra.mrb[18].mxu1 %vm260_vm3, %v30970_v50  ;;  %22418 = vmatmul.mubr.msk.f32.gmra.mrb[16].mxu0 %vm260_vm3, %v26213_v8 }
 0x133   : > { %22223 = vmatprep.mubr.msk.f32.mxu1 %vm260_vm3, %v30972_v52  ;;  %22420 = vmatprep.mubr.msk.f32.mxu0 %vm260_vm3, %v26217_v44 }
 0x136   : > { %22224 = vmatmul.mubr.msk.f32.gmra.mrb[20].mxu1 %vm260_vm3, %v30974_v0  ;;  %22421 = vmatmul.mubr.msk.f32.gmra.mrb[18].mxu0 %vm260_vm3, %v26229_v46 }
 0x137   : > { %22226 = vmatprep.mubr.msk.f32.mxu1 %vm260_vm3, %v30976_v2  ;;  %22423 = vmatprep.mubr.msk.f32.mxu0 %vm260_vm3, %v26233_v57 }
 0x13a   : > { %22227 = vmatmul.mubr.msk.f32.gmra.mrb[22].mxu1 %vm260_vm3, %v30978_v16  ;;  %22424 = vmatmul.mubr.msk.f32.gmra.mrb[20].mxu0 %vm260_vm3, %v26245_v24 }
 0x13b   : > { %22229 = vmatprep.mubr.msk.f32.mxu1 %vm260_vm3, %v30980_v35  ;;  %22426 = vmatprep.mubr.msk.f32.mxu0 %vm260_vm3, %v26249_v22  ;;  %v26760_v22 = vld [vmem:[%s30629_s2] ss:$0 sm:$0xff] }
 0x13e   : > { %22230 = vmatmul.mubr.msk.f32.gmra.mrb[24].mxu1 %vm260_vm3, %v30982_v43  ;;  %22427 = vmatmul.mubr.msk.f32.gmra.mrb[22].mxu0 %vm260_vm3, %v26261_v18 }
 0x13f   : > { %22232 = vmatprep.mubr.msk.f32.mxu1 %vm260_vm3, %v30984_v51  ;;  %22429 = vmatprep.mubr.msk.f32.mxu0 %vm260_vm3, %v26265_v14 }
 0x142   : > { %22233 = vmatmul.mubr.msk.f32.gmra.mrb[26].mxu1 %vm260_vm3, %v30986_v30  ;;  %22430 = vmatmul.mubr.msk.f32.gmra.mrb[24].mxu0 %vm260_vm3, %v26277_v10 }
 0x143   : > { %22235 = vmatprep.mubr.msk.f32.mxu1 %vm260_vm3, %v30987_v3  ;;  %22432 = vmatprep.mubr.msk.f32.mxu0 %vm260_vm3, %v26281_v5 }
 0x146   : > { %22236 = vmatmul.mubr.msk.f32.gmra.mrb[28].mxu1 %vm260_vm3, %v30989_v49  ;;  %22433 = vmatmul.mubr.msk.f32.gmra.mrb[26].mxu0 %vm260_vm3, %v30961_v32 }
 0x147   : > { %22238 = vmatprep.mubr.msk.f32.mxu1 %vm260_vm3, %v26596_v34  ;;  %22435 = vmatprep.mubr.msk.f32.mxu0 %vm260_vm3, %v30990_v54 }
 0x14a   : > { %22239 = vmatmul.mubr.msk.f32.gmra.mrb[30].mxu1 %vm260_vm3, %v26606_v53  ;;  %22436 = vmatmul.mubr.msk.f32.gmra.mrb[28].mxu0 %vm260_vm3, %v30991_v59 }
 0x14b   : > { %22438 = vmatprep.mubr.msk.f32.mxu0 %vm260_vm3, %v3380_v56  ;;  %22443 = vmatprep.mubr.msk.f32.mxu1 %vm4102_vm4, %v4068_v25 }
 0x14e   : > { %22439 = vmatmul.mubr.msk.f32.gmra.mrb[30].mxu0 %vm260_vm3, %v3381_v61  ;;  %22444 = vmatmul.mubr.msk.f32.vlgmr.msra.gmra.mrb[32].mxu1 %vm4102_vm4, %v4069_v27 }
 0x14f   : > { %22492 = vmatpush3.msra.mxu1 %v19220_v28 }
 0x1c1   : > { %v22145_v1 = vpop.f32.mrb[0].mxu1 }
 0x1c2   : > { %v1598_v4 = vpop.f32.mrb[1].mxu1 }
 0x1c5   : > { %v22148_v5 = vpop.f32.mrb[2].mxu1 }
 0x1c6   : > { %v1608_v6 = vpop.f32.mrb[3].mxu1 }
 0x1c9   : > { %v22151_v9 = vpop.f32.mrb[4].mxu1 }
 0x1ca   : > { %v1618_v10 = vpop.f32.mrb[5].mxu1 }
 0x1cd   : > { %v22154_v11 = vpop.f32.mrb[6].mxu1 }
 0x1ce   : > { %v1628_v12 = vpop.f32.mrb[7].mxu1 }
 0x1d1   : > { %v22157_v13 = vpop.f32.mrb[8].mxu1 }
 0x1d2   : > { %v26743_v14 = vpop.f32.mrb[9].mxu1 }
 0x1d5   : > { %v26745_v15 = vpop.f32.mrb[10].mxu1 }
 0x1d6   : > { %v26747_v17 = vpop.f32.mrb[11].mxu1 }
 0x1d9   : > { %v26749_v18 = vpop.f32.mrb[12].mxu1 }
 0x1da   : > { %v26751_v19 = vpop.f32.mrb[13].mxu1 }
 0x1dd   : > { %v26753_v20 = vpop.f32.mrb[14].mxu1 }
 0x1de   : > { %v26755_v21 = vpop.f32.mrb[15].mxu1 }
 0x1e5   : > { %v22395_v23 = vpop.f32.mrb[0].mxu0 }
 0x1e6   : > { %v24441_v29 = vadd.f32 %v22395_v23, %v22145_v1  ;;  %v3549_v31 = vpop.f32.mrb[1].mxu0 }
 0x1e7   : > { %v24442_v33 = vadd.f32 %v3549_v31, %v1598_v4 }
 0x1e8   : > { %v3746_v38 = vadd.f32 %v24441_v29, %v26760_v22 }
 0x1e9   : > { %v3745_v39 = vadd.f32 %v24442_v33, %v26760_v22  ;;  %v22398_v40 = vpop.f32.mrb[2].mxu0 }
 0x1ea   : > { %v24443_v8 = vadd.f32 %v22398_v40, %v22148_v5  ;;  %v3559_v42 = vpop.f32.mrb[3].mxu0  ;;  %v3810_v46 = vmul.f32 0.01, %v3746_v38  ;;  %vm3778_vm6 = vcmp.gt.f32.partialorder %v3746_v38, 0.0 }
 0x1eb   : > { %v24444_v44 = vadd.f32 %v3559_v42, %v1608_v6  ;;  %vm3777_vm5 = vcmp.gt.f32.partialorder %v3745_v39, 0.0  ;;  %v3809_v45 = vmul.f32 0.01, %v3745_v39 }
 0x1ec   : > { %v3748_v47 = vadd.f32 %v24443_v8, %v26760_v22  ;;  %v3842_v32 = vsel %vm3778_vm6, %v3746_v38, %v3810_v46 }
 0x1ed   : > { %v3747_v57 = vadd.f32 %v24444_v44, %v26760_v22  ;;  %v22401_v58 = vpop.f32.mrb[4].mxu0  ;;  %v3841_v24 = vsel %vm3777_vm5, %v3745_v39, %v3809_v45 }
 0x1ee   : > { %v24445_v26 = vadd.f32 %v22401_v58, %v22151_v9  ;;  %v3569_v63 = vpop.f32.mrb[5].mxu0  ;;  %3905 = vrot.lane.b32.xlu0 %v3841_v24, %s25744_s18  ;;  %v3812_v52 = vmul.f32 0.01, %v3748_v47  ;;  %vm3780_vm8 = vcmp.gt.f32.partialorder %v3748_v47, 0.0 }
 0x1ef   : > { %v24446_v55 = vadd.f32 %v3569_v63, %v1618_v10  ;;  %vm3779_vm7 = vcmp.gt.f32.partialorder %v3747_v57, 0.0  ;;  %v3811_v60 = vmul.f32 0.01, %v3747_v57 }
 0x1f0   : > { %v3750_v36 = vadd.f32 %v24445_v26, %v26760_v22  ;;  %v3844_v3 = vsel %vm3780_vm8, %v3748_v47, %v3812_v52 }
 0x1f1   : > { %v3749_v41 = vadd.f32 %v24446_v55, %v26760_v22  ;;  %v22404_v48 = vpop.f32.mrb[6].mxu0  ;;  %v3843_v50 = vsel %vm3779_vm7, %v3747_v57, %v3811_v60 }
 0x1f2   : > { %v24447_v0 = vadd.f32 %v22404_v48, %v22154_v11  ;;  %v3579_v2 = vpop.f32.mrb[7].mxu0  ;;  %3907 = vrot.lane.b32.xlu0 %v3842_v32, %s25744_s18  ;;  %3909 = vrot.lane.b32.xlu1 %v3843_v50, %s25744_s18  ;;  %v3814_v49 = vmul.f32 0.01, %v3750_v36  ;;  %vm3782_vm10 = vcmp.gt.f32.partialorder %v3750_v36, 0.0 }
 0x1f3   : > { %v24448_v16 = vadd.f32 %v3579_v2, %v1628_v12  ;;  %vm3781_vm9 = vcmp.gt.f32.partialorder %v3749_v41, 0.0  ;;  %v3813_v35 = vmul.f32 0.01, %v3749_v41 }
 0x1f4   : > { %v3752_v43 = vadd.f32 %v24447_v0, %v26760_v22  ;;  %v3846_v1 = vsel %vm3782_vm10, %v3750_v36, %v3814_v49 }
 0x1f5   : > { %v3751_v51 = vadd.f32 %v24448_v16, %v26760_v22  ;;  %v22407_v30 = vpop.f32.mrb[8].mxu0  ;;  %v3845_v34 = vsel %vm3781_vm9, %v3749_v41, %v3813_v35 }
 0x1f6   : > { %v24449_v53 = vadd.f32 %v22407_v30, %v22157_v13  ;;  %v3589_v7 = vpop.f32.mrb[9].mxu0  ;;  %3911 = vrot.lane.b32.xlu1 %v3844_v3, %s25744_s18  ;;  %3913 = vrot.lane.b32.xlu0 %v3845_v34, %s25744_s18  ;;  %v3816_v59 = vmul.f32 0.01, %v3752_v43  ;;  %vm3784_vm12 = vcmp.gt.f32.partialorder %v3752_v43, 0.0 }
 0x1f7   : > { %v24450_v37 = vadd.f32 %v3589_v7, %v26743_v14  ;;  %vm3783_vm11 = vcmp.gt.f32.partialorder %v3751_v51, 0.0  ;;  %v3815_v54 = vmul.f32 0.01, %v3751_v51 }
 0x1f8   : > { %v3754_v56 = vadd.f32 %v24449_v53, %v26760_v22  ;;  %v3848_v11 = vsel %vm3784_vm12, %v3752_v43, %v3816_v59 }
 0x1f9   : > { %v3753_v61 = vadd.f32 %v24450_v37, %v26760_v22  ;;  %v22410_v62 = vpop.f32.mrb[10].mxu0  ;;  %v3847_v4 = vsel %vm3783_vm11, %v3751_v51, %v3815_v54 }
 0x1fa   : > { %v24451_v5 = vadd.f32 %v22410_v62, %v26745_v15  ;;  %v3599_v6 = vpop.f32.mrb[11].mxu0  ;;  %3915 = vrot.lane.b32.xlu1 %v3846_v1, %s25744_s18  ;;  %3917 = vrot.lane.b32.xlu0 %v3847_v4, %s25744_s18  ;;  %v3818_v12 = vmul.f32 0.01, %v3754_v56  ;;  %vm3786_vm14 = vcmp.gt.f32.partialorder %v3754_v56, 0.0 }
 0x1fb   : > { %v24452_v9 = vadd.f32 %v3599_v6, %v26747_v17  ;;  %vm3785_vm13 = vcmp.gt.f32.partialorder %v3753_v61, 0.0  ;;  %v3817_v10 = vmul.f32 0.01, %v3753_v61 }
 0x1fc   : > { %v3756_v13 = vadd.f32 %v24451_v5, %v26760_v22  ;;  %v3850_v29 = vsel %vm3786_vm14, %v3754_v56, %v3818_v12 }
 0x1fd   : > { %v3755_v14 = vadd.f32 %v24452_v9, %v26760_v22  ;;  %v22413_v23 = vpop.f32.mrb[12].mxu0  ;;  %v3849_v25 = vsel %vm3785_vm13, %v3753_v61, %v3817_v10 }
 0x1fe   : > { %v24453_v15 = vadd.f32 %v22413_v23, %v26749_v18  ;;  %v3609_v27 = vpop.f32.mrb[13].mxu0  ;;  %3919 = vrot.lane.b32.xlu1 %v3848_v11, %s25744_s18  ;;  %3921 = vrot.lane.b32.xlu0 %v3849_v25, %s25744_s18  ;;  %v3820_v8 = vmul.f32 0.01, %v3756_v13  ;;  %vm3788_vm2 = vcmp.gt.f32.partialorder %v3756_v13, 0.0 }
 0x1ff   : > { %v24454_v17 = vadd.f32 %v3609_v27, %v26751_v19  ;;  %vm3787_vm15 = vcmp.gt.f32.partialorder %v3755_v14, 0.0  ;;  %v3819_v28 = vmul.f32 0.01, %v3755_v14 }
 0x200   : > { %v3758_v31 = vadd.f32 %v24453_v15, %v26760_v22  ;;  %v3852_v24 = vsel %vm3788_vm2, %v3756_v13, %v3820_v8 }
 0x201   : > { %v3757_v33 = vadd.f32 %v24454_v17, %v26760_v22  ;;  %v22219_v38 = vpop.f32.mrb[16].mxu1  ;;  %v22416_v39 = vpop.f32.mrb[14].mxu0  ;;  %v3851_v40 = vsel %vm3787_vm15, %v3755_v14, %v3819_v28 }
 0x202   : > { %v24455_v18 = vadd.f32 %v22416_v39, %v26753_v20  ;;  %v3619_v42 = vpop.f32.mrb[15].mxu0  ;;  %3923 = vrot.lane.b32.xlu1 %v3850_v29, %s25744_s18  ;;  %3925 = vrot.lane.b32.xlu0 %v3851_v40, %s25744_s18  ;;  %v2068_v44 = vpop.f32.mrb[17].mxu1  ;;  %v3822_v20 = vmul.f32 0.01, %v3758_v31  ;;  %vm3790_vm6 = vcmp.gt.f32.partialorder %v3758_v31, 0.0 }
 0x203   : > { %v24456_v19 = vadd.f32 %v3619_v42, %v26755_v21  ;;  %vm3789_vm5 = vcmp.gt.f32.partialorder %v3757_v33, 0.0  ;;  %v3821_v45 = vmul.f32 0.01, %v3757_v33 }
 0x204   : > { %v3760_v46 = vadd.f32 %v24455_v18, %v26760_v22  ;;  %v3854_v0 = vsel %vm3790_vm6, %v3758_v31, %v3822_v20 }
 0x205   : > { %v3759_v47 = vadd.f32 %v24456_v19, %v26760_v22  ;;  %v22222_v57 = vpop.f32.mrb[18].mxu1  ;;  %v22419_v58 = vpop.f32.mrb[16].mxu0  ;;  %v3853_v26 = vsel %vm3789_vm5, %v3757_v33, %v3821_v45 }
 0x206   : > { %v24457_v63 = vadd.f32 %v22419_v58, %v22219_v38  ;;  %v3629_v55 = vpop.f32.mrb[17].mxu0  ;;  %3927 = vrot.lane.b32.xlu1 %v3852_v24, %s25744_s18  ;;  %3929 = vrot.lane.b32.xlu0 %v3853_v26, %s25744_s18  ;;  %v2078_v60 = vpop.f32.mrb[19].mxu1  ;;  %v3824_v41 = vmul.f32 0.01, %v3760_v46  ;;  %vm3792_vm8 = vcmp.gt.f32.partialorder %v3760_v46, 0.0 }
 0x207   : > { %v24458_v21 = vadd.f32 %v3629_v55, %v2068_v44  ;;  %vm3791_vm7 = vcmp.gt.f32.partialorder %v3759_v47, 0.0  ;;  %v3823_v32 = vmul.f32 0.01, %v3759_v47 }
 0x208   : > { %v3762_v36 = vadd.f32 %v24457_v63, %v26760_v22  ;;  %v3856_v3 = vsel %vm3792_vm8, %v3760_v46, %v3824_v41 }
 0x209   : > { %v3761_v48 = vadd.f32 %v24458_v21, %v26760_v22  ;;  %v22225_v50 = vpop.f32.mrb[20].mxu1  ;;  %v22422_v52 = vpop.f32.mrb[18].mxu0  ;;  %v3855_v2 = vsel %vm3791_vm7, %v3759_v47, %v3823_v32 }
 0x20a   : > { %v24459_v16 = vadd.f32 %v22422_v52, %v22222_v57  ;;  %v3639_v35 = vpop.f32.mrb[19].mxu0  ;;  %3931 = vrot.lane.b32.xlu1 %v3854_v0, %s25744_s18  ;;  %3933 = vrot.lane.b32.xlu0 %v3855_v2, %s25744_s18  ;;  %v2088_v43 = vpop.f32.mrb[21].mxu1  ;;  %v3826_v34 = vmul.f32 0.01, %v3762_v36  ;;  %vm3794_vm10 = vcmp.gt.f32.partialorder %v3762_v36, 0.0 }
 0x20b   : > { %v24460_v51 = vadd.f32 %v3639_v35, %v2078_v60  ;;  %vm3793_vm9 = vcmp.gt.f32.partialorder %v3761_v48, 0.0  ;;  %v3825_v30 = vmul.f32 0.01, %v3761_v48 }
 0x20c   : > { %v3764_v49 = vadd.f32 %v24459_v16, %v26760_v22  ;;  %v3858_v4 = vsel %vm3794_vm10, %v3762_v36, %v3826_v34 }
 0x20d   : > { %v3763_v53 = vadd.f32 %v24460_v51, %v26760_v22  ;;  %v22228_v7 = vpop.f32.mrb[22].mxu1  ;;  %v22425_v37 = vpop.f32.mrb[20].mxu0  ;;  %v3857_v54 = vsel %vm3793_vm9, %v3761_v48, %v3825_v30 }
 0x20e   : > { %v24461_v56 = vadd.f32 %v22425_v37, %v22225_v50  ;;  %v3649_v59 = vpop.f32.mrb[21].mxu0  ;;  %3935 = vrot.lane.b32.xlu1 %v3856_v3, %s25744_s18  ;;  %3937 = vrot.lane.b32.xlu0 %v3857_v54, %s25744_s18  ;;  %v2098_v61 = vpop.f32.mrb[23].mxu1  ;;  %v3828_v12 = vmul.f32 0.01, %v3764_v49  ;;  %vm3796_vm12 = vcmp.gt.f32.partialorder %v3764_v49, 0.0 }
 0x20f   : > { %v24462_v62 = vadd.f32 %v3649_v59, %v2088_v43  ;;  %vm3795_vm11 = vcmp.gt.f32.partialorder %v3763_v53, 0.0  ;;  %v3827_v1 = vmul.f32 0.01, %v3763_v53 }
 0x210   : > { %v3766_v5 = vadd.f32 %v24461_v56, %v26760_v22  ;;  %v3860_v31 = vsel %vm3796_vm12, %v3764_v49, %v3828_v12 }
 0x211   : > { %v3765_v6 = vadd.f32 %v24462_v62, %v26760_v22  ;;  %v22231_v9 = vpop.f32.mrb[24].mxu1  ;;  %v22428_v10 = vpop.f32.mrb[22].mxu0  ;;  %v3859_v11 = vsel %vm3795_vm11, %v3763_v53, %v3827_v1 }
 0x212   : > { %v24463_v13 = vadd.f32 %v22428_v10, %v22228_v7  ;;  %v3659_v14 = vpop.f32.mrb[23].mxu0  ;;  %3939 = vrot.lane.b32.xlu1 %v3858_v4, %s25744_s18  ;;  %3941 = vrot.lane.b32.xlu0 %v3859_v11, %s25744_s18  ;;  %v2108_v23 = vpop.f32.mrb[25].mxu1  ;;  %v3830_v38 = vmul.f32 0.01, %v3766_v5  ;;  %vm3798_vm14 = vcmp.gt.f32.partialorder %v3766_v5, 0.0  ;;  %v26838_v4 = vld [vmem:[%s30628_s1 + $0x108] sm:$0xff] }
 0x213   : > { %v24464_v25 = vadd.f32 %v3659_v14, %v2098_v61  ;;  %vm3797_vm13 = vcmp.gt.f32.partialorder %v3765_v6, 0.0  ;;  %v3829_v15 = vmul.f32 0.01, %v3765_v6  ;;  %22541 = vmatprep.subr.mxu1 %v26838_v4 }
 0x214   : > { %v3768_v27 = vadd.f32 %v24463_v13, %v26760_v22  ;;  %v3862_v57 = vsel %vm3798_vm14, %v3766_v5, %v3830_v38  ;;  %vm25745_vm14 = vmmov 1  }
 0x215   : > { %v3767_v17 = vadd.f32 %v24464_v25, %v26760_v22  ;;  %v22234_v28 = vpop.f32.mrb[26].mxu1  ;;  %v22431_v29 = vpop.f32.mrb[24].mxu0  ;;  %v3861_v33 = vsel %vm3797_vm13, %v3765_v6, %v3829_v15  ;;  %vm4001_vm13 = vcmask 64544  }
 0x216   : > { %v24465_v39 = vadd.f32 %v22431_v29, %v22231_v9  ;;  %v3669_v40 = vpop.f32.mrb[25].mxu0  ;;  %3943 = vrot.lane.b32.xlu1 %v3860_v31, %s25744_s18  ;;  %3945 = vrot.lane.b32.xlu0 %v3861_v33, %s25744_s18  ;;  %v2118_v8 = vpop.f32.mrb[27].mxu1  ;;  %v3832_v19 = vmul.f32 0.01, %v3768_v27  ;;  %vm3800_vm2 = vcmp.gt.f32.partialorder %v3768_v27, 0.0 }
 0x217   : > { %v24466_v18 = vadd.f32 %v3669_v40, %v2108_v23  ;;  %vm3799_vm15 = vcmp.gt.f32.partialorder %v3767_v17, 0.0  ;;  %v3831_v42 = vmul.f32 0.01, %v3767_v17 }
 0x218   : > { %v3770_v44 = vadd.f32 %v24465_v39, %v26760_v22  ;;  %v3864_v60 = vsel %vm3800_vm2, %v3768_v27, %v3832_v19 }
 0x219   : > { %v3769_v45 = vadd.f32 %v24466_v18, %v26760_v22  ;;  %v22237_v46 = vpop.f32.mrb[28].mxu1  ;;  %v22434_v47 = vpop.f32.mrb[26].mxu0  ;;  %v3863_v58 = vsel %vm3799_vm15, %v3767_v17, %v3831_v42  ;;  %vm27664_vm15 = vmpackc.low %vm456_vm0, %vm25745_vm14 }
 0x21a   : > { %v24467_v24 = vadd.f32 %v22434_v47, %v22234_v28  ;;  %v3679_v26 = vpop.f32.mrb[27].mxu0  ;;  %3947 = vrot.lane.b32.xlu1 %v3862_v57, %s25744_s18  ;;  %3949 = vrot.lane.b32.xlu0 %v3863_v58, %s25744_s18  ;;  %v2128_v20 = vpop.f32.mrb[29].mxu1  ;;  %v3834_v21 = vmul.f32 0.01, %v3770_v44  ;;  %vm3802_vm6 = vcmp.gt.f32.partialorder %v3770_v44, 0.0 }
 0x21b   : > { %v24468_v63 = vadd.f32 %v3679_v26, %v2118_v8  ;;  %vm3801_vm5 = vcmp.gt.f32.partialorder %v3769_v45, 0.0  ;;  %v3833_v55 = vmul.f32 0.01, %v3769_v45 }
 0x21c   : > { %v3772_v32 = vadd.f32 %v24467_v24, %v26760_v22  ;;  %v3866_v43 = vsel %vm3802_vm6, %v3770_v44, %v3834_v21 }
 0x21d   : > { %v3771_v36 = vadd.f32 %v24468_v63, %v26760_v22  ;;  %v22240_v41 = vpop.f32.mrb[30].mxu1  ;;  %v22437_v48 = vpop.f32.mrb[28].mxu0  ;;  %v3865_v50 = vsel %vm3801_vm5, %v3769_v45, %v3833_v55 }
 0x21e   : > { %v24469_v52 = vadd.f32 %v22437_v48, %v22237_v46  ;;  %v3689_v0 = vpop.f32.mrb[29].mxu0  ;;  %3951 = vrot.lane.b32.xlu1 %v3864_v60, %s25744_s18  ;;  %3953 = vrot.lane.b32.xlu0 %v3865_v50, %s25744_s18  ;;  %v2138_v2 = vpop.f32.mrb[31].mxu1  ;;  %v3836_v49 = vmul.f32 0.01, %v3772_v32  ;;  %vm3804_vm8 = vcmp.gt.f32.partialorder %v3772_v32, 0.0 }
 0x21f   : > { %v24470_v16 = vadd.f32 %v3689_v0, %v2128_v20  ;;  %vm3803_vm7 = vcmp.gt.f32.partialorder %v3771_v36, 0.0  ;;  %v3835_v35 = vmul.f32 0.01, %v3771_v36 }
 0x220   : > { %v3774_v51 = vadd.f32 %v24469_v52, %v26760_v22  ;;  %v3868_v61 = vsel %vm3804_vm8, %v3772_v32, %v3836_v49 }
 0x221   : > { %v3773_v30 = vadd.f32 %v24470_v16, %v26760_v22  ;;  %v22440_v3 = vpop.f32.mrb[30].mxu0  ;;  %v3867_v34 = vsel %vm3803_vm7, %v3771_v36, %v3835_v35 }
 0x222   : > { %v24471_v53 = vadd.f32 %v22440_v3, %v22240_v41  ;;  %v3699_v7 = vpop.f32.mrb[31].mxu0  ;;  %3955 = vrot.lane.b32.xlu1 %v3866_v43, %s25744_s18  ;;  %3957 = vrot.lane.b32.xlu0 %v3867_v34, %s25744_s18  ;;  %v3838_v1 = vmul.f32 0.01, %v3774_v51  ;;  %vm3806_vm10 = vcmp.gt.f32.partialorder %v3774_v51, 0.0 }
 0x223   : > { %v24472_v37 = vadd.f32 %v3699_v7, %v2138_v2  ;;  %vm3805_vm9 = vcmp.gt.f32.partialorder %v3773_v30, 0.0  ;;  %v3837_v54 = vmul.f32 0.01, %v3773_v30 }
 0x224   : > { %v3776_v56 = vadd.f32 %v24471_v53, %v26760_v22  ;;  %v3870_v6 = vsel %vm3806_vm10, %v3774_v51, %v3838_v1 }
 0x225   : > { %v3775_v59 = vadd.f32 %v24472_v37, %v26760_v22  ;;  %v3869_v62 = vsel %vm3805_vm9, %v3773_v30, %v3837_v54 }
 0x226   : > { %3959 = vrot.lane.b32.xlu1 %v3868_v61, %s25744_s18  ;;  %3961 = vrot.lane.b32.xlu0 %v3869_v62, %s25744_s18  ;;  %v3840_v22 = vmul.f32 0.01, %v3776_v56  ;;  %vm3808_vm12 = vcmp.gt.f32.partialorder %v3776_v56, 0.0 }
 0x227   : > { %vm3807_vm11 = vcmp.gt.f32.partialorder %v3775_v59, 0.0  ;;  %v3839_v5 = vmul.f32 0.01, %v3775_v59 }
 0x228   : > { %v3872_v10 = vsel %vm3808_vm12, %v3776_v56, %v3840_v22  ;;  %v4034_v22 = vld [vmem:[#allocation2] sm:$0xff] }
 0x229   : > { %v3871_v9 = vsel %vm3807_vm11, %v3775_v59, %v3839_v5 }
 0x22a   : > { %3963 = vrot.lane.b32.xlu1 %v3870_v6, %s25744_s18  ;;  %3965 = vrot.lane.b32.xlu0 %v3871_v9, %s25744_s18 }
 0x22e   : > { %3967 = vrot.lane.b32.xlu1 %v3872_v10, %s25744_s18 }
 0x260   : > { %v3906_v11 = vpop.permute.xlu0 %3905 }
 0x261   : > { %4002 = vst.msk [vmem:[#allocation2 + $0x19] sm:$0xff] %vm4001_vm13, %v3906_v11  ;;  %v4035_v11 = vld [vmem:[#allocation2 + $0x8] sm:$0xff] }
 0x264   : > { %v3908_v12 = vpop.permute.xlu0 %3907  ;;  %v3910_v13 = vpop.permute.xlu1 %3909 }
 0x265   : > { %4003 = vst.msk [vmem:[#allocation2 + $0x21] sm:$0xff] %vm4001_vm13, %v3908_v12  ;;  %4004 = vst.msk [vmem:[#allocation2 + $0x31] sm:$0xff] %vm4001_vm13, %v3910_v13  ;;  %v27000_v12 = vld [vmem:[%s30628_s1 + $0x120] sm:$0xff] }
 0x268   : > { %v3912_v14 = vpop.permute.xlu1 %3911  ;;  %v3914_v23 = vpop.permute.xlu0 %3913  ;;  %v26847_v25 = vld [vmem:[#allocation2 + $0x19] sm:$0xff] }
 0x269   : > { %4005 = vst.msk [vmem:[#allocation2 + $0x39] sm:$0xff] %vm4001_vm13, %v3912_v14  ;;  %4006 = vst.msk [vmem:[#allocation2 + $0x49] sm:$0xff] %vm4001_vm13, %v3914_v23  ;;  %22446 = vmatprep.mubr.msk.f32.mxu1 %vm4102_vm4, %v26847_v25  ;;  %v27003_v13 = vld [vmem:[#allocation2 + $0x18] sm:$0xff] }
 0x26c   : > { %v3916_v15 = vpop.permute.xlu1 %3915  ;;  %v3918_v27 = vpop.permute.xlu0 %3917  ;;  %v26853_v17 = vld [vmem:[#allocation2 + $0x21] sm:$0xff]  ;;  %v26855_v28 = vld [vmem:[#allocation2 + $0x31] sm:$0xff] }
 0x26d   : > { %4007 = vst.msk [vmem:[#allocation2 + $0x51] sm:$0xff] %vm4001_vm13, %v3916_v15  ;;  %4008 = vst.msk [vmem:[#allocation2 + $0x61] sm:$0xff] %vm4001_vm13, %v3918_v27  ;;  %22447 = vmatmul.mubr.msk.f32.gmra.mrb[34].mxu1 %vm4102_vm4, %v26853_v17  ;;  %v27009_v14 = vld [vmem:[#allocation2 + $0x20] sm:$0xff]  ;;  %v27013_v23 = vld [vmem:[#allocation2 + $0x30] sm:$0xff] }
 0x26e   : > { %22449 = vmatprep.mubr.msk.f32.mxu1 %vm4102_vm4, %v26855_v28 }
 0x270   : > { %v3920_v29 = vpop.permute.xlu1 %3919  ;;  %v3922_v31 = vpop.permute.xlu0 %3921  ;;  %v26863_v33 = vld [vmem:[#allocation2 + $0x39] sm:$0xff]  ;;  %v26865_v38 = vld [vmem:[#allocation2 + $0x49] sm:$0xff] }
 0x271   : > { %4009 = vst.msk [vmem:[#allocation2 + $0x69] sm:$0xff] %vm4001_vm13, %v3920_v29  ;;  %4010 = vst.msk [vmem:[#allocation2 + $0x79] sm:$0xff] %vm4001_vm13, %v3922_v31  ;;  %22450 = vmatmul.mubr.msk.f32.gmra.mrb[36].mxu1 %vm4102_vm4, %v26863_v33  ;;  %v27017_v15 = vld [vmem:[#allocation2 + $0x38] sm:$0xff] }
 0x272   : > { %22452 = vmatprep.mubr.msk.f32.mxu1 %vm4102_vm4, %v26865_v38 }
 0x274   : > { %v3924_v39 = vpop.permute.xlu1 %3923  ;;  %v3926_v40 = vpop.permute.xlu0 %3925  ;;  %v26873_v8 = vld [vmem:[#allocation2 + $0x51] sm:$0xff]  ;;  %v26875_v18 = vld [vmem:[#allocation2 + $0x61] sm:$0xff] }
 0x275   : > { %4011 = vst.msk [vmem:[#allocation2 + $0x81] sm:$0xff] %vm4001_vm13, %v3924_v39  ;;  %4012 = vst.msk [vmem:[#allocation2 + $0x91] sm:$0xff] %vm4001_vm13, %v3926_v40  ;;  %22453 = vmatmul.mubr.msk.f32.gmra.mrb[38].mxu1 %vm4102_vm4, %v26873_v8  ;;  %v27025_v27 = vld [vmem:[#allocation2 + $0x50] sm:$0xff]  ;;  %v27029_v29 = vld [vmem:[#allocation2 + $0x60] sm:$0xff] }
 0x276   : > { %22455 = vmatprep.mubr.msk.f32.mxu1 %vm4102_vm4, %v26875_v18 }
 0x278   : > { %v3928_v42 = vpop.permute.xlu1 %3927  ;;  %v3930_v44 = vpop.permute.xlu0 %3929  ;;  %v26883_v19 = vld [vmem:[#allocation2 + $0x69] sm:$0xff]  ;;  %v26885_v45 = vld [vmem:[#allocation2 + $0x79] sm:$0xff] }
 0x279   : > { %4013 = vst.msk [vmem:[#allocation2 + $0x99] sm:$0xff] %vm4001_vm13, %v3928_v42  ;;  %4014 = vst.msk [vmem:[#allocation2 + $0xa9] sm:$0xff] %vm4001_vm13, %v3930_v44  ;;  %22456 = vmatmul.mubr.msk.f32.gmra.mrb[40].mxu1 %vm4102_vm4, %v26883_v19  ;;  %v27033_v31 = vld [vmem:[#allocation2 + $0x68] sm:$0xff]  ;;  %v27037_v39 = vld [vmem:[#allocation2 + $0x78] sm:$0xff] }
 0x27a   : > { %22458 = vmatprep.mubr.msk.f32.mxu1 %vm4102_vm4, %v26885_v45 }
 0x27c   : > { %v3932_v46 = vpop.permute.xlu1 %3931  ;;  %v3934_v47 = vpop.permute.xlu0 %3933  ;;  %v26893_v57 = vld [vmem:[#allocation2 + $0x81] sm:$0xff]  ;;  %v26895_v58 = vld [vmem:[#allocation2 + $0x91] sm:$0xff] }
 0x27d   : > { %4015 = vst.msk [vmem:[#allocation2 + $0xb1] sm:$0xff] %vm4001_vm13, %v3932_v46  ;;  %4016 = vst.msk [vmem:[#allocation2 + $0xc1] sm:$0xff] %vm4001_vm13, %v3934_v47  ;;  %22459 = vmatmul.mubr.msk.f32.gmra.mrb[42].mxu1 %vm4102_vm4, %v26893_v57  ;;  %v27041_v40 = vld [vmem:[#allocation2 + $0x80] sm:$0xff]  ;;  %v27045_v42 = vld [vmem:[#allocation2 + $0x90] sm:$0xff] }
 0x27e   : > { %22461 = vmatprep.mubr.msk.f32.mxu1 %vm4102_vm4, %v26895_v58 }
 0x280   : > { %v3936_v24 = vpop.permute.xlu1 %3935  ;;  %v3938_v26 = vpop.permute.xlu0 %3937  ;;  %v26903_v20 = vld [vmem:[#allocation2 + $0x99] sm:$0xff]  ;;  %v26905_v63 = vld [vmem:[#allocation2 + $0xa9] sm:$0xff] }
 0x281   : > { %4017 = vst.msk [vmem:[#allocation2 + $0xc9] sm:$0xff] %vm4001_vm13, %v3936_v24  ;;  %4018 = vst.msk [vmem:[#allocation2 + $0xd9] sm:$0xff] %vm4001_vm13, %v3938_v26  ;;  %22462 = vmatmul.mubr.msk.f32.gmra.mrb[44].mxu1 %vm4102_vm4, %v26903_v20  ;;  %v27049_v44 = vld [vmem:[#allocation2 + $0x98] sm:$0xff]  ;;  %v27053_v46 = vld [vmem:[#allocation2 + $0xa8] sm:$0xff] }
 0x282   : > { %22464 = vmatprep.mubr.msk.f32.mxu1 %vm4102_vm4, %v26905_v63 }
 0x284   : > { %v3940_v55 = vpop.permute.xlu1 %3939  ;;  %v3942_v60 = vpop.permute.xlu0 %3941  ;;  %v26913_v21 = vld [vmem:[#allocation2 + $0xb1] sm:$0xff]  ;;  %v26915_v32 = vld [vmem:[#allocation2 + $0xc1] sm:$0xff] }
 0x285   : > { %4019 = vst.msk [vmem:[#allocation2 + $0xe1] sm:$0xff] %vm4001_vm13, %v3940_v55  ;;  %4020 = vst.msk [vmem:[#allocation2 + $0xf1] sm:$0xff] %vm4001_vm13, %v3942_v60  ;;  %22465 = vmatmul.mubr.msk.f32.gmra.mrb[46].mxu1 %vm4102_vm4, %v26913_v21  ;;  %v27057_v47 = vld [vmem:[#allocation2 + $0xb0] sm:$0xff]  ;;  %v27061_v24 = vld [vmem:[#allocation2 + $0xc0] sm:$0xff] }
 0x286   : > { %22467 = vmatprep.mubr.msk.f32.mxu1 %vm4102_vm4, %v26915_v32 }
 0x288   : > { %v3944_v36 = vpop.permute.xlu1 %3943  ;;  %v3946_v41 = vpop.permute.xlu0 %3945  ;;  %v26923_v48 = vld [vmem:[#allocation2 + $0xc9] sm:$0xff]  ;;  %v26925_v50 = vld [vmem:[#allocation2 + $0xd9] sm:$0xff] }
 0x289   : > { %4021 = vst.msk [vmem:[#allocation2 + $0xf9] sm:$0xff] %vm4001_vm13, %v3944_v36  ;;  %4022 = vst.msk [vmem:[#allocation2 + $0x109] sm:$0xff] %vm4001_vm13, %v3946_v41  ;;  %22468 = vmatmul.mubr.msk.f32.gmra.mrb[48].mxu1 %vm4102_vm4, %v26923_v48  ;;  %v27065_v26 = vld [vmem:[#allocation2 + $0xc8] sm:$0xff]  ;;  %v27069_v55 = vld [vmem:[#allocation2 + $0xd8] sm:$0xff] }
 0x28a   : > { %22470 = vmatprep.mubr.msk.f32.mxu1 %vm4102_vm4, %v26925_v50 }
 0x28c   : > { %v3948_v52 = vpop.permute.xlu1 %3947  ;;  %v3950_v0 = vpop.permute.xlu0 %3949  ;;  %v26933_v2 = vld [vmem:[#allocation2 + $0xe1] sm:$0xff]  ;;  %v26935_v16 = vld [vmem:[#allocation2 + $0xf1] sm:$0xff] }
 0x28d   : > { %4023 = vst.msk [vmem:[#allocation2 + $0x111] sm:$0xff] %vm4001_vm13, %v3948_v52  ;;  %4024 = vst.msk [vmem:[#allocation2 + $0x121] sm:$0xff] %vm4001_vm13, %v3950_v0  ;;  %22471 = vmatmul.mubr.msk.f32.gmra.mrb[50].mxu1 %vm4102_vm4, %v26933_v2  ;;  %v27073_v60 = vld [vmem:[#allocation2 + $0xe0] sm:$0xff]  ;;  %v27077_v36 = vld [vmem:[#allocation2 + $0xf0] sm:$0xff] }
 0x28e   : > { %22473 = vmatprep.mubr.msk.f32.mxu1 %vm4102_vm4, %v26935_v16 }
 0x290   : > { %v3952_v35 = vpop.permute.xlu1 %3951  ;;  %v3954_v43 = vpop.permute.xlu0 %3953  ;;  %v26943_v51 = vld [vmem:[#allocation2 + $0xf9] sm:$0xff]  ;;  %v26945_v30 = vld [vmem:[#allocation2 + $0x109] sm:$0xff] }
 0x291   : > { %4025 = vst.msk [vmem:[#allocation2 + $0x129] sm:$0xff] %vm4001_vm13, %v3952_v35  ;;  %4026 = vst.msk [vmem:[#allocation2 + $0x139] sm:$0xff] %vm4001_vm13, %v3954_v43  ;;  %22474 = vmatmul.mubr.msk.f32.gmra.mrb[52].mxu1 %vm4102_vm4, %v26943_v51  ;;  %v27081_v41 = vld [vmem:[#allocation2 + $0xf8] sm:$0xff]  ;;  %v27085_v52 = vld [vmem:[#allocation2 + $0x108] sm:$0xff] }
 0x292   : > { %22476 = vmatprep.mubr.msk.f32.mxu1 %vm4102_vm4, %v26945_v30 }
 0x294   : > { %v3956_v3 = vpop.permute.xlu1 %3955  ;;  %v3958_v34 = vpop.permute.xlu0 %3957  ;;  %v26953_v49 = vld [vmem:[#allocation2 + $0x111] sm:$0xff]  ;;  %v26955_v53 = vld [vmem:[#allocation2 + $0x121] sm:$0xff] }
 0x295   : > { %4027 = vst.msk [vmem:[#allocation2 + $0x141] sm:$0xff] %vm4001_vm13, %v3956_v3  ;;  %4028 = vst.msk [vmem:[#allocation2 + $0x151] sm:$0xff] %vm4001_vm13, %v3958_v34  ;;  %22477 = vmatmul.mubr.msk.f32.gmra.mrb[54].mxu1 %vm4102_vm4, %v26953_v49  ;;  %v27089_v0 = vld [vmem:[#allocation2 + $0x110] sm:$0xff]  ;;  %v27093_v35 = vld [vmem:[#allocation2 + $0x120] sm:$0xff] }
 0x296   : > { %22479 = vmatprep.mubr.msk.f32.mxu1 %vm4102_vm4, %v26955_v53 }
 0x298   : > { %v3960_v7 = vpop.permute.xlu1 %3959  ;;  %v3962_v37 = vpop.permute.xlu0 %3961  ;;  %v26963_v54 = vld [vmem:[#allocation2 + $0x129] sm:$0xff]  ;;  %v26965_v56 = vld [vmem:[#allocation2 + $0x139] sm:$0xff] }
 0x299   : > { %30992 = vst [vmem:[#allocation31_spill] sm:$0xff] %v26963_v54  ;;  %30993 = vst [vmem:[#allocation3_spill] sm:$0xff] %v26965_v56  ;;  %22480 = vmatmul.mubr.msk.f32.gmra.mrb[56].mxu1 %vm4102_vm4, %v26963_v54  ;;  %v27097_v43 = vld [vmem:[#allocation2 + $0x128] sm:$0xff]  ;;  %v27101_v3 = vld [vmem:[#allocation2 + $0x138] sm:$0xff] }
 0x29a   : > { %4029 = vst.msk [vmem:[#allocation2 + $0x159] sm:$0xff] %vm4001_vm13, %v3960_v7  ;;  %4030 = vst.msk [vmem:[#allocation2 + $0x169] sm:$0xff] %vm4001_vm13, %v3962_v37  ;;  %22482 = vmatprep.mubr.msk.f32.mxu1 %vm4102_vm4, %v26965_v56 }
 0x29c   : > { %v3964_v59 = vpop.permute.xlu1 %3963  ;;  %v3966_v61 = vpop.permute.xlu0 %3965  ;;  %v26973_v62 = vld [vmem:[#allocation2 + $0x141] sm:$0xff]  ;;  %v26975_v1 = vld [vmem:[#allocation2 + $0x151] sm:$0xff] }
 0x29d   : > { %30994 = vst [vmem:[#allocation18_spill] sm:$0xff] %v26973_v62  ;;  %30995 = vst [vmem:[#allocation4_spill] sm:$0xff] %v26975_v1  ;;  %22483 = vmatmul.mubr.msk.f32.gmra.mrb[58].mxu1 %vm4102_vm4, %v26973_v62  ;;  %v27105_v34 = vld [vmem:[#allocation2 + $0x140] sm:$0xff]  ;;  %v27109_v7 = vld [vmem:[#allocation2 + $0x150] sm:$0xff] }
 0x29e   : > { %4031 = vst.msk [vmem:[#allocation2 + $0x171] sm:$0xff] %vm4001_vm13, %v3964_v59  ;;  %4032 = vst.msk [vmem:[#allocation2 + $0x181] sm:$0xff] %vm4001_vm13, %v3966_v61  ;;  %22485 = vmatprep.mubr.msk.f32.mxu1 %vm4102_vm4, %v26975_v1  ;;  %v4745_v61 = vld [vmem:[#allocation2 + $0x2] sm:$0xff] }
 0x2a0   : > { %v3968_v5 = vpop.permute.xlu1 %3967 }
 0x2a1   : > { %v26983_v6 = vld [vmem:[#allocation2 + $0x159] sm:$0xff]  ;;  %v26985_v9 = vld [vmem:[#allocation2 + $0x169] sm:$0xff]  ;;  %4033 = vst.msk [vmem:[#allocation2 + $0x189] sm:$0xff] %vm4001_vm13, %v3968_v5 }
 0x2a2   : > { %30996 = vst [vmem:[#allocation19_spill] sm:$0xff] %v26983_v6  ;;  %30997 = vst [vmem:[#allocation5_spill] sm:$0xff] %v26985_v9  ;;  %22486 = vmatmul.mubr.msk.f32.gmra.mrb[60].mxu1 %vm4102_vm4, %v26983_v6  ;;  %v27113_v37 = vld [vmem:[#allocation2 + $0x158] sm:$0xff]  ;;  %v27117_v59 = vld [vmem:[#allocation2 + $0x168] sm:$0xff] }
 0x2a3   : > { %22488 = vmatprep.mubr.msk.f32.mxu1 %vm4102_vm4, %v26985_v9  ;;  %v27138_v9 = vld [vmem:[#allocation2 + $0x22] sm:$0xff] }
 0x2a4   : > { %31000 = vst [vmem:[#allocation21_spill] sm:$0xff] %v27138_v9 }
 0x2a5   : > { %v26992_v10 = vld [vmem:[#allocation2 + $0x171] sm:$0xff] }
 0x2a6   : > { %30998 = vst [vmem:[#allocation20_spill] sm:$0xff] %v26992_v10  ;;  %22489 = vmatmul.mubr.msk.f32.gmra.mrb[62].mxu1 %vm4102_vm4, %v26992_v10  ;;  %v27121_v5 = vld [vmem:[#allocation2 + $0x170] sm:$0xff]  ;;  %v27132_v10 = vld [vmem:[#allocation2 + $0x1a] sm:$0xff] }
 0x2a7   : > { %22493 = vmatprep.mubr.msk.f32.mxu1 %vm4102_vm4, %v4034_v22  ;;  %v4746_v22 = vld [vmem:[#allocation2 + $0xa] sm:$0xff]  ;;  %30999 = vst [vmem:[#allocation6_spill] sm:$0xff] %v27132_v10 }
 0x2aa   : > { %22494 = vmatmul.mubr.msk.f32.vlgmr.msra.gmra.mrb[32].mxu1 %vm4102_vm4, %v4035_v11  ;;  %v27129_v11 = vld [vmem:[%s30628_s1 + $0x138] sm:$0xff] }
 0x2ab   : > { %22542 = vmatpush3.msra.mxu1 %v26838_v4  ;;  %22496 = vmatprep.mubr.msk.f32.mxu1 %vm4102_vm4, %v27003_v13  ;;  %v27021_v4 = vld [vmem:[#allocation2 + $0x48] sm:$0xff] }
 0x2ac   : > { %22591 = vmatprep.subr.mxu1 %v27000_v12 }
 0x2ae   : > { %22497 = vmatmul.mubr.msk.f32.gmra.mrb[34].mxu1 %vm4102_vm4, %v27009_v14 }
 0x2af   : > { %22499 = vmatprep.mubr.msk.f32.mxu1 %vm4102_vm4, %v27013_v23 }
 0x2b2   : > { %22500 = vmatmul.mubr.msk.f32.gmra.mrb[36].mxu1 %vm4102_vm4, %v27017_v15 }
 0x2b3   : > { %22502 = vmatprep.mubr.msk.f32.mxu1 %vm4102_vm4, %v27021_v4 }
 0x2b6   : > { %22503 = vmatmul.mubr.msk.f32.gmra.mrb[38].mxu1 %vm4102_vm4, %v27025_v27 }
 0x2b7   : > { %22505 = vmatprep.mubr.msk.f32.mxu1 %vm4102_vm4, %v27029_v29 }
 0x2ba   : > { %22506 = vmatmul.mubr.msk.f32.gmra.mrb[40].mxu1 %vm4102_vm4, %v27033_v31 }
 0x2bb   : > { %22508 = vmatprep.mubr.msk.f32.mxu1 %vm4102_vm4, %v27037_v39 }
 0x2be   : > { %22509 = vmatmul.mubr.msk.f32.gmra.mrb[42].mxu1 %vm4102_vm4, %v27041_v40 }
 0x2bf   : > { %22511 = vmatprep.mubr.msk.f32.mxu1 %vm4102_vm4, %v27045_v42 }
 0x2c2   : > { %22512 = vmatmul.mubr.msk.f32.gmra.mrb[44].mxu1 %vm4102_vm4, %v27049_v44 }
 0x2c3   : > { %22514 = vmatprep.mubr.msk.f32.mxu1 %vm4102_vm4, %v27053_v46 }
 0x2c6   : > { %22515 = vmatmul.mubr.msk.f32.gmra.mrb[46].mxu1 %vm4102_vm4, %v27057_v47 }
 0x2c7   : > { %22517 = vmatprep.mubr.msk.f32.mxu1 %vm4102_vm4, %v27061_v24 }
 0x2ca   : > { %22518 = vmatmul.mubr.msk.f32.gmra.mrb[48].mxu1 %vm4102_vm4, %v27065_v26 }
 0x2cb   : > { %22520 = vmatprep.mubr.msk.f32.mxu1 %vm4102_vm4, %v27069_v55 }
 0x2ce   : > { %22521 = vmatmul.mubr.msk.f32.gmra.mrb[50].mxu1 %vm4102_vm4, %v27073_v60 }
 0x2cf   : > { %22523 = vmatprep.mubr.msk.f32.mxu1 %vm4102_vm4, %v27077_v36 }
 0x2d2   : > { %22524 = vmatmul.mubr.msk.f32.gmra.mrb[52].mxu1 %vm4102_vm4, %v27081_v41 }
 0x2d3   : > { %22526 = vmatprep.mubr.msk.f32.mxu1 %vm4102_vm4, %v27085_v52 }
 0x2d6   : > { %22527 = vmatmul.mubr.msk.f32.gmra.mrb[54].mxu1 %vm4102_vm4, %v27089_v0 }
 0x2d7   : > { %22529 = vmatprep.mubr.msk.f32.mxu1 %vm4102_vm4, %v27093_v35 }
 0x2da   : > { %22530 = vmatmul.mubr.msk.f32.gmra.mrb[56].mxu1 %vm4102_vm4, %v27097_v43 }
 0x2db   : > { %22532 = vmatprep.mubr.msk.f32.mxu1 %vm4102_vm4, %v27101_v3 }
 0x2de   : > { %22533 = vmatmul.mubr.msk.f32.gmra.mrb[58].mxu1 %vm4102_vm4, %v27105_v34 }
 0x2df   : > { %22535 = vmatprep.mubr.msk.f32.mxu1 %vm4102_vm4, %v27109_v7 }
 0x2e2   : > { %22536 = vmatmul.mubr.msk.f32.gmra.mrb[60].mxu1 %vm4102_vm4, %v27113_v37 }
 0x2e3   : > { %22538 = vmatprep.mubr.msk.f32.mxu1 %vm4102_vm4, %v27117_v59 }
 0x2e6   : > { %22539 = vmatmul.mubr.msk.f32.gmra.mrb[62].mxu1 %vm4102_vm4, %v27121_v5 }
 0x2e7   : > { %22543 = vmatprep.mubr.msk.f32.mxu1 %vm4102_vm4, %v4745_v61  ;;  %v27142_v61 = vld [vmem:[#allocation2 + $0x32] sm:$0xff] }
 0x2e8   : > { %31001 = vst [vmem:[#allocation7_spill] sm:$0xff] %v27142_v61 }
 0x2ea   : > { %22544 = vmatmul.mubr.msk.f32.vlgmr.msra.gmra.mrb[32].mxu1 %vm4102_vm4, %v4746_v22  ;;  %v27146_v22 = vld [vmem:[#allocation2 + $0x3a] sm:$0xff] }
 0x2eb   : > { %22592 = vmatpush3.msra.mxu1 %v27000_v12  ;;  %22546 = vmatprep.mubr.msk.f32.mxu1 %vm4102_vm4, %v27132_v10  ;;  %31002 = vst [vmem:[#allocation22_spill] sm:$0xff] %v27146_v22  ;;  %v27150_v12 = vld [vmem:[#allocation2 + $0x4a] sm:$0xff]  ;;  %v27154_v10 = vld [vmem:[#allocation2 + $0x52] sm:$0xff] }
 0x2ec   : > { %22641 = vmatprep.subr.mxu1 %v27129_v11  ;;  %31003 = vst [vmem:[#allocation8_spill] sm:$0xff] %v27150_v12  ;;  %31004 = vst [vmem:[#allocation23_spill] sm:$0xff] %v27154_v10 }
 0x2ee   : > { %22547 = vmatmul.mubr.msk.f32.gmra.mrb[34].mxu1 %vm4102_vm4, %v27138_v9  ;;  %v27158_v9 = vld [vmem:[#allocation2 + $0x62] sm:$0xff] }
 0x2ef   : > { %22549 = vmatprep.mubr.msk.f32.mxu1 %vm4102_vm4, %v27142_v61  ;;  %31005 = vst [vmem:[#allocation9_spill] sm:$0xff] %v27158_v9  ;;  %v27162_v61 = vld [vmem:[#allocation2 + $0x6a] sm:$0xff] }
 0x2f0   : > { %31006 = vst [vmem:[#allocation24_spill] sm:$0xff] %v27162_v61 }
 0x2f2   : > { %22550 = vmatmul.mubr.msk.f32.gmra.mrb[36].mxu1 %vm4102_vm4, %v27146_v22  ;;  %v27166_v22 = vld [vmem:[#allocation2 + $0x7a] sm:$0xff] }
 0x2f3   : > { %22552 = vmatprep.mubr.msk.f32.mxu1 %vm4102_vm4, %v27150_v12  ;;  %31007 = vst [vmem:[#allocation10_spill] sm:$0xff] %v27166_v22  ;;  %v27170_v12 = vld [vmem:[#allocation2 + $0x82] sm:$0xff] }
 0x2f4   : > { %31008 = vst [vmem:[#allocation25_spill] sm:$0xff] %v27170_v12 }
 0x2f6   : > { %22553 = vmatmul.mubr.msk.f32.gmra.mrb[38].mxu1 %vm4102_vm4, %v27154_v10  ;;  %v27174_v10 = vld [vmem:[#allocation2 + $0x92] sm:$0xff] }
 0x2f7   : > { %22555 = vmatprep.mubr.msk.f32.mxu1 %vm4102_vm4, %v27158_v9  ;;  %31009 = vst [vmem:[#allocation11_spill] sm:$0xff] %v27174_v10  ;;  %v27178_v9 = vld [vmem:[#allocation2 + $0x9a] sm:$0xff] }
 0x2f8   : > { %31010 = vst [vmem:[#allocation26_spill] sm:$0xff] %v27178_v9 }
 0x2fa   : > { %22556 = vmatmul.mubr.msk.f32.gmra.mrb[40].mxu1 %vm4102_vm4, %v27162_v61  ;;  %v27182_v61 = vld [vmem:[#allocation2 + $0xaa] sm:$0xff] }
 0x2fb   : > { %22558 = vmatprep.mubr.msk.f32.mxu1 %vm4102_vm4, %v27166_v22  ;;  %31011 = vst [vmem:[#allocation12_spill] sm:$0xff] %v27182_v61  ;;  %v27186_v22 = vld [vmem:[#allocation2 + $0xb2] sm:$0xff] }
 0x2fc   : > { %31012 = vst [vmem:[#allocation27_spill] sm:$0xff] %v27186_v22 }
 0x2fe   : > { %22559 = vmatmul.mubr.msk.f32.gmra.mrb[42].mxu1 %vm4102_vm4, %v27170_v12  ;;  %v27190_v12 = vld [vmem:[#allocation2 + $0xc2] sm:$0xff] }
 0x2ff   : > { %22561 = vmatprep.mubr.msk.f32.mxu1 %vm4102_vm4, %v27174_v10  ;;  %31013 = vst [vmem:[#allocation13_spill] sm:$0xff] %v27190_v12  ;;  %v27194_v10 = vld [vmem:[#allocation2 + $0xca] sm:$0xff] }
 0x300   : > { %31014 = vst [vmem:[#allocation28_spill] sm:$0xff] %v27194_v10 }
 0x302   : > { %22562 = vmatmul.mubr.msk.f32.gmra.mrb[44].mxu1 %vm4102_vm4, %v27178_v9  ;;  %v27198_v9 = vld [vmem:[#allocation2 + $0xda] sm:$0xff] }
 0x303   : > { %22564 = vmatprep.mubr.msk.f32.mxu1 %vm4102_vm4, %v27182_v61  ;;  %31015 = vst [vmem:[#allocation14_spill] sm:$0xff] %v27198_v9  ;;  %v27202_v61 = vld [vmem:[#allocation2 + $0xe2] sm:$0xff] }
 0x304   : > { %31016 = vst [vmem:[#allocation29_spill] sm:$0xff] %v27202_v61 }
 0x306   : > { %22565 = vmatmul.mubr.msk.f32.gmra.mrb[46].mxu1 %vm4102_vm4, %v27186_v22  ;;  %v27206_v22 = vld [vmem:[#allocation2 + $0xf2] sm:$0xff] }
 0x307   : > { %22567 = vmatprep.mubr.msk.f32.mxu1 %vm4102_vm4, %v27190_v12  ;;  %31017 = vst [vmem:[#allocation15_spill] sm:$0xff] %v27206_v22  ;;  %v27210_v12 = vld [vmem:[#allocation2 + $0xfa] sm:$0xff] }
 0x308   : > { %31018 = vst [vmem:[#allocation16_spill] sm:$0xff] %v27210_v12 }
 0x30a   : > { %22568 = vmatmul.mubr.msk.f32.gmra.mrb[48].mxu1 %vm4102_vm4, %v27194_v10  ;;  %v27214_v10 = vld [vmem:[#allocation2 + $0x10a] sm:$0xff] }
 0x30b   : > { %22570 = vmatprep.mubr.msk.f32.mxu1 %vm4102_vm4, %v27198_v9  ;;  %31019 = vst [vmem:[#allocation30_spill] sm:$0xff] %v27214_v10  ;;  %v27218_v9 = vld [vmem:[#allocation2 + $0x112] sm:$0xff] }
 0x30c   : > { %31020 = vst [vmem:[#allocation17_spill] sm:$0xff] %v27218_v9 }
 0x30e   : > { %22571 = vmatmul.mubr.msk.f32.gmra.mrb[50].mxu1 %vm4102_vm4, %v27202_v61  ;;  %v27222_v61 = vld [vmem:[#allocation2 + $0x122] sm:$0xff] }
 0x30f   : > { %22573 = vmatprep.mubr.msk.f32.mxu1 %vm4102_vm4, %v27206_v22  ;;  %31021 = vst [vmem:[#allocation32_spill] sm:$0xff] %v27222_v61  ;;  %v27226_v22 = vld [vmem:[#allocation2 + $0x12a] sm:$0xff] }
 0x310   : > { %31022 = vst [vmem:[#allocation33_spill] sm:$0xff] %v27226_v22 }
 0x312   : > { %22574 = vmatmul.mubr.msk.f32.gmra.mrb[52].mxu1 %vm4102_vm4, %v27210_v12  ;;  %v27230_v12 = vld [vmem:[#allocation2 + $0x13a] sm:$0xff] }
 0x313   : > { %22576 = vmatprep.mubr.msk.f32.mxu1 %vm4102_vm4, %v27214_v10  ;;  %31023 = vst [vmem:[#allocation34_spill] sm:$0xff] %v27230_v12  ;;  %v27234_v10 = vld [vmem:[#allocation2 + $0x142] sm:$0xff] }
 0x316   : > { %22577 = vmatmul.mubr.msk.f32.gmra.mrb[54].mxu1 %vm4102_vm4, %v27218_v9  ;;  %v27238_v9 = vld [vmem:[#allocation2 + $0x152] sm:$0xff] }
 0x317   : > { %22579 = vmatprep.mubr.msk.f32.mxu1 %vm4102_vm4, %v27222_v61  ;;  %31024 = vst [vmem:[#allocation35_spill] sm:$0xff] %v27238_v9  ;;  %v27242_v61 = vld [vmem:[#allocation2 + $0x15a] sm:$0xff] }
 0x31a   : > { %22580 = vmatmul.mubr.msk.f32.gmra.mrb[56].mxu1 %vm4102_vm4, %v27226_v22  ;;  %v27246_v22 = vld [vmem:[#allocation2 + $0x16a] sm:$0xff] }
 0x31b   : > { %22582 = vmatprep.mubr.msk.f32.mxu1 %vm4102_vm4, %v27230_v12  ;;  %31025 = vst [vmem:[#allocation36_spill] sm:$0xff] %v27246_v22  ;;  %v27250_v12 = vld [vmem:[#allocation2 + $0x172] sm:$0xff] }
 0x31e   : > { %22583 = vmatmul.mubr.msk.f32.gmra.mrb[58].mxu1 %vm4102_vm4, %v27234_v10 }
 0x31f   : > { %22585 = vmatprep.mubr.msk.f32.mxu1 %vm4102_vm4, %v27238_v9  ;;  %v19385_v9 = vld [vmem:[%s30628_s1 + $0x150] sm:$0xff] }
 0x322   : > { %22586 = vmatmul.mubr.msk.f32.gmra.mrb[60].mxu1 %vm4102_vm4, %v27242_v61 }
 0x323   : > { %22588 = vmatprep.mubr.msk.f32.mxu1 %vm4102_vm4, %v27246_v22 }
 0x326   : > { %22589 = vmatmul.mubr.msk.f32.gmra.mrb[62].mxu1 %vm4102_vm4, %v27250_v12 }
 0x327   : > { %22593 = vmatprep.mubr.msk.f32.mxu1 %vm4102_vm4, %v27003_v13  ;;  %v27318_v13 = vld [vmem:[#allocation2 + $0x180] sm:$0xff] }
 0x32a   : > { %22594 = vmatmul.mubr.msk.f32.vlgmr.msra.gmra.mrb[32].mxu1 %vm4102_vm4, %v27009_v14  ;;  %v27322_v14 = vld [vmem:[#allocation2 + $0x188] sm:$0xff] }
 0x32b   : > { %22642 = vmatpush3.msra.mxu1 %v27129_v11  ;;  %22596 = vmatprep.mubr.msk.f32.mxu1 %vm4102_vm4, %v27013_v23  ;;  %v19418_v11 = vld [vmem:[%s30628_s1 + $0x168] sm:$0xff] }
 0x32c   : > { %22691 = vmatprep.subr.mxu1 %v19385_v9 }
 0x32e   : > { %22597 = vmatmul.mubr.msk.f32.gmra.mrb[34].mxu1 %vm4102_vm4, %v27017_v15 }
 0x32f   : > { %22599 = vmatprep.mubr.msk.f32.mxu1 %vm4102_vm4, %v27021_v4 }
 0x332   : > { %22600 = vmatmul.mubr.msk.f32.gmra.mrb[36].mxu1 %vm4102_vm4, %v27025_v27 }
 0x333   : > { %22602 = vmatprep.mubr.msk.f32.mxu1 %vm4102_vm4, %v27029_v29 }
 0x336   : > { %22603 = vmatmul.mubr.msk.f32.gmra.mrb[38].mxu1 %vm4102_vm4, %v27033_v31 }
 0x337   : > { %22605 = vmatprep.mubr.msk.f32.mxu1 %vm4102_vm4, %v27037_v39 }
 0x33a   : > { %22606 = vmatmul.mubr.msk.f32.gmra.mrb[40].mxu1 %vm4102_vm4, %v27041_v40 }
 0x33b   : > { %22608 = vmatprep.mubr.msk.f32.mxu1 %vm4102_vm4, %v27045_v42 }
 0x33e   : > { %22609 = vmatmul.mubr.msk.f32.gmra.mrb[42].mxu1 %vm4102_vm4, %v27049_v44 }
 0x33f   : > { %22611 = vmatprep.mubr.msk.f32.mxu1 %vm4102_vm4, %v27053_v46 }
 0x342   : > { %22612 = vmatmul.mubr.msk.f32.gmra.mrb[44].mxu1 %vm4102_vm4, %v27057_v47 }
 0x343   : > { %22614 = vmatprep.mubr.msk.f32.mxu1 %vm4102_vm4, %v27061_v24 }
 0x346   : > { %22615 = vmatmul.mubr.msk.f32.gmra.mrb[46].mxu1 %vm4102_vm4, %v27065_v26 }
 0x347   : > { %22617 = vmatprep.mubr.msk.f32.mxu1 %vm4102_vm4, %v27069_v55 }
 0x34a   : > { %22618 = vmatmul.mubr.msk.f32.gmra.mrb[48].mxu1 %vm4102_vm4, %v27073_v60 }
 0x34b   : > { %22620 = vmatprep.mubr.msk.f32.mxu1 %vm4102_vm4, %v27077_v36 }
 0x34e   : > { %22621 = vmatmul.mubr.msk.f32.gmra.mrb[50].mxu1 %vm4102_vm4, %v27081_v41 }
 0x34f   : > { %22623 = vmatprep.mubr.msk.f32.mxu1 %vm4102_vm4, %v27085_v52 }
 0x352   : > { %22624 = vmatmul.mubr.msk.f32.gmra.mrb[52].mxu1 %vm4102_vm4, %v27089_v0 }
 0x353   : > { %22626 = vmatprep.mubr.msk.f32.mxu1 %vm4102_vm4, %v27093_v35 }
 0x356   : > { %22627 = vmatmul.mubr.msk.f32.gmra.mrb[54].mxu1 %vm4102_vm4, %v27097_v43 }
 0x357   : > { %22629 = vmatprep.mubr.msk.f32.mxu1 %vm4102_vm4, %v27101_v3 }
 0x35a   : > { %22630 = vmatmul.mubr.msk.f32.gmra.mrb[56].mxu1 %vm4102_vm4, %v27105_v34 }
 0x35b   : > { %22632 = vmatprep.mubr.msk.f32.mxu1 %vm4102_vm4, %v27109_v7 }
 0x35e   : > { %22633 = vmatmul.mubr.msk.f32.gmra.mrb[58].mxu1 %vm4102_vm4, %v27113_v37 }
 0x35f   : > { %22635 = vmatprep.mubr.msk.f32.mxu1 %vm4102_vm4, %v27117_v59 }
 0x362   : > { %22636 = vmatmul.mubr.msk.f32.gmra.mrb[60].mxu1 %vm4102_vm4, %v27121_v5 }
 0x363   : > { %22638 = vmatprep.mubr.msk.f32.mxu1 %vm4102_vm4, %v27318_v13 }
 0x366   : > { %22639 = vmatmul.mubr.msk.f32.gmra.mrb[62].mxu1 %vm4102_vm4, %v27322_v14 }
 0x367   : > { %22643 = vmatprep.mubr.msk.f32.mxu1 %vm4102_vm4, %v26847_v25  ;;  %v31026_v25 = vld [vmem:[#allocation5_spill] sm:$0xff] }
 0x36a   : > { %22644 = vmatmul.mubr.msk.f32.vlgmr.msra.gmra.mrb[32].mxu1 %vm4102_vm4, %v26853_v17  ;;  %v31027_v17 = vld [vmem:[#allocation20_spill] sm:$0xff] }
 0x36b   : > { %22692 = vmatpush3.msra.mxu1 %v19385_v9  ;;  %22646 = vmatprep.mubr.msk.f32.mxu1 %vm4102_vm4, %v26855_v28  ;;  %v27389_v9 = vld [vmem:[#allocation2 + $0x181] sm:$0xff] }
 0x36c   : > { %22741 = vmatprep.subr.mxu1 %v19418_v11  ;;  %31028 = vst [vmem:[#allocation37_spill] sm:$0xff] %v27389_v9 }
 0x36e   : > { %22647 = vmatmul.mubr.msk.f32.gmra.mrb[34].mxu1 %vm4102_vm4, %v26863_v33 }
 0x36f   : > { %22649 = vmatprep.mubr.msk.f32.mxu1 %vm4102_vm4, %v26865_v38 }
 0x372   : > { %22650 = vmatmul.mubr.msk.f32.gmra.mrb[36].mxu1 %vm4102_vm4, %v26873_v8 }
 0x373   : > { %22652 = vmatprep.mubr.msk.f32.mxu1 %vm4102_vm4, %v26875_v18 }
 0x376   : > { %22653 = vmatmul.mubr.msk.f32.gmra.mrb[38].mxu1 %vm4102_vm4, %v26883_v19 }
 0x377   : > { %22655 = vmatprep.mubr.msk.f32.mxu1 %vm4102_vm4, %v26885_v45 }
 0x37a   : > { %22656 = vmatmul.mubr.msk.f32.gmra.mrb[40].mxu1 %vm4102_vm4, %v26893_v57 }
 0x37b   : > { %22658 = vmatprep.mubr.msk.f32.mxu1 %vm4102_vm4, %v26895_v58 }
 0x37e   : > { %22659 = vmatmul.mubr.msk.f32.gmra.mrb[42].mxu1 %vm4102_vm4, %v26903_v20 }
 0x37f   : > { %22661 = vmatprep.mubr.msk.f32.mxu1 %vm4102_vm4, %v26905_v63 }
 0x382   : > { %22662 = vmatmul.mubr.msk.f32.gmra.mrb[44].mxu1 %vm4102_vm4, %v26913_v21 }
 0x383   : > { %22664 = vmatprep.mubr.msk.f32.mxu1 %vm4102_vm4, %v26915_v32 }
 0x386   : > { %22665 = vmatmul.mubr.msk.f32.gmra.mrb[46].mxu1 %vm4102_vm4, %v26923_v48 }
 0x387   : > { %22667 = vmatprep.mubr.msk.f32.mxu1 %vm4102_vm4, %v26925_v50 }
 0x38a   : > { %22668 = vmatmul.mubr.msk.f32.gmra.mrb[48].mxu1 %vm4102_vm4, %v26933_v2 }
 0x38b   : > { %22670 = vmatprep.mubr.msk.f32.mxu1 %vm4102_vm4, %v26935_v16 }
 0x38e   : > { %22671 = vmatmul.mubr.msk.f32.gmra.mrb[50].mxu1 %vm4102_vm4, %v26943_v51 }
 0x38f   : > { %22673 = vmatprep.mubr.msk.f32.mxu1 %vm4102_vm4, %v26945_v30 }
 0x392   : > { %22674 = vmatmul.mubr.msk.f32.gmra.mrb[52].mxu1 %vm4102_vm4, %v26953_v49 }
 0x393   : > { %22676 = vmatprep.mubr.msk.f32.mxu1 %vm4102_vm4, %v26955_v53 }
 0x396   : > { %22677 = vmatmul.mubr.msk.f32.gmra.mrb[54].mxu1 %vm4102_vm4, %v26963_v54  ;;  %v31037_v54 = vld [vmem:[#allocation24_spill] sm:$0xff] }
 0x397   : > { %22679 = vmatprep.mubr.msk.f32.mxu1 %vm4102_vm4, %v26965_v56  ;;  %v27393_v56 = vld [vmem:[#allocation2 + $0x189] sm:$0xff] }
 0x398   : > { %31029 = vst [vmem:[#allocation38_spill] sm:$0xff] %v27393_v56 }
 0x39a   : > { %22680 = vmatmul.mubr.msk.f32.gmra.mrb[56].mxu1 %vm4102_vm4, %v26973_v62  ;;  %v31034_v62 = vld [vmem:[#allocation8_spill] sm:$0xff] }
 0x39b   : > { %22682 = vmatprep.mubr.msk.f32.mxu1 %vm4102_vm4, %v26975_v1  ;;  %v31030_v1 = vld [vmem:[#allocation6_spill] sm:$0xff] }
 0x39e   : > { %22683 = vmatmul.mubr.msk.f32.gmra.mrb[58].mxu1 %vm4102_vm4, %v26983_v6  ;;  %v31031_v6 = vld [vmem:[#allocation21_spill] sm:$0xff] }
 0x39f   : > { %22685 = vmatprep.mubr.msk.f32.mxu1 %vm4102_vm4, %v31026_v25  ;;  %v19451_v25 = vld [vmem:[%s30628_s1 + $0x180] sm:$0xff] }
 0x3a2   : > { %22686 = vmatmul.mubr.msk.f32.gmra.mrb[60].mxu1 %vm4102_vm4, %v31027_v17  ;;  %v31032_v17 = vld [vmem:[#allocation7_spill] sm:$0xff] }
 0x3a3   : > { %22688 = vmatprep.mubr.msk.f32.mxu1 %vm4102_vm4, %v27389_v9  ;;  %v31033_v9 = vld [vmem:[#allocation22_spill] sm:$0xff] }
 0x3a6   : > { %22689 = vmatmul.mubr.msk.f32.gmra.mrb[62].mxu1 %vm4102_vm4, %v27393_v56  ;;  %v31035_v56 = vld [vmem:[#allocation23_spill] sm:$0xff] }
 0x3a7   : > { %22693 = vmatprep.mubr.msk.f32.mxu1 %vm4102_vm4, %v31030_v1  ;;  %v31036_v1 = vld [vmem:[#allocation9_spill] sm:$0xff] }
 0x3aa   : > { %22694 = vmatmul.mubr.msk.f32.vlgmr.msra.gmra.mrb[32].mxu1 %vm4102_vm4, %v31031_v6  ;;  %v31038_v6 = vld [vmem:[#allocation10_spill] sm:$0xff] }
 0x3ab   : > { %22742 = vmatpush3.msra.mxu1 %v19418_v11  ;;  %22696 = vmatprep.mubr.msk.f32.mxu1 %vm4102_vm4, %v31032_v17  ;;  %v31039_v11 = vld [vmem:[#allocation25_spill] sm:$0xff]  ;;  %v31040_v17 = vld [vmem:[#allocation11_spill] sm:$0xff] }
 0x3ac   : > { %22791 = vmatprep.subr.mxu1 %v19451_v25 }
 0x3ae   : > { %22697 = vmatmul.mubr.msk.f32.gmra.mrb[34].mxu1 %vm4102_vm4, %v31033_v9  ;;  %v31041_v9 = vld [vmem:[#allocation26_spill] sm:$0xff] }
 0x3af   : > { %22699 = vmatprep.mubr.msk.f32.mxu1 %vm4102_vm4, %v31034_v62  ;;  %v31042_v62 = vld [vmem:[#allocation12_spill] sm:$0xff] }
 0x3b2   : > { %22700 = vmatmul.mubr.msk.f32.gmra.mrb[36].mxu1 %vm4102_vm4, %v31035_v56  ;;  %v31043_v56 = vld [vmem:[#allocation27_spill] sm:$0xff] }
 0x3b3   : > { %22702 = vmatprep.mubr.msk.f32.mxu1 %vm4102_vm4, %v31036_v1  ;;  %v31044_v1 = vld [vmem:[#allocation13_spill] sm:$0xff] }
 0x3b6   : > { %22703 = vmatmul.mubr.msk.f32.gmra.mrb[38].mxu1 %vm4102_vm4, %v31037_v54  ;;  %v31045_v54 = vld [vmem:[#allocation28_spill] sm:$0xff] }
 0x3b7   : > { %22705 = vmatprep.mubr.msk.f32.mxu1 %vm4102_vm4, %v31038_v6  ;;  %v31046_v6 = vld [vmem:[#allocation14_spill] sm:$0xff] }
 0x3ba   : > { %22706 = vmatmul.mubr.msk.f32.gmra.mrb[40].mxu1 %vm4102_vm4, %v31039_v11  ;;  %v31047_v11 = vld [vmem:[#allocation29_spill] sm:$0xff] }
 0x3bb   : > { %22708 = vmatprep.mubr.msk.f32.mxu1 %vm4102_vm4, %v31040_v17  ;;  %v31048_v17 = vld [vmem:[#allocation15_spill] sm:$0xff] }
 0x3be   : > { %22709 = vmatmul.mubr.msk.f32.gmra.mrb[42].mxu1 %vm4102_vm4, %v31041_v9  ;;  %v31049_v9 = vld [vmem:[#allocation16_spill] sm:$0xff] }
 0x3bf   : > { %22711 = vmatprep.mubr.msk.f32.mxu1 %vm4102_vm4, %v31042_v62  ;;  %v31050_v62 = vld [vmem:[#allocation30_spill] sm:$0xff] }
 0x3c2   : > { %22712 = vmatmul.mubr.msk.f32.gmra.mrb[44].mxu1 %vm4102_vm4, %v31043_v56  ;;  %v31051_v56 = vld [vmem:[#allocation17_spill] sm:$0xff] }
 0x3c3   : > { %22714 = vmatprep.mubr.msk.f32.mxu1 %vm4102_vm4, %v31044_v1  ;;  %v31052_v1 = vld [vmem:[#allocation32_spill] sm:$0xff] }
 0x3c6   : > { %22715 = vmatmul.mubr.msk.f32.gmra.mrb[46].mxu1 %vm4102_vm4, %v31045_v54  ;;  %v31053_v54 = vld [vmem:[#allocation33_spill] sm:$0xff] }
 0x3c7   : > { %22717 = vmatprep.mubr.msk.f32.mxu1 %vm4102_vm4, %v31046_v6  ;;  %v31054_v6 = vld [vmem:[#allocation34_spill] sm:$0xff] }
 0x3ca   : > { %22718 = vmatmul.mubr.msk.f32.gmra.mrb[48].mxu1 %vm4102_vm4, %v31047_v11 }
 0x3cb   : > { %22720 = vmatprep.mubr.msk.f32.mxu1 %vm4102_vm4, %v31048_v17  ;;  %v31055_v17 = vld [vmem:[#allocation35_spill] sm:$0xff] }
 0x3ce   : > { %22721 = vmatmul.mubr.msk.f32.gmra.mrb[50].mxu1 %vm4102_vm4, %v31049_v9 }
 0x3cf   : > { %22723 = vmatprep.mubr.msk.f32.mxu1 %vm4102_vm4, %v31050_v62 }
 0x3d2   : > { %22724 = vmatmul.mubr.msk.f32.gmra.mrb[52].mxu1 %vm4102_vm4, %v31051_v56 }
 0x3d3   : > { %22726 = vmatprep.mubr.msk.f32.mxu1 %vm4102_vm4, %v31052_v1  ;;  %v27460_v1 = vld [vmem:[#allocation2 + $0x182] sm:$0xff] }
 0x3d6   : > { %22727 = vmatmul.mubr.msk.f32.gmra.mrb[54].mxu1 %vm4102_vm4, %v31053_v54 }
 0x3d7   : > { %22729 = vmatprep.mubr.msk.f32.mxu1 %vm4102_vm4, %v31054_v6  ;;  %v27464_v6 = vld [vmem:[#allocation2 + $0x18a] sm:$0xff] }
 0x3da   : > { %22730 = vmatmul.mubr.msk.f32.gmra.mrb[56].mxu1 %vm4102_vm4, %v27234_v10 }
 0x3db   : > { %22732 = vmatprep.mubr.msk.f32.mxu1 %vm4102_vm4, %v31055_v17 }
 0x3de   : > { %22733 = vmatmul.mubr.msk.f32.gmra.mrb[58].mxu1 %vm4102_vm4, %v27242_v61 }
 0x3df   : > { %22735 = vmatprep.mubr.msk.f32.mxu1 %vm4102_vm4, %v27246_v22  ;;  %v19484_v22 = vld [vmem:[%s30628_s1 + $0x198] sm:$0xff] }
 0x3e2   : > { %22736 = vmatmul.mubr.msk.f32.gmra.mrb[60].mxu1 %vm4102_vm4, %v27250_v12 }
 0x3e3   : > { %22738 = vmatprep.mubr.msk.f32.mxu1 %vm4102_vm4, %v27460_v1 }
 0x3e6   : > { %22739 = vmatmul.mubr.msk.f32.gmra.mrb[62].mxu1 %vm4102_vm4, %v27464_v6 }
 0x3e7   : > { %22743 = vmatprep.mubr.msk.f32.mxu1 %vm4102_vm4, %v27013_v23  ;;  %v6323_v23 = vld [vmem:[#allocation2 + $0x198] sm:$0xff] }
 0x3ea   : > { %22744 = vmatmul.mubr.msk.f32.vlgmr.msra.gmra.mrb[32].mxu1 %vm4102_vm4, %v27017_v15  ;;  %v6324_v15 = vld [vmem:[#allocation2 + $0x1a0] sm:$0xff] }
 0x3eb   : > { %22792 = vmatpush3.msra.mxu1 %v19451_v25  ;;  %22746 = vmatprep.mubr.msk.f32.mxu1 %vm4102_vm4, %v27021_v4  ;;  %v31075_v4 = vld [vmem:[#allocation12_spill] sm:$0xff] }
 0x3ec   : > { %22841 = vmatprep.subr.mxu1 %v19484_v22 }
 0x3ee   : > { %22747 = vmatmul.mubr.msk.f32.gmra.mrb[34].mxu1 %vm4102_vm4, %v27025_v27  ;;  %v31076_v27 = vld [vmem:[#allocation27_spill] sm:$0xff] }
 0x3ef   : > { %22749 = vmatprep.mubr.msk.f32.mxu1 %vm4102_vm4, %v27029_v29  ;;  %v31077_v29 = vld [vmem:[#allocation13_spill] sm:$0xff] }
 0x3f2   : > { %22750 = vmatmul.mubr.msk.f32.gmra.mrb[36].mxu1 %vm4102_vm4, %v27033_v31  ;;  %v31078_v31 = vld [vmem:[#allocation28_spill] sm:$0xff] }
 0x3f3   : > { %22752 = vmatprep.mubr.msk.f32.mxu1 %vm4102_vm4, %v27037_v39  ;;  %v31079_v39 = vld [vmem:[#allocation14_spill] sm:$0xff] }
 0x3f6   : > { %22753 = vmatmul.mubr.msk.f32.gmra.mrb[38].mxu1 %vm4102_vm4, %v27041_v40  ;;  %v31080_v40 = vld [vmem:[#allocation15_spill] sm:$0xff] }
 0x3f7   : > { %22755 = vmatprep.mubr.msk.f32.mxu1 %vm4102_vm4, %v27045_v42  ;;  %v31081_v42 = vld [vmem:[#allocation32_spill] sm:$0xff] }
 0x3fa   : > { %22756 = vmatmul.mubr.msk.f32.gmra.mrb[40].mxu1 %vm4102_vm4, %v27049_v44  ;;  %v31082_v44 = vld [vmem:[#allocation34_spill] sm:$0xff] }
 0x3fb   : > { %22758 = vmatprep.mubr.msk.f32.mxu1 %vm4102_vm4, %v27053_v46  ;;  %v19521_v46 = vld [vmem:[%s30628_s1 + $0x1d0] sm:$0xf] }
 0x3fe   : > { %22759 = vmatmul.mubr.msk.f32.gmra.mrb[42].mxu1 %vm4102_vm4, %v27057_v47 }
 0x3ff   : > { %22761 = vmatprep.mubr.msk.f32.mxu1 %vm4102_vm4, %v27061_v24 }
 0x402   : > { %22762 = vmatmul.mubr.msk.f32.gmra.mrb[44].mxu1 %vm4102_vm4, %v27065_v26  ;;  %v7783_v26 = vld [vmem:[#allocation2 + $0x1] sm:$0xff] }
 0x403   : > { %22764 = vmatprep.mubr.msk.f32.mxu1 %vm4102_vm4, %v27069_v55  ;;  %v19518_v55 = vld [vmem:[%s30628_s1 + $0x1b0] sm:$0xff] }
 0x406   : > { %22765 = vmatmul.mubr.msk.f32.gmra.mrb[46].mxu1 %vm4102_vm4, %v27073_v60  ;;  %v19519_v60 = vld [vmem:[%s30628_s1 + $0x1b8] sm:$0xf] }
 0x407   : > { %22767 = vmatprep.mubr.msk.f32.mxu1 %vm4102_vm4, %v27077_v36  ;;  %v27681_v36 = vld [vmem:[%s30629_s2 + $0x1] ss:$0 sm:$0xff] }
 0x40a   : > { %22768 = vmatmul.mubr.msk.f32.gmra.mrb[48].mxu1 %vm4102_vm4, %v27081_v41  ;;  %v24319_v41 = vpack.c.bf16 %v19519_v60, %v19518_v55 }
 0x40b   : > { %22770 = vmatprep.mubr.msk.f32.mxu1 %vm4102_vm4, %v27085_v52  ;;  %v7784_v52 = vld [vmem:[#allocation2 + $0x9] sm:$0xff] }
 0x40e   : > { %22771 = vmatmul.mubr.msk.f32.gmra.mrb[50].mxu1 %vm4102_vm4, %v27089_v0 }
 0x40f   : > { %22773 = vmatprep.mubr.msk.f32.mxu1 %vm4102_vm4, %v27093_v35 }
 0x412   : > { %22774 = vmatmul.mubr.msk.f32.gmra.mrb[52].mxu1 %vm4102_vm4, %v27097_v43 }
 0x413   : > { %22776 = vmatprep.mubr.msk.f32.mxu1 %vm4102_vm4, %v27101_v3 }
 0x416   : > { %22777 = vmatmul.mubr.msk.f32.gmra.mrb[54].mxu1 %vm4102_vm4, %v27105_v34 }
 0x417   : > { %22779 = vmatprep.mubr.msk.f32.mxu1 %vm4102_vm4, %v27109_v7 }
 0x41a   : > { %22780 = vmatmul.mubr.msk.f32.gmra.mrb[56].mxu1 %vm4102_vm4, %v27113_v37 }
 0x41b   : > { %22782 = vmatprep.mubr.msk.f32.mxu1 %vm4102_vm4, %v27117_v59 }
 0x41e   : > { %22783 = vmatmul.mubr.msk.f32.gmra.mrb[58].mxu1 %vm4102_vm4, %v27121_v5 }
 0x41f   : > { %22785 = vmatprep.mubr.msk.f32.mxu1 %vm4102_vm4, %v27318_v13 }
 0x422   : > { %22786 = vmatmul.mubr.msk.f32.gmra.mrb[60].mxu1 %vm4102_vm4, %v27322_v14 }
 0x423   : > { %22788 = vmatprep.mubr.msk.f32.mxu1 %vm4102_vm4, %v6323_v23 }
 0x426   : > { %22789 = vmatmul.mubr.msk.f32.gmra.mrb[62].mxu1 %vm4102_vm4, %v6324_v15 }
 0x427   : > { %22793 = vmatprep.mubr.msk.f32.mxu1 %vm4102_vm4, %v26855_v28  ;;  %v31056_v28 = vld [vmem:[#allocation31_spill] sm:$0xff] }
 0x42a   : > { %22794 = vmatmul.mubr.msk.f32.vlgmr.msra.gmra.mrb[32].mxu1 %vm4102_vm4, %v26863_v33  ;;  %v31057_v33 = vld [vmem:[#allocation3_spill] sm:$0xff] }
 0x42b   : > { %22842 = vmatpush3.msra.mxu1 %v19484_v22  ;;  %22796 = vmatprep.mubr.msk.f32.mxu1 %vm4102_vm4, %v26865_v38  ;;  %v31058_v38 = vld [vmem:[#allocation18_spill] sm:$0xff] }
 0x42e   : > { %22797 = vmatmul.mubr.msk.f32.gmra.mrb[34].mxu1 %vm4102_vm4, %v26873_v8  ;;  %v31059_v8 = vld [vmem:[#allocation4_spill] sm:$0xff] }
 0x42f   : > { %22799 = vmatprep.mubr.msk.f32.mxu1 %vm4102_vm4, %v26875_v18  ;;  %v31060_v18 = vld [vmem:[#allocation19_spill] sm:$0xff] }
 0x432   : > { %22800 = vmatmul.mubr.msk.f32.gmra.mrb[36].mxu1 %vm4102_vm4, %v26883_v19  ;;  %v31061_v19 = vld [vmem:[#allocation5_spill] sm:$0xff] }
 0x433   : > { %22802 = vmatprep.mubr.msk.f32.mxu1 %vm4102_vm4, %v26885_v45  ;;  %v31062_v45 = vld [vmem:[#allocation20_spill] sm:$0xff] }
 0x436   : > { %22803 = vmatmul.mubr.msk.f32.gmra.mrb[38].mxu1 %vm4102_vm4, %v26893_v57  ;;  %v31063_v57 = vld [vmem:[#allocation37_spill] sm:$0xff] }
 0x437   : > { %22805 = vmatprep.mubr.msk.f32.mxu1 %vm4102_vm4, %v26895_v58  ;;  %v6710_v58 = vld [vmem:[#allocation2 + $0x199] sm:$0xff] }
 0x43a   : > { %22806 = vmatmul.mubr.msk.f32.gmra.mrb[40].mxu1 %vm4102_vm4, %v26903_v20  ;;  %v31064_v20 = vld [vmem:[#allocation38_spill] sm:$0xff] }
 0x43b   : > { %22808 = vmatprep.mubr.msk.f32.mxu1 %vm4102_vm4, %v26905_v63  ;;  %v6711_v63 = vld [vmem:[#allocation2 + $0x1a1] sm:$0xff] }
 0x43e   : > { %22809 = vmatmul.mubr.msk.f32.gmra.mrb[42].mxu1 %vm4102_vm4, %v26913_v21  ;;  %v31065_v21 = vld [vmem:[#allocation7_spill] sm:$0xff] }
 0x43f   : > { %22811 = vmatprep.mubr.msk.f32.mxu1 %vm4102_vm4, %v26915_v32  ;;  %v31066_v32 = vld [vmem:[#allocation22_spill] sm:$0xff] }
 0x442   : > { %22812 = vmatmul.mubr.msk.f32.gmra.mrb[44].mxu1 %vm4102_vm4, %v26923_v48  ;;  %v31067_v48 = vld [vmem:[#allocation8_spill] sm:$0xff] }
 0x443   : > { %22814 = vmatprep.mubr.msk.f32.mxu1 %vm4102_vm4, %v26925_v50  ;;  %v31068_v50 = vld [vmem:[#allocation23_spill] sm:$0xff] }
 0x446   : > { %22815 = vmatmul.mubr.msk.f32.gmra.mrb[46].mxu1 %vm4102_vm4, %v26933_v2  ;;  %v31069_v2 = vld [vmem:[#allocation9_spill] sm:$0xff] }
 0x447   : > { %22817 = vmatprep.mubr.msk.f32.mxu1 %vm4102_vm4, %v26935_v16  ;;  %v31070_v16 = vld [vmem:[#allocation24_spill] sm:$0xff] }
 0x44a   : > { %22818 = vmatmul.mubr.msk.f32.gmra.mrb[48].mxu1 %vm4102_vm4, %v26943_v51  ;;  %v31071_v51 = vld [vmem:[#allocation10_spill] sm:$0xff] }
 0x44b   : > { %22820 = vmatprep.mubr.msk.f32.mxu1 %vm4102_vm4, %v26945_v30  ;;  %v31072_v30 = vld [vmem:[#allocation25_spill] sm:$0xff] }
 0x44e   : > { %22821 = vmatmul.mubr.msk.f32.gmra.mrb[50].mxu1 %vm4102_vm4, %v26953_v49  ;;  %v31073_v49 = vld [vmem:[#allocation11_spill] sm:$0xff] }
 0x44f   : > { %22823 = vmatprep.mubr.msk.f32.mxu1 %vm4102_vm4, %v26955_v53  ;;  %v31074_v53 = vld [vmem:[#allocation26_spill] sm:$0xff] }
 0x452   : > { %22824 = vmatmul.mubr.msk.f32.gmra.mrb[52].mxu1 %vm4102_vm4, %v31056_v28 }
 0x453   : > { %22826 = vmatprep.mubr.msk.f32.mxu1 %vm4102_vm4, %v31057_v33 }
 0x456   : > { %22827 = vmatmul.mubr.msk.f32.gmra.mrb[54].mxu1 %vm4102_vm4, %v31058_v38 }
 0x457   : > { %22829 = vmatprep.mubr.msk.f32.mxu1 %vm4102_vm4, %v31059_v8 }
 0x45a   : > { %22830 = vmatmul.mubr.msk.f32.gmra.mrb[56].mxu1 %vm4102_vm4, %v31060_v18 }
 0x45b   : > { %22832 = vmatprep.mubr.msk.f32.mxu1 %vm4102_vm4, %v31061_v19 }
 0x45e   : > { %22833 = vmatmul.mubr.msk.f32.gmra.mrb[58].mxu1 %vm4102_vm4, %v31062_v45 }
 0x45f   : > { %22835 = vmatprep.mubr.msk.f32.mxu1 %vm4102_vm4, %v31063_v57 }
 0x462   : > { %22836 = vmatmul.mubr.msk.f32.gmra.mrb[60].mxu1 %vm4102_vm4, %v31064_v20 }
 0x463   : > { %22838 = vmatprep.mubr.msk.f32.mxu1 %vm4102_vm4, %v6710_v58 }
 0x466   : > { %22839 = vmatmul.mubr.msk.f32.gmra.mrb[62].mxu1 %vm4102_vm4, %v6711_v63 }
 0x467   : > { %22843 = vmatprep.mubr.msk.f32.mxu1 %vm4102_vm4, %v31065_v21 }
 0x46a   : > { %22844 = vmatmul.mubr.msk.f32.vlgmr.msra.gmra.mrb[32].mxu1 %vm4102_vm4, %v31066_v32 }
 0x46b   : > { %22846 = vmatprep.mubr.msk.f32.mxu1 %vm4102_vm4, %v31067_v48 }
 0x46e   : > { %22847 = vmatmul.mubr.msk.f32.gmra.mrb[34].mxu1 %vm4102_vm4, %v31068_v50 }
 0x46f   : > { %22849 = vmatprep.mubr.msk.f32.mxu1 %vm4102_vm4, %v31069_v2 }
 0x472   : > { %22850 = vmatmul.mubr.msk.f32.gmra.mrb[36].mxu1 %vm4102_vm4, %v31070_v16 }
 0x473   : > { %22852 = vmatprep.mubr.msk.f32.mxu1 %vm4102_vm4, %v31071_v51 }
 0x476   : > { %22853 = vmatmul.mubr.msk.f32.gmra.mrb[38].mxu1 %vm4102_vm4, %v31072_v30 }
 0x477   : > { %22855 = vmatprep.mubr.msk.f32.mxu1 %vm4102_vm4, %v31073_v49 }
 0x47a   : > { %22856 = vmatmul.mubr.msk.f32.gmra.mrb[40].mxu1 %vm4102_vm4, %v31074_v53 }
 0x47b   : > { %22858 = vmatprep.mubr.msk.f32.mxu1 %vm4102_vm4, %v31075_v4 }
 0x47e   : > { %22859 = vmatmul.mubr.msk.f32.gmra.mrb[42].mxu1 %vm4102_vm4, %v31076_v27 }
 0x47f   : > { %22861 = vmatprep.mubr.msk.f32.mxu1 %vm4102_vm4, %v31077_v29 }
 0x482   : > { %22862 = vmatmul.mubr.msk.f32.gmra.mrb[44].mxu1 %vm4102_vm4, %v31078_v31 }
 0x483   : > { %22864 = vmatprep.mubr.msk.f32.mxu1 %vm4102_vm4, %v31079_v39 }
 0x486   : > { %22865 = vmatmul.mubr.msk.f32.gmra.mrb[46].mxu1 %vm4102_vm4, %v31047_v11 }
 0x487   : > { %22867 = vmatprep.mubr.msk.f32.mxu1 %vm4102_vm4, %v31080_v40 }
 0x48a   : > { %22868 = vmatmul.mubr.msk.f32.gmra.mrb[48].mxu1 %vm4102_vm4, %v31049_v9 }
 0x48b   : > { %22870 = vmatprep.mubr.msk.f32.mxu1 %vm4102_vm4, %v31050_v62  ;;  %v31083_v62 = vld [vmem:[#allocation36_spill] sm:$0xff] }
 0x48e   : > { %22871 = vmatmul.mubr.msk.f32.gmra.mrb[50].mxu1 %vm4102_vm4, %v31051_v56  ;;  %v7098_v56 = vld [vmem:[#allocation2 + $0x1a2] sm:$0xff] }
 0x48f   : > { %22873 = vmatprep.mubr.msk.f32.mxu1 %vm4102_vm4, %v31081_v42 }
 0x492   : > { %22874 = vmatmul.mubr.msk.f32.gmra.mrb[52].mxu1 %vm4102_vm4, %v31053_v54  ;;  %v7097_v54 = vld [vmem:[#allocation2 + $0x19a] sm:$0xff] }
 0x493   : > { %22876 = vmatprep.mubr.msk.f32.mxu1 %vm4102_vm4, %v31082_v44 }
 0x496   : > { %22877 = vmatmul.mubr.msk.f32.gmra.mrb[54].mxu1 %vm4102_vm4, %v27234_v10  ;;  %v19520_v10 = vld [vmem:[%s30628_s1 + $0x1c8] sm:$0xff] }
 0x497   : > { %22879 = vmatprep.mubr.msk.f32.mxu1 %vm4102_vm4, %v31055_v17  ;;  %v24313_v47 = vpack.c.bf16 %v19521_v46, %v19520_v10 }
 0x499   : > { %24315 = vmatprep.subr.msk.bf16.mxu0 %vm27664_vm15, %v24313_v47 }
 0x49a   : > { %22880 = vmatmul.mubr.msk.f32.gmra.mrb[56].mxu1 %vm4102_vm4, %v27242_v61  ;;  %24318 = vmatpush3.bf16.msk.msra.mxu0 %vm27664_vm15, %v24313_v47 }
 0x49b   : > { %22882 = vmatprep.mubr.msk.f32.mxu1 %vm4102_vm4, %v31083_v62  ;;  %24321 = vmatprep.subr.msk.bf16.mxu0 %vm27664_vm15, %v24319_v41 }
 0x49e   : > { %22883 = vmatmul.mubr.msk.f32.gmra.mrb[58].mxu1 %vm4102_vm4, %v27250_v12 }
 0x49f   : > { %22885 = vmatprep.mubr.msk.f32.mxu1 %vm4102_vm4, %v27460_v1 }
 0x4a2   : > { %22886 = vmatmul.mubr.msk.f32.gmra.mrb[60].mxu1 %vm4102_vm4, %v27464_v6 }
 0x4a3   : > { %22888 = vmatprep.mubr.msk.f32.mxu1 %vm4102_vm4, %v7097_v54 }
 0x4a6   : > { %22889 = vmatmul.mubr.msk.f32.gmra.mrb[62].mxu1 %vm4102_vm4, %v7098_v56  ;;  %vm7818_vm4 = vcmask 97280  }
 0x4a7   : > { %22895 = vmatprep.mubr.msk.f32.mxu0 %vm7818_vm4, %v7783_v26 }
 0x4a8   : > { %22896 = vmatmul.mubr.msk.f32.vlgmr.msra.gmra.mrb[32].mxu0 %vm7818_vm4, %v7784_v52 }
 0x4a9   : > { %24324 = vmatpush3.bf16.msk.msra.mxu0 %vm27664_vm15, %v24319_v41 }
 0x53d   : > { %v22845_v0 = vpop.f32.mrb[32].mxu1 }
 0x53e   : > { %v7460_v35 = vadd.f32 %v22845_v0, %v27681_v36  ;;  %v7263_v43 = vpop.f32.mrb[33].mxu1 }
 0x53f   : > { %v7459_v3 = vadd.f32 %v27681_v36, %v7263_v43 }
 0x540   : > { %v7524_v34 = vmul.f32 0.01, %v7460_v35  ;;  %vm7492_vm2 = vcmp.gt.f32.partialorder %v7460_v35, 0.0 }
 0x541   : > { %v7523_v7 = vmul.f32 0.01, %v7459_v3  ;;  %v22848_v37 = vpop.f32.mrb[34].mxu1  ;;  %vm7491_vm5 = vcmp.gt.f32.partialorder %v7459_v3, 0.0 }
 0x542   : > { %v7462_v59 = vadd.f32 %v22848_v37, %v27681_v36  ;;  %v7273_v5 = vpop.f32.mrb[35].mxu1  ;;  %v7556_v61 = vsel %vm7492_vm2, %v7460_v35, %v7524_v34 }
 0x543   : > { %v7461_v22 = vadd.f32 %v27681_v36, %v7273_v5  ;;  %7621 = vrot.lane.b32.xlu1 %v7556_v61, %s25746_s20  ;;  %v7555_v12 = vsel %vm7491_vm5, %v7459_v3, %v7523_v7 }
 0x544   : > { %v7526_v13 = vmul.f32 0.01, %v7462_v59  ;;  %7619 = vrot.lane.b32.xlu0 %v7555_v12, %s25746_s20  ;;  %vm7494_vm6 = vcmp.gt.f32.partialorder %v7462_v59, 0.0 }
 0x545   : > { %v7525_v14 = vmul.f32 0.01, %v7461_v22  ;;  %v22851_v25 = vpop.f32.mrb[36].mxu1  ;;  %vm7493_vm7 = vcmp.gt.f32.partialorder %v7461_v22, 0.0 }
 0x546   : > { %v7464_v17 = vadd.f32 %v22851_v25, %v27681_v36  ;;  %v7283_v9 = vpop.f32.mrb[37].mxu1  ;;  %v7558_v1 = vsel %vm7494_vm6, %v7462_v59, %v7526_v13 }
 0x547   : > { %v7463_v6 = vadd.f32 %v27681_v36, %v7283_v9  ;;  %7625 = vrot.lane.b32.xlu1 %v7558_v1, %s25746_s20  ;;  %v7557_v11 = vsel %vm7493_vm7, %v7461_v22, %v7525_v14 }
 0x548   : > { %v7528_v23 = vmul.f32 0.01, %v7464_v17  ;;  %7623 = vrot.lane.b32.xlu0 %v7557_v11, %s25746_s20  ;;  %vm7496_vm8 = vcmp.gt.f32.partialorder %v7464_v17, 0.0 }
 0x549   : > { %v7527_v15 = vmul.f32 0.01, %v7463_v6  ;;  %v22854_v28 = vpop.f32.mrb[38].mxu1  ;;  %vm7495_vm9 = vcmp.gt.f32.partialorder %v7463_v6, 0.0 }
 0x54a   : > { %v7466_v33 = vadd.f32 %v22854_v28, %v27681_v36  ;;  %v7293_v38 = vpop.f32.mrb[39].mxu1  ;;  %v7560_v8 = vsel %vm7496_vm8, %v7464_v17, %v7528_v23 }
 0x54b   : > { %v7465_v18 = vadd.f32 %v27681_v36, %v7293_v38  ;;  %7629 = vrot.lane.b32.xlu1 %v7560_v8, %s25746_s20  ;;  %v7559_v19 = vsel %vm7495_vm9, %v7463_v6, %v7527_v15 }
 0x54c   : > { %v7530_v45 = vmul.f32 0.01, %v7466_v33  ;;  %7627 = vrot.lane.b32.xlu0 %v7559_v19, %s25746_s20  ;;  %vm7498_vm10 = vcmp.gt.f32.partialorder %v7466_v33, 0.0 }
 0x54d   : > { %v7529_v57 = vmul.f32 0.01, %v7465_v18  ;;  %v22857_v58 = vpop.f32.mrb[40].mxu1  ;;  %vm7497_vm11 = vcmp.gt.f32.partialorder %v7465_v18, 0.0 }
 0x54e   : > { %v7468_v20 = vadd.f32 %v22857_v58, %v27681_v36  ;;  %v7303_v63 = vpop.f32.mrb[41].mxu1  ;;  %v7562_v21 = vsel %vm7498_vm10, %v7466_v33, %v7530_v45 }
 0x54f   : > { %v7467_v32 = vadd.f32 %v27681_v36, %v7303_v63  ;;  %7633 = vrot.lane.b32.xlu1 %v7562_v21, %s25746_s20  ;;  %v7561_v48 = vsel %vm7497_vm11, %v7465_v18, %v7529_v57 }
 0x550   : > { %v7532_v50 = vmul.f32 0.01, %v7468_v20  ;;  %7631 = vrot.lane.b32.xlu0 %v7561_v48, %s25746_s20  ;;  %vm7500_vm12 = vcmp.gt.f32.partialorder %v7468_v20, 0.0 }
 0x551   : > { %v7531_v2 = vmul.f32 0.01, %v7467_v32  ;;  %v22860_v16 = vpop.f32.mrb[42].mxu1  ;;  %vm7499_vm13 = vcmp.gt.f32.partialorder %v7467_v32, 0.0 }
 0x552   : > { %v7470_v51 = vadd.f32 %v22860_v16, %v27681_v36  ;;  %v7313_v30 = vpop.f32.mrb[43].mxu1  ;;  %v7564_v49 = vsel %vm7500_vm12, %v7468_v20, %v7532_v50 }
 0x553   : > { %v7469_v53 = vadd.f32 %v27681_v36, %v7313_v30  ;;  %7637 = vrot.lane.b32.xlu1 %v7564_v49, %s25746_s20  ;;  %v7563_v4 = vsel %vm7499_vm13, %v7467_v32, %v7531_v2 }
 0x554   : > { %v7534_v27 = vmul.f32 0.01, %v7470_v51  ;;  %7635 = vrot.lane.b32.xlu0 %v7563_v4, %s25746_s20  ;;  %vm7502_vm14 = vcmp.gt.f32.partialorder %v7470_v51, 0.0 }
 0x555   : > { %v7533_v29 = vmul.f32 0.01, %v7469_v53  ;;  %v22863_v31 = vpop.f32.mrb[44].mxu1  ;;  %vm7501_vm2 = vcmp.gt.f32.partialorder %v7469_v53, 0.0 }
 0x556   : > { %v7472_v39 = vadd.f32 %v22863_v31, %v27681_v36  ;;  %v7323_v40 = vpop.f32.mrb[45].mxu1  ;;  %v7566_v42 = vsel %vm7502_vm14, %v7470_v51, %v7534_v27 }
 0x557   : > { %v7471_v44 = vadd.f32 %v27681_v36, %v7323_v40  ;;  %7641 = vrot.lane.b32.xlu1 %v7566_v42, %s25746_s20  ;;  %v7565_v62 = vsel %vm7501_vm2, %v7469_v53, %v7533_v29 }
 0x558   : > { %v7536_v54 = vmul.f32 0.01, %v7472_v39  ;;  %7639 = vrot.lane.b32.xlu0 %v7565_v62, %s25746_s20  ;;  %vm7504_vm5 = vcmp.gt.f32.partialorder %v7472_v39, 0.0 }
 0x559   : > { %v7535_v56 = vmul.f32 0.01, %v7471_v44  ;;  %v22866_v10 = vpop.f32.mrb[46].mxu1  ;;  %vm7503_vm6 = vcmp.gt.f32.partialorder %v7471_v44, 0.0 }
 0x55a   : > { %v7474_v46 = vadd.f32 %v22866_v10, %v27681_v36  ;;  %v7333_v47 = vpop.f32.mrb[47].mxu1  ;;  %v7568_v26 = vsel %vm7504_vm5, %v7472_v39, %v7536_v54 }
 0x55b   : > { %v7473_v55 = vadd.f32 %v27681_v36, %v7333_v47  ;;  %7645 = vrot.lane.b32.xlu1 %v7568_v26, %s25746_s20  ;;  %v7567_v60 = vsel %vm7503_vm6, %v7471_v44, %v7535_v56  ;;  %v19588_v26 = vld [vmem:[%s30628_s1 + $0x1e0] sm:$0xff] }
 0x55c   : > { %v7538_v41 = vmul.f32 0.01, %v7474_v46  ;;  %7643 = vrot.lane.b32.xlu0 %v7567_v60, %s25746_s20  ;;  %vm7506_vm7 = vcmp.gt.f32.partialorder %v7474_v46, 0.0 }
 0x55d   : > { %v7537_v52 = vmul.f32 0.01, %v7473_v55  ;;  %v22869_v0 = vpop.f32.mrb[48].mxu1  ;;  %vm7505_vm8 = vcmp.gt.f32.partialorder %v7473_v55, 0.0 }
 0x55e   : > { %v7476_v35 = vadd.f32 %v22869_v0, %v27681_v36  ;;  %v7343_v43 = vpop.f32.mrb[49].mxu1  ;;  %v7570_v3 = vsel %vm7506_vm7, %v7474_v46, %v7538_v41 }
 0x55f   : > { %v7475_v34 = vadd.f32 %v27681_v36, %v7343_v43  ;;  %7649 = vrot.lane.b32.xlu1 %v7570_v3, %s25746_s20  ;;  %v7569_v7 = vsel %vm7505_vm8, %v7473_v55, %v7537_v52  ;;  %v19589_v52 = vld [vmem:[%s30628_s1 + $0x1e8] sm:$0xf] }
 0x560   : > { %v7540_v37 = vmul.f32 0.01, %v7476_v35  ;;  %7647 = vrot.lane.b32.xlu0 %v7569_v7, %s25746_s20  ;;  %vm7508_vm9 = vcmp.gt.f32.partialorder %v7476_v35, 0.0  ;;  %v27756_v43 = vpack.c.bf16 %v19589_v52, %v19588_v26 }
 0x561   : > { %v7539_v59 = vmul.f32 0.01, %v7475_v34  ;;  %v22872_v5 = vpop.f32.mrb[50].mxu1  ;;  %vm7507_vm10 = vcmp.gt.f32.partialorder %v7475_v34, 0.0 }
 0x562   : > { %v7478_v61 = vadd.f32 %v22872_v5, %v27681_v36  ;;  %v7353_v22 = vpop.f32.mrb[51].mxu1  ;;  %v7572_v12 = vsel %vm7508_vm9, %v7476_v35, %v7540_v37  ;;  %24327 = vmatprep.subr.msk.bf16.mxu0 %vm27664_vm15, %v27756_v43 }
 0x563   : > { %v7477_v13 = vadd.f32 %v27681_v36, %v7353_v22  ;;  %7653 = vrot.lane.b32.xlu1 %v7572_v12, %s25746_s20  ;;  %v7571_v14 = vsel %vm7507_vm10, %v7475_v34, %v7539_v59 }
 0x564   : > { %v7542_v25 = vmul.f32 0.01, %v7478_v61  ;;  %7651 = vrot.lane.b32.xlu0 %v7571_v14, %s25746_s20  ;;  %vm7510_vm11 = vcmp.gt.f32.partialorder %v7478_v61, 0.0 }
 0x565   : > { %v7541_v17 = vmul.f32 0.01, %v7477_v13  ;;  %v22875_v9 = vpop.f32.mrb[52].mxu1  ;;  %vm7509_vm12 = vcmp.gt.f32.partialorder %v7477_v13, 0.0 }
 0x566   : > { %v7480_v1 = vadd.f32 %v22875_v9, %v27681_v36  ;;  %v7363_v6 = vpop.f32.mrb[53].mxu1  ;;  %v7574_v11 = vsel %vm7510_vm11, %v7478_v61, %v7542_v25 }
 0x567   : > { %v7479_v23 = vadd.f32 %v27681_v36, %v7363_v6  ;;  %7657 = vrot.lane.b32.xlu1 %v7574_v11, %s25746_s20  ;;  %v7573_v15 = vsel %vm7509_vm12, %v7477_v13, %v7541_v17 }
 0x568   : > { %v7544_v28 = vmul.f32 0.01, %v7480_v1  ;;  %7655 = vrot.lane.b32.xlu0 %v7573_v15, %s25746_s20  ;;  %vm7512_vm13 = vcmp.gt.f32.partialorder %v7480_v1, 0.0 }
 0x569   : > { %v7543_v33 = vmul.f32 0.01, %v7479_v23  ;;  %v22878_v38 = vpop.f32.mrb[54].mxu1  ;;  %vm7511_vm14 = vcmp.gt.f32.partialorder %v7479_v23, 0.0 }
 0x56a   : > { %v7482_v8 = vadd.f32 %v22878_v38, %v27681_v36  ;;  %v7373_v18 = vpop.f32.mrb[55].mxu1  ;;  %v7576_v19 = vsel %vm7512_vm13, %v7480_v1, %v7544_v28 }
 0x56b   : > { %v7481_v45 = vadd.f32 %v27681_v36, %v7373_v18  ;;  %7661 = vrot.lane.b32.xlu1 %v7576_v19, %s25746_s20  ;;  %v7575_v57 = vsel %vm7511_vm14, %v7479_v23, %v7543_v33  ;;  %vm7715_vm14 = vcmask 97344  }
 0x56c   : > { %v7546_v58 = vmul.f32 0.01, %v7482_v8  ;;  %7659 = vrot.lane.b32.xlu0 %v7575_v57, %s25746_s20  ;;  %vm7514_vm2 = vcmp.gt.f32.partialorder %v7482_v8, 0.0 }
 0x56d   : > { %v7545_v20 = vmul.f32 0.01, %v7481_v45  ;;  %v22881_v63 = vpop.f32.mrb[56].mxu1  ;;  %vm7513_vm5 = vcmp.gt.f32.partialorder %v7481_v45, 0.0 }
 0x56e   : > { %v7484_v21 = vadd.f32 %v22881_v63, %v27681_v36  ;;  %v7383_v32 = vpop.f32.mrb[57].mxu1  ;;  %v7578_v48 = vsel %vm7514_vm2, %v7482_v8, %v7546_v58 }
 0x56f   : > { %v7483_v50 = vadd.f32 %v27681_v36, %v7383_v32  ;;  %7665 = vrot.lane.b32.xlu1 %v7578_v48, %s25746_s20  ;;  %v7577_v2 = vsel %vm7513_vm5, %v7481_v45, %v7545_v20 }
 0x570   : > { %v7548_v16 = vmul.f32 0.01, %v7484_v21  ;;  %7663 = vrot.lane.b32.xlu0 %v7577_v2, %s25746_s20  ;;  %vm7516_vm6 = vcmp.gt.f32.partialorder %v7484_v21, 0.0 }
 0x571   : > { %v7547_v51 = vmul.f32 0.01, %v7483_v50  ;;  %v22884_v30 = vpop.f32.mrb[58].mxu1  ;;  %vm7515_vm7 = vcmp.gt.f32.partialorder %v7483_v50, 0.0 }
 0x572   : > { %v7486_v49 = vadd.f32 %v22884_v30, %v27681_v36  ;;  %v7393_v53 = vpop.f32.mrb[59].mxu1  ;;  %v7580_v4 = vsel %vm7516_vm6, %v7484_v21, %v7548_v16 }
 0x573   : > { %v7485_v27 = vadd.f32 %v27681_v36, %v7393_v53  ;;  %7669 = vrot.lane.b32.xlu1 %v7580_v4, %s25746_s20  ;;  %v7579_v29 = vsel %vm7515_vm7, %v7483_v50, %v7547_v51 }
 0x574   : > { %v7550_v31 = vmul.f32 0.01, %v7486_v49  ;;  %7667 = vrot.lane.b32.xlu0 %v7579_v29, %s25746_s20  ;;  %vm7518_vm8 = vcmp.gt.f32.partialorder %v7486_v49, 0.0 }
 0x575   : > { %v7549_v39 = vmul.f32 0.01, %v7485_v27  ;;  %v22887_v40 = vpop.f32.mrb[60].mxu1  ;;  %vm7517_vm9 = vcmp.gt.f32.partialorder %v7485_v27, 0.0 }
 0x576   : > { %v7488_v42 = vadd.f32 %v22887_v40, %v27681_v36  ;;  %v7403_v44 = vpop.f32.mrb[61].mxu1  ;;  %v7582_v62 = vsel %vm7518_vm8, %v7486_v49, %v7550_v31 }
 0x577   : > { %v7487_v54 = vadd.f32 %v27681_v36, %v7403_v44  ;;  %7673 = vrot.lane.b32.xlu1 %v7582_v62, %s25746_s20  ;;  %v7581_v56 = vsel %vm7517_vm9, %v7485_v27, %v7549_v39 }
 0x578   : > { %v7552_v10 = vmul.f32 0.01, %v7488_v42  ;;  %7671 = vrot.lane.b32.xlu0 %v7581_v56, %s25746_s20  ;;  %vm7520_vm10 = vcmp.gt.f32.partialorder %v7488_v42, 0.0 }
 0x579   : > { %v7551_v46 = vmul.f32 0.01, %v7487_v54  ;;  %v22890_v47 = vpop.f32.mrb[62].mxu1  ;;  %vm7519_vm11 = vcmp.gt.f32.partialorder %v7487_v54, 0.0 }
 0x57a   : > { %v7490_v55 = vadd.f32 %v22890_v47, %v27681_v36  ;;  %v7413_v60 = vpop.f32.mrb[63].mxu1  ;;  %v7584_v41 = vsel %vm7520_vm10, %v7488_v42, %v7552_v10 }
 0x57b   : > { %v7489_v0 = vadd.f32 %v27681_v36, %v7413_v60  ;;  %7677 = vrot.lane.b32.xlu1 %v7584_v41, %s25746_s20  ;;  %v7583_v35 = vsel %vm7519_vm11, %v7487_v54, %v7551_v46 }
 0x57c   : > { %v7554_v3 = vmul.f32 0.01, %v7490_v55  ;;  %7675 = vrot.lane.b32.xlu0 %v7583_v35, %s25746_s20  ;;  %vm7522_vm12 = vcmp.gt.f32.partialorder %v7490_v55, 0.0 }
 0x57d   : > { %v7553_v34 = vmul.f32 0.01, %v7489_v0  ;;  %vm7521_vm13 = vcmp.gt.f32.partialorder %v7489_v0, 0.0 }
 0x57e   : > { %v7586_v7 = vsel %vm7522_vm12, %v7490_v55, %v7554_v3 }
 0x57f   : > { %7681 = vrot.lane.b32.xlu1 %v7586_v7, %s25746_s20  ;;  %v7585_v37 = vsel %vm7521_vm13, %v7489_v0, %v7553_v34 }
 0x580   : > { %7679 = vrot.lane.b32.xlu0 %v7585_v37, %s25746_s20  ;;  %v7748_v37 = vld [vmem:[#allocation2] sm:$0xff] }
 0x5b5   : > { %v7622_v36 = vpop.permute.xlu1 %7621 }
 0x5b6   : > { %v7620_v59 = vpop.permute.xlu0 %7619  ;;  %7717 = vst.msk [vmem:[#allocation2 + $0x21] sm:$0xff] %vm7715_vm14, %v7622_v36 }
 0x5b7   : > { %7716 = vst.msk [vmem:[#allocation2 + $0x19] sm:$0xff] %vm7715_vm14, %v7620_v59  ;;  %v19623_v59 = vld [vmem:[%s30628_s1 + $0x1f8] sm:$0xff] }
 0x5b9   : > { %v7626_v5 = vpop.permute.xlu1 %7625 }
 0x5ba   : > { %v7624_v61 = vpop.permute.xlu0 %7623  ;;  %7719 = vst.msk [vmem:[#allocation2 + $0x39] sm:$0xff] %vm7715_vm14, %v7626_v5  ;;  %v19624_v5 = vld [vmem:[%s30628_s1 + $0x200] sm:$0xf] }
 0x5bb   : > { %7718 = vst.msk [vmem:[#allocation2 + $0x31] sm:$0xff] %vm7715_vm14, %v7624_v61  ;;  %v7749_v61 = vld [vmem:[#allocation2 + $0x8] sm:$0xff] }
 0x5bd   : > { %v7630_v22 = vpop.permute.xlu1 %7629  ;;  %v27774_v14 = vld [vmem:[#allocation2 + $0x21] sm:$0xff] }
 0x5be   : > { %v7628_v12 = vpop.permute.xlu0 %7627  ;;  %v27768_v13 = vld [vmem:[#allocation2 + $0x19] sm:$0xff]  ;;  %7721 = vst.msk [vmem:[#allocation2 + $0x51] sm:$0xff] %vm7715_vm14, %v7630_v22  ;;  %v27923_v22 = vpack.c.bf16 %v19624_v5, %v19623_v59  ;;  %v8467_v59 = vld [vmem:[#allocation2 + $0x2] sm:$0xff] }
 0x5bf   : > { %22898 = vmatprep.mubr.msk.f32.mxu0 %vm7818_vm4, %v27768_v13  ;;  %7720 = vst.msk [vmem:[#allocation2 + $0x49] sm:$0xff] %vm7715_vm14, %v7628_v12  ;;  %v27926_v12 = vld [vmem:[#allocation2 + $0x18] sm:$0xff] }
 0x5c0   : > { %22899 = vmatmul.mubr.msk.f32.gmra.mrb[34].mxu0 %vm7818_vm4, %v27774_v14 }
 0x5c1   : > { %v7634_v25 = vpop.permute.xlu1 %7633  ;;  %v27784_v1 = vld [vmem:[#allocation2 + $0x39] sm:$0xff] }
 0x5c2   : > { %7723 = vst.msk [vmem:[#allocation2 + $0x69] sm:$0xff] %vm7715_vm14, %v7634_v25  ;;  %v7632_v17 = vpop.permute.xlu0 %7631  ;;  %v27779_v9 = vld [vmem:[#allocation2 + $0x31] sm:$0xff]  ;;  %v27936_v25 = vld [vmem:[#allocation2 + $0x20] sm:$0xff] }
 0x5c3   : > { %7722 = vst.msk [vmem:[#allocation2 + $0x61] sm:$0xff] %vm7715_vm14, %v7632_v17  ;;  %22901 = vmatprep.mubr.msk.f32.mxu0 %vm7818_vm4, %v27779_v9  ;;  %v27940_v17 = vld [vmem:[#allocation2 + $0x30] sm:$0xff] }
 0x5c4   : > { %22902 = vmatmul.mubr.msk.f32.gmra.mrb[36].mxu0 %vm7818_vm4, %v27784_v1 }
 0x5c5   : > { %v7638_v6 = vpop.permute.xlu1 %7637  ;;  %v27794_v15 = vld [vmem:[#allocation2 + $0x51] sm:$0xff] }
 0x5c6   : > { %7725 = vst.msk [vmem:[#allocation2 + $0x81] sm:$0xff] %vm7715_vm14, %v7638_v6  ;;  %v7636_v11 = vpop.permute.xlu0 %7635  ;;  %v27789_v23 = vld [vmem:[#allocation2 + $0x49] sm:$0xff]  ;;  %v27944_v6 = vld [vmem:[#allocation2 + $0x38] sm:$0xff] }
 0x5c7   : > { %7724 = vst.msk [vmem:[#allocation2 + $0x79] sm:$0xff] %vm7715_vm14, %v7636_v11  ;;  %22904 = vmatprep.mubr.msk.f32.mxu0 %vm7818_vm4, %v27789_v23  ;;  %v27952_v11 = vld [vmem:[#allocation2 + $0x50] sm:$0xff] }
 0x5c8   : > { %22905 = vmatmul.mubr.msk.f32.gmra.mrb[38].mxu0 %vm7818_vm4, %v27794_v15 }
 0x5c9   : > { %v7642_v28 = vpop.permute.xlu1 %7641  ;;  %v27804_v8 = vld [vmem:[#allocation2 + $0x69] sm:$0xff] }
 0x5ca   : > { %7727 = vst.msk [vmem:[#allocation2 + $0x99] sm:$0xff] %vm7715_vm14, %v7642_v28  ;;  %v7640_v33 = vpop.permute.xlu0 %7639  ;;  %v27799_v38 = vld [vmem:[#allocation2 + $0x61] sm:$0xff] }
 0x5cb   : > { %7726 = vst.msk [vmem:[#allocation2 + $0x91] sm:$0xff] %vm7715_vm14, %v7640_v33  ;;  %22907 = vmatprep.mubr.msk.f32.mxu0 %vm7818_vm4, %v27799_v38  ;;  %v27956_v28 = vld [vmem:[#allocation2 + $0x60] sm:$0xff]  ;;  %v27960_v33 = vld [vmem:[#allocation2 + $0x68] sm:$0xff] }
 0x5cc   : > { %22908 = vmatmul.mubr.msk.f32.gmra.mrb[40].mxu0 %vm7818_vm4, %v27804_v8 }
 0x5cd   : > { %v7646_v18 = vpop.permute.xlu1 %7645  ;;  %v27814_v57 = vld [vmem:[#allocation2 + $0x81] sm:$0xff] }
 0x5ce   : > { %7729 = vst.msk [vmem:[#allocation2 + $0xb1] sm:$0xff] %vm7715_vm14, %v7646_v18  ;;  %v7644_v19 = vpop.permute.xlu0 %7643  ;;  %v27809_v45 = vld [vmem:[#allocation2 + $0x79] sm:$0xff] }
 0x5cf   : > { %7728 = vst.msk [vmem:[#allocation2 + $0xa9] sm:$0xff] %vm7715_vm14, %v7644_v19  ;;  %22910 = vmatprep.mubr.msk.f32.mxu0 %vm7818_vm4, %v27809_v45  ;;  %v27964_v18 = vld [vmem:[#allocation2 + $0x78] sm:$0xff]  ;;  %v27968_v19 = vld [vmem:[#allocation2 + $0x80] sm:$0xff] }
 0x5d0   : > { %22911 = vmatmul.mubr.msk.f32.gmra.mrb[42].mxu0 %vm7818_vm4, %v27814_v57 }
 0x5d1   : > { %v7650_v58 = vpop.permute.xlu1 %7649  ;;  %v27824_v21 = vld [vmem:[#allocation2 + $0x99] sm:$0xff] }
 0x5d2   : > { %7731 = vst.msk [vmem:[#allocation2 + $0xc9] sm:$0xff] %vm7715_vm14, %v7650_v58  ;;  %v7648_v20 = vpop.permute.xlu0 %7647  ;;  %v27819_v63 = vld [vmem:[#allocation2 + $0x91] sm:$0xff] }
 0x5d3   : > { %7730 = vst.msk [vmem:[#allocation2 + $0xc1] sm:$0xff] %vm7715_vm14, %v7648_v20  ;;  %22913 = vmatprep.mubr.msk.f32.mxu0 %vm7818_vm4, %v27819_v63  ;;  %v27972_v58 = vld [vmem:[#allocation2 + $0x90] sm:$0xff]  ;;  %v27976_v20 = vld [vmem:[#allocation2 + $0x98] sm:$0xff] }
 0x5d4   : > { %22914 = vmatmul.mubr.msk.f32.gmra.mrb[44].mxu0 %vm7818_vm4, %v27824_v21 }
 0x5d5   : > { %v7654_v32 = vpop.permute.xlu1 %7653  ;;  %v27834_v2 = vld [vmem:[#allocation2 + $0xb1] sm:$0xff] }
 0x5d6   : > { %7733 = vst.msk [vmem:[#allocation2 + $0xe1] sm:$0xff] %vm7715_vm14, %v7654_v32  ;;  %v7652_v48 = vpop.permute.xlu0 %7651  ;;  %v27829_v50 = vld [vmem:[#allocation2 + $0xa9] sm:$0xff] }
 0x5d7   : > { %7732 = vst.msk [vmem:[#allocation2 + $0xd9] sm:$0xff] %vm7715_vm14, %v7652_v48  ;;  %22916 = vmatprep.mubr.msk.f32.mxu0 %vm7818_vm4, %v27829_v50  ;;  %v27980_v32 = vld [vmem:[#allocation2 + $0xa8] sm:$0xff]  ;;  %v27984_v48 = vld [vmem:[#allocation2 + $0xb0] sm:$0xff] }
 0x5d8   : > { %22917 = vmatmul.mubr.msk.f32.gmra.mrb[46].mxu0 %vm7818_vm4, %v27834_v2 }
 0x5d9   : > { %v7658_v16 = vpop.permute.xlu1 %7657  ;;  %v27844_v49 = vld [vmem:[#allocation2 + $0xc9] sm:$0xff] }
 0x5da   : > { %7735 = vst.msk [vmem:[#allocation2 + $0xf9] sm:$0xff] %vm7715_vm14, %v7658_v16  ;;  %v7656_v51 = vpop.permute.xlu0 %7655  ;;  %v27839_v30 = vld [vmem:[#allocation2 + $0xc1] sm:$0xff] }
 0x5db   : > { %7734 = vst.msk [vmem:[#allocation2 + $0xf1] sm:$0xff] %vm7715_vm14, %v7656_v51  ;;  %22919 = vmatprep.mubr.msk.f32.mxu0 %vm7818_vm4, %v27839_v30  ;;  %v27988_v16 = vld [vmem:[#allocation2 + $0xc0] sm:$0xff]  ;;  %v27992_v51 = vld [vmem:[#allocation2 + $0xc8] sm:$0xff] }
 0x5dc   : > { %22920 = vmatmul.mubr.msk.f32.gmra.mrb[48].mxu0 %vm7818_vm4, %v27844_v49 }
 0x5dd   : > { %v7662_v53 = vpop.permute.xlu1 %7661  ;;  %v27854_v29 = vld [vmem:[#allocation2 + $0xe1] sm:$0xff] }
 0x5de   : > { %7737 = vst.msk [vmem:[#allocation2 + $0x111] sm:$0xff] %vm7715_vm14, %v7662_v53  ;;  %v7660_v4 = vpop.permute.xlu0 %7659  ;;  %v27849_v27 = vld [vmem:[#allocation2 + $0xd9] sm:$0xff] }
 0x5df   : > { %7736 = vst.msk [vmem:[#allocation2 + $0x109] sm:$0xff] %vm7715_vm14, %v7660_v4  ;;  %22922 = vmatprep.mubr.msk.f32.mxu0 %vm7818_vm4, %v27849_v27  ;;  %v27996_v53 = vld [vmem:[#allocation2 + $0xd8] sm:$0xff]  ;;  %v28000_v4 = vld [vmem:[#allocation2 + $0xe0] sm:$0xff] }
 0x5e0   : > { %22923 = vmatmul.mubr.msk.f32.gmra.mrb[50].mxu0 %vm7818_vm4, %v27854_v29 }
 0x5e1   : > { %v7666_v31 = vpop.permute.xlu1 %7665  ;;  %v27864_v42 = vld [vmem:[#allocation2 + $0xf9] sm:$0xff] }
 0x5e2   : > { %7739 = vst.msk [vmem:[#allocation2 + $0x129] sm:$0xff] %vm7715_vm14, %v7666_v31  ;;  %v7664_v39 = vpop.permute.xlu0 %7663  ;;  %v27859_v40 = vld [vmem:[#allocation2 + $0xf1] sm:$0xff] }
 0x5e3   : > { %7738 = vst.msk [vmem:[#allocation2 + $0x121] sm:$0xff] %vm7715_vm14, %v7664_v39  ;;  %22925 = vmatprep.mubr.msk.f32.mxu0 %vm7818_vm4, %v27859_v40  ;;  %v28004_v31 = vld [vmem:[#allocation2 + $0xf0] sm:$0xff]  ;;  %v28008_v39 = vld [vmem:[#allocation2 + $0xf8] sm:$0xff] }
 0x5e4   : > { %22926 = vmatmul.mubr.msk.f32.gmra.mrb[52].mxu0 %vm7818_vm4, %v27864_v42 }
 0x5e5   : > { %v7670_v44 = vpop.permute.xlu1 %7669  ;;  %v27874_v56 = vld [vmem:[#allocation2 + $0x111] sm:$0xff] }
 0x5e6   : > { %7741 = vst.msk [vmem:[#allocation2 + $0x141] sm:$0xff] %vm7715_vm14, %v7670_v44  ;;  %v7668_v62 = vpop.permute.xlu0 %7667  ;;  %v27869_v54 = vld [vmem:[#allocation2 + $0x109] sm:$0xff] }
 0x5e7   : > { %7740 = vst.msk [vmem:[#allocation2 + $0x139] sm:$0xff] %vm7715_vm14, %v7668_v62  ;;  %22928 = vmatprep.mubr.msk.f32.mxu0 %vm7818_vm4, %v27869_v54  ;;  %v28012_v44 = vld [vmem:[#allocation2 + $0x108] sm:$0xff]  ;;  %v28016_v62 = vld [vmem:[#allocation2 + $0x110] sm:$0xff] }
 0x5e8   : > { %22929 = vmatmul.mubr.msk.f32.gmra.mrb[54].mxu0 %vm7818_vm4, %v27874_v56 }
 0x5e9   : > { %v7674_v10 = vpop.permute.xlu1 %7673  ;;  %v27884_v26 = vld [vmem:[#allocation2 + $0x129] sm:$0xff] }
 0x5ea   : > { %7743 = vst.msk [vmem:[#allocation2 + $0x159] sm:$0xff] %vm7715_vm14, %v7674_v10  ;;  %v7672_v46 = vpop.permute.xlu0 %7671  ;;  %v27879_v47 = vld [vmem:[#allocation2 + $0x121] sm:$0xff] }
 0x5eb   : > { %7742 = vst.msk [vmem:[#allocation2 + $0x151] sm:$0xff] %vm7715_vm14, %v7672_v46  ;;  %22931 = vmatprep.mubr.msk.f32.mxu0 %vm7818_vm4, %v27879_v47  ;;  %v28020_v10 = vld [vmem:[#allocation2 + $0x120] sm:$0xff]  ;;  %v28024_v46 = vld [vmem:[#allocation2 + $0x128] sm:$0xff] }
 0x5ec   : > { %22932 = vmatmul.mubr.msk.f32.gmra.mrb[56].mxu0 %vm7818_vm4, %v27884_v26 }
 0x5ed   : > { %v7678_v55 = vpop.permute.xlu1 %7677  ;;  %v27894_v52 = vld [vmem:[#allocation2 + $0x141] sm:$0xff] }
 0x5ee   : > { %7745 = vst.msk [vmem:[#allocation2 + $0x171] sm:$0xff] %vm7715_vm14, %v7678_v55  ;;  %v7676_v60 = vpop.permute.xlu0 %7675  ;;  %v27889_v41 = vld [vmem:[#allocation2 + $0x139] sm:$0xff]  ;;  %31086 = vst [vmem:[#allocation6_spill] sm:$0xff] %v27894_v52 }
 0x5ef   : > { %7744 = vst.msk [vmem:[#allocation2 + $0x169] sm:$0xff] %vm7715_vm14, %v7676_v60  ;;  %22934 = vmatprep.mubr.msk.f32.mxu0 %vm7818_vm4, %v27889_v41  ;;  %v28028_v55 = vld [vmem:[#allocation2 + $0x138] sm:$0xff]  ;;  %v28032_v60 = vld [vmem:[#allocation2 + $0x140] sm:$0xff] }
 0x5f0   : > { %22935 = vmatmul.mubr.msk.f32.gmra.mrb[58].mxu0 %vm7818_vm4, %v27894_v52  ;;  %v28072_v52 = vld [vmem:[#allocation2 + $0x22] sm:$0xff] }
 0x5f1   : > { %v7682_v0 = vpop.permute.xlu1 %7681  ;;  %v27904_v34 = vld [vmem:[#allocation2 + $0x159] sm:$0xff] }
 0x5f2   : > { %7747 = vst.msk [vmem:[#allocation2 + $0x189] sm:$0xff] %vm7715_vm14, %v7682_v0  ;;  %v7680_v35 = vpop.permute.xlu0 %7679  ;;  %v27899_v3 = vld [vmem:[#allocation2 + $0x151] sm:$0xff]  ;;  %31088 = vst [vmem:[#allocation29_spill] sm:$0xff] %v27904_v34 }
 0x5f3   : > { %31087 = vst [vmem:[#allocation21_spill] sm:$0xff] %v27899_v3  ;;  %7746 = vst.msk [vmem:[#allocation2 + $0x181] sm:$0xff] %vm7715_vm14, %v7680_v35  ;;  %22937 = vmatprep.mubr.msk.f32.mxu0 %vm7818_vm4, %v27899_v3  ;;  %v28036_v0 = vld [vmem:[#allocation2 + $0x150] sm:$0xff]  ;;  %v28040_v35 = vld [vmem:[#allocation2 + $0x158] sm:$0xff] }
 0x5f4   : > { %22938 = vmatmul.mubr.msk.f32.gmra.mrb[60].mxu0 %vm7818_vm4, %v27904_v34  ;;  %v28062_v3 = vld [vmem:[#allocation2 + $0x1a] sm:$0xff] }
 0x5f5   : > { %v27912_v36 = vld [vmem:[#allocation2 + $0x171] sm:$0xff] }
 0x5f6   : > { %v27908_v7 = vld [vmem:[#allocation2 + $0x169] sm:$0xff]  ;;  %31090 = vst [vmem:[#allocation30_spill] sm:$0xff] %v27912_v36 }
 0x5f7   : > { %31089 = vst [vmem:[#allocation16_spill] sm:$0xff] %v27908_v7  ;;  %22940 = vmatprep.mubr.msk.f32.mxu0 %vm7818_vm4, %v27908_v7  ;;  %v28048_v5 = vld [vmem:[#allocation2 + $0x170] sm:$0xff] }
 0x5f8   : > { %22941 = vmatmul.mubr.msk.f32.gmra.mrb[62].mxu0 %vm7818_vm4, %v27912_v36  ;;  %v19659_v36 = vld [vmem:[%s30628_s1 + $0x218] sm:$0xf]  ;;  %v8468_v7 = vld [vmem:[#allocation2 + $0xa] sm:$0xff] }
 0x5f9   : > { %22947 = vmatprep.mubr.msk.f32.mxu0 %vm7818_vm4, %v7748_v37  ;;  %v28044_v37 = vld [vmem:[#allocation2 + $0x168] sm:$0xff] }
 0x5fc   : > { %22948 = vmatmul.mubr.msk.f32.vlgmr.msra.gmra.mrb[32].mxu0 %vm7818_vm4, %v7749_v61  ;;  %v19658_v61 = vld [vmem:[%s30628_s1 + $0x210] sm:$0xff] }
 0x5fd   : > { %24330 = vmatpush3.bf16.msk.msra.mxu0 %vm27664_vm15, %v27756_v43  ;;  %22950 = vmatprep.mubr.msk.f32.mxu0 %vm7818_vm4, %v27926_v12  ;;  %v27948_v43 = vld [vmem:[#allocation2 + $0x48] sm:$0xff]  ;;  %v28059_v34 = vpack.c.bf16 %v19659_v36, %v19658_v61  ;;  %v28076_v36 = vld [vmem:[#allocation2 + $0x32] sm:$0xff] }
 0x5fe   : > { %24333 = vmatprep.subr.msk.bf16.mxu0 %vm27664_vm15, %v27923_v22  ;;  %31091 = vst [vmem:[#allocation17_spill] sm:$0xff] %v28076_v36  ;;  %v28092_v61 = vld [vmem:[#allocation2 + $0x62] sm:$0xff] }
 0x5ff   : > { %31095 = vst [vmem:[#allocation3_spill] sm:$0xff] %v28092_v61 }
 0x600   : > { %22951 = vmatmul.mubr.msk.f32.gmra.mrb[34].mxu0 %vm7818_vm4, %v27936_v25 }
 0x601   : > { %22953 = vmatprep.mubr.msk.f32.mxu0 %vm7818_vm4, %v27940_v17 }
 0x604   : > { %22954 = vmatmul.mubr.msk.f32.gmra.mrb[36].mxu0 %vm7818_vm4, %v27944_v6 }
 0x605   : > { %22956 = vmatprep.mubr.msk.f32.mxu0 %vm7818_vm4, %v27948_v43 }
 0x608   : > { %22957 = vmatmul.mubr.msk.f32.gmra.mrb[38].mxu0 %vm7818_vm4, %v27952_v11 }
 0x609   : > { %22959 = vmatprep.mubr.msk.f32.mxu0 %vm7818_vm4, %v27956_v28 }
 0x60c   : > { %22960 = vmatmul.mubr.msk.f32.gmra.mrb[40].mxu0 %vm7818_vm4, %v27960_v33 }
 0x60d   : > { %22962 = vmatprep.mubr.msk.f32.mxu0 %vm7818_vm4, %v27964_v18 }
 0x610   : > { %22963 = vmatmul.mubr.msk.f32.gmra.mrb[42].mxu0 %vm7818_vm4, %v27968_v19 }
 0x611   : > { %22965 = vmatprep.mubr.msk.f32.mxu0 %vm7818_vm4, %v27972_v58 }
 0x614   : > { %22966 = vmatmul.mubr.msk.f32.gmra.mrb[44].mxu0 %vm7818_vm4, %v27976_v20 }
 0x615   : > { %22968 = vmatprep.mubr.msk.f32.mxu0 %vm7818_vm4, %v27980_v32 }
 0x618   : > { %22969 = vmatmul.mubr.msk.f32.gmra.mrb[46].mxu0 %vm7818_vm4, %v27984_v48 }
 0x619   : > { %22971 = vmatprep.mubr.msk.f32.mxu0 %vm7818_vm4, %v27988_v16 }
 0x61c   : > { %22972 = vmatmul.mubr.msk.f32.gmra.mrb[48].mxu0 %vm7818_vm4, %v27992_v51 }
 0x61d   : > { %22974 = vmatprep.mubr.msk.f32.mxu0 %vm7818_vm4, %v27996_v53 }
 0x620   : > { %22975 = vmatmul.mubr.msk.f32.gmra.mrb[50].mxu0 %vm7818_vm4, %v28000_v4 }
 0x621   : > { %22977 = vmatprep.mubr.msk.f32.mxu0 %vm7818_vm4, %v28004_v31 }
 0x624   : > { %22978 = vmatmul.mubr.msk.f32.gmra.mrb[52].mxu0 %vm7818_vm4, %v28008_v39 }
 0x625   : > { %22980 = vmatprep.mubr.msk.f32.mxu0 %vm7818_vm4, %v28012_v44 }
 0x628   : > { %22981 = vmatmul.mubr.msk.f32.gmra.mrb[54].mxu0 %vm7818_vm4, %v28016_v62 }
 0x629   : > { %22983 = vmatprep.mubr.msk.f32.mxu0 %vm7818_vm4, %v28020_v10 }
 0x62c   : > { %22984 = vmatmul.mubr.msk.f32.gmra.mrb[56].mxu0 %vm7818_vm4, %v28024_v46 }
 0x62d   : > { %22986 = vmatprep.mubr.msk.f32.mxu0 %vm7818_vm4, %v28028_v55 }
 0x630   : > { %22987 = vmatmul.mubr.msk.f32.gmra.mrb[58].mxu0 %vm7818_vm4, %v28032_v60 }
 0x631   : > { %22989 = vmatprep.mubr.msk.f32.mxu0 %vm7818_vm4, %v28036_v0 }
 0x634   : > { %22990 = vmatmul.mubr.msk.f32.gmra.mrb[60].mxu0 %vm7818_vm4, %v28040_v35 }
 0x635   : > { %22992 = vmatprep.mubr.msk.f32.mxu0 %vm7818_vm4, %v28044_v37 }
 0x638   : > { %22993 = vmatmul.mubr.msk.f32.gmra.mrb[62].mxu0 %vm7818_vm4, %v28048_v5 }
 0x639   : > { %22999 = vmatprep.mubr.msk.f32.mxu0 %vm7818_vm4, %v8467_v59  ;;  %v28088_v59 = vld [vmem:[#allocation2 + $0x52] sm:$0xff] }
 0x63a   : > { %31094 = vst [vmem:[#allocation31_spill] sm:$0xff] %v28088_v59 }
 0x63c   : > { %23000 = vmatmul.mubr.msk.f32.vlgmr.msra.gmra.mrb[32].mxu0 %vm7818_vm4, %v8468_v7  ;;  %v28080_v7 = vld [vmem:[#allocation2 + $0x3a] sm:$0xff] }
 0x63d   : > { %24336 = vmatpush3.bf16.msk.msra.mxu0 %vm27664_vm15, %v27923_v22  ;;  %23002 = vmatprep.mubr.msk.f32.mxu0 %vm7818_vm4, %v28062_v3  ;;  %31092 = vst [vmem:[#allocation33_spill] sm:$0xff] %v28080_v7  ;;  %v28084_v22 = vld [vmem:[#allocation2 + $0x4a] sm:$0xff] }
 0x63e   : > { %24339 = vmatprep.subr.msk.bf16.mxu0 %vm27664_vm15, %v28059_v34  ;;  %31093 = vst [vmem:[#allocation35_spill] sm:$0xff] %v28084_v22 }
 0x640   : > { %23003 = vmatmul.mubr.msk.f32.gmra.mrb[34].mxu0 %vm7818_vm4, %v28072_v52 }
 0x641   : > { %23005 = vmatprep.mubr.msk.f32.mxu0 %vm7818_vm4, %v28076_v36  ;;  %v28096_v36 = vld [vmem:[#allocation2 + $0x6a] sm:$0xff] }
 0x642   : > { %31096 = vst [vmem:[#allocation18_spill] sm:$0xff] %v28096_v36 }
 0x644   : > { %23006 = vmatmul.mubr.msk.f32.gmra.mrb[36].mxu0 %vm7818_vm4, %v28080_v7  ;;  %v28100_v7 = vld [vmem:[#allocation2 + $0x7a] sm:$0xff] }
 0x645   : > { %23008 = vmatprep.mubr.msk.f32.mxu0 %vm7818_vm4, %v28084_v22  ;;  %31097 = vst [vmem:[#allocation4_spill] sm:$0xff] %v28100_v7  ;;  %v28104_v22 = vld [vmem:[#allocation2 + $0x82] sm:$0xff] }
 0x646   : > { %31098 = vst [vmem:[#allocation19_spill] sm:$0xff] %v28104_v22 }
 0x648   : > { %23009 = vmatmul.mubr.msk.f32.gmra.mrb[38].mxu0 %vm7818_vm4, %v28088_v59  ;;  %v28108_v59 = vld [vmem:[#allocation2 + $0x92] sm:$0xff] }
 0x649   : > { %23011 = vmatprep.mubr.msk.f32.mxu0 %vm7818_vm4, %v28092_v61  ;;  %31099 = vst [vmem:[#allocation5_spill] sm:$0xff] %v28108_v59  ;;  %v28112_v61 = vld [vmem:[#allocation2 + $0x9a] sm:$0xff] }
 0x64a   : > { %31100 = vst [vmem:[#allocation20_spill] sm:$0xff] %v28112_v61 }
 0x64c   : > { %23012 = vmatmul.mubr.msk.f32.gmra.mrb[40].mxu0 %vm7818_vm4, %v28096_v36  ;;  %v28116_v36 = vld [vmem:[#allocation2 + $0xaa] sm:$0xff] }
 0x64d   : > { %23014 = vmatprep.mubr.msk.f32.mxu0 %vm7818_vm4, %v28100_v7  ;;  %31101 = vst [vmem:[#allocation37_spill] sm:$0xff] %v28116_v36  ;;  %v28120_v7 = vld [vmem:[#allocation2 + $0xb2] sm:$0xff] }
 0x64e   : > { %31102 = vst [vmem:[#allocation38_spill] sm:$0xff] %v28120_v7 }
 0x650   : > { %23015 = vmatmul.mubr.msk.f32.gmra.mrb[42].mxu0 %vm7818_vm4, %v28104_v22  ;;  %v28124_v22 = vld [vmem:[#allocation2 + $0xc2] sm:$0xff] }
 0x651   : > { %23017 = vmatprep.mubr.msk.f32.mxu0 %vm7818_vm4, %v28108_v59  ;;  %31103 = vst [vmem:[#allocation7_spill] sm:$0xff] %v28124_v22  ;;  %v28128_v59 = vld [vmem:[#allocation2 + $0xca] sm:$0xff] }
 0x652   : > { %31104 = vst [vmem:[#allocation22_spill] sm:$0xff] %v28128_v59 }
 0x654   : > { %23018 = vmatmul.mubr.msk.f32.gmra.mrb[44].mxu0 %vm7818_vm4, %v28112_v61  ;;  %v28132_v61 = vld [vmem:[#allocation2 + $0xda] sm:$0xff] }
 0x655   : > { %23020 = vmatprep.mubr.msk.f32.mxu0 %vm7818_vm4, %v28116_v36  ;;  %31105 = vst [vmem:[#allocation8_spill] sm:$0xff] %v28132_v61  ;;  %v28136_v36 = vld [vmem:[#allocation2 + $0xe2] sm:$0xff] }
 0x656   : > { %31106 = vst [vmem:[#allocation23_spill] sm:$0xff] %v28136_v36 }
 0x658   : > { %23021 = vmatmul.mubr.msk.f32.gmra.mrb[46].mxu0 %vm7818_vm4, %v28120_v7  ;;  %v28140_v7 = vld [vmem:[#allocation2 + $0xf2] sm:$0xff] }
 0x659   : > { %23023 = vmatprep.mubr.msk.f32.mxu0 %vm7818_vm4, %v28124_v22  ;;  %31107 = vst [vmem:[#allocation9_spill] sm:$0xff] %v28140_v7  ;;  %v28144_v22 = vld [vmem:[#allocation2 + $0xfa] sm:$0xff] }
 0x65a   : > { %31108 = vst [vmem:[#allocation24_spill] sm:$0xff] %v28144_v22 }
 0x65c   : > { %23024 = vmatmul.mubr.msk.f32.gmra.mrb[48].mxu0 %vm7818_vm4, %v28128_v59  ;;  %v28148_v59 = vld [vmem:[#allocation2 + $0x10a] sm:$0xff] }
 0x65d   : > { %23026 = vmatprep.mubr.msk.f32.mxu0 %vm7818_vm4, %v28132_v61  ;;  %31109 = vst [vmem:[#allocation10_spill] sm:$0xff] %v28148_v59  ;;  %v28152_v61 = vld [vmem:[#allocation2 + $0x112] sm:$0xff] }
 0x65e   : > { %31110 = vst [vmem:[#allocation25_spill] sm:$0xff] %v28152_v61 }
 0x660   : > { %23027 = vmatmul.mubr.msk.f32.gmra.mrb[50].mxu0 %vm7818_vm4, %v28136_v36  ;;  %v28156_v36 = vld [vmem:[#allocation2 + $0x122] sm:$0xff] }
 0x661   : > { %23029 = vmatprep.mubr.msk.f32.mxu0 %vm7818_vm4, %v28140_v7  ;;  %31111 = vst [vmem:[#allocation11_spill] sm:$0xff] %v28156_v36  ;;  %v28160_v7 = vld [vmem:[#allocation2 + $0x12a] sm:$0xff] }
 0x662   : > { %31112 = vst [vmem:[#allocation26_spill] sm:$0xff] %v28160_v7 }
 0x664   : > { %23030 = vmatmul.mubr.msk.f32.gmra.mrb[52].mxu0 %vm7818_vm4, %v28144_v22  ;;  %v28164_v22 = vld [vmem:[#allocation2 + $0x13a] sm:$0xff] }
 0x665   : > { %23032 = vmatprep.mubr.msk.f32.mxu0 %vm7818_vm4, %v28148_v59  ;;  %31113 = vst [vmem:[#allocation12_spill] sm:$0xff] %v28164_v22  ;;  %v28168_v59 = vld [vmem:[#allocation2 + $0x142] sm:$0xff] }
 0x666   : > { %31114 = vst [vmem:[#allocation27_spill] sm:$0xff] %v28168_v59 }
 0x668   : > { %23033 = vmatmul.mubr.msk.f32.gmra.mrb[54].mxu0 %vm7818_vm4, %v28152_v61  ;;  %v28172_v61 = vld [vmem:[#allocation2 + $0x152] sm:$0xff] }
 0x669   : > { %23035 = vmatprep.mubr.msk.f32.mxu0 %vm7818_vm4, %v28156_v36  ;;  %31115 = vst [vmem:[#allocation13_spill] sm:$0xff] %v28172_v61  ;;  %v28176_v36 = vld [vmem:[#allocation2 + $0x15a] sm:$0xff] }
 0x66a   : > { %31116 = vst [vmem:[#allocation28_spill] sm:$0xff] %v28176_v36 }
 0x66c   : > { %23036 = vmatmul.mubr.msk.f32.gmra.mrb[56].mxu0 %vm7818_vm4, %v28160_v7  ;;  %v28180_v7 = vld [vmem:[#allocation2 + $0x16a] sm:$0xff] }
 0x66d   : > { %23038 = vmatprep.mubr.msk.f32.mxu0 %vm7818_vm4, %v28164_v22  ;;  %v28184_v22 = vld [vmem:[#allocation2 + $0x172] sm:$0xff] }
 0x66e   : > { %31117 = vst [vmem:[#allocation14_spill] sm:$0xff] %v28184_v22 }
 0x670   : > { %23039 = vmatmul.mubr.msk.f32.gmra.mrb[58].mxu0 %vm7818_vm4, %v28168_v59  ;;  %v19693_v59 = vld [vmem:[%s30628_s1 + $0x228] sm:$0xff] }
 0x671   : > { %23041 = vmatprep.mubr.msk.f32.mxu0 %vm7818_vm4, %v28172_v61  ;;  %v19694_v61 = vld [vmem:[%s30628_s1 + $0x230] sm:$0xf] }
 0x674   : > { %23042 = vmatmul.mubr.msk.f32.gmra.mrb[60].mxu0 %vm7818_vm4, %v28176_v36  ;;  %v24343_v36 = vpack.c.bf16 %v19694_v61, %v19693_v59  ;;  %v19729_v59 = vld [vmem:[%s30628_s1 + $0x248] sm:$0xf] }
 0x675   : > { %23044 = vmatprep.mubr.msk.f32.mxu0 %vm7818_vm4, %v28180_v7 }
 0x678   : > { %23045 = vmatmul.mubr.msk.f32.gmra.mrb[62].mxu0 %vm7818_vm4, %v28184_v22 }
 0x679   : > { %23051 = vmatprep.mubr.msk.f32.mxu0 %vm7818_vm4, %v27926_v12  ;;  %v28263_v12 = vld [vmem:[#allocation2 + $0x188] sm:$0xff] }
 0x67c   : > { %23052 = vmatmul.mubr.msk.f32.vlgmr.msra.gmra.mrb[32].mxu0 %vm7818_vm4, %v27936_v25  ;;  %v19728_v25 = vld [vmem:[%s30628_s1 + $0x240] sm:$0xff] }
 0x67d   : > { %24342 = vmatpush3.bf16.msk.msra.mxu0 %vm27664_vm15, %v28059_v34  ;;  %23054 = vmatprep.mubr.msk.f32.mxu0 %vm7818_vm4, %v27940_v17  ;;  %v28259_v34 = vld [vmem:[#allocation2 + $0x180] sm:$0xff]  ;;  %v24349_v61 = vpack.c.bf16 %v19729_v59, %v19728_v25 }
 0x67e   : > { %24345 = vmatprep.subr.msk.bf16.mxu0 %vm27664_vm15, %v24343_v36  ;;  %v31125_v59 = vld [vmem:[#allocation17_spill] sm:$0xff] }
 0x680   : > { %23055 = vmatmul.mubr.msk.f32.gmra.mrb[34].mxu0 %vm7818_vm4, %v27944_v6 }
 0x681   : > { %23057 = vmatprep.mubr.msk.f32.mxu0 %vm7818_vm4, %v27948_v43 }
 0x684   : > { %23058 = vmatmul.mubr.msk.f32.gmra.mrb[36].mxu0 %vm7818_vm4, %v27952_v11 }
 0x685   : > { %23060 = vmatprep.mubr.msk.f32.mxu0 %vm7818_vm4, %v27956_v28 }
 0x688   : > { %23061 = vmatmul.mubr.msk.f32.gmra.mrb[38].mxu0 %vm7818_vm4, %v27960_v33 }
 0x689   : > { %23063 = vmatprep.mubr.msk.f32.mxu0 %vm7818_vm4, %v27964_v18 }
 0x68c   : > { %23064 = vmatmul.mubr.msk.f32.gmra.mrb[40].mxu0 %vm7818_vm4, %v27968_v19 }
 0x68d   : > { %23066 = vmatprep.mubr.msk.f32.mxu0 %vm7818_vm4, %v27972_v58 }
 0x690   : > { %23067 = vmatmul.mubr.msk.f32.gmra.mrb[42].mxu0 %vm7818_vm4, %v27976_v20 }
 0x691   : > { %23069 = vmatprep.mubr.msk.f32.mxu0 %vm7818_vm4, %v27980_v32 }
 0x694   : > { %23070 = vmatmul.mubr.msk.f32.gmra.mrb[44].mxu0 %vm7818_vm4, %v27984_v48 }
 0x695   : > { %23072 = vmatprep.mubr.msk.f32.mxu0 %vm7818_vm4, %v27988_v16 }
 0x698   : > { %23073 = vmatmul.mubr.msk.f32.gmra.mrb[46].mxu0 %vm7818_vm4, %v27992_v51 }
 0x699   : > { %23075 = vmatprep.mubr.msk.f32.mxu0 %vm7818_vm4, %v27996_v53 }
 0x69c   : > { %23076 = vmatmul.mubr.msk.f32.gmra.mrb[48].mxu0 %vm7818_vm4, %v28000_v4 }
 0x69d   : > { %23078 = vmatprep.mubr.msk.f32.mxu0 %vm7818_vm4, %v28004_v31 }
 0x6a0   : > { %23079 = vmatmul.mubr.msk.f32.gmra.mrb[50].mxu0 %vm7818_vm4, %v28008_v39 }
 0x6a1   : > { %23081 = vmatprep.mubr.msk.f32.mxu0 %vm7818_vm4, %v28012_v44 }
 0x6a4   : > { %23082 = vmatmul.mubr.msk.f32.gmra.mrb[52].mxu0 %vm7818_vm4, %v28016_v62 }
 0x6a5   : > { %23084 = vmatprep.mubr.msk.f32.mxu0 %vm7818_vm4, %v28020_v10 }
 0x6a8   : > { %23085 = vmatmul.mubr.msk.f32.gmra.mrb[54].mxu0 %vm7818_vm4, %v28024_v46 }
 0x6a9   : > { %23087 = vmatprep.mubr.msk.f32.mxu0 %vm7818_vm4, %v28028_v55 }
 0x6ac   : > { %23088 = vmatmul.mubr.msk.f32.gmra.mrb[56].mxu0 %vm7818_vm4, %v28032_v60 }
 0x6ad   : > { %23090 = vmatprep.mubr.msk.f32.mxu0 %vm7818_vm4, %v28036_v0 }
 0x6b0   : > { %23091 = vmatmul.mubr.msk.f32.gmra.mrb[58].mxu0 %vm7818_vm4, %v28040_v35 }
 0x6b1   : > { %23093 = vmatprep.mubr.msk.f32.mxu0 %vm7818_vm4, %v28044_v37 }
 0x6b4   : > { %23094 = vmatmul.mubr.msk.f32.gmra.mrb[60].mxu0 %vm7818_vm4, %v28048_v5 }
 0x6b5   : > { %23096 = vmatprep.mubr.msk.f32.mxu0 %vm7818_vm4, %v28259_v34 }
 0x6b8   : > { %23097 = vmatmul.mubr.msk.f32.gmra.mrb[62].mxu0 %vm7818_vm4, %v28263_v12 }
 0x6b9   : > { %23103 = vmatprep.mubr.msk.f32.mxu0 %vm7818_vm4, %v27768_v13  ;;  %v31118_v13 = vld [vmem:[#allocation6_spill] sm:$0xff] }
 0x6bc   : > { %23104 = vmatmul.mubr.msk.f32.vlgmr.msra.gmra.mrb[32].mxu0 %vm7818_vm4, %v27774_v14  ;;  %v31119_v14 = vld [vmem:[#allocation21_spill] sm:$0xff] }
 0x6bd   : > { %24348 = vmatpush3.bf16.msk.msra.mxu0 %vm27664_vm15, %v24343_v36  ;;  %23106 = vmatprep.mubr.msk.f32.mxu0 %vm7818_vm4, %v27779_v9  ;;  %v31120_v9 = vld [vmem:[#allocation29_spill] sm:$0xff] }
 0x6be   : > { %24351 = vmatprep.subr.msk.bf16.mxu0 %vm27664_vm15, %v24349_v61  ;;  %v19764_v36 = vld [vmem:[%s30628_s1 + $0x260] sm:$0xf] }
 0x6c0   : > { %23107 = vmatmul.mubr.msk.f32.gmra.mrb[34].mxu0 %vm7818_vm4, %v27784_v1  ;;  %v31121_v1 = vld [vmem:[#allocation16_spill] sm:$0xff] }
 0x6c1   : > { %23109 = vmatprep.mubr.msk.f32.mxu0 %vm7818_vm4, %v27789_v23  ;;  %v31122_v23 = vld [vmem:[#allocation30_spill] sm:$0xff] }
 0x6c4   : > { %23110 = vmatmul.mubr.msk.f32.gmra.mrb[36].mxu0 %vm7818_vm4, %v27794_v15  ;;  %v28337_v15 = vld [vmem:[#allocation2 + $0x181] sm:$0xff] }
 0x6c5   : > { %23112 = vmatprep.mubr.msk.f32.mxu0 %vm7818_vm4, %v27799_v38  ;;  %31123 = vst [vmem:[#allocation15_spill] sm:$0xff] %v28337_v15  ;;  %v28341_v38 = vld [vmem:[#allocation2 + $0x189] sm:$0xff] }
 0x6c6   : > { %31124 = vst [vmem:[#allocation32_spill] sm:$0xff] %v28341_v38 }
 0x6c8   : > { %23113 = vmatmul.mubr.msk.f32.gmra.mrb[38].mxu0 %vm7818_vm4, %v27804_v8  ;;  %v19763_v8 = vld [vmem:[%s30628_s1 + $0x258] sm:$0xff] }
 0x6c9   : > { %23115 = vmatprep.mubr.msk.f32.mxu0 %vm7818_vm4, %v27809_v45  ;;  %v24355_v25 = vpack.c.bf16 %v19764_v36, %v19763_v8  ;;  %v31129_v8 = vld [vmem:[#allocation3_spill] sm:$0xff] }
 0x6ca   : > { %v31132_v36 = vld [vmem:[#allocation19_spill] sm:$0xff] }
 0x6cc   : > { %23116 = vmatmul.mubr.msk.f32.gmra.mrb[40].mxu0 %vm7818_vm4, %v27814_v57  ;;  %v31151_v24 = vld [vmem:[#allocation15_spill] sm:$0xff] }
 0x6cd   : > { %23118 = vmatprep.mubr.msk.f32.mxu0 %vm7818_vm4, %v27819_v63 }
 0x6d0   : > { %23119 = vmatmul.mubr.msk.f32.gmra.mrb[42].mxu0 %vm7818_vm4, %v27824_v21 }
 0x6d1   : > { %23121 = vmatprep.mubr.msk.f32.mxu0 %vm7818_vm4, %v27829_v50 }
 0x6d4   : > { %23122 = vmatmul.mubr.msk.f32.gmra.mrb[44].mxu0 %vm7818_vm4, %v27834_v2 }
 0x6d5   : > { %23124 = vmatprep.mubr.msk.f32.mxu0 %vm7818_vm4, %v27839_v30 }
 0x6d8   : > { %23125 = vmatmul.mubr.msk.f32.gmra.mrb[46].mxu0 %vm7818_vm4, %v27844_v49 }
 0x6d9   : > { %23127 = vmatprep.mubr.msk.f32.mxu0 %vm7818_vm4, %v27849_v27 }
 0x6dc   : > { %23128 = vmatmul.mubr.msk.f32.gmra.mrb[48].mxu0 %vm7818_vm4, %v27854_v29 }
 0x6dd   : > { %23130 = vmatprep.mubr.msk.f32.mxu0 %vm7818_vm4, %v27859_v40 }
 0x6e0   : > { %23131 = vmatmul.mubr.msk.f32.gmra.mrb[50].mxu0 %vm7818_vm4, %v27864_v42 }
 0x6e1   : > { %23133 = vmatprep.mubr.msk.f32.mxu0 %vm7818_vm4, %v27869_v54 }
 0x6e4   : > { %23134 = vmatmul.mubr.msk.f32.gmra.mrb[52].mxu0 %vm7818_vm4, %v27874_v56 }
 0x6e5   : > { %23136 = vmatprep.mubr.msk.f32.mxu0 %vm7818_vm4, %v27879_v47 }
 0x6e8   : > { %23137 = vmatmul.mubr.msk.f32.gmra.mrb[54].mxu0 %vm7818_vm4, %v27884_v26 }
 0x6e9   : > { %23139 = vmatprep.mubr.msk.f32.mxu0 %vm7818_vm4, %v27889_v41 }
 0x6ec   : > { %23140 = vmatmul.mubr.msk.f32.gmra.mrb[56].mxu0 %vm7818_vm4, %v31118_v13 }
 0x6ed   : > { %23142 = vmatprep.mubr.msk.f32.mxu0 %vm7818_vm4, %v31119_v14 }
 0x6f0   : > { %23143 = vmatmul.mubr.msk.f32.gmra.mrb[58].mxu0 %vm7818_vm4, %v31120_v9 }
 0x6f1   : > { %23145 = vmatprep.mubr.msk.f32.mxu0 %vm7818_vm4, %v31121_v1 }
 0x6f4   : > { %23146 = vmatmul.mubr.msk.f32.gmra.mrb[60].mxu0 %vm7818_vm4, %v31122_v23 }
 0x6f5   : > { %23148 = vmatprep.mubr.msk.f32.mxu0 %vm7818_vm4, %v28337_v15  ;;  %v31126_v15 = vld [vmem:[#allocation33_spill] sm:$0xff] }
 0x6f8   : > { %23149 = vmatmul.mubr.msk.f32.gmra.mrb[62].mxu0 %vm7818_vm4, %v28341_v38  ;;  %v31127_v38 = vld [vmem:[#allocation35_spill] sm:$0xff] }
 0x6f9   : > { %23155 = vmatprep.mubr.msk.f32.mxu0 %vm7818_vm4, %v28062_v3  ;;  %v31128_v3 = vld [vmem:[#allocation31_spill] sm:$0xff] }
 0x6fc   : > { %23156 = vmatmul.mubr.msk.f32.vlgmr.msra.gmra.mrb[32].mxu0 %vm7818_vm4, %v28072_v52  ;;  %v31130_v52 = vld [vmem:[#allocation18_spill] sm:$0xff] }
 0x6fd   : > { %24354 = vmatpush3.bf16.msk.msra.mxu0 %vm27664_vm15, %v24349_v61  ;;  %23158 = vmatprep.mubr.msk.f32.mxu0 %vm7818_vm4, %v31125_v59  ;;  %v31131_v61 = vld [vmem:[#allocation4_spill] sm:$0xff]  ;;  %v31133_v59 = vld [vmem:[#allocation5_spill] sm:$0xff] }
 0x6fe   : > { %24357 = vmatprep.subr.msk.bf16.mxu0 %vm27664_vm15, %v24355_v25 }
 0x700   : > { %23159 = vmatmul.mubr.msk.f32.gmra.mrb[34].mxu0 %vm7818_vm4, %v31126_v15  ;;  %v31134_v15 = vld [vmem:[#allocation20_spill] sm:$0xff] }
 0x701   : > { %23161 = vmatprep.mubr.msk.f32.mxu0 %vm7818_vm4, %v31127_v38  ;;  %v31135_v38 = vld [vmem:[#allocation37_spill] sm:$0xff] }
 0x704   : > { %23162 = vmatmul.mubr.msk.f32.gmra.mrb[36].mxu0 %vm7818_vm4, %v31128_v3  ;;  %v31136_v3 = vld [vmem:[#allocation38_spill] sm:$0xff] }
 0x705   : > { %23164 = vmatprep.mubr.msk.f32.mxu0 %vm7818_vm4, %v31129_v8  ;;  %v31137_v8 = vld [vmem:[#allocation7_spill] sm:$0xff] }
 0x708   : > { %23165 = vmatmul.mubr.msk.f32.gmra.mrb[38].mxu0 %vm7818_vm4, %v31130_v52  ;;  %v31138_v52 = vld [vmem:[#allocation22_spill] sm:$0xff] }
 0x709   : > { %23167 = vmatprep.mubr.msk.f32.mxu0 %vm7818_vm4, %v31131_v61  ;;  %v31139_v61 = vld [vmem:[#allocation8_spill] sm:$0xff] }
 0x70c   : > { %23168 = vmatmul.mubr.msk.f32.gmra.mrb[40].mxu0 %vm7818_vm4, %v31132_v36  ;;  %v31140_v36 = vld [vmem:[#allocation23_spill] sm:$0xff] }
 0x70d   : > { %23170 = vmatprep.mubr.msk.f32.mxu0 %vm7818_vm4, %v31133_v59  ;;  %v31141_v59 = vld [vmem:[#allocation9_spill] sm:$0xff] }
 0x710   : > { %23171 = vmatmul.mubr.msk.f32.gmra.mrb[42].mxu0 %vm7818_vm4, %v31134_v15  ;;  %v31142_v15 = vld [vmem:[#allocation24_spill] sm:$0xff] }
 0x711   : > { %23173 = vmatprep.mubr.msk.f32.mxu0 %vm7818_vm4, %v31135_v38  ;;  %v31143_v38 = vld [vmem:[#allocation10_spill] sm:$0xff] }
 0x714   : > { %23174 = vmatmul.mubr.msk.f32.gmra.mrb[44].mxu0 %vm7818_vm4, %v31136_v3  ;;  %v31144_v3 = vld [vmem:[#allocation25_spill] sm:$0xff] }
 0x715   : > { %23176 = vmatprep.mubr.msk.f32.mxu0 %vm7818_vm4, %v31137_v8  ;;  %v31145_v8 = vld [vmem:[#allocation11_spill] sm:$0xff] }
 0x718   : > { %23177 = vmatmul.mubr.msk.f32.gmra.mrb[46].mxu0 %vm7818_vm4, %v31138_v52  ;;  %v31146_v52 = vld [vmem:[#allocation26_spill] sm:$0xff] }
 0x719   : > { %23179 = vmatprep.mubr.msk.f32.mxu0 %vm7818_vm4, %v31139_v61  ;;  %v31147_v61 = vld [vmem:[#allocation12_spill] sm:$0xff] }
 0x71c   : > { %23180 = vmatmul.mubr.msk.f32.gmra.mrb[48].mxu0 %vm7818_vm4, %v31140_v36  ;;  %v31148_v36 = vld [vmem:[#allocation27_spill] sm:$0xff] }
 0x71d   : > { %23182 = vmatprep.mubr.msk.f32.mxu0 %vm7818_vm4, %v31141_v59  ;;  %v31149_v59 = vld [vmem:[#allocation13_spill] sm:$0xff] }
 0x720   : > { %23183 = vmatmul.mubr.msk.f32.gmra.mrb[50].mxu0 %vm7818_vm4, %v31142_v15  ;;  %v31150_v15 = vld [vmem:[#allocation28_spill] sm:$0xff] }
 0x721   : > { %23185 = vmatprep.mubr.msk.f32.mxu0 %vm7818_vm4, %v31143_v38 }
 0x724   : > { %23186 = vmatmul.mubr.msk.f32.gmra.mrb[52].mxu0 %vm7818_vm4, %v31144_v3 }
 0x725   : > { %23188 = vmatprep.mubr.msk.f32.mxu0 %vm7818_vm4, %v31145_v8  ;;  %v28415_v8 = vld [vmem:[#allocation2 + $0x182] sm:$0xff] }
 0x728   : > { %23189 = vmatmul.mubr.msk.f32.gmra.mrb[54].mxu0 %vm7818_vm4, %v31146_v52 }
 0x729   : > { %23191 = vmatprep.mubr.msk.f32.mxu0 %vm7818_vm4, %v31147_v61  ;;  %v28419_v61 = vld [vmem:[#allocation2 + $0x18a] sm:$0xff] }
 0x72c   : > { %23192 = vmatmul.mubr.msk.f32.gmra.mrb[56].mxu0 %vm7818_vm4, %v31148_v36 }
 0x72d   : > { %23194 = vmatprep.mubr.msk.f32.mxu0 %vm7818_vm4, %v31149_v59  ;;  %v19798_v59 = vld [vmem:[%s30628_s1 + $0x270] sm:$0xff] }
 0x730   : > { %23195 = vmatmul.mubr.msk.f32.gmra.mrb[58].mxu0 %vm7818_vm4, %v31150_v15  ;;  %v19799_v15 = vld [vmem:[%s30628_s1 + $0x278] sm:$0xf] }
 0x731   : > { %23197 = vmatprep.mubr.msk.f32.mxu0 %vm7818_vm4, %v28180_v7 }
 0x734   : > { %23198 = vmatmul.mubr.msk.f32.gmra.mrb[60].mxu0 %vm7818_vm4, %v28184_v22  ;;  %v24361_v22 = vpack.c.bf16 %v19799_v15, %v19798_v59 }
 0x735   : > { %23200 = vmatprep.mubr.msk.f32.mxu0 %vm7818_vm4, %v28415_v8 }
 0x738   : > { %23201 = vmatmul.mubr.msk.f32.gmra.mrb[62].mxu0 %vm7818_vm4, %v28419_v61 }
 0x739   : > { %23207 = vmatprep.mubr.msk.f32.mxu0 %vm7818_vm4, %v27940_v17  ;;  %v10061_v17 = vld [vmem:[#allocation2 + $0x198] sm:$0xff] }
 0x73c   : > { %23208 = vmatmul.mubr.msk.f32.vlgmr.msra.gmra.mrb[32].mxu0 %vm7818_vm4, %v27944_v6  ;;  %v10062_v6 = vld [vmem:[#allocation2 + $0x1a0] sm:$0xff] }
 0x73d   : > { %24360 = vmatpush3.bf16.msk.msra.mxu0 %vm27664_vm15, %v24355_v25  ;;  %23210 = vmatprep.mubr.msk.f32.mxu0 %vm7818_vm4, %v27948_v43  ;;  %v10422_v43 = vld [vmem:[#allocation2 + $0x31] sm:$0xff] }
 0x73e   : > { %24363 = vmatprep.subr.msk.bf16.mxu0 %vm27664_vm15, %v24361_v22 }
 0x740   : > { %23211 = vmatmul.mubr.msk.f32.gmra.mrb[34].mxu0 %vm7818_vm4, %v27952_v11  ;;  %v10423_v11 = vld [vmem:[#allocation2 + $0x39] sm:$0xff] }
 0x741   : > { %23213 = vmatprep.mubr.msk.f32.mxu0 %vm7818_vm4, %v27956_v28  ;;  %v10424_v28 = vld [vmem:[#allocation2 + $0x49] sm:$0xff] }
 0x744   : > { %23214 = vmatmul.mubr.msk.f32.gmra.mrb[36].mxu0 %vm7818_vm4, %v27960_v33  ;;  %v10425_v33 = vld [vmem:[#allocation2 + $0x51] sm:$0xff] }
 0x745   : > { %23216 = vmatprep.mubr.msk.f32.mxu0 %vm7818_vm4, %v27964_v18  ;;  %v10426_v18 = vld [vmem:[#allocation2 + $0x61] sm:$0xff] }
 0x748   : > { %23217 = vmatmul.mubr.msk.f32.gmra.mrb[38].mxu0 %vm7818_vm4, %v27968_v19  ;;  %v10427_v19 = vld [vmem:[#allocation2 + $0x69] sm:$0xff] }
 0x749   : > { %23219 = vmatprep.mubr.msk.f32.mxu0 %vm7818_vm4, %v27972_v58  ;;  %v31167_v58 = vld [vmem:[#allocation8_spill] sm:$0xff] }
 0x74c   : > { %23220 = vmatmul.mubr.msk.f32.gmra.mrb[40].mxu0 %vm7818_vm4, %v27976_v20  ;;  %v31168_v20 = vld [vmem:[#allocation23_spill] sm:$0xff] }
 0x74d   : > { %23222 = vmatprep.mubr.msk.f32.mxu0 %vm7818_vm4, %v27980_v32  ;;  %v31169_v32 = vld [vmem:[#allocation9_spill] sm:$0xff] }
 0x750   : > { %23223 = vmatmul.mubr.msk.f32.gmra.mrb[42].mxu0 %vm7818_vm4, %v27984_v48  ;;  %v31170_v48 = vld [vmem:[#allocation24_spill] sm:$0xff] }
 0x751   : > { %23225 = vmatprep.mubr.msk.f32.mxu0 %vm7818_vm4, %v27988_v16  ;;  %v31171_v16 = vld [vmem:[#allocation11_spill] sm:$0xff] }
 0x754   : > { %23226 = vmatmul.mubr.msk.f32.gmra.mrb[44].mxu0 %vm7818_vm4, %v27992_v51  ;;  %v31172_v51 = vld [vmem:[#allocation12_spill] sm:$0xff] }
 0x755   : > { %23228 = vmatprep.mubr.msk.f32.mxu0 %vm7818_vm4, %v27996_v53  ;;  %v31173_v53 = vld [vmem:[#allocation13_spill] sm:$0xff] }
 0x758   : > { %23229 = vmatmul.mubr.msk.f32.gmra.mrb[46].mxu0 %vm7818_vm4, %v28000_v4  ;;  %v31174_v4 = vld [vmem:[#allocation28_spill] sm:$0xff] }
 0x759   : > { %23231 = vmatprep.mubr.msk.f32.mxu0 %vm7818_vm4, %v28004_v31  ;;  %v31175_v31 = vld [vmem:[#allocation14_spill] sm:$0xff] }
 0x75c   : > { %23232 = vmatmul.mubr.msk.f32.gmra.mrb[48].mxu0 %vm7818_vm4, %v28008_v39  ;;  %v10843_v39 = vld [vmem:[#allocation2 + $0x19a] sm:$0xff] }
 0x75d   : > { %23234 = vmatprep.mubr.msk.f32.mxu0 %vm7818_vm4, %v28012_v44  ;;  %v10844_v44 = vld [vmem:[#allocation2 + $0x1a2] sm:$0xff] }
 0x760   : > { %23235 = vmatmul.mubr.msk.f32.gmra.mrb[50].mxu0 %vm7818_vm4, %v28016_v62  ;;  %v19836_v62 = vld [vmem:[%s30628_s1 + $0x2a0] sm:$0xff] }
 0x761   : > { %23237 = vmatprep.mubr.msk.f32.mxu0 %vm7818_vm4, %v28020_v10  ;;  %v19837_v10 = vld [vmem:[%s30628_s1 + $0x2a8] sm:$0xff] }
 0x764   : > { %23238 = vmatmul.mubr.msk.f32.gmra.mrb[52].mxu0 %vm7818_vm4, %v28024_v46  ;;  %v24367_v46 = vpack.c.bf16 %v19837_v10, %v19836_v62 }
 0x765   : > { %23240 = vmatprep.mubr.msk.f32.mxu0 %vm7818_vm4, %v28028_v55  ;;  %v11533_v55 = vld [vmem:[#allocation2 + $0x1] sm:$0xff] }
 0x766   : > { %24368 = vmatprep.subr.bf16.mxu1 %v24367_v46 }
 0x767   : > { %24370 = vmatpush3.bf16.msra.mxu1 %v24367_v46 }
 0x768   : > { %23241 = vmatmul.mubr.msk.f32.gmra.mrb[54].mxu0 %vm7818_vm4, %v28032_v60  ;;  %v19834_v60 = vld [vmem:[%s30628_s1 + $0x288] sm:$0xff] }
 0x769   : > { %23243 = vmatprep.mubr.msk.f32.mxu0 %vm7818_vm4, %v28036_v0  ;;  %v19835_v0 = vld [vmem:[%s30628_s1 + $0x290] sm:$0xff] }
 0x76c   : > { %23244 = vmatmul.mubr.msk.f32.gmra.mrb[56].mxu0 %vm7818_vm4, %v28040_v35  ;;  %v28630_v35 = vld [vmem:[%s30629_s2 + $0x2] ss:$0 sm:$0xff] }
 0x76d   : > { %23246 = vmatprep.mubr.msk.f32.mxu0 %vm7818_vm4, %v28044_v37  ;;  %v24371_v37 = vpack.c.bf16 %v19835_v0, %v19834_v60 }
 0x76f   : > { %24372 = vmatprep.subr.bf16.mxu1 %v24371_v37 }
 0x770   : > { %23247 = vmatmul.mubr.msk.f32.gmra.mrb[58].mxu0 %vm7818_vm4, %v28048_v5  ;;  %v11534_v5 = vld [vmem:[#allocation2 + $0x9] sm:$0xff] }
 0x771   : > { %23249 = vmatprep.mubr.msk.f32.mxu0 %vm7818_vm4, %v28259_v34 }
 0x774   : > { %23250 = vmatmul.mubr.msk.f32.gmra.mrb[60].mxu0 %vm7818_vm4, %v28263_v12 }
 0x775   : > { %23252 = vmatprep.mubr.msk.f32.mxu0 %vm7818_vm4, %v10061_v17 }
 0x778   : > { %23253 = vmatmul.mubr.msk.f32.gmra.mrb[62].mxu0 %vm7818_vm4, %v10062_v6 }
 0x779   : > { %23259 = vmatprep.mubr.msk.f32.mxu0 %vm7818_vm4, %v10422_v43 }
 0x77c   : > { %23260 = vmatmul.mubr.msk.f32.vlgmr.msra.gmra.mrb[32].mxu0 %vm7818_vm4, %v10423_v11 }
 0x77d   : > { %24366 = vmatpush3.bf16.msk.msra.mxu0 %vm27664_vm15, %v24361_v22  ;;  %23262 = vmatprep.mubr.msk.f32.mxu0 %vm7818_vm4, %v10424_v28  ;;  %vm11568_vm15 = vcmask 130048  }
 0x77e   : > { %23363 = vmatprep.mubr.msk.f32.mxu1 %vm11568_vm15, %v11533_v55 }
 0x77f   : > { %23364 = vmatmul.mubr.msk.f32.vlgmr.msra.gmra.mrb[64].mxu1 %vm11568_vm15, %v11534_v5 }
 0x780   : > { %23263 = vmatmul.mubr.msk.f32.gmra.mrb[34].mxu0 %vm7818_vm4, %v10425_v33  ;;  %24374 = vmatpush3.bf16.msra.mxu1 %v24371_v37 }
 0x781   : > { %23265 = vmatprep.mubr.msk.f32.mxu0 %vm7818_vm4, %v10426_v18 }
 0x784   : > { %23266 = vmatmul.mubr.msk.f32.gmra.mrb[36].mxu0 %vm7818_vm4, %v10427_v19 }
 0x785   : > { %23268 = vmatprep.mubr.msk.f32.mxu0 %vm7818_vm4, %v27809_v45  ;;  %v10452_v45 = vld [vmem:[#allocation2 + $0x199] sm:$0xff] }
 0x788   : > { %23269 = vmatmul.mubr.msk.f32.gmra.mrb[38].mxu0 %vm7818_vm4, %v27814_v57  ;;  %v31152_v57 = vld [vmem:[#allocation32_spill] sm:$0xff] }
 0x789   : > { %23271 = vmatprep.mubr.msk.f32.mxu0 %vm7818_vm4, %v27819_v63  ;;  %v10453_v63 = vld [vmem:[#allocation2 + $0x1a1] sm:$0xff] }
 0x78c   : > { %23272 = vmatmul.mubr.msk.f32.gmra.mrb[40].mxu0 %vm7818_vm4, %v27824_v21  ;;  %v31153_v21 = vld [vmem:[#allocation17_spill] sm:$0xff] }
 0x78d   : > { %23274 = vmatprep.mubr.msk.f32.mxu0 %vm7818_vm4, %v27829_v50  ;;  %v31154_v50 = vld [vmem:[#allocation33_spill] sm:$0xff] }
 0x790   : > { %23275 = vmatmul.mubr.msk.f32.gmra.mrb[42].mxu0 %vm7818_vm4, %v27834_v2  ;;  %v31155_v2 = vld [vmem:[#allocation35_spill] sm:$0xff] }
 0x791   : > { %23277 = vmatprep.mubr.msk.f32.mxu0 %vm7818_vm4, %v27839_v30  ;;  %v31156_v30 = vld [vmem:[#allocation31_spill] sm:$0xff] }
 0x794   : > { %23278 = vmatmul.mubr.msk.f32.gmra.mrb[44].mxu0 %vm7818_vm4, %v27844_v49  ;;  %v31157_v49 = vld [vmem:[#allocation3_spill] sm:$0xff] }
 0x795   : > { %23280 = vmatprep.mubr.msk.f32.mxu0 %vm7818_vm4, %v27849_v27  ;;  %v31158_v27 = vld [vmem:[#allocation18_spill] sm:$0xff] }
 0x798   : > { %23281 = vmatmul.mubr.msk.f32.gmra.mrb[46].mxu0 %vm7818_vm4, %v27854_v29  ;;  %v31159_v29 = vld [vmem:[#allocation4_spill] sm:$0xff] }
 0x799   : > { %23283 = vmatprep.mubr.msk.f32.mxu0 %vm7818_vm4, %v27859_v40  ;;  %v31160_v40 = vld [vmem:[#allocation19_spill] sm:$0xff] }
 0x79c   : > { %23284 = vmatmul.mubr.msk.f32.gmra.mrb[48].mxu0 %vm7818_vm4, %v27864_v42  ;;  %v31161_v42 = vld [vmem:[#allocation5_spill] sm:$0xff] }
 0x79d   : > { %23286 = vmatprep.mubr.msk.f32.mxu0 %vm7818_vm4, %v27869_v54  ;;  %v31162_v54 = vld [vmem:[#allocation20_spill] sm:$0xff] }
 0x7a0   : > { %23287 = vmatmul.mubr.msk.f32.gmra.mrb[50].mxu0 %vm7818_vm4, %v27874_v56  ;;  %v31163_v56 = vld [vmem:[#allocation37_spill] sm:$0xff] }
 0x7a1   : > { %23289 = vmatprep.mubr.msk.f32.mxu0 %vm7818_vm4, %v27879_v47  ;;  %v31164_v47 = vld [vmem:[#allocation38_spill] sm:$0xff] }
 0x7a4   : > { %23290 = vmatmul.mubr.msk.f32.gmra.mrb[52].mxu0 %vm7818_vm4, %v27884_v26  ;;  %v31165_v26 = vld [vmem:[#allocation7_spill] sm:$0xff] }
 0x7a5   : > { %23292 = vmatprep.mubr.msk.f32.mxu0 %vm7818_vm4, %v27889_v41  ;;  %v31166_v41 = vld [vmem:[#allocation22_spill] sm:$0xff] }
 0x7a8   : > { %23293 = vmatmul.mubr.msk.f32.gmra.mrb[54].mxu0 %vm7818_vm4, %v31118_v13 }
 0x7a9   : > { %23295 = vmatprep.mubr.msk.f32.mxu0 %vm7818_vm4, %v31119_v14 }
 0x7ac   : > { %23296 = vmatmul.mubr.msk.f32.gmra.mrb[56].mxu0 %vm7818_vm4, %v31120_v9 }
 0x7ad   : > { %23298 = vmatprep.mubr.msk.f32.mxu0 %vm7818_vm4, %v31121_v1 }
 0x7b0   : > { %23299 = vmatmul.mubr.msk.f32.gmra.mrb[58].mxu0 %vm7818_vm4, %v31122_v23 }
 0x7b1   : > { %23301 = vmatprep.mubr.msk.f32.mxu0 %vm7818_vm4, %v31151_v24 }
 0x7b4   : > { %23302 = vmatmul.mubr.msk.f32.gmra.mrb[60].mxu0 %vm7818_vm4, %v31152_v57 }
 0x7b5   : > { %23304 = vmatprep.mubr.msk.f32.mxu0 %vm7818_vm4, %v10452_v45 }
 0x7b8   : > { %23305 = vmatmul.mubr.msk.f32.gmra.mrb[62].mxu0 %vm7818_vm4, %v10453_v63 }
 0x7b9   : > { %23311 = vmatprep.mubr.msk.f32.mxu0 %vm7818_vm4, %v31153_v21 }
 0x7bc   : > { %23312 = vmatmul.mubr.msk.f32.vlgmr.msra.gmra.mrb[32].mxu0 %vm7818_vm4, %v31154_v50 }
 0x7bd   : > { %23314 = vmatprep.mubr.msk.f32.mxu0 %vm7818_vm4, %v31155_v2 }
 0x7c0   : > { %23315 = vmatmul.mubr.msk.f32.gmra.mrb[34].mxu0 %vm7818_vm4, %v31156_v30 }
 0x7c1   : > { %23317 = vmatprep.mubr.msk.f32.mxu0 %vm7818_vm4, %v31157_v49 }
 0x7c4   : > { %23318 = vmatmul.mubr.msk.f32.gmra.mrb[36].mxu0 %vm7818_vm4, %v31158_v27 }
 0x7c5   : > { %23320 = vmatprep.mubr.msk.f32.mxu0 %vm7818_vm4, %v31159_v29 }
 0x7c8   : > { %23321 = vmatmul.mubr.msk.f32.gmra.mrb[38].mxu0 %vm7818_vm4, %v31160_v40 }
 0x7c9   : > { %23323 = vmatprep.mubr.msk.f32.mxu0 %vm7818_vm4, %v31161_v42 }
 0x7cc   : > { %23324 = vmatmul.mubr.msk.f32.gmra.mrb[40].mxu0 %vm7818_vm4, %v31162_v54 }
 0x7cd   : > { %23326 = vmatprep.mubr.msk.f32.mxu0 %vm7818_vm4, %v31163_v56 }
 0x7d0   : > { %23327 = vmatmul.mubr.msk.f32.gmra.mrb[42].mxu0 %vm7818_vm4, %v31164_v47 }
 0x7d1   : > { %23329 = vmatprep.mubr.msk.f32.mxu0 %vm7818_vm4, %v31165_v26 }
 0x7d4   : > { %23330 = vmatmul.mubr.msk.f32.gmra.mrb[44].mxu0 %vm7818_vm4, %v31166_v41 }
 0x7d5   : > { %23332 = vmatprep.mubr.msk.f32.mxu0 %vm7818_vm4, %v31167_v58 }
 0x7d8   : > { %23333 = vmatmul.mubr.msk.f32.gmra.mrb[46].mxu0 %vm7818_vm4, %v31168_v20 }
 0x7d9   : > { %23335 = vmatprep.mubr.msk.f32.mxu0 %vm7818_vm4, %v31169_v32 }
 0x7dc   : > { %23336 = vmatmul.mubr.msk.f32.gmra.mrb[48].mxu0 %vm7818_vm4, %v31170_v48 }
 0x7dd   : > { %23338 = vmatprep.mubr.msk.f32.mxu0 %vm7818_vm4, %v31143_v38 }
 0x7e0   : > { %23339 = vmatmul.mubr.msk.f32.gmra.mrb[50].mxu0 %vm7818_vm4, %v31144_v3 }
 0x7e1   : > { %23341 = vmatprep.mubr.msk.f32.mxu0 %vm7818_vm4, %v31171_v16 }
 0x7e4   : > { %23342 = vmatmul.mubr.msk.f32.gmra.mrb[52].mxu0 %vm7818_vm4, %v31146_v52 }
 0x7e5   : > { %23344 = vmatprep.mubr.msk.f32.mxu0 %vm7818_vm4, %v31172_v51 }
 0x7e8   : > { %23345 = vmatmul.mubr.msk.f32.gmra.mrb[54].mxu0 %vm7818_vm4, %v31148_v36 }
 0x7e9   : > { %23347 = vmatprep.mubr.msk.f32.mxu0 %vm7818_vm4, %v31173_v53 }
 0x7ec   : > { %23348 = vmatmul.mubr.msk.f32.gmra.mrb[56].mxu0 %vm7818_vm4, %v31174_v4 }
 0x7ed   : > { %23350 = vmatprep.mubr.msk.f32.mxu0 %vm7818_vm4, %v28180_v7 }
 0x7f0   : > { %23351 = vmatmul.mubr.msk.f32.gmra.mrb[58].mxu0 %vm7818_vm4, %v31175_v31 }
 0x7f1   : > { %23353 = vmatprep.mubr.msk.f32.mxu0 %vm7818_vm4, %v28415_v8 }
 0x7f4   : > { %23354 = vmatmul.mubr.msk.f32.gmra.mrb[60].mxu0 %vm7818_vm4, %v28419_v61 }
 0x7f5   : > { %23356 = vmatprep.mubr.msk.f32.mxu0 %vm7818_vm4, %v10843_v39 }
 0x7f8   : > { %23357 = vmatmul.mubr.msk.f32.gmra.mrb[62].mxu0 %vm7818_vm4, %v10844_v44 }
 0x88f   : > { %v23313_v7 = vpop.f32.mrb[32].mxu0 }
 0x890   : > { %v11210_v22 = vadd.f32 %v23313_v7, %v28630_v35  ;;  %v11013_v34 = vpop.f32.mrb[33].mxu0 }
 0x891   : > { %v11209_v12 = vadd.f32 %v28630_v35, %v11013_v34 }
 0x892   : > { %v11274_v13 = vmul.f32 0.01, %v11210_v22  ;;  %vm11242_vm4 = vcmp.gt.f32.partialorder %v11210_v22, 0.0 }
 0x893   : > { %v11273_v14 = vmul.f32 0.01, %v11209_v12  ;;  %v23316_v9 = vpop.f32.mrb[34].mxu0  ;;  %vm11241_vm2 = vcmp.gt.f32.partialorder %v11209_v12, 0.0 }
 0x894   : > { %v11212_v1 = vadd.f32 %v23316_v9, %v28630_v35  ;;  %v11023_v23 = vpop.f32.mrb[35].mxu0  ;;  %v11306_v15 = vsel %vm11242_vm4, %v11210_v22, %v11274_v13 }
 0x895   : > { %v11211_v38 = vadd.f32 %v28630_v35, %v11023_v23  ;;  %11371 = vrot.lane.b32.xlu1 %v11306_v15, %s25747_s11  ;;  %v11305_v25 = vsel %vm11241_vm2, %v11209_v12, %v11273_v14 }
 0x896   : > { %v11276_v59 = vmul.f32 0.01, %v11212_v1  ;;  %11369 = vrot.lane.b32.xlu0 %v11305_v25, %s25747_s11  ;;  %vm11244_vm5 = vcmp.gt.f32.partialorder %v11212_v1, 0.0 }
 0x897   : > { %v11275_v3 = vmul.f32 0.01, %v11211_v38  ;;  %v23319_v8 = vpop.f32.mrb[36].mxu0  ;;  %vm11243_vm6 = vcmp.gt.f32.partialorder %v11211_v38, 0.0 }
 0x898   : > { %v11214_v52 = vadd.f32 %v23319_v8, %v28630_v35  ;;  %v11033_v61 = vpop.f32.mrb[37].mxu0  ;;  %v11308_v36 = vsel %vm11244_vm5, %v11212_v1, %v11276_v59 }
 0x899   : > { %v11213_v17 = vadd.f32 %v28630_v35, %v11033_v61  ;;  %11375 = vrot.lane.b32.xlu1 %v11308_v36, %s25747_s11  ;;  %v11307_v6 = vsel %vm11243_vm6, %v11211_v38, %v11275_v3 }
 0x89a   : > { %v11278_v43 = vmul.f32 0.01, %v11214_v52  ;;  %11373 = vrot.lane.b32.xlu0 %v11307_v6, %s25747_s11  ;;  %vm11246_vm7 = vcmp.gt.f32.partialorder %v11214_v52, 0.0 }
 0x89b   : > { %v11277_v11 = vmul.f32 0.01, %v11213_v17  ;;  %v23322_v28 = vpop.f32.mrb[38].mxu0  ;;  %vm11245_vm8 = vcmp.gt.f32.partialorder %v11213_v17, 0.0 }
 0x89c   : > { %v11216_v33 = vadd.f32 %v23322_v28, %v28630_v35  ;;  %v11043_v18 = vpop.f32.mrb[39].mxu0  ;;  %v11310_v19 = vsel %vm11246_vm7, %v11214_v52, %v11278_v43 }
 0x89d   : > { %v11215_v24 = vadd.f32 %v28630_v35, %v11043_v18  ;;  %11379 = vrot.lane.b32.xlu1 %v11310_v19, %s25747_s11  ;;  %v11309_v45 = vsel %vm11245_vm8, %v11213_v17, %v11277_v11 }
 0x89e   : > { %v11280_v57 = vmul.f32 0.01, %v11216_v33  ;;  %11377 = vrot.lane.b32.xlu0 %v11309_v45, %s25747_s11  ;;  %vm11248_vm9 = vcmp.gt.f32.partialorder %v11216_v33, 0.0 }
 0x89f   : > { %v11279_v63 = vmul.f32 0.01, %v11215_v24  ;;  %v23325_v21 = vpop.f32.mrb[40].mxu0  ;;  %vm11247_vm10 = vcmp.gt.f32.partialorder %v11215_v24, 0.0 }
 0x8a0   : > { %v11218_v50 = vadd.f32 %v23325_v21, %v28630_v35  ;;  %v11053_v2 = vpop.f32.mrb[41].mxu0  ;;  %v11312_v30 = vsel %vm11248_vm9, %v11216_v33, %v11280_v57 }
 0x8a1   : > { %v11217_v49 = vadd.f32 %v28630_v35, %v11053_v2  ;;  %11383 = vrot.lane.b32.xlu1 %v11312_v30, %s25747_s11  ;;  %v11311_v27 = vsel %vm11247_vm10, %v11215_v24, %v11279_v63 }
 0x8a2   : > { %v11282_v29 = vmul.f32 0.01, %v11218_v50  ;;  %11381 = vrot.lane.b32.xlu0 %v11311_v27, %s25747_s11  ;;  %vm11250_vm11 = vcmp.gt.f32.partialorder %v11218_v50, 0.0 }
 0x8a3   : > { %v11281_v40 = vmul.f32 0.01, %v11217_v49  ;;  %v23328_v42 = vpop.f32.mrb[42].mxu0  ;;  %vm11249_vm12 = vcmp.gt.f32.partialorder %v11217_v49, 0.0 }
 0x8a4   : > { %v11220_v54 = vadd.f32 %v23328_v42, %v28630_v35  ;;  %v11063_v56 = vpop.f32.mrb[43].mxu0  ;;  %v11314_v47 = vsel %vm11250_vm11, %v11218_v50, %v11282_v29 }
 0x8a5   : > { %v11219_v26 = vadd.f32 %v28630_v35, %v11063_v56  ;;  %11387 = vrot.lane.b32.xlu1 %v11314_v47, %s25747_s11  ;;  %v11313_v41 = vsel %vm11249_vm12, %v11217_v49, %v11281_v40 }
 0x8a6   : > { %v11284_v58 = vmul.f32 0.01, %v11220_v54  ;;  %11385 = vrot.lane.b32.xlu0 %v11313_v41, %s25747_s11  ;;  %vm11252_vm13 = vcmp.gt.f32.partialorder %v11220_v54, 0.0 }
 0x8a7   : > { %v11283_v20 = vmul.f32 0.01, %v11219_v26  ;;  %v23331_v32 = vpop.f32.mrb[44].mxu0  ;;  %vm11251_vm14 = vcmp.gt.f32.partialorder %v11219_v26, 0.0 }
 0x8a8   : > { %v11222_v48 = vadd.f32 %v23331_v32, %v28630_v35  ;;  %v11073_v16 = vpop.f32.mrb[45].mxu0  ;;  %v11316_v51 = vsel %vm11252_vm13, %v11220_v54, %v11284_v58 }
 0x8a9   : > { %v11221_v53 = vadd.f32 %v28630_v35, %v11073_v16  ;;  %11391 = vrot.lane.b32.xlu1 %v11316_v51, %s25747_s11  ;;  %v11315_v4 = vsel %vm11251_vm14, %v11219_v26, %v11283_v20 }
 0x8aa   : > { %v11286_v31 = vmul.f32 0.01, %v11222_v48  ;;  %11389 = vrot.lane.b32.xlu0 %v11315_v4, %s25747_s11  ;;  %vm11254_vm4 = vcmp.gt.f32.partialorder %v11222_v48, 0.0 }
 0x8ab   : > { %v11285_v39 = vmul.f32 0.01, %v11221_v53  ;;  %v23334_v44 = vpop.f32.mrb[46].mxu0  ;;  %vm11253_vm2 = vcmp.gt.f32.partialorder %v11221_v53, 0.0 }
 0x8ac   : > { %v11224_v62 = vadd.f32 %v23334_v44, %v28630_v35  ;;  %v11083_v10 = vpop.f32.mrb[47].mxu0  ;;  %v11318_v46 = vsel %vm11254_vm4, %v11222_v48, %v11286_v31 }
 0x8ad   : > { %v11223_v55 = vadd.f32 %v28630_v35, %v11083_v10  ;;  %11395 = vrot.lane.b32.xlu1 %v11318_v46, %s25747_s11  ;;  %v11317_v60 = vsel %vm11253_vm2, %v11221_v53, %v11285_v39  ;;  %v19902_v10 = vld [vmem:[%s30628_s1 + $0x2b8] sm:$0xff]  ;;  %v19903_v46 = vld [vmem:[%s30628_s1 + $0x2c0] sm:$0xff] }
 0x8ae   : > { %v11288_v0 = vmul.f32 0.01, %v11224_v62  ;;  %11393 = vrot.lane.b32.xlu0 %v11317_v60, %s25747_s11  ;;  %vm11256_vm5 = vcmp.gt.f32.partialorder %v11224_v62, 0.0 }
 0x8af   : > { %v11287_v37 = vmul.f32 0.01, %v11223_v55  ;;  %v23337_v5 = vpop.f32.mrb[48].mxu0  ;;  %vm11255_vm6 = vcmp.gt.f32.partialorder %v11223_v55, 0.0 }
 0x8b0   : > { %v11226_v7 = vadd.f32 %v23337_v5, %v28630_v35  ;;  %v11093_v22 = vpop.f32.mrb[49].mxu0  ;;  %v11320_v34 = vsel %vm11256_vm5, %v11224_v62, %v11288_v0 }
 0x8b1   : > { %v11225_v12 = vadd.f32 %v28630_v35, %v11093_v22  ;;  %11399 = vrot.lane.b32.xlu1 %v11320_v34, %s25747_s11  ;;  %v11319_v13 = vsel %vm11255_vm6, %v11223_v55, %v11287_v37  ;;  %v28699_v37 = vpack.c.bf16 %v19903_v46, %v19902_v10 }
 0x8b2   : > { %v11290_v14 = vmul.f32 0.01, %v11226_v7  ;;  %11397 = vrot.lane.b32.xlu0 %v11319_v13, %s25747_s11  ;;  %vm11258_vm7 = vcmp.gt.f32.partialorder %v11226_v7, 0.0 }
 0x8b3   : > { %v11289_v9 = vmul.f32 0.01, %v11225_v12  ;;  %v23340_v1 = vpop.f32.mrb[50].mxu0  ;;  %vm11257_vm8 = vcmp.gt.f32.partialorder %v11225_v12, 0.0  ;;  %24376 = vmatprep.subr.bf16.mxu1 %v28699_v37 }
 0x8b4   : > { %v11228_v23 = vadd.f32 %v23340_v1, %v28630_v35  ;;  %v11103_v15 = vpop.f32.mrb[51].mxu0  ;;  %v11322_v38 = vsel %vm11258_vm7, %v11226_v7, %v11290_v14 }
 0x8b5   : > { %v11227_v25 = vadd.f32 %v28630_v35, %v11103_v15  ;;  %11403 = vrot.lane.b32.xlu1 %v11322_v38, %s25747_s11  ;;  %v11321_v59 = vsel %vm11257_vm8, %v11225_v12, %v11289_v9 }
 0x8b6   : > { %v11292_v3 = vmul.f32 0.01, %v11228_v23  ;;  %11401 = vrot.lane.b32.xlu0 %v11321_v59, %s25747_s11  ;;  %vm11260_vm9 = vcmp.gt.f32.partialorder %v11228_v23, 0.0 }
 0x8b7   : > { %v11291_v8 = vmul.f32 0.01, %v11227_v25  ;;  %v23343_v52 = vpop.f32.mrb[52].mxu0  ;;  %vm11259_vm10 = vcmp.gt.f32.partialorder %v11227_v25, 0.0 }
 0x8b8   : > { %v11230_v61 = vadd.f32 %v23343_v52, %v28630_v35  ;;  %v11113_v36 = vpop.f32.mrb[53].mxu0  ;;  %v11324_v17 = vsel %vm11260_vm9, %v11228_v23, %v11292_v3 }
 0x8b9   : > { %v11229_v6 = vadd.f32 %v28630_v35, %v11113_v36  ;;  %11407 = vrot.lane.b32.xlu1 %v11324_v17, %s25747_s11  ;;  %v11323_v43 = vsel %vm11259_vm10, %v11227_v25, %v11291_v8 }
 0x8ba   : > { %v11294_v11 = vmul.f32 0.01, %v11230_v61  ;;  %11405 = vrot.lane.b32.xlu0 %v11323_v43, %s25747_s11  ;;  %vm11262_vm11 = vcmp.gt.f32.partialorder %v11230_v61, 0.0 }
 0x8bb   : > { %v11293_v28 = vmul.f32 0.01, %v11229_v6  ;;  %v23346_v33 = vpop.f32.mrb[54].mxu0  ;;  %vm11261_vm12 = vcmp.gt.f32.partialorder %v11229_v6, 0.0 }
 0x8bc   : > { %v11232_v18 = vadd.f32 %v23346_v33, %v28630_v35  ;;  %v11123_v19 = vpop.f32.mrb[55].mxu0  ;;  %v11326_v24 = vsel %vm11262_vm11, %v11230_v61, %v11294_v11  ;;  %vm11465_vm11 = vcmask 130144  }
 0x8bd   : > { %v11231_v45 = vadd.f32 %v28630_v35, %v11123_v19  ;;  %11411 = vrot.lane.b32.xlu1 %v11326_v24, %s25747_s11  ;;  %v11325_v57 = vsel %vm11261_vm12, %v11229_v6, %v11293_v28 }
 0x8be   : > { %v11296_v63 = vmul.f32 0.01, %v11232_v18  ;;  %11409 = vrot.lane.b32.xlu0 %v11325_v57, %s25747_s11  ;;  %vm11264_vm13 = vcmp.gt.f32.partialorder %v11232_v18, 0.0 }
 0x8bf   : > { %v11295_v21 = vmul.f32 0.01, %v11231_v45  ;;  %v23349_v50 = vpop.f32.mrb[56].mxu0  ;;  %vm11263_vm14 = vcmp.gt.f32.partialorder %v11231_v45, 0.0 }
 0x8c0   : > { %v11234_v2 = vadd.f32 %v23349_v50, %v28630_v35  ;;  %v11133_v30 = vpop.f32.mrb[57].mxu0  ;;  %v11328_v49 = vsel %vm11264_vm13, %v11232_v18, %v11296_v63 }
 0x8c1   : > { %v11233_v27 = vadd.f32 %v28630_v35, %v11133_v30  ;;  %11415 = vrot.lane.b32.xlu1 %v11328_v49, %s25747_s11  ;;  %v11327_v29 = vsel %vm11263_vm14, %v11231_v45, %v11295_v21 }
 0x8c2   : > { %v11298_v40 = vmul.f32 0.01, %v11234_v2  ;;  %11413 = vrot.lane.b32.xlu0 %v11327_v29, %s25747_s11  ;;  %vm11266_vm4 = vcmp.gt.f32.partialorder %v11234_v2, 0.0 }
 0x8c3   : > { %v11297_v42 = vmul.f32 0.01, %v11233_v27  ;;  %v23352_v54 = vpop.f32.mrb[58].mxu0  ;;  %vm11265_vm2 = vcmp.gt.f32.partialorder %v11233_v27, 0.0 }
 0x8c4   : > { %v11236_v56 = vadd.f32 %v23352_v54, %v28630_v35  ;;  %v11143_v47 = vpop.f32.mrb[59].mxu0  ;;  %v11330_v26 = vsel %vm11266_vm4, %v11234_v2, %v11298_v40 }
 0x8c5   : > { %v11235_v41 = vadd.f32 %v28630_v35, %v11143_v47  ;;  %11419 = vrot.lane.b32.xlu1 %v11330_v26, %s25747_s11  ;;  %v11329_v58 = vsel %vm11265_vm2, %v11233_v27, %v11297_v42 }
 0x8c6   : > { %v11300_v20 = vmul.f32 0.01, %v11236_v56  ;;  %11417 = vrot.lane.b32.xlu0 %v11329_v58, %s25747_s11  ;;  %vm11268_vm5 = vcmp.gt.f32.partialorder %v11236_v56, 0.0 }
 0x8c7   : > { %v11299_v32 = vmul.f32 0.01, %v11235_v41  ;;  %v23355_v48 = vpop.f32.mrb[60].mxu0  ;;  %vm11267_vm6 = vcmp.gt.f32.partialorder %v11235_v41, 0.0 }
 0x8c8   : > { %v11238_v16 = vadd.f32 %v23355_v48, %v28630_v35  ;;  %v11153_v51 = vpop.f32.mrb[61].mxu0  ;;  %v11332_v53 = vsel %vm11268_vm5, %v11236_v56, %v11300_v20 }
 0x8c9   : > { %v11237_v4 = vadd.f32 %v28630_v35, %v11153_v51  ;;  %11423 = vrot.lane.b32.xlu1 %v11332_v53, %s25747_s11  ;;  %v11331_v31 = vsel %vm11267_vm6, %v11235_v41, %v11299_v32 }
 0x8ca   : > { %v11302_v39 = vmul.f32 0.01, %v11238_v16  ;;  %11421 = vrot.lane.b32.xlu0 %v11331_v31, %s25747_s11  ;;  %vm11270_vm7 = vcmp.gt.f32.partialorder %v11238_v16, 0.0 }
 0x8cb   : > { %v11301_v44 = vmul.f32 0.01, %v11237_v4  ;;  %v23358_v62 = vpop.f32.mrb[62].mxu0  ;;  %vm11269_vm8 = vcmp.gt.f32.partialorder %v11237_v4, 0.0 }
 0x8cc   : > { %v11240_v55 = vadd.f32 %v23358_v62, %v28630_v35  ;;  %v11163_v60 = vpop.f32.mrb[63].mxu0  ;;  %v11334_v0 = vsel %vm11270_vm7, %v11238_v16, %v11302_v39 }
 0x8cd   : > { %v11239_v5 = vadd.f32 %v28630_v35, %v11163_v60  ;;  %11427 = vrot.lane.b32.xlu1 %v11334_v0, %s25747_s11  ;;  %v11333_v7 = vsel %vm11269_vm8, %v11237_v4, %v11301_v44 }
 0x8ce   : > { %v11304_v22 = vmul.f32 0.01, %v11240_v55  ;;  %11425 = vrot.lane.b32.xlu0 %v11333_v7, %s25747_s11  ;;  %vm11272_vm9 = vcmp.gt.f32.partialorder %v11240_v55, 0.0 }
 0x8cf   : > { %v11303_v34 = vmul.f32 0.01, %v11239_v5  ;;  %vm11271_vm10 = vcmp.gt.f32.partialorder %v11239_v5, 0.0 }
 0x8d0   : > { %v11336_v12 = vsel %vm11272_vm9, %v11240_v55, %v11304_v22 }
 0x8d1   : > { %11431 = vrot.lane.b32.xlu1 %v11336_v12, %s25747_s11  ;;  %v11335_v13 = vsel %vm11271_vm10, %v11239_v5, %v11303_v34  ;;  %v11498_v12 = vld [vmem:[#allocation2] sm:$0xff] }
 0x8d2   : > { %11429 = vrot.lane.b32.xlu0 %v11335_v13, %s25747_s11 }
 0x907   : > { %v11372_v14 = vpop.permute.xlu1 %11371 }
 0x908   : > { %v11370_v35 = vpop.permute.xlu0 %11369  ;;  %11467 = vst.msk [vmem:[#allocation2 + $0x21] sm:$0xff] %vm11465_vm11, %v11372_v14  ;;  %v19936_v14 = vld [vmem:[%s30628_s1 + $0x2d0] sm:$0xff] }
 0x909   : > { %11466 = vst.msk [vmem:[#allocation2 + $0x19] sm:$0xff] %vm11465_vm11, %v11370_v35  ;;  %v19937_v35 = vld [vmem:[%s30628_s1 + $0x2d8] sm:$0xff] }
 0x90b   : > { %v11376_v9 = vpop.permute.xlu1 %11375 }
 0x90c   : > { %v11374_v1 = vpop.permute.xlu0 %11373  ;;  %11469 = vst.msk [vmem:[#allocation2 + $0x39] sm:$0xff] %vm11465_vm11, %v11376_v9  ;;  %v11499_v9 = vld [vmem:[#allocation2 + $0x8] sm:$0xff] }
 0x90d   : > { %11468 = vst.msk [vmem:[#allocation2 + $0x31] sm:$0xff] %vm11465_vm11, %v11374_v1  ;;  %v28866_v1 = vpack.c.bf16 %v19937_v35, %v19936_v14  ;;  %v19970_v35 = vld [vmem:[%s30628_s1 + $0x2e8] sm:$0xff] }
 0x90f   : > { %v11380_v23 = vpop.permute.xlu1 %11379  ;;  %v28717_v25 = vld [vmem:[#allocation2 + $0x21] sm:$0xff] }
 0x910   : > { %v11378_v15 = vpop.permute.xlu0 %11377  ;;  %v28711_v38 = vld [vmem:[#allocation2 + $0x19] sm:$0xff]  ;;  %11471 = vst.msk [vmem:[#allocation2 + $0x51] sm:$0xff] %vm11465_vm11, %v11380_v23 }
 0x911   : > { %23366 = vmatprep.mubr.msk.f32.mxu1 %vm11568_vm15, %v28711_v38  ;;  %11470 = vst.msk [vmem:[#allocation2 + $0x49] sm:$0xff] %vm11465_vm11, %v11378_v15  ;;  %v28869_v23 = vld [vmem:[#allocation2 + $0x18] sm:$0xff]  ;;  %v28875_v15 = vld [vmem:[#allocation2 + $0x20] sm:$0xff] }
 0x912   : > { %23367 = vmatmul.mubr.msk.f32.gmra.mrb[66].mxu1 %vm11568_vm15, %v28717_v25 }
 0x913   : > { %v11384_v59 = vpop.permute.xlu1 %11383  ;;  %v28727_v52 = vld [vmem:[#allocation2 + $0x39] sm:$0xff] }
 0x914   : > { %11473 = vst.msk [vmem:[#allocation2 + $0x69] sm:$0xff] %vm11465_vm11, %v11384_v59  ;;  %v11382_v3 = vpop.permute.xlu0 %11381  ;;  %v28722_v8 = vld [vmem:[#allocation2 + $0x31] sm:$0xff] }
 0x915   : > { %11472 = vst.msk [vmem:[#allocation2 + $0x61] sm:$0xff] %vm11465_vm11, %v11382_v3  ;;  %23369 = vmatprep.mubr.msk.f32.mxu1 %vm11568_vm15, %v28722_v8  ;;  %v28879_v59 = vld [vmem:[#allocation2 + $0x30] sm:$0xff]  ;;  %v28883_v3 = vld [vmem:[#allocation2 + $0x38] sm:$0xff] }
 0x916   : > { %23370 = vmatmul.mubr.msk.f32.gmra.mrb[68].mxu1 %vm11568_vm15, %v28727_v52 }
 0x917   : > { %v11388_v61 = vpop.permute.xlu1 %11387  ;;  %v28737_v6 = vld [vmem:[#allocation2 + $0x51] sm:$0xff] }
 0x918   : > { %11475 = vst.msk [vmem:[#allocation2 + $0x81] sm:$0xff] %vm11465_vm11, %v11388_v61  ;;  %v11386_v36 = vpop.permute.xlu0 %11385  ;;  %v28732_v17 = vld [vmem:[#allocation2 + $0x49] sm:$0xff] }
 0x919   : > { %11474 = vst.msk [vmem:[#allocation2 + $0x79] sm:$0xff] %vm11465_vm11, %v11386_v36  ;;  %23372 = vmatprep.mubr.msk.f32.mxu1 %vm11568_vm15, %v28732_v17  ;;  %v28891_v61 = vld [vmem:[#allocation2 + $0x50] sm:$0xff] }
 0x91a   : > { %23373 = vmatmul.mubr.msk.f32.gmra.mrb[70].mxu1 %vm11568_vm15, %v28737_v6 }
 0x91b   : > { %v11392_v43 = vpop.permute.xlu1 %11391  ;;  %v28747_v33 = vld [vmem:[#allocation2 + $0x69] sm:$0xff] }
 0x91c   : > { %11477 = vst.msk [vmem:[#allocation2 + $0x99] sm:$0xff] %vm11465_vm11, %v11392_v43  ;;  %v11390_v11 = vpop.permute.xlu0 %11389  ;;  %v28742_v28 = vld [vmem:[#allocation2 + $0x61] sm:$0xff] }
 0x91d   : > { %11476 = vst.msk [vmem:[#allocation2 + $0x91] sm:$0xff] %vm11465_vm11, %v11390_v11  ;;  %23375 = vmatprep.mubr.msk.f32.mxu1 %vm11568_vm15, %v28742_v28  ;;  %v28895_v36 = vld [vmem:[#allocation2 + $0x60] sm:$0xff]  ;;  %v28899_v43 = vld [vmem:[#allocation2 + $0x68] sm:$0xff] }
 0x91e   : > { %23376 = vmatmul.mubr.msk.f32.gmra.mrb[72].mxu1 %vm11568_vm15, %v28747_v33 }
 0x91f   : > { %v11396_v18 = vpop.permute.xlu1 %11395  ;;  %v28757_v45 = vld [vmem:[#allocation2 + $0x81] sm:$0xff] }
 0x920   : > { %11479 = vst.msk [vmem:[#allocation2 + $0xb1] sm:$0xff] %vm11465_vm11, %v11396_v18  ;;  %v11394_v19 = vpop.permute.xlu0 %11393  ;;  %v28752_v24 = vld [vmem:[#allocation2 + $0x79] sm:$0xff] }
 0x921   : > { %11478 = vst.msk [vmem:[#allocation2 + $0xa9] sm:$0xff] %vm11465_vm11, %v11394_v19  ;;  %23378 = vmatprep.mubr.msk.f32.mxu1 %vm11568_vm15, %v28752_v24  ;;  %v28903_v11 = vld [vmem:[#allocation2 + $0x78] sm:$0xff]  ;;  %v28907_v18 = vld [vmem:[#allocation2 + $0x80] sm:$0xff] }
 0x922   : > { %23379 = vmatmul.mubr.msk.f32.gmra.mrb[74].mxu1 %vm11568_vm15, %v28757_v45 }
 0x923   : > { %v11400_v57 = vpop.permute.xlu1 %11399  ;;  %v28767_v50 = vld [vmem:[#allocation2 + $0x99] sm:$0xff] }
 0x924   : > { %11481 = vst.msk [vmem:[#allocation2 + $0xc9] sm:$0xff] %vm11465_vm11, %v11400_v57  ;;  %v11398_v63 = vpop.permute.xlu0 %11397  ;;  %v28762_v21 = vld [vmem:[#allocation2 + $0x91] sm:$0xff] }
 0x925   : > { %11480 = vst.msk [vmem:[#allocation2 + $0xc1] sm:$0xff] %vm11465_vm11, %v11398_v63  ;;  %23381 = vmatprep.mubr.msk.f32.mxu1 %vm11568_vm15, %v28762_v21  ;;  %v28911_v19 = vld [vmem:[#allocation2 + $0x90] sm:$0xff]  ;;  %v28915_v57 = vld [vmem:[#allocation2 + $0x98] sm:$0xff] }
 0x926   : > { %23382 = vmatmul.mubr.msk.f32.gmra.mrb[76].mxu1 %vm11568_vm15, %v28767_v50 }
 0x927   : > { %v11404_v2 = vpop.permute.xlu1 %11403  ;;  %v28777_v27 = vld [vmem:[#allocation2 + $0xb1] sm:$0xff] }
 0x928   : > { %11483 = vst.msk [vmem:[#allocation2 + $0xe1] sm:$0xff] %vm11465_vm11, %v11404_v2  ;;  %v11402_v30 = vpop.permute.xlu0 %11401  ;;  %v28772_v49 = vld [vmem:[#allocation2 + $0xa9] sm:$0xff] }
 0x929   : > { %11482 = vst.msk [vmem:[#allocation2 + $0xd9] sm:$0xff] %vm11465_vm11, %v11402_v30  ;;  %23384 = vmatprep.mubr.msk.f32.mxu1 %vm11568_vm15, %v28772_v49  ;;  %v28919_v63 = vld [vmem:[#allocation2 + $0xa8] sm:$0xff]  ;;  %v28923_v2 = vld [vmem:[#allocation2 + $0xb0] sm:$0xff] }
 0x92a   : > { %23385 = vmatmul.mubr.msk.f32.gmra.mrb[78].mxu1 %vm11568_vm15, %v28777_v27 }
 0x92b   : > { %v11408_v29 = vpop.permute.xlu1 %11407  ;;  %v28787_v54 = vld [vmem:[#allocation2 + $0xc9] sm:$0xff] }
 0x92c   : > { %11485 = vst.msk [vmem:[#allocation2 + $0xf9] sm:$0xff] %vm11465_vm11, %v11408_v29  ;;  %v11406_v40 = vpop.permute.xlu0 %11405  ;;  %v28782_v42 = vld [vmem:[#allocation2 + $0xc1] sm:$0xff] }
 0x92d   : > { %11484 = vst.msk [vmem:[#allocation2 + $0xf1] sm:$0xff] %vm11465_vm11, %v11406_v40  ;;  %23387 = vmatprep.mubr.msk.f32.mxu1 %vm11568_vm15, %v28782_v42  ;;  %v28927_v30 = vld [vmem:[#allocation2 + $0xc0] sm:$0xff]  ;;  %v28931_v29 = vld [vmem:[#allocation2 + $0xc8] sm:$0xff] }
 0x92e   : > { %23388 = vmatmul.mubr.msk.f32.gmra.mrb[80].mxu1 %vm11568_vm15, %v28787_v54 }
 0x92f   : > { %v11412_v56 = vpop.permute.xlu1 %11411  ;;  %v28797_v41 = vld [vmem:[#allocation2 + $0xe1] sm:$0xff] }
 0x930   : > { %11487 = vst.msk [vmem:[#allocation2 + $0x111] sm:$0xff] %vm11465_vm11, %v11412_v56  ;;  %v11410_v47 = vpop.permute.xlu0 %11409  ;;  %v28792_v26 = vld [vmem:[#allocation2 + $0xd9] sm:$0xff] }
 0x931   : > { %11486 = vst.msk [vmem:[#allocation2 + $0x109] sm:$0xff] %vm11465_vm11, %v11410_v47  ;;  %23390 = vmatprep.mubr.msk.f32.mxu1 %vm11568_vm15, %v28792_v26  ;;  %v28935_v40 = vld [vmem:[#allocation2 + $0xd8] sm:$0xff]  ;;  %v28939_v56 = vld [vmem:[#allocation2 + $0xe0] sm:$0xff] }
 0x932   : > { %23391 = vmatmul.mubr.msk.f32.gmra.mrb[82].mxu1 %vm11568_vm15, %v28797_v41 }
 0x933   : > { %v11416_v58 = vpop.permute.xlu1 %11415  ;;  %v28807_v48 = vld [vmem:[#allocation2 + $0xf9] sm:$0xff] }
 0x934   : > { %11489 = vst.msk [vmem:[#allocation2 + $0x129] sm:$0xff] %vm11465_vm11, %v11416_v58  ;;  %v11414_v20 = vpop.permute.xlu0 %11413  ;;  %v28802_v32 = vld [vmem:[#allocation2 + $0xf1] sm:$0xff] }
 0x935   : > { %11488 = vst.msk [vmem:[#allocation2 + $0x121] sm:$0xff] %vm11465_vm11, %v11414_v20  ;;  %23393 = vmatprep.mubr.msk.f32.mxu1 %vm11568_vm15, %v28802_v32  ;;  %v28943_v47 = vld [vmem:[#allocation2 + $0xf0] sm:$0xff]  ;;  %v28947_v58 = vld [vmem:[#allocation2 + $0xf8] sm:$0xff] }
 0x936   : > { %23394 = vmatmul.mubr.msk.f32.gmra.mrb[84].mxu1 %vm11568_vm15, %v28807_v48 }
 0x937   : > { %v11420_v16 = vpop.permute.xlu1 %11419  ;;  %v28817_v4 = vld [vmem:[#allocation2 + $0x111] sm:$0xff] }
 0x938   : > { %11491 = vst.msk [vmem:[#allocation2 + $0x141] sm:$0xff] %vm11465_vm11, %v11420_v16  ;;  %v11418_v51 = vpop.permute.xlu0 %11417  ;;  %v28812_v53 = vld [vmem:[#allocation2 + $0x109] sm:$0xff] }
 0x939   : > { %11490 = vst.msk [vmem:[#allocation2 + $0x139] sm:$0xff] %vm11465_vm11, %v11418_v51  ;;  %23396 = vmatprep.mubr.msk.f32.mxu1 %vm11568_vm15, %v28812_v53  ;;  %v28951_v20 = vld [vmem:[#allocation2 + $0x108] sm:$0xff]  ;;  %v28955_v16 = vld [vmem:[#allocation2 + $0x110] sm:$0xff] }
 0x93a   : > { %23397 = vmatmul.mubr.msk.f32.gmra.mrb[86].mxu1 %vm11568_vm15, %v28817_v4 }
 0x93b   : > { %v11424_v31 = vpop.permute.xlu1 %11423  ;;  %v28827_v62 = vld [vmem:[#allocation2 + $0x129] sm:$0xff] }
 0x93c   : > { %11493 = vst.msk [vmem:[#allocation2 + $0x159] sm:$0xff] %vm11465_vm11, %v11424_v31  ;;  %v11422_v39 = vpop.permute.xlu0 %11421  ;;  %v28822_v44 = vld [vmem:[#allocation2 + $0x121] sm:$0xff] }
 0x93d   : > { %11492 = vst.msk [vmem:[#allocation2 + $0x151] sm:$0xff] %vm11465_vm11, %v11422_v39  ;;  %23399 = vmatprep.mubr.msk.f32.mxu1 %vm11568_vm15, %v28822_v44  ;;  %v28959_v51 = vld [vmem:[#allocation2 + $0x120] sm:$0xff]  ;;  %v28963_v31 = vld [vmem:[#allocation2 + $0x128] sm:$0xff] }
 0x93e   : > { %23400 = vmatmul.mubr.msk.f32.gmra.mrb[88].mxu1 %vm11568_vm15, %v28827_v62 }
 0x93f   : > { %v11428_v10 = vpop.permute.xlu1 %11427  ;;  %v28837_v60 = vld [vmem:[#allocation2 + $0x141] sm:$0xff] }
 0x940   : > { %11495 = vst.msk [vmem:[#allocation2 + $0x171] sm:$0xff] %vm11465_vm11, %v11428_v10  ;;  %v11426_v46 = vpop.permute.xlu0 %11425  ;;  %v28832_v55 = vld [vmem:[#allocation2 + $0x139] sm:$0xff] }
 0x941   : > { %11494 = vst.msk [vmem:[#allocation2 + $0x169] sm:$0xff] %vm11465_vm11, %v11426_v46  ;;  %23402 = vmatprep.mubr.msk.f32.mxu1 %vm11568_vm15, %v28832_v55  ;;  %v28967_v39 = vld [vmem:[#allocation2 + $0x138] sm:$0xff]  ;;  %v28971_v10 = vld [vmem:[#allocation2 + $0x140] sm:$0xff] }
 0x942   : > { %23403 = vmatmul.mubr.msk.f32.gmra.mrb[90].mxu1 %vm11568_vm15, %v28837_v60 }
 0x943   : > { %v11432_v0 = vpop.permute.xlu1 %11431  ;;  %v28847_v22 = vld [vmem:[#allocation2 + $0x159] sm:$0xff] }
 0x944   : > { %11497 = vst.msk [vmem:[#allocation2 + $0x189] sm:$0xff] %vm11465_vm11, %v11432_v0  ;;  %v11430_v5 = vpop.permute.xlu0 %11429  ;;  %v28842_v7 = vld [vmem:[#allocation2 + $0x151] sm:$0xff]  ;;  %31177 = vst [vmem:[#allocation36_spill] sm:$0xff] %v28847_v22 }
 0x945   : > { %31176 = vst [vmem:[#allocation34_spill] sm:$0xff] %v28842_v7  ;;  %11496 = vst.msk [vmem:[#allocation2 + $0x181] sm:$0xff] %vm11465_vm11, %v11430_v5  ;;  %23405 = vmatprep.mubr.msk.f32.mxu1 %vm11568_vm15, %v28842_v7  ;;  %v28975_v46 = vld [vmem:[#allocation2 + $0x150] sm:$0xff]  ;;  %v28979_v0 = vld [vmem:[#allocation2 + $0x158] sm:$0xff] }
 0x946   : > { %23406 = vmatmul.mubr.msk.f32.gmra.mrb[92].mxu1 %vm11568_vm15, %v28847_v22  ;;  %v29001_v22 = vld [vmem:[#allocation2 + $0x1a] sm:$0xff]  ;;  %v29007_v7 = vld [vmem:[#allocation2 + $0x22] sm:$0xff] }
 0x947   : > { %v28855_v13 = vld [vmem:[#allocation2 + $0x171] sm:$0xff] }
 0x948   : > { %v28851_v34 = vld [vmem:[#allocation2 + $0x169] sm:$0xff]  ;;  %31179 = vst [vmem:[#allocation21_spill] sm:$0xff] %v28855_v13 }
 0x949   : > { %31178 = vst [vmem:[#allocation6_spill] sm:$0xff] %v28851_v34  ;;  %23408 = vmatprep.mubr.msk.f32.mxu1 %vm11568_vm15, %v28851_v34  ;;  %v28983_v5 = vld [vmem:[#allocation2 + $0x168] sm:$0xff]  ;;  %v28987_v14 = vld [vmem:[#allocation2 + $0x170] sm:$0xff] }
 0x94a   : > { %23409 = vmatmul.mubr.msk.f32.gmra.mrb[94].mxu1 %vm11568_vm15, %v28855_v13  ;;  %v12212_v13 = vld [vmem:[#allocation2 + $0xa] sm:$0xff] }
 0x94b   : > { %23415 = vmatprep.mubr.msk.f32.mxu1 %vm11568_vm15, %v11498_v12  ;;  %v12211_v12 = vld [vmem:[#allocation2 + $0x2] sm:$0xff] }
 0x94e   : > { %23416 = vmatmul.mubr.msk.f32.vlgmr.msra.gmra.mrb[64].mxu1 %vm11568_vm15, %v11499_v9  ;;  %v19971_v9 = vld [vmem:[%s30628_s1 + $0x2f0] sm:$0xff] }
 0x94f   : > { %24378 = vmatpush3.bf16.msra.mxu1 %v28699_v37  ;;  %23418 = vmatprep.mubr.msk.f32.mxu1 %vm11568_vm15, %v28869_v23  ;;  %v28887_v37 = vld [vmem:[#allocation2 + $0x48] sm:$0xff]  ;;  %v28998_v34 = vpack.c.bf16 %v19971_v9, %v19970_v35  ;;  %v29023_v35 = vld [vmem:[#allocation2 + $0x52] sm:$0xff] }
 0x950   : > { %24380 = vmatprep.subr.bf16.mxu1 %v28866_v1  ;;  %31183 = vst [vmem:[#allocation10_spill] sm:$0xff] %v29023_v35  ;;  %v29027_v9 = vld [vmem:[#allocation2 + $0x62] sm:$0xff] }
 0x951   : > { %31184 = vst [vmem:[#allocation25_spill] sm:$0xff] %v29027_v9 }
 0x952   : > { %23419 = vmatmul.mubr.msk.f32.gmra.mrb[66].mxu1 %vm11568_vm15, %v28875_v15 }
 0x953   : > { %23421 = vmatprep.mubr.msk.f32.mxu1 %vm11568_vm15, %v28879_v59 }
 0x956   : > { %23422 = vmatmul.mubr.msk.f32.gmra.mrb[68].mxu1 %vm11568_vm15, %v28883_v3 }
 0x957   : > { %23424 = vmatprep.mubr.msk.f32.mxu1 %vm11568_vm15, %v28887_v37 }
 0x95a   : > { %23425 = vmatmul.mubr.msk.f32.gmra.mrb[70].mxu1 %vm11568_vm15, %v28891_v61 }
 0x95b   : > { %23427 = vmatprep.mubr.msk.f32.mxu1 %vm11568_vm15, %v28895_v36 }
 0x95e   : > { %23428 = vmatmul.mubr.msk.f32.gmra.mrb[72].mxu1 %vm11568_vm15, %v28899_v43 }
 0x95f   : > { %23430 = vmatprep.mubr.msk.f32.mxu1 %vm11568_vm15, %v28903_v11 }
 0x962   : > { %23431 = vmatmul.mubr.msk.f32.gmra.mrb[74].mxu1 %vm11568_vm15, %v28907_v18 }
 0x963   : > { %23433 = vmatprep.mubr.msk.f32.mxu1 %vm11568_vm15, %v28911_v19 }
 0x966   : > { %23434 = vmatmul.mubr.msk.f32.gmra.mrb[76].mxu1 %vm11568_vm15, %v28915_v57 }
 0x967   : > { %23436 = vmatprep.mubr.msk.f32.mxu1 %vm11568_vm15, %v28919_v63 }
 0x96a   : > { %23437 = vmatmul.mubr.msk.f32.gmra.mrb[78].mxu1 %vm11568_vm15, %v28923_v2 }
 0x96b   : > { %23439 = vmatprep.mubr.msk.f32.mxu1 %vm11568_vm15, %v28927_v30 }
 0x96e   : > { %23440 = vmatmul.mubr.msk.f32.gmra.mrb[80].mxu1 %vm11568_vm15, %v28931_v29 }
 0x96f   : > { %23442 = vmatprep.mubr.msk.f32.mxu1 %vm11568_vm15, %v28935_v40 }
 0x972   : > { %23443 = vmatmul.mubr.msk.f32.gmra.mrb[82].mxu1 %vm11568_vm15, %v28939_v56 }
 0x973   : > { %23445 = vmatprep.mubr.msk.f32.mxu1 %vm11568_vm15, %v28943_v47 }
 0x976   : > { %23446 = vmatmul.mubr.msk.f32.gmra.mrb[84].mxu1 %vm11568_vm15, %v28947_v58 }
 0x977   : > { %23448 = vmatprep.mubr.msk.f32.mxu1 %vm11568_vm15, %v28951_v20 }
 0x97a   : > { %23449 = vmatmul.mubr.msk.f32.gmra.mrb[86].mxu1 %vm11568_vm15, %v28955_v16 }
 0x97b   : > { %23451 = vmatprep.mubr.msk.f32.mxu1 %vm11568_vm15, %v28959_v51 }
 0x97e   : > { %23452 = vmatmul.mubr.msk.f32.gmra.mrb[88].mxu1 %vm11568_vm15, %v28963_v31 }
 0x97f   : > { %23454 = vmatprep.mubr.msk.f32.mxu1 %vm11568_vm15, %v28967_v39 }
 0x982   : > { %23455 = vmatmul.mubr.msk.f32.gmra.mrb[90].mxu1 %vm11568_vm15, %v28971_v10 }
 0x983   : > { %23457 = vmatprep.mubr.msk.f32.mxu1 %vm11568_vm15, %v28975_v46 }
 0x986   : > { %23458 = vmatmul.mubr.msk.f32.gmra.mrb[92].mxu1 %vm11568_vm15, %v28979_v0 }
 0x987   : > { %23460 = vmatprep.mubr.msk.f32.mxu1 %vm11568_vm15, %v28983_v5 }
 0x98a   : > { %23461 = vmatmul.mubr.msk.f32.gmra.mrb[94].mxu1 %vm11568_vm15, %v28987_v14 }
 0x98b   : > { %23467 = vmatprep.mubr.msk.f32.mxu1 %vm11568_vm15, %v12211_v12  ;;  %v29011_v12 = vld [vmem:[#allocation2 + $0x32] sm:$0xff] }
 0x98c   : > { %31180 = vst [vmem:[#allocation29_spill] sm:$0xff] %v29011_v12 }
 0x98e   : > { %23468 = vmatmul.mubr.msk.f32.vlgmr.msra.gmra.mrb[64].mxu1 %vm11568_vm15, %v12212_v13  ;;  %v29015_v13 = vld [vmem:[#allocation2 + $0x3a] sm:$0xff] }
 0x98f   : > { %24382 = vmatpush3.bf16.msra.mxu1 %v28866_v1  ;;  %23470 = vmatprep.mubr.msk.f32.mxu1 %vm11568_vm15, %v29001_v22  ;;  %31181 = vst [vmem:[#allocation16_spill] sm:$0xff] %v29015_v13  ;;  %v29019_v1 = vld [vmem:[#allocation2 + $0x4a] sm:$0xff] }
 0x990   : > { %24384 = vmatprep.subr.bf16.mxu1 %v28998_v34  ;;  %31182 = vst [vmem:[#allocation30_spill] sm:$0xff] %v29019_v1 }
 0x992   : > { %23471 = vmatmul.mubr.msk.f32.gmra.mrb[66].mxu1 %vm11568_vm15, %v29007_v7 }
 0x993   : > { %23473 = vmatprep.mubr.msk.f32.mxu1 %vm11568_vm15, %v29011_v12  ;;  %v29031_v12 = vld [vmem:[#allocation2 + $0x6a] sm:$0xff] }
 0x994   : > { %31185 = vst [vmem:[#allocation26_spill] sm:$0xff] %v29031_v12 }
 0x996   : > { %23474 = vmatmul.mubr.msk.f32.gmra.mrb[68].mxu1 %vm11568_vm15, %v29015_v13  ;;  %v29035_v13 = vld [vmem:[#allocation2 + $0x7a] sm:$0xff] }
 0x997   : > { %23476 = vmatprep.mubr.msk.f32.mxu1 %vm11568_vm15, %v29019_v1  ;;  %31186 = vst [vmem:[#allocation27_spill] sm:$0xff] %v29035_v13  ;;  %v29039_v1 = vld [vmem:[#allocation2 + $0x82] sm:$0xff] }
 0x998   : > { %31187 = vst [vmem:[#allocation15_spill] sm:$0xff] %v29039_v1 }
 0x99a   : > { %23477 = vmatmul.mubr.msk.f32.gmra.mrb[70].mxu1 %vm11568_vm15, %v29023_v35  ;;  %v29043_v35 = vld [vmem:[#allocation2 + $0x92] sm:$0xff] }
 0x99b   : > { %23479 = vmatprep.mubr.msk.f32.mxu1 %vm11568_vm15, %v29027_v9  ;;  %31188 = vst [vmem:[#allocation32_spill] sm:$0xff] %v29043_v35  ;;  %v29047_v9 = vld [vmem:[#allocation2 + $0x9a] sm:$0xff] }
 0x99c   : > { %31189 = vst [vmem:[#allocation17_spill] sm:$0xff] %v29047_v9 }
 0x99e   : > { %23480 = vmatmul.mubr.msk.f32.gmra.mrb[72].mxu1 %vm11568_vm15, %v29031_v12  ;;  %v29051_v12 = vld [vmem:[#allocation2 + $0xaa] sm:$0xff] }
 0x99f   : > { %23482 = vmatprep.mubr.msk.f32.mxu1 %vm11568_vm15, %v29035_v13  ;;  %31190 = vst [vmem:[#allocation33_spill] sm:$0xff] %v29051_v12  ;;  %v29055_v13 = vld [vmem:[#allocation2 + $0xb2] sm:$0xff] }
 0x9a0   : > { %31191 = vst [vmem:[#allocation35_spill] sm:$0xff] %v29055_v13 }
 0x9a2   : > { %23483 = vmatmul.mubr.msk.f32.gmra.mrb[74].mxu1 %vm11568_vm15, %v29039_v1  ;;  %v29059_v1 = vld [vmem:[#allocation2 + $0xc2] sm:$0xff] }
 0x9a3   : > { %23485 = vmatprep.mubr.msk.f32.mxu1 %vm11568_vm15, %v29043_v35  ;;  %31192 = vst [vmem:[#allocation31_spill] sm:$0xff] %v29059_v1  ;;  %v29063_v35 = vld [vmem:[#allocation2 + $0xca] sm:$0xff] }
 0x9a4   : > { %31193 = vst [vmem:[#allocation3_spill] sm:$0xff] %v29063_v35 }
 0x9a6   : > { %23486 = vmatmul.mubr.msk.f32.gmra.mrb[76].mxu1 %vm11568_vm15, %v29047_v9  ;;  %v29067_v9 = vld [vmem:[#allocation2 + $0xda] sm:$0xff] }
 0x9a7   : > { %23488 = vmatprep.mubr.msk.f32.mxu1 %vm11568_vm15, %v29051_v12  ;;  %31194 = vst [vmem:[#allocation18_spill] sm:$0xff] %v29067_v9  ;;  %v29071_v12 = vld [vmem:[#allocation2 + $0xe2] sm:$0xff] }
 0x9a8   : > { %31195 = vst [vmem:[#allocation4_spill] sm:$0xff] %v29071_v12 }
 0x9aa   : > { %23489 = vmatmul.mubr.msk.f32.gmra.mrb[78].mxu1 %vm11568_vm15, %v29055_v13  ;;  %v29075_v13 = vld [vmem:[#allocation2 + $0xf2] sm:$0xff] }
 0x9ab   : > { %23491 = vmatprep.mubr.msk.f32.mxu1 %vm11568_vm15, %v29059_v1  ;;  %31196 = vst [vmem:[#allocation19_spill] sm:$0xff] %v29075_v13  ;;  %v29079_v1 = vld [vmem:[#allocation2 + $0xfa] sm:$0xff] }
 0x9ac   : > { %31197 = vst [vmem:[#allocation5_spill] sm:$0xff] %v29079_v1 }
 0x9ae   : > { %23492 = vmatmul.mubr.msk.f32.gmra.mrb[80].mxu1 %vm11568_vm15, %v29063_v35  ;;  %v29083_v35 = vld [vmem:[#allocation2 + $0x10a] sm:$0xff] }
 0x9af   : > { %23494 = vmatprep.mubr.msk.f32.mxu1 %vm11568_vm15, %v29067_v9  ;;  %31198 = vst [vmem:[#allocation20_spill] sm:$0xff] %v29083_v35  ;;  %v29087_v9 = vld [vmem:[#allocation2 + $0x112] sm:$0xff] }
 0x9b0   : > { %31199 = vst [vmem:[#allocation37_spill] sm:$0xff] %v29087_v9 }
 0x9b2   : > { %23495 = vmatmul.mubr.msk.f32.gmra.mrb[82].mxu1 %vm11568_vm15, %v29071_v12  ;;  %v29091_v12 = vld [vmem:[#allocation2 + $0x122] sm:$0xff] }
 0x9b3   : > { %23497 = vmatprep.mubr.msk.f32.mxu1 %vm11568_vm15, %v29075_v13  ;;  %31200 = vst [vmem:[#allocation38_spill] sm:$0xff] %v29091_v12  ;;  %v29095_v13 = vld [vmem:[#allocation2 + $0x12a] sm:$0xff] }
 0x9b4   : > { %31201 = vst [vmem:[#allocation7_spill] sm:$0xff] %v29095_v13 }
 0x9b6   : > { %23498 = vmatmul.mubr.msk.f32.gmra.mrb[84].mxu1 %vm11568_vm15, %v29079_v1  ;;  %v29099_v1 = vld [vmem:[#allocation2 + $0x13a] sm:$0xff] }
 0x9b7   : > { %23500 = vmatprep.mubr.msk.f32.mxu1 %vm11568_vm15, %v29083_v35  ;;  %31202 = vst [vmem:[#allocation22_spill] sm:$0xff] %v29099_v1  ;;  %v29103_v35 = vld [vmem:[#allocation2 + $0x142] sm:$0xff] }
 0x9b8   : > { %31203 = vst [vmem:[#allocation8_spill] sm:$0xff] %v29103_v35 }
 0x9ba   : > { %23501 = vmatmul.mubr.msk.f32.gmra.mrb[86].mxu1 %vm11568_vm15, %v29087_v9  ;;  %v29107_v9 = vld [vmem:[#allocation2 + $0x152] sm:$0xff] }
 0x9bb   : > { %23503 = vmatprep.mubr.msk.f32.mxu1 %vm11568_vm15, %v29091_v12  ;;  %31204 = vst [vmem:[#allocation23_spill] sm:$0xff] %v29107_v9  ;;  %v29111_v12 = vld [vmem:[#allocation2 + $0x15a] sm:$0xff] }
 0x9bc   : > { %31205 = vst [vmem:[#allocation9_spill] sm:$0xff] %v29111_v12 }
 0x9be   : > { %23504 = vmatmul.mubr.msk.f32.gmra.mrb[88].mxu1 %vm11568_vm15, %v29095_v13  ;;  %v29115_v13 = vld [vmem:[#allocation2 + $0x16a] sm:$0xff] }
 0x9bf   : > { %23506 = vmatprep.mubr.msk.f32.mxu1 %vm11568_vm15, %v29099_v1  ;;  %v29119_v1 = vld [vmem:[#allocation2 + $0x172] sm:$0xff] }
 0x9c0   : > { %31206 = vst [vmem:[#allocation24_spill] sm:$0xff] %v29119_v1 }
 0x9c2   : > { %23507 = vmatmul.mubr.msk.f32.gmra.mrb[90].mxu1 %vm11568_vm15, %v29103_v35  ;;  %v20004_v35 = vld [vmem:[%s30628_s1 + $0x300] sm:$0xff] }
 0x9c3   : > { %23509 = vmatprep.mubr.msk.f32.mxu1 %vm11568_vm15, %v29107_v9  ;;  %v20005_v9 = vld [vmem:[%s30628_s1 + $0x308] sm:$0xff] }
 0x9c6   : > { %23510 = vmatmul.mubr.msk.f32.gmra.mrb[92].mxu1 %vm11568_vm15, %v29111_v12  ;;  %v24387_v12 = vpack.c.bf16 %v20005_v9, %v20004_v35  ;;  %v20039_v35 = vld [vmem:[%s30628_s1 + $0x320] sm:$0xff] }
 0x9c7   : > { %23512 = vmatprep.mubr.msk.f32.mxu1 %vm11568_vm15, %v29115_v13 }
 0x9ca   : > { %23513 = vmatmul.mubr.msk.f32.gmra.mrb[94].mxu1 %vm11568_vm15, %v29119_v1 }
 0x9cb   : > { %23519 = vmatprep.mubr.msk.f32.mxu1 %vm11568_vm15, %v28869_v23  ;;  %v29194_v23 = vld [vmem:[#allocation2 + $0x188] sm:$0xff] }
 0x9ce   : > { %23520 = vmatmul.mubr.msk.f32.vlgmr.msra.gmra.mrb[64].mxu1 %vm11568_vm15, %v28875_v15  ;;  %v20038_v15 = vld [vmem:[%s30628_s1 + $0x318] sm:$0xff] }
 0x9cf   : > { %24386 = vmatpush3.bf16.msra.mxu1 %v28998_v34  ;;  %23522 = vmatprep.mubr.msk.f32.mxu1 %vm11568_vm15, %v28879_v59  ;;  %v29190_v34 = vld [vmem:[#allocation2 + $0x180] sm:$0xff]  ;;  %v24391_v9 = vpack.c.bf16 %v20039_v35, %v20038_v15  ;;  %v31214_v35 = vld [vmem:[#allocation16_spill] sm:$0xff] }
 0x9d0   : > { %24388 = vmatprep.subr.bf16.mxu1 %v24387_v12  ;;  %v31213_v15 = vld [vmem:[#allocation29_spill] sm:$0xff] }
 0x9d2   : > { %23523 = vmatmul.mubr.msk.f32.gmra.mrb[66].mxu1 %vm11568_vm15, %v28883_v3 }
 0x9d3   : > { %23525 = vmatprep.mubr.msk.f32.mxu1 %vm11568_vm15, %v28887_v37 }
 0x9d6   : > { %23526 = vmatmul.mubr.msk.f32.gmra.mrb[68].mxu1 %vm11568_vm15, %v28891_v61 }
 0x9d7   : > { %23528 = vmatprep.mubr.msk.f32.mxu1 %vm11568_vm15, %v28895_v36 }
 0x9da   : > { %23529 = vmatmul.mubr.msk.f32.gmra.mrb[70].mxu1 %vm11568_vm15, %v28899_v43 }
 0x9db   : > { %23531 = vmatprep.mubr.msk.f32.mxu1 %vm11568_vm15, %v28903_v11 }
 0x9de   : > { %23532 = vmatmul.mubr.msk.f32.gmra.mrb[72].mxu1 %vm11568_vm15, %v28907_v18 }
 0x9df   : > { %23534 = vmatprep.mubr.msk.f32.mxu1 %vm11568_vm15, %v28911_v19 }
 0x9e2   : > { %23535 = vmatmul.mubr.msk.f32.gmra.mrb[74].mxu1 %vm11568_vm15, %v28915_v57 }
 0x9e3   : > { %23537 = vmatprep.mubr.msk.f32.mxu1 %vm11568_vm15, %v28919_v63 }
 0x9e6   : > { %23538 = vmatmul.mubr.msk.f32.gmra.mrb[76].mxu1 %vm11568_vm15, %v28923_v2 }
 0x9e7   : > { %23540 = vmatprep.mubr.msk.f32.mxu1 %vm11568_vm15, %v28927_v30 }
 0x9ea   : > { %23541 = vmatmul.mubr.msk.f32.gmra.mrb[78].mxu1 %vm11568_vm15, %v28931_v29 }
 0x9eb   : > { %23543 = vmatprep.mubr.msk.f32.mxu1 %vm11568_vm15, %v28935_v40 }
 0x9ee   : > { %23544 = vmatmul.mubr.msk.f32.gmra.mrb[80].mxu1 %vm11568_vm15, %v28939_v56 }
 0x9ef   : > { %23546 = vmatprep.mubr.msk.f32.mxu1 %vm11568_vm15, %v28943_v47 }
 0x9f2   : > { %23547 = vmatmul.mubr.msk.f32.gmra.mrb[82].mxu1 %vm11568_vm15, %v28947_v58 }
 0x9f3   : > { %23549 = vmatprep.mubr.msk.f32.mxu1 %vm11568_vm15, %v28951_v20 }
 0x9f6   : > { %23550 = vmatmul.mubr.msk.f32.gmra.mrb[84].mxu1 %vm11568_vm15, %v28955_v16 }
 0x9f7   : > { %23552 = vmatprep.mubr.msk.f32.mxu1 %vm11568_vm15, %v28959_v51 }
 0x9fa   : > { %23553 = vmatmul.mubr.msk.f32.gmra.mrb[86].mxu1 %vm11568_vm15, %v28963_v31 }
 0x9fb   : > { %23555 = vmatprep.mubr.msk.f32.mxu1 %vm11568_vm15, %v28967_v39 }
 0x9fe   : > { %23556 = vmatmul.mubr.msk.f32.gmra.mrb[88].mxu1 %vm11568_vm15, %v28971_v10 }
 0x9ff   : > { %23558 = vmatprep.mubr.msk.f32.mxu1 %vm11568_vm15, %v28975_v46 }
 0xa02   : > { %23559 = vmatmul.mubr.msk.f32.gmra.mrb[90].mxu1 %vm11568_vm15, %v28979_v0 }
 0xa03   : > { %23561 = vmatprep.mubr.msk.f32.mxu1 %vm11568_vm15, %v28983_v5 }
 0xa06   : > { %23562 = vmatmul.mubr.msk.f32.gmra.mrb[92].mxu1 %vm11568_vm15, %v28987_v14 }
 0xa07   : > { %23564 = vmatprep.mubr.msk.f32.mxu1 %vm11568_vm15, %v29190_v34 }
 0xa0a   : > { %23565 = vmatmul.mubr.msk.f32.gmra.mrb[94].mxu1 %vm11568_vm15, %v29194_v23 }
 0xa0b   : > { %23571 = vmatprep.mubr.msk.f32.mxu1 %vm11568_vm15, %v28711_v38  ;;  %v31207_v38 = vld [vmem:[#allocation34_spill] sm:$0xff] }
 0xa0e   : > { %23572 = vmatmul.mubr.msk.f32.vlgmr.msra.gmra.mrb[64].mxu1 %vm11568_vm15, %v28717_v25  ;;  %v31208_v25 = vld [vmem:[#allocation36_spill] sm:$0xff] }
 0xa0f   : > { %24390 = vmatpush3.bf16.msra.mxu1 %v24387_v12  ;;  %23574 = vmatprep.mubr.msk.f32.mxu1 %vm11568_vm15, %v28722_v8  ;;  %v31209_v8 = vld [vmem:[#allocation6_spill] sm:$0xff] }
 0xa10   : > { %24392 = vmatprep.subr.bf16.mxu1 %v24391_v9 }
 0xa12   : > { %23575 = vmatmul.mubr.msk.f32.gmra.mrb[66].mxu1 %vm11568_vm15, %v28727_v52  ;;  %v31210_v52 = vld [vmem:[#allocation21_spill] sm:$0xff] }
 0xa13   : > { %23577 = vmatprep.mubr.msk.f32.mxu1 %vm11568_vm15, %v28732_v17  ;;  %v29264_v17 = vld [vmem:[#allocation2 + $0x181] sm:$0xff] }
 0xa14   : > { %31211 = vst [vmem:[#allocation11_spill] sm:$0xff] %v29264_v17 }
 0xa16   : > { %23578 = vmatmul.mubr.msk.f32.gmra.mrb[68].mxu1 %vm11568_vm15, %v28737_v6  ;;  %v29268_v6 = vld [vmem:[#allocation2 + $0x189] sm:$0xff] }
 0xa17   : > { %23580 = vmatprep.mubr.msk.f32.mxu1 %vm11568_vm15, %v28742_v28  ;;  %31212 = vst [vmem:[#allocation12_spill] sm:$0xff] %v29268_v6  ;;  %v20072_v28 = vld [vmem:[%s30628_s1 + $0x330] sm:$0xff] }
 0xa1a   : > { %23581 = vmatmul.mubr.msk.f32.gmra.mrb[70].mxu1 %vm11568_vm15, %v28747_v33  ;;  %v20073_v33 = vld [vmem:[%s30628_s1 + $0x338] sm:$0xff] }
 0xa1b   : > { %23583 = vmatprep.mubr.msk.f32.mxu1 %vm11568_vm15, %v28752_v24  ;;  %v24395_v12 = vpack.c.bf16 %v20073_v33, %v20072_v28  ;;  %v31221_v28 = vld [vmem:[#allocation32_spill] sm:$0xff]  ;;  %v31222_v33 = vld [vmem:[#allocation17_spill] sm:$0xff] }
 0xa1e   : > { %23584 = vmatmul.mubr.msk.f32.gmra.mrb[72].mxu1 %vm11568_vm15, %v28757_v45 }
 0xa1f   : > { %23586 = vmatprep.mubr.msk.f32.mxu1 %vm11568_vm15, %v28762_v21 }
 0xa22   : > { %23587 = vmatmul.mubr.msk.f32.gmra.mrb[74].mxu1 %vm11568_vm15, %v28767_v50 }
 0xa23   : > { %23589 = vmatprep.mubr.msk.f32.mxu1 %vm11568_vm15, %v28772_v49 }
 0xa26   : > { %23590 = vmatmul.mubr.msk.f32.gmra.mrb[76].mxu1 %vm11568_vm15, %v28777_v27 }
 0xa27   : > { %23592 = vmatprep.mubr.msk.f32.mxu1 %vm11568_vm15, %v28782_v42 }
 0xa2a   : > { %23593 = vmatmul.mubr.msk.f32.gmra.mrb[78].mxu1 %vm11568_vm15, %v28787_v54 }
 0xa2b   : > { %23595 = vmatprep.mubr.msk.f32.mxu1 %vm11568_vm15, %v28792_v26 }
 0xa2e   : > { %23596 = vmatmul.mubr.msk.f32.gmra.mrb[80].mxu1 %vm11568_vm15, %v28797_v41 }
 0xa2f   : > { %23598 = vmatprep.mubr.msk.f32.mxu1 %vm11568_vm15, %v28802_v32 }
 0xa32   : > { %23599 = vmatmul.mubr.msk.f32.gmra.mrb[82].mxu1 %vm11568_vm15, %v28807_v48 }
 0xa33   : > { %23601 = vmatprep.mubr.msk.f32.mxu1 %vm11568_vm15, %v28812_v53 }
 0xa36   : > { %23602 = vmatmul.mubr.msk.f32.gmra.mrb[84].mxu1 %vm11568_vm15, %v28817_v4 }
 0xa37   : > { %23604 = vmatprep.mubr.msk.f32.mxu1 %vm11568_vm15, %v28822_v44 }
 0xa3a   : > { %23605 = vmatmul.mubr.msk.f32.gmra.mrb[86].mxu1 %vm11568_vm15, %v28827_v62 }
 0xa3b   : > { %23607 = vmatprep.mubr.msk.f32.mxu1 %vm11568_vm15, %v28832_v55 }
 0xa3e   : > { %23608 = vmatmul.mubr.msk.f32.gmra.mrb[88].mxu1 %vm11568_vm15, %v28837_v60 }
 0xa3f   : > { %23610 = vmatprep.mubr.msk.f32.mxu1 %vm11568_vm15, %v31207_v38 }
 0xa42   : > { %23611 = vmatmul.mubr.msk.f32.gmra.mrb[90].mxu1 %vm11568_vm15, %v31208_v25 }
 0xa43   : > { %23613 = vmatprep.mubr.msk.f32.mxu1 %vm11568_vm15, %v31209_v8 }
 0xa46   : > { %23614 = vmatmul.mubr.msk.f32.gmra.mrb[92].mxu1 %vm11568_vm15, %v31210_v52  ;;  %v31216_v52 = vld [vmem:[#allocation10_spill] sm:$0xff] }
 0xa47   : > { %23616 = vmatprep.mubr.msk.f32.mxu1 %vm11568_vm15, %v29264_v17  ;;  %v31215_v17 = vld [vmem:[#allocation30_spill] sm:$0xff] }
 0xa4a   : > { %23617 = vmatmul.mubr.msk.f32.gmra.mrb[94].mxu1 %vm11568_vm15, %v29268_v6  ;;  %v31217_v6 = vld [vmem:[#allocation25_spill] sm:$0xff] }
 0xa4b   : > { %23623 = vmatprep.mubr.msk.f32.mxu1 %vm11568_vm15, %v29001_v22  ;;  %v31218_v22 = vld [vmem:[#allocation26_spill] sm:$0xff] }
 0xa4e   : > { %23624 = vmatmul.mubr.msk.f32.vlgmr.msra.gmra.mrb[64].mxu1 %vm11568_vm15, %v29007_v7  ;;  %v31219_v7 = vld [vmem:[#allocation27_spill] sm:$0xff] }
 0xa4f   : > { %24394 = vmatpush3.bf16.msra.mxu1 %v24391_v9  ;;  %23626 = vmatprep.mubr.msk.f32.mxu1 %vm11568_vm15, %v31213_v15  ;;  %v31220_v9 = vld [vmem:[#allocation15_spill] sm:$0xff] }
 0xa50   : > { %24396 = vmatprep.subr.bf16.mxu1 %v24395_v12 }
 0xa52   : > { %23627 = vmatmul.mubr.msk.f32.gmra.mrb[66].mxu1 %vm11568_vm15, %v31214_v35 }
 0xa53   : > { %23629 = vmatprep.mubr.msk.f32.mxu1 %vm11568_vm15, %v31215_v17  ;;  %v31223_v17 = vld [vmem:[#allocation33_spill] sm:$0xff] }
 0xa56   : > { %23630 = vmatmul.mubr.msk.f32.gmra.mrb[68].mxu1 %vm11568_vm15, %v31216_v52  ;;  %v31224_v52 = vld [vmem:[#allocation35_spill] sm:$0xff] }
 0xa57   : > { %23632 = vmatprep.mubr.msk.f32.mxu1 %vm11568_vm15, %v31217_v6  ;;  %v31225_v6 = vld [vmem:[#allocation31_spill] sm:$0xff] }
 0xa5a   : > { %23633 = vmatmul.mubr.msk.f32.gmra.mrb[70].mxu1 %vm11568_vm15, %v31218_v22  ;;  %v31226_v22 = vld [vmem:[#allocation3_spill] sm:$0xff] }
 0xa5b   : > { %23635 = vmatprep.mubr.msk.f32.mxu1 %vm11568_vm15, %v31219_v7  ;;  %v31227_v7 = vld [vmem:[#allocation18_spill] sm:$0xff] }
 0xa5e   : > { %23636 = vmatmul.mubr.msk.f32.gmra.mrb[72].mxu1 %vm11568_vm15, %v31220_v9  ;;  %v31228_v9 = vld [vmem:[#allocation4_spill] sm:$0xff] }
 0xa5f   : > { %23638 = vmatprep.mubr.msk.f32.mxu1 %vm11568_vm15, %v31221_v28  ;;  %v31229_v28 = vld [vmem:[#allocation19_spill] sm:$0xff] }
 0xa62   : > { %23639 = vmatmul.mubr.msk.f32.gmra.mrb[74].mxu1 %vm11568_vm15, %v31222_v33  ;;  %v31230_v33 = vld [vmem:[#allocation5_spill] sm:$0xff] }
 0xa63   : > { %23641 = vmatprep.mubr.msk.f32.mxu1 %vm11568_vm15, %v31223_v17  ;;  %v31231_v17 = vld [vmem:[#allocation20_spill] sm:$0xff] }
 0xa66   : > { %23642 = vmatmul.mubr.msk.f32.gmra.mrb[76].mxu1 %vm11568_vm15, %v31224_v52  ;;  %v31232_v52 = vld [vmem:[#allocation37_spill] sm:$0xff] }
 0xa67   : > { %23644 = vmatprep.mubr.msk.f32.mxu1 %vm11568_vm15, %v31225_v6  ;;  %v31233_v6 = vld [vmem:[#allocation38_spill] sm:$0xff] }
 0xa6a   : > { %23645 = vmatmul.mubr.msk.f32.gmra.mrb[78].mxu1 %vm11568_vm15, %v31226_v22  ;;  %v31234_v22 = vld [vmem:[#allocation7_spill] sm:$0xff] }
 0xa6b   : > { %23647 = vmatprep.mubr.msk.f32.mxu1 %vm11568_vm15, %v31227_v7  ;;  %v31235_v7 = vld [vmem:[#allocation22_spill] sm:$0xff] }
 0xa6e   : > { %23648 = vmatmul.mubr.msk.f32.gmra.mrb[80].mxu1 %vm11568_vm15, %v31228_v9  ;;  %v31236_v9 = vld [vmem:[#allocation8_spill] sm:$0xff] }
 0xa6f   : > { %23650 = vmatprep.mubr.msk.f32.mxu1 %vm11568_vm15, %v31229_v28  ;;  %v31237_v28 = vld [vmem:[#allocation23_spill] sm:$0xff] }
 0xa72   : > { %23651 = vmatmul.mubr.msk.f32.gmra.mrb[82].mxu1 %vm11568_vm15, %v31230_v33  ;;  %v31238_v33 = vld [vmem:[#allocation9_spill] sm:$0xff] }
 0xa73   : > { %23653 = vmatprep.mubr.msk.f32.mxu1 %vm11568_vm15, %v31231_v17 }
 0xa76   : > { %23654 = vmatmul.mubr.msk.f32.gmra.mrb[84].mxu1 %vm11568_vm15, %v31232_v52 }
 0xa77   : > { %23656 = vmatprep.mubr.msk.f32.mxu1 %vm11568_vm15, %v31233_v6  ;;  %v29338_v6 = vld [vmem:[#allocation2 + $0x182] sm:$0xff] }
 0xa7a   : > { %23657 = vmatmul.mubr.msk.f32.gmra.mrb[86].mxu1 %vm11568_vm15, %v31234_v22 }
 0xa7b   : > { %23659 = vmatprep.mubr.msk.f32.mxu1 %vm11568_vm15, %v31235_v7  ;;  %v29342_v7 = vld [vmem:[#allocation2 + $0x18a] sm:$0xff] }
 0xa7e   : > { %23660 = vmatmul.mubr.msk.f32.gmra.mrb[88].mxu1 %vm11568_vm15, %v31236_v9 }
 0xa7f   : > { %23662 = vmatprep.mubr.msk.f32.mxu1 %vm11568_vm15, %v31237_v28  ;;  %v20106_v28 = vld [vmem:[%s30628_s1 + $0x348] sm:$0xff] }
 0xa82   : > { %23663 = vmatmul.mubr.msk.f32.gmra.mrb[90].mxu1 %vm11568_vm15, %v31238_v33  ;;  %v20107_v33 = vld [vmem:[%s30628_s1 + $0x350] sm:$0xff] }
 0xa83   : > { %23665 = vmatprep.mubr.msk.f32.mxu1 %vm11568_vm15, %v29115_v13 }
 0xa86   : > { %23666 = vmatmul.mubr.msk.f32.gmra.mrb[92].mxu1 %vm11568_vm15, %v29119_v1  ;;  %v24399_v1 = vpack.c.bf16 %v20107_v33, %v20106_v28 }
 0xa87   : > { %23668 = vmatprep.mubr.msk.f32.mxu1 %vm11568_vm15, %v29338_v6 }
 0xa8a   : > { %23669 = vmatmul.mubr.msk.f32.gmra.mrb[94].mxu1 %vm11568_vm15, %v29342_v7 }
 0xa8b   : > { %23675 = vmatprep.mubr.msk.f32.mxu1 %vm11568_vm15, %v28879_v59  ;;  %v13793_v59 = vld [vmem:[#allocation2 + $0x198] sm:$0xff] }
 0xa8e   : > { %23676 = vmatmul.mubr.msk.f32.vlgmr.msra.gmra.mrb[64].mxu1 %vm11568_vm15, %v28883_v3  ;;  %v13794_v3 = vld [vmem:[#allocation2 + $0x1a0] sm:$0xff] }
 0xa8f   : > { %24398 = vmatpush3.bf16.msra.mxu1 %v24395_v12  ;;  %23678 = vmatprep.mubr.msk.f32.mxu1 %vm11568_vm15, %v28887_v37  ;;  %v14151_v37 = vld [vmem:[#allocation2 + $0x31] sm:$0xff] }
 0xa90   : > { %24400 = vmatprep.subr.bf16.mxu1 %v24399_v1 }
 0xa92   : > { %23679 = vmatmul.mubr.msk.f32.gmra.mrb[66].mxu1 %vm11568_vm15, %v28891_v61  ;;  %v14152_v61 = vld [vmem:[#allocation2 + $0x39] sm:$0xff] }
 0xa93   : > { %23681 = vmatprep.mubr.msk.f32.mxu1 %vm11568_vm15, %v28895_v36  ;;  %v14153_v36 = vld [vmem:[#allocation2 + $0x49] sm:$0xff] }
 0xa96   : > { %23682 = vmatmul.mubr.msk.f32.gmra.mrb[68].mxu1 %vm11568_vm15, %v28899_v43  ;;  %v14154_v43 = vld [vmem:[#allocation2 + $0x51] sm:$0xff] }
 0xa97   : > { %23684 = vmatprep.mubr.msk.f32.mxu1 %vm11568_vm15, %v28903_v11  ;;  %v14155_v11 = vld [vmem:[#allocation2 + $0x61] sm:$0xff] }
 0xa9a   : > { %23685 = vmatmul.mubr.msk.f32.gmra.mrb[70].mxu1 %vm11568_vm15, %v28907_v18  ;;  %v14156_v18 = vld [vmem:[#allocation2 + $0x69] sm:$0xff] }
 0xa9b   : > { %23687 = vmatprep.mubr.msk.f32.mxu1 %vm11568_vm15, %v28911_v19  ;;  %v31255_v19 = vld [vmem:[#allocation4_spill] sm:$0xff] }
 0xa9e   : > { %23688 = vmatmul.mubr.msk.f32.gmra.mrb[72].mxu1 %vm11568_vm15, %v28915_v57  ;;  %v31256_v57 = vld [vmem:[#allocation19_spill] sm:$0xff] }
 0xa9f   : > { %23690 = vmatprep.mubr.msk.f32.mxu1 %vm11568_vm15, %v28919_v63  ;;  %v31257_v63 = vld [vmem:[#allocation5_spill] sm:$0xff] }
 0xaa2   : > { %23691 = vmatmul.mubr.msk.f32.gmra.mrb[74].mxu1 %vm11568_vm15, %v28923_v2  ;;  %v31258_v2 = vld [vmem:[#allocation38_spill] sm:$0xff] }
 0xaa3   : > { %23693 = vmatprep.mubr.msk.f32.mxu1 %vm11568_vm15, %v28927_v30  ;;  %v31259_v30 = vld [vmem:[#allocation22_spill] sm:$0xff] }
 0xaa6   : > { %23694 = vmatmul.mubr.msk.f32.gmra.mrb[76].mxu1 %vm11568_vm15, %v28931_v29  ;;  %v31260_v29 = vld [vmem:[#allocation23_spill] sm:$0xff] }
 0xaa7   : > { %23696 = vmatprep.mubr.msk.f32.mxu1 %vm11568_vm15, %v28935_v40  ;;  %v31261_v40 = vld [vmem:[#allocation9_spill] sm:$0xff] }
 0xaaa   : > { %23697 = vmatmul.mubr.msk.f32.gmra.mrb[78].mxu1 %vm11568_vm15, %v28939_v56  ;;  %v31262_v56 = vld [vmem:[#allocation24_spill] sm:$0xff] }
 0xaab   : > { %23699 = vmatprep.mubr.msk.f32.mxu1 %vm11568_vm15, %v28943_v47  ;;  %v14569_v47 = vld [vmem:[#allocation2 + $0x19a] sm:$0xff] }
 0xaae   : > { %23700 = vmatmul.mubr.msk.f32.gmra.mrb[80].mxu1 %vm11568_vm15, %v28947_v58  ;;  %v14570_v58 = vld [vmem:[#allocation2 + $0x1a2] sm:$0xff] }
 0xaaf   : > { %23702 = vmatprep.mubr.msk.f32.mxu1 %vm11568_vm15, %v28951_v20  ;;  %v20144_v20 = vld [vmem:[%s30628_s1 + $0x378] sm:$0xff] }
 0xab2   : > { %23703 = vmatmul.mubr.msk.f32.gmra.mrb[82].mxu1 %vm11568_vm15, %v28955_v16  ;;  %v20145_v16 = vld [vmem:[%s30628_s1 + $0x380] sm:$0xff] }
 0xab3   : > { %23705 = vmatprep.mubr.msk.f32.mxu1 %vm11568_vm15, %v28959_v51  ;;  %v24403_v51 = vpack.c.bf16 %v20145_v16, %v20144_v20 }
 0xab5   : > { %24404 = vmatprep.subr.bf16.mxu0 %v24403_v51 }
 0xab6   : > { %23706 = vmatmul.mubr.msk.f32.gmra.mrb[84].mxu1 %vm11568_vm15, %v28963_v31  ;;  %v20146_v31 = vld [vmem:[%s30628_s1 + $0x388] sm:$0xf]  ;;  %24406 = vmatpush3.bf16.msra.mxu0 %v24403_v51 }
 0xab7   : > { %23708 = vmatprep.mubr.msk.f32.mxu1 %vm11568_vm15, %v28967_v39  ;;  %23831 = vmatprep.subr.msk.mxu0 %vm456_vm0, %v20146_v31  ;;  %v15257_v39 = vld [vmem:[#allocation2 + $0x1] sm:$0xff] }
 0xab8   : > { %23833 = vmatprep.mubr.msk.f32.mxu0 %vm171_vm1, %v15257_v39 }
 0xaba   : > { %23709 = vmatmul.mubr.msk.f32.gmra.mrb[86].mxu1 %vm11568_vm15, %v28971_v10  ;;  %23832 = vmatpush3.msk.msra.mxu0 %vm456_vm0, %v20146_v31  ;;  %v20141_v10 = vld [vmem:[%s30628_s1 + $0x360] sm:$0xff] }
 0xabb   : > { %23711 = vmatprep.mubr.msk.f32.mxu1 %vm11568_vm15, %v28975_v46  ;;  %v20142_v46 = vld [vmem:[%s30628_s1 + $0x368] sm:$0xff] }
 0xabe   : > { %23712 = vmatmul.mubr.msk.f32.gmra.mrb[88].mxu1 %vm11568_vm15, %v28979_v0  ;;  %v29552_v0 = vld [vmem:[%s30629_s2 + $0x3] ss:$0 sm:$0xff] }
 0xabf   : > { %23714 = vmatprep.mubr.msk.f32.mxu1 %vm11568_vm15, %v28983_v5  ;;  %v24407_v5 = vpack.c.bf16 %v20142_v46, %v20141_v10  ;;  %v20143_v46 = vld [vmem:[%s30628_s1 + $0x370] sm:$0xf] }
 0xac1   : > { %24408 = vmatprep.subr.bf16.mxu0 %v24407_v5 }
 0xac2   : > { %23715 = vmatmul.mubr.msk.f32.gmra.mrb[90].mxu1 %vm11568_vm15, %v28987_v14  ;;  %v15258_v14 = vld [vmem:[#allocation2 + $0x9] sm:$0xff] }
 0xac3   : > { %23717 = vmatprep.mubr.msk.f32.mxu1 %vm11568_vm15, %v29190_v34  ;;  %23834 = vmatmul.mubr.msk.f32.vlgmr.msra.gmra.mrb[64].mxu0 %vm171_vm1, %v15258_v14 }
 0xac4   : > { %24410 = vmatpush3.bf16.msra.mxu0 %v24407_v5 }
 0xac5   : > { %23885 = vmatprep.subr.msk.mxu0 %vm456_vm0, %v20143_v46 }
 0xac6   : > { %23718 = vmatmul.mubr.msk.f32.gmra.mrb[92].mxu1 %vm11568_vm15, %v29194_v23 }
 0xac7   : > { %23720 = vmatprep.mubr.msk.f32.mxu1 %vm11568_vm15, %v13793_v59 }
 0xac8   : > { %23886 = vmatpush3.msk.msra.mxu0 %vm456_vm0, %v20143_v46 }
 0xaca   : > { %23721 = vmatmul.mubr.msk.f32.gmra.mrb[94].mxu1 %vm11568_vm15, %v13794_v3 }
 0xacb   : > { %23727 = vmatprep.mubr.msk.f32.mxu1 %vm11568_vm15, %v14151_v37 }
 0xace   : > { %23728 = vmatmul.mubr.msk.f32.vlgmr.msra.gmra.mrb[64].mxu1 %vm11568_vm15, %v14152_v61 }
 0xacf   : > { %24402 = vmatpush3.bf16.msra.mxu1 %v24399_v1  ;;  %23730 = vmatprep.mubr.msk.f32.mxu1 %vm11568_vm15, %v14153_v36 }
 0xad2   : > { %23731 = vmatmul.mubr.msk.f32.gmra.mrb[66].mxu1 %vm11568_vm15, %v14154_v43 }
 0xad3   : > { %23733 = vmatprep.mubr.msk.f32.mxu1 %vm11568_vm15, %v14155_v11 }
 0xad6   : > { %23734 = vmatmul.mubr.msk.f32.gmra.mrb[68].mxu1 %vm11568_vm15, %v14156_v18 }
 0xad7   : > { %23736 = vmatprep.mubr.msk.f32.mxu1 %vm11568_vm15, %v28752_v24  ;;  %v31239_v24 = vld [vmem:[#allocation21_spill] sm:$0xff] }
 0xada   : > { %23737 = vmatmul.mubr.msk.f32.gmra.mrb[70].mxu1 %vm11568_vm15, %v28757_v45  ;;  %v31240_v45 = vld [vmem:[#allocation11_spill] sm:$0xff] }
 0xadb   : > { %23739 = vmatprep.mubr.msk.f32.mxu1 %vm11568_vm15, %v28762_v21  ;;  %v14181_v21 = vld [vmem:[#allocation2 + $0x199] sm:$0xff] }
 0xade   : > { %23740 = vmatmul.mubr.msk.f32.gmra.mrb[72].mxu1 %vm11568_vm15, %v28767_v50  ;;  %v31241_v50 = vld [vmem:[#allocation12_spill] sm:$0xff] }
 0xadf   : > { %23742 = vmatprep.mubr.msk.f32.mxu1 %vm11568_vm15, %v28772_v49  ;;  %v14182_v49 = vld [vmem:[#allocation2 + $0x1a1] sm:$0xff] }
 0xae2   : > { %23743 = vmatmul.mubr.msk.f32.gmra.mrb[74].mxu1 %vm11568_vm15, %v28777_v27  ;;  %v31242_v27 = vld [vmem:[#allocation30_spill] sm:$0xff] }
 0xae3   : > { %23745 = vmatprep.mubr.msk.f32.mxu1 %vm11568_vm15, %v28782_v42  ;;  %v31243_v42 = vld [vmem:[#allocation10_spill] sm:$0xff] }
 0xae6   : > { %23746 = vmatmul.mubr.msk.f32.gmra.mrb[76].mxu1 %vm11568_vm15, %v28787_v54  ;;  %v31244_v54 = vld [vmem:[#allocation25_spill] sm:$0xff] }
 0xae7   : > { %23748 = vmatprep.mubr.msk.f32.mxu1 %vm11568_vm15, %v28792_v26  ;;  %v31245_v26 = vld [vmem:[#allocation26_spill] sm:$0xff] }
 0xaea   : > { %23749 = vmatmul.mubr.msk.f32.gmra.mrb[78].mxu1 %vm11568_vm15, %v28797_v41  ;;  %v31246_v41 = vld [vmem:[#allocation27_spill] sm:$0xff] }
 0xaeb   : > { %23751 = vmatprep.mubr.msk.f32.mxu1 %vm11568_vm15, %v28802_v32  ;;  %v31247_v32 = vld [vmem:[#allocation15_spill] sm:$0xff] }
 0xaee   : > { %23752 = vmatmul.mubr.msk.f32.gmra.mrb[80].mxu1 %vm11568_vm15, %v28807_v48  ;;  %v31248_v48 = vld [vmem:[#allocation32_spill] sm:$0xff] }
 0xaef   : > { %23754 = vmatprep.mubr.msk.f32.mxu1 %vm11568_vm15, %v28812_v53  ;;  %v31249_v53 = vld [vmem:[#allocation17_spill] sm:$0xff] }
 0xaf2   : > { %23755 = vmatmul.mubr.msk.f32.gmra.mrb[82].mxu1 %vm11568_vm15, %v28817_v4  ;;  %v31250_v4 = vld [vmem:[#allocation33_spill] sm:$0xff] }
 0xaf3   : > { %23757 = vmatprep.mubr.msk.f32.mxu1 %vm11568_vm15, %v28822_v44  ;;  %v31251_v44 = vld [vmem:[#allocation35_spill] sm:$0xff] }
 0xaf6   : > { %23758 = vmatmul.mubr.msk.f32.gmra.mrb[84].mxu1 %vm11568_vm15, %v28827_v62  ;;  %v31252_v62 = vld [vmem:[#allocation31_spill] sm:$0xff] }
 0xaf7   : > { %23760 = vmatprep.mubr.msk.f32.mxu1 %vm11568_vm15, %v28832_v55  ;;  %v31253_v55 = vld [vmem:[#allocation3_spill] sm:$0xff] }
 0xafa   : > { %23761 = vmatmul.mubr.msk.f32.gmra.mrb[86].mxu1 %vm11568_vm15, %v28837_v60  ;;  %v31254_v60 = vld [vmem:[#allocation18_spill] sm:$0xff] }
 0xafb   : > { %23763 = vmatprep.mubr.msk.f32.mxu1 %vm11568_vm15, %v31207_v38 }
 0xafe   : > { %23764 = vmatmul.mubr.msk.f32.gmra.mrb[88].mxu1 %vm11568_vm15, %v31208_v25 }
 0xaff   : > { %23766 = vmatprep.mubr.msk.f32.mxu1 %vm11568_vm15, %v31209_v8 }
 0xb02   : > { %23767 = vmatmul.mubr.msk.f32.gmra.mrb[90].mxu1 %vm11568_vm15, %v31239_v24 }
 0xb03   : > { %23769 = vmatprep.mubr.msk.f32.mxu1 %vm11568_vm15, %v31240_v45 }
 0xb06   : > { %23770 = vmatmul.mubr.msk.f32.gmra.mrb[92].mxu1 %vm11568_vm15, %v31241_v50 }
 0xb07   : > { %23772 = vmatprep.mubr.msk.f32.mxu1 %vm11568_vm15, %v14181_v21 }
 0xb0a   : > { %23773 = vmatmul.mubr.msk.f32.gmra.mrb[94].mxu1 %vm11568_vm15, %v14182_v49 }
 0xb0b   : > { %23779 = vmatprep.mubr.msk.f32.mxu1 %vm11568_vm15, %v31213_v15 }
 0xb0e   : > { %23780 = vmatmul.mubr.msk.f32.vlgmr.msra.gmra.mrb[64].mxu1 %vm11568_vm15, %v31214_v35 }
 0xb0f   : > { %23782 = vmatprep.mubr.msk.f32.mxu1 %vm11568_vm15, %v31242_v27 }
 0xb12   : > { %23783 = vmatmul.mubr.msk.f32.gmra.mrb[66].mxu1 %vm11568_vm15, %v31243_v42 }
 0xb13   : > { %23785 = vmatprep.mubr.msk.f32.mxu1 %vm11568_vm15, %v31244_v54 }
 0xb16   : > { %23786 = vmatmul.mubr.msk.f32.gmra.mrb[68].mxu1 %vm11568_vm15, %v31245_v26 }
 0xb17   : > { %23788 = vmatprep.mubr.msk.f32.mxu1 %vm11568_vm15, %v31246_v41 }
 0xb1a   : > { %23789 = vmatmul.mubr.msk.f32.gmra.mrb[70].mxu1 %vm11568_vm15, %v31247_v32 }
 0xb1b   : > { %23791 = vmatprep.mubr.msk.f32.mxu1 %vm11568_vm15, %v31248_v48 }
 0xb1e   : > { %23792 = vmatmul.mubr.msk.f32.gmra.mrb[72].mxu1 %vm11568_vm15, %v31249_v53 }
 0xb1f   : > { %23794 = vmatprep.mubr.msk.f32.mxu1 %vm11568_vm15, %v31250_v4 }
 0xb22   : > { %23795 = vmatmul.mubr.msk.f32.gmra.mrb[74].mxu1 %vm11568_vm15, %v31251_v44 }
 0xb23   : > { %23797 = vmatprep.mubr.msk.f32.mxu1 %vm11568_vm15, %v31252_v62 }
 0xb26   : > { %23798 = vmatmul.mubr.msk.f32.gmra.mrb[76].mxu1 %vm11568_vm15, %v31253_v55 }
 0xb27   : > { %23800 = vmatprep.mubr.msk.f32.mxu1 %vm11568_vm15, %v31254_v60 }
 0xb2a   : > { %23801 = vmatmul.mubr.msk.f32.gmra.mrb[78].mxu1 %vm11568_vm15, %v31255_v19 }
 0xb2b   : > { %23803 = vmatprep.mubr.msk.f32.mxu1 %vm11568_vm15, %v31256_v57 }
 0xb2e   : > { %23804 = vmatmul.mubr.msk.f32.gmra.mrb[80].mxu1 %vm11568_vm15, %v31257_v63 }
 0xb2f   : > { %23806 = vmatprep.mubr.msk.f32.mxu1 %vm11568_vm15, %v31231_v17 }
 0xb32   : > { %23807 = vmatmul.mubr.msk.f32.gmra.mrb[82].mxu1 %vm11568_vm15, %v31232_v52 }
 0xb33   : > { %23809 = vmatprep.mubr.msk.f32.mxu1 %vm11568_vm15, %v31258_v2 }
 0xb36   : > { %23810 = vmatmul.mubr.msk.f32.gmra.mrb[84].mxu1 %vm11568_vm15, %v31234_v22 }
 0xb37   : > { %23812 = vmatprep.mubr.msk.f32.mxu1 %vm11568_vm15, %v31259_v30 }
 0xb3a   : > { %23813 = vmatmul.mubr.msk.f32.gmra.mrb[86].mxu1 %vm11568_vm15, %v31236_v9 }
 0xb3b   : > { %23815 = vmatprep.mubr.msk.f32.mxu1 %vm11568_vm15, %v31260_v29 }
 0xb3e   : > { %23816 = vmatmul.mubr.msk.f32.gmra.mrb[88].mxu1 %vm11568_vm15, %v31261_v40 }
 0xb3f   : > { %23818 = vmatprep.mubr.msk.f32.mxu1 %vm11568_vm15, %v29115_v13 }
 0xb42   : > { %23819 = vmatmul.mubr.msk.f32.gmra.mrb[90].mxu1 %vm11568_vm15, %v31262_v56 }
 0xb43   : > { %23821 = vmatprep.mubr.msk.f32.mxu1 %vm11568_vm15, %v29338_v6 }
 0xb46   : > { %23822 = vmatmul.mubr.msk.f32.gmra.mrb[92].mxu1 %vm11568_vm15, %v29342_v7 }
 0xb47   : > { %23824 = vmatprep.mubr.msk.f32.mxu1 %vm11568_vm15, %v14569_v47 }
 0xb4a   : > { %23825 = vmatmul.mubr.msk.f32.gmra.mrb[94].mxu1 %vm11568_vm15, %v14570_v58 }
 0xbe1   : > { %v23781_v13 = vpop.f32.mrb[64].mxu1 }
 0xbe2   : > { %v14933_v1 = vadd.f32 %v23781_v13, %v29552_v0  ;;  %v14736_v34 = vpop.f32.mrb[65].mxu1 }
 0xbe3   : > { %v14932_v23 = vadd.f32 %v29552_v0, %v14736_v34 }
 0xbe4   : > { %v14997_v38 = vmul.f32 0.01, %v14933_v1  ;;  %vm14965_vm15 = vcmp.gt.f32.partialorder %v14933_v1, 0.0 }
 0xbe5   : > { %v14996_v25 = vmul.f32 0.01, %v14932_v23  ;;  %v23784_v8 = vpop.f32.mrb[66].mxu1  ;;  %vm14964_vm12 = vcmp.gt.f32.partialorder %v14932_v23, 0.0 }
 0xbe6   : > { %v14935_v52 = vadd.f32 %v23784_v8, %v29552_v0  ;;  %v14746_v17 = vpop.f32.mrb[67].mxu1  ;;  %v15029_v6 = vsel %vm14965_vm15, %v14933_v1, %v14997_v38 }
 0xbe7   : > { %v14934_v12 = vadd.f32 %v29552_v0, %v14746_v17  ;;  %15094 = vrot.lane.b32.xlu1 %v15029_v6, %s25748_s6  ;;  %v15028_v15 = vsel %vm14964_vm12, %v14932_v23, %v14996_v25 }
 0xbe8   : > { %vm14967_vm13 = vcmp.gt.f32.partialorder %v14935_v52, 0.0  ;;  %v14999_v35 = vmul.f32 0.01, %v14935_v52  ;;  %15092 = vrot.lane.b32.xlu0 %v15028_v15, %s25748_s6 }
 0xbe9   : > { %vm14966_vm14 = vcmp.gt.f32.partialorder %v14934_v12, 0.0  ;;  %v14998_v22 = vmul.f32 0.01, %v14934_v12  ;;  %v23787_v7 = vpop.f32.mrb[68].mxu1 }
 0xbea   : > { %v14937_v9 = vadd.f32 %v23787_v7, %v29552_v0  ;;  %v14756_v28 = vpop.f32.mrb[69].mxu1  ;;  %v15031_v33 = vsel %vm14967_vm13, %v14935_v52, %v14999_v35 }
 0xbeb   : > { %v14936_v59 = vadd.f32 %v29552_v0, %v14756_v28  ;;  %15098 = vrot.lane.b32.xlu1 %v15031_v33, %s25748_s6  ;;  %v15030_v3 = vsel %vm14966_vm14, %v14934_v12, %v14998_v22 }
 0xbec   : > { %vm14969_vm4 = vcmp.gt.f32.partialorder %v14937_v9, 0.0  ;;  %v15001_v37 = vmul.f32 0.01, %v14937_v9  ;;  %15096 = vrot.lane.b32.xlu0 %v15030_v3, %s25748_s6 }
 0xbed   : > { %vm14968_vm2 = vcmp.gt.f32.partialorder %v14936_v59, 0.0  ;;  %v15000_v61 = vmul.f32 0.01, %v14936_v59  ;;  %v23790_v36 = vpop.f32.mrb[70].mxu1 }
 0xbee   : > { %v14939_v43 = vadd.f32 %v23790_v36, %v29552_v0  ;;  %v14766_v11 = vpop.f32.mrb[71].mxu1  ;;  %v15033_v18 = vsel %vm14969_vm4, %v14937_v9, %v15001_v37 }
 0xbef   : > { %v14938_v24 = vadd.f32 %v29552_v0, %v14766_v11  ;;  %15102 = vrot.lane.b32.xlu1 %v15033_v18, %s25748_s6  ;;  %v15032_v45 = vsel %vm14968_vm2, %v14936_v59, %v15000_v61 }
 0xbf0   : > { %vm14971_vm5 = vcmp.gt.f32.partialorder %v14939_v43, 0.0  ;;  %v15003_v21 = vmul.f32 0.01, %v14939_v43  ;;  %15100 = vrot.lane.b32.xlu0 %v15032_v45, %s25748_s6 }
 0xbf1   : > { %vm14970_vm6 = vcmp.gt.f32.partialorder %v14938_v24, 0.0  ;;  %v15002_v50 = vmul.f32 0.01, %v14938_v24  ;;  %v23793_v49 = vpop.f32.mrb[72].mxu1 }
 0xbf2   : > { %v14941_v27 = vadd.f32 %v23793_v49, %v29552_v0  ;;  %v14776_v42 = vpop.f32.mrb[73].mxu1  ;;  %v15035_v54 = vsel %vm14971_vm5, %v14939_v43, %v15003_v21 }
 0xbf3   : > { %v14940_v26 = vadd.f32 %v29552_v0, %v14776_v42  ;;  %15106 = vrot.lane.b32.xlu1 %v15035_v54, %s25748_s6  ;;  %v15034_v41 = vsel %vm14970_vm6, %v14938_v24, %v15002_v50 }
 0xbf4   : > { %vm14973_vm7 = vcmp.gt.f32.partialorder %v14941_v27, 0.0  ;;  %v15005_v32 = vmul.f32 0.01, %v14941_v27  ;;  %15104 = vrot.lane.b32.xlu0 %v15034_v41, %s25748_s6 }
 0xbf5   : > { %vm14972_vm8 = vcmp.gt.f32.partialorder %v14940_v26, 0.0  ;;  %v15004_v48 = vmul.f32 0.01, %v14940_v26  ;;  %v23796_v53 = vpop.f32.mrb[74].mxu1 }
 0xbf6   : > { %v14943_v4 = vadd.f32 %v23796_v53, %v29552_v0  ;;  %v14786_v44 = vpop.f32.mrb[75].mxu1  ;;  %v15037_v62 = vsel %vm14973_vm7, %v14941_v27, %v15005_v32 }
 0xbf7   : > { %v14942_v55 = vadd.f32 %v29552_v0, %v14786_v44  ;;  %15110 = vrot.lane.b32.xlu1 %v15037_v62, %s25748_s6  ;;  %v15036_v60 = vsel %vm14972_vm8, %v14940_v26, %v15004_v48 }
 0xbf8   : > { %vm14975_vm9 = vcmp.gt.f32.partialorder %v14943_v4, 0.0  ;;  %v15007_v19 = vmul.f32 0.01, %v14943_v4  ;;  %15108 = vrot.lane.b32.xlu0 %v15036_v60, %s25748_s6 }
 0xbf9   : > { %vm14974_vm10 = vcmp.gt.f32.partialorder %v14942_v55, 0.0  ;;  %v15006_v57 = vmul.f32 0.01, %v14942_v55  ;;  %v23799_v63 = vpop.f32.mrb[76].mxu1 }
 0xbfa   : > { %v14945_v2 = vadd.f32 %v23799_v63, %v29552_v0  ;;  %v14796_v30 = vpop.f32.mrb[77].mxu1  ;;  %v15039_v29 = vsel %vm14975_vm9, %v14943_v4, %v15007_v19 }
 0xbfb   : > { %v14944_v40 = vadd.f32 %v29552_v0, %v14796_v30  ;;  %15114 = vrot.lane.b32.xlu1 %v15039_v29, %s25748_s6  ;;  %v15038_v56 = vsel %vm14974_vm10, %v14942_v55, %v15006_v57 }
 0xbfc   : > { %vm14977_vm11 = vcmp.gt.f32.partialorder %v14945_v2, 0.0  ;;  %v15009_v47 = vmul.f32 0.01, %v14945_v2  ;;  %15112 = vrot.lane.b32.xlu0 %v15038_v56, %s25748_s6 }
 0xbfd   : > { %vm14976_vm15 = vcmp.gt.f32.partialorder %v14944_v40, 0.0  ;;  %v15008_v58 = vmul.f32 0.01, %v14944_v40  ;;  %v23802_v20 = vpop.f32.mrb[78].mxu1 }
 0xbfe   : > { %v14947_v16 = vadd.f32 %v23802_v20, %v29552_v0  ;;  %v14806_v51 = vpop.f32.mrb[79].mxu1  ;;  %v15041_v31 = vsel %vm14977_vm11, %v14945_v2, %v15009_v47 }
 0xbff   : > { %v14946_v39 = vadd.f32 %v29552_v0, %v14806_v51  ;;  %15118 = vrot.lane.b32.xlu1 %v15041_v31, %s25748_s6  ;;  %v15040_v10 = vsel %vm14976_vm15, %v14944_v40, %v15008_v58  ;;  %v20213_v31 = vld [vmem:[%s30628_s1 + $0x390] sm:$0xff] }
 0xc00   : > { %vm14979_vm12 = vcmp.gt.f32.partialorder %v14947_v16, 0.0  ;;  %v15011_v5 = vmul.f32 0.01, %v14947_v16  ;;  %15116 = vrot.lane.b32.xlu0 %v15040_v10, %s25748_s6 }
 0xc01   : > { %vm14978_vm13 = vcmp.gt.f32.partialorder %v14946_v39, 0.0  ;;  %v15010_v14 = vmul.f32 0.01, %v14946_v39  ;;  %v23805_v13 = vpop.f32.mrb[80].mxu1 }
 0xc02   : > { %v14949_v1 = vadd.f32 %v23805_v13, %v29552_v0  ;;  %v14816_v34 = vpop.f32.mrb[81].mxu1  ;;  %v15043_v23 = vsel %vm14979_vm12, %v14947_v16, %v15011_v5 }
 0xc03   : > { %v14948_v38 = vadd.f32 %v29552_v0, %v14816_v34  ;;  %15122 = vrot.lane.b32.xlu1 %v15043_v23, %s25748_s6  ;;  %v15042_v25 = vsel %vm14978_vm13, %v14946_v39, %v15010_v14  ;;  %v20214_v39 = vld [vmem:[%s30628_s1 + $0x398] sm:$0xff] }
 0xc04   : > { %vm14981_vm14 = vcmp.gt.f32.partialorder %v14949_v1, 0.0  ;;  %v15013_v8 = vmul.f32 0.01, %v14949_v1  ;;  %15120 = vrot.lane.b32.xlu0 %v15042_v25, %s25748_s6  ;;  %v29626_v14 = vpack.c.bf16 %v20214_v39, %v20213_v31 }
 0xc05   : > { %vm14980_vm4 = vcmp.gt.f32.partialorder %v14948_v38, 0.0  ;;  %v15012_v52 = vmul.f32 0.01, %v14948_v38  ;;  %v23808_v17 = vpop.f32.mrb[82].mxu1 }
 0xc06   : > { %v14951_v6 = vadd.f32 %v23808_v17, %v29552_v0  ;;  %v14826_v12 = vpop.f32.mrb[83].mxu1  ;;  %v15045_v15 = vsel %vm14981_vm14, %v14949_v1, %v15013_v8  ;;  %24412 = vmatprep.subr.bf16.mxu0 %v29626_v14 }
 0xc07   : > { %v14950_v35 = vadd.f32 %v29552_v0, %v14826_v12  ;;  %15126 = vrot.lane.b32.xlu1 %v15045_v15, %s25748_s6  ;;  %v15044_v22 = vsel %vm14980_vm4, %v14948_v38, %v15012_v52 }
 0xc08   : > { %vm14983_vm2 = vcmp.gt.f32.partialorder %v14951_v6, 0.0  ;;  %v15015_v7 = vmul.f32 0.01, %v14951_v6  ;;  %15124 = vrot.lane.b32.xlu0 %v15044_v22, %s25748_s6 }
 0xc09   : > { %vm14982_vm5 = vcmp.gt.f32.partialorder %v14950_v35, 0.0  ;;  %v15014_v9 = vmul.f32 0.01, %v14950_v35  ;;  %v23811_v28 = vpop.f32.mrb[84].mxu1 }
 0xc0a   : > { %v14953_v33 = vadd.f32 %v23811_v28, %v29552_v0  ;;  %v14836_v59 = vpop.f32.mrb[85].mxu1  ;;  %v15047_v3 = vsel %vm14983_vm2, %v14951_v6, %v15015_v7 }
 0xc0b   : > { %v14952_v37 = vadd.f32 %v29552_v0, %v14836_v59  ;;  %15130 = vrot.lane.b32.xlu1 %v15047_v3, %s25748_s6  ;;  %v15046_v61 = vsel %vm14982_vm5, %v14950_v35, %v15014_v9  ;;  %vm15188_vm5 = vcmask 162944  }
 0xc0c   : > { %vm14985_vm6 = vcmp.gt.f32.partialorder %v14953_v33, 0.0  ;;  %v15017_v36 = vmul.f32 0.01, %v14953_v33  ;;  %15128 = vrot.lane.b32.xlu0 %v15046_v61, %s25748_s6 }
 0xc0d   : > { %vm14984_vm7 = vcmp.gt.f32.partialorder %v14952_v37, 0.0  ;;  %v15016_v43 = vmul.f32 0.01, %v14952_v37  ;;  %v23814_v11 = vpop.f32.mrb[86].mxu1 }
 0xc0e   : > { %v14955_v18 = vadd.f32 %v23814_v11, %v29552_v0  ;;  %v14846_v24 = vpop.f32.mrb[87].mxu1  ;;  %v15049_v45 = vsel %vm14985_vm6, %v14953_v33, %v15017_v36 }
 0xc0f   : > { %v14954_v21 = vadd.f32 %v29552_v0, %v14846_v24  ;;  %15134 = vrot.lane.b32.xlu1 %v15049_v45, %s25748_s6  ;;  %v15048_v50 = vsel %vm14984_vm7, %v14952_v37, %v15016_v43 }
 0xc10   : > { %vm14987_vm8 = vcmp.gt.f32.partialorder %v14955_v18, 0.0  ;;  %v15019_v49 = vmul.f32 0.01, %v14955_v18  ;;  %15132 = vrot.lane.b32.xlu0 %v15048_v50, %s25748_s6 }
 0xc11   : > { %vm14986_vm9 = vcmp.gt.f32.partialorder %v14954_v21, 0.0  ;;  %v15018_v27 = vmul.f32 0.01, %v14954_v21  ;;  %v23817_v42 = vpop.f32.mrb[88].mxu1 }
 0xc12   : > { %v14957_v54 = vadd.f32 %v23817_v42, %v29552_v0  ;;  %v14856_v26 = vpop.f32.mrb[89].mxu1  ;;  %v15051_v41 = vsel %vm14987_vm8, %v14955_v18, %v15019_v49 }
 0xc13   : > { %v14956_v32 = vadd.f32 %v29552_v0, %v14856_v26  ;;  %15138 = vrot.lane.b32.xlu1 %v15051_v41, %s25748_s6  ;;  %v15050_v48 = vsel %vm14986_vm9, %v14954_v21, %v15018_v27 }
 0xc14   : > { %vm14989_vm10 = vcmp.gt.f32.partialorder %v14957_v54, 0.0  ;;  %v15021_v53 = vmul.f32 0.01, %v14957_v54  ;;  %15136 = vrot.lane.b32.xlu0 %v15050_v48, %s25748_s6 }
 0xc15   : > { %vm14988_vm11 = vcmp.gt.f32.partialorder %v14956_v32, 0.0  ;;  %v15020_v4 = vmul.f32 0.01, %v14956_v32  ;;  %v23820_v44 = vpop.f32.mrb[90].mxu1 }
 0xc16   : > { %v14959_v62 = vadd.f32 %v23820_v44, %v29552_v0  ;;  %v14866_v55 = vpop.f32.mrb[91].mxu1  ;;  %v15053_v60 = vsel %vm14989_vm10, %v14957_v54, %v15021_v53 }
 0xc17   : > { %v14958_v19 = vadd.f32 %v29552_v0, %v14866_v55  ;;  %15142 = vrot.lane.b32.xlu1 %v15053_v60, %s25748_s6  ;;  %v15052_v57 = vsel %vm14988_vm11, %v14956_v32, %v15020_v4 }
 0xc18   : > { %vm14991_vm15 = vcmp.gt.f32.partialorder %v14959_v62, 0.0  ;;  %v15023_v63 = vmul.f32 0.01, %v14959_v62  ;;  %15140 = vrot.lane.b32.xlu0 %v15052_v57, %s25748_s6 }
 0xc19   : > { %vm14990_vm12 = vcmp.gt.f32.partialorder %v14958_v19, 0.0  ;;  %v15022_v2 = vmul.f32 0.01, %v14958_v19  ;;  %v23823_v30 = vpop.f32.mrb[92].mxu1 }
 0xc1a   : > { %v14961_v29 = vadd.f32 %v23823_v30, %v29552_v0  ;;  %v14876_v40 = vpop.f32.mrb[93].mxu1  ;;  %v15055_v56 = vsel %vm14991_vm15, %v14959_v62, %v15023_v63 }
 0xc1b   : > { %v14960_v47 = vadd.f32 %v29552_v0, %v14876_v40  ;;  %15146 = vrot.lane.b32.xlu1 %v15055_v56, %s25748_s6  ;;  %v15054_v58 = vsel %vm14990_vm12, %v14958_v19, %v15022_v2 }
 0xc1c   : > { %vm14993_vm13 = vcmp.gt.f32.partialorder %v14961_v29, 0.0  ;;  %v15025_v20 = vmul.f32 0.01, %v14961_v29  ;;  %15144 = vrot.lane.b32.xlu0 %v15054_v58, %s25748_s6 }
 0xc1d   : > { %vm14992_vm14 = vcmp.gt.f32.partialorder %v14960_v47, 0.0  ;;  %v15024_v16 = vmul.f32 0.01, %v14960_v47  ;;  %v23826_v51 = vpop.f32.mrb[94].mxu1 }
 0xc1e   : > { %v14963_v10 = vadd.f32 %v23826_v51, %v29552_v0  ;;  %v14886_v46 = vpop.f32.mrb[95].mxu1  ;;  %v15057_v5 = vsel %vm14993_vm13, %v14961_v29, %v15025_v20 }
 0xc1f   : > { %v14962_v13 = vadd.f32 %v29552_v0, %v14886_v46  ;;  %15150 = vrot.lane.b32.xlu1 %v15057_v5, %s25748_s6  ;;  %v15056_v1 = vsel %vm14992_vm14, %v14960_v47, %v15024_v16 }
 0xc20   : > { %vm14995_vm4 = vcmp.gt.f32.partialorder %v14963_v10, 0.0  ;;  %v15027_v34 = vmul.f32 0.01, %v14963_v10  ;;  %15148 = vrot.lane.b32.xlu0 %v15056_v1, %s25748_s6 }
 0xc21   : > { %vm14994_vm2 = vcmp.gt.f32.partialorder %v14962_v13, 0.0  ;;  %v15026_v23 = vmul.f32 0.01, %v14962_v13 }
 0xc22   : > { %v15059_v38 = vsel %vm14995_vm4, %v14963_v10, %v15027_v34 }
 0xc23   : > { %15154 = vrot.lane.b32.xlu1 %v15059_v38, %s25748_s6  ;;  %v15058_v25 = vsel %vm14994_vm2, %v14962_v13, %v15026_v23  ;;  %v15221_v38 = vld [vmem:[#allocation2] sm:$0xff] }
 0xc24   : > { %15152 = vrot.lane.b32.xlu0 %v15058_v25, %s25748_s6 }
 0xc59   : > { %v15095_v8 = vpop.permute.xlu1 %15094 }
 0xc5a   : > { %v15093_v0 = vpop.permute.xlu0 %15092  ;;  %15190 = vst.msk [vmem:[#allocation2 + $0x21] sm:$0xff] %vm15188_vm5, %v15095_v8  ;;  %v15222_v8 = vld [vmem:[#allocation2 + $0x8] sm:$0xff] }
 0xc5b   : > { %15189 = vst.msk [vmem:[#allocation2 + $0x19] sm:$0xff] %vm15188_vm5, %v15093_v0  ;;  %v20215_v0 = vld [vmem:[%s30628_s1 + $0x3a0] sm:$0xf] }
 0xc5d   : > { %v15099_v52 = vpop.permute.xlu1 %15098 }
 0xc5e   : > { %v15097_v17 = vpop.permute.xlu0 %15096  ;;  %15192 = vst.msk [vmem:[#allocation2 + $0x39] sm:$0xff] %vm15188_vm5, %v15099_v52  ;;  %v20249_v52 = vld [vmem:[%s30628_s1 + $0x3a8] sm:$0xff] }
 0xc5f   : > { %15191 = vst.msk [vmem:[#allocation2 + $0x31] sm:$0xff] %vm15188_vm5, %v15097_v17  ;;  %v20250_v17 = vld [vmem:[%s30628_s1 + $0x3b0] sm:$0xff] }
 0xc61   : > { %v15103_v6 = vpop.permute.xlu1 %15102  ;;  %v29644_v35 = vld [vmem:[#allocation2 + $0x21] sm:$0xff] }
 0xc62   : > { %v15101_v12 = vpop.permute.xlu0 %15100  ;;  %v29638_v15 = vld [vmem:[#allocation2 + $0x19] sm:$0xff]  ;;  %15194 = vst.msk [vmem:[#allocation2 + $0x51] sm:$0xff] %vm15188_vm5, %v15103_v6 }
 0xc63   : > { %23836 = vmatprep.mubr.msk.f32.mxu0 %vm171_vm1, %v29638_v15  ;;  %15193 = vst.msk [vmem:[#allocation2 + $0x49] sm:$0xff] %vm15188_vm5, %v15101_v12  ;;  %v29797_v6 = vld [vmem:[#allocation2 + $0x18] sm:$0xff]  ;;  %v29803_v12 = vpack.c.bf16 %v20250_v17, %v20249_v52  ;;  %v15942_v52 = vld [vmem:[#allocation2 + $0xa] sm:$0xff] }
 0xc64   : > { %23837 = vmatmul.mubr.msk.f32.gmra.mrb[66].mxu0 %vm171_vm1, %v29644_v35  ;;  %v20251_v17 = vld [vmem:[%s30628_s1 + $0x3b8] sm:$0xf] }
 0xc65   : > { %v15107_v22 = vpop.permute.xlu1 %15106  ;;  %v29654_v28 = vld [vmem:[#allocation2 + $0x39] sm:$0xff] }
 0xc66   : > { %15196 = vst.msk [vmem:[#allocation2 + $0x69] sm:$0xff] %vm15188_vm5, %v15107_v22  ;;  %v15105_v7 = vpop.permute.xlu0 %15104  ;;  %v29649_v9 = vld [vmem:[#allocation2 + $0x31] sm:$0xff]  ;;  %v29805_v22 = vld [vmem:[#allocation2 + $0x20] sm:$0xff] }
 0xc67   : > { %15195 = vst.msk [vmem:[#allocation2 + $0x61] sm:$0xff] %vm15188_vm5, %v15105_v7  ;;  %23839 = vmatprep.mubr.msk.f32.mxu0 %vm171_vm1, %v29649_v9  ;;  %v29809_v7 = vld [vmem:[#allocation2 + $0x30] sm:$0xff] }
 0xc68   : > { %23840 = vmatmul.mubr.msk.f32.gmra.mrb[68].mxu0 %vm171_vm1, %v29654_v28 }
 0xc69   : > { %v15111_v33 = vpop.permute.xlu1 %15110  ;;  %v29664_v37 = vld [vmem:[#allocation2 + $0x51] sm:$0xff] }
 0xc6a   : > { %15198 = vst.msk [vmem:[#allocation2 + $0x81] sm:$0xff] %vm15188_vm5, %v15111_v33  ;;  %v15109_v59 = vpop.permute.xlu0 %15108  ;;  %v29659_v3 = vld [vmem:[#allocation2 + $0x49] sm:$0xff] }
 0xc6b   : > { %15197 = vst.msk [vmem:[#allocation2 + $0x79] sm:$0xff] %vm15188_vm5, %v15109_v59  ;;  %23842 = vmatprep.mubr.msk.f32.mxu0 %vm171_vm1, %v29659_v3  ;;  %v29819_v33 = vld [vmem:[#allocation2 + $0x48] sm:$0xff]  ;;  %v29823_v59 = vld [vmem:[#allocation2 + $0x50] sm:$0xff] }
 0xc6c   : > { %23843 = vmatmul.mubr.msk.f32.gmra.mrb[70].mxu0 %vm171_vm1, %v29664_v37 }
 0xc6d   : > { %v15115_v61 = vpop.permute.xlu1 %15114  ;;  %v29674_v11 = vld [vmem:[#allocation2 + $0x69] sm:$0xff] }
 0xc6e   : > { %15200 = vst.msk [vmem:[#allocation2 + $0x99] sm:$0xff] %vm15188_vm5, %v15115_v61  ;;  %v15113_v36 = vpop.permute.xlu0 %15112  ;;  %v29669_v43 = vld [vmem:[#allocation2 + $0x61] sm:$0xff] }
 0xc6f   : > { %15199 = vst.msk [vmem:[#allocation2 + $0x91] sm:$0xff] %vm15188_vm5, %v15113_v36  ;;  %23845 = vmatprep.mubr.msk.f32.mxu0 %vm171_vm1, %v29669_v43  ;;  %v29827_v61 = vld [vmem:[#allocation2 + $0x60] sm:$0xff]  ;;  %v29831_v36 = vld [vmem:[#allocation2 + $0x68] sm:$0xff] }
 0xc70   : > { %23846 = vmatmul.mubr.msk.f32.gmra.mrb[72].mxu0 %vm171_vm1, %v29674_v11 }
 0xc71   : > { %v15119_v18 = vpop.permute.xlu1 %15118  ;;  %v29684_v21 = vld [vmem:[#allocation2 + $0x81] sm:$0xff] }
 0xc72   : > { %15202 = vst.msk [vmem:[#allocation2 + $0xb1] sm:$0xff] %vm15188_vm5, %v15119_v18  ;;  %v15117_v24 = vpop.permute.xlu0 %15116  ;;  %v29679_v45 = vld [vmem:[#allocation2 + $0x79] sm:$0xff] }
 0xc73   : > { %15201 = vst.msk [vmem:[#allocation2 + $0xa9] sm:$0xff] %vm15188_vm5, %v15117_v24  ;;  %23848 = vmatprep.mubr.msk.f32.mxu0 %vm171_vm1, %v29679_v45  ;;  %v29835_v18 = vld [vmem:[#allocation2 + $0x78] sm:$0xff]  ;;  %v29839_v24 = vld [vmem:[#allocation2 + $0x80] sm:$0xff] }
 0xc74   : > { %23849 = vmatmul.mubr.msk.f32.gmra.mrb[74].mxu0 %vm171_vm1, %v29684_v21 }
 0xc75   : > { %v15123_v50 = vpop.permute.xlu1 %15122  ;;  %v29694_v42 = vld [vmem:[#allocation2 + $0x99] sm:$0xff] }
 0xc76   : > { %15204 = vst.msk [vmem:[#allocation2 + $0xc9] sm:$0xff] %vm15188_vm5, %v15123_v50  ;;  %v15121_v49 = vpop.permute.xlu0 %15120  ;;  %v29689_v27 = vld [vmem:[#allocation2 + $0x91] sm:$0xff] }
 0xc77   : > { %15203 = vst.msk [vmem:[#allocation2 + $0xc1] sm:$0xff] %vm15188_vm5, %v15121_v49  ;;  %23851 = vmatprep.mubr.msk.f32.mxu0 %vm171_vm1, %v29689_v27  ;;  %v29843_v50 = vld [vmem:[#allocation2 + $0x90] sm:$0xff]  ;;  %v29847_v49 = vld [vmem:[#allocation2 + $0x98] sm:$0xff] }
 0xc78   : > { %23852 = vmatmul.mubr.msk.f32.gmra.mrb[76].mxu0 %vm171_vm1, %v29694_v42 }
 0xc79   : > { %v15127_v54 = vpop.permute.xlu1 %15126  ;;  %v29704_v32 = vld [vmem:[#allocation2 + $0xb1] sm:$0xff] }
 0xc7a   : > { %15206 = vst.msk [vmem:[#allocation2 + $0xe1] sm:$0xff] %vm15188_vm5, %v15127_v54  ;;  %v15125_v26 = vpop.permute.xlu0 %15124  ;;  %v29699_v41 = vld [vmem:[#allocation2 + $0xa9] sm:$0xff] }
 0xc7b   : > { %15205 = vst.msk [vmem:[#allocation2 + $0xd9] sm:$0xff] %vm15188_vm5, %v15125_v26  ;;  %23854 = vmatprep.mubr.msk.f32.mxu0 %vm171_vm1, %v29699_v41  ;;  %v29851_v54 = vld [vmem:[#allocation2 + $0xa8] sm:$0xff]  ;;  %v29855_v26 = vld [vmem:[#allocation2 + $0xb0] sm:$0xff] }
 0xc7c   : > { %23855 = vmatmul.mubr.msk.f32.gmra.mrb[78].mxu0 %vm171_vm1, %v29704_v32 }
 0xc7d   : > { %v15131_v48 = vpop.permute.xlu1 %15130  ;;  %v29714_v44 = vld [vmem:[#allocation2 + $0xc9] sm:$0xff] }
 0xc7e   : > { %15208 = vst.msk [vmem:[#allocation2 + $0xf9] sm:$0xff] %vm15188_vm5, %v15131_v48  ;;  %v15129_v53 = vpop.permute.xlu0 %15128  ;;  %v29709_v4 = vld [vmem:[#allocation2 + $0xc1] sm:$0xff] }
 0xc7f   : > { %15207 = vst.msk [vmem:[#allocation2 + $0xf1] sm:$0xff] %vm15188_vm5, %v15129_v53  ;;  %23857 = vmatprep.mubr.msk.f32.mxu0 %vm171_vm1, %v29709_v4  ;;  %v29859_v48 = vld [vmem:[#allocation2 + $0xc0] sm:$0xff]  ;;  %v29863_v53 = vld [vmem:[#allocation2 + $0xc8] sm:$0xff] }
 0xc80   : > { %23858 = vmatmul.mubr.msk.f32.gmra.mrb[80].mxu0 %vm171_vm1, %v29714_v44 }
 0xc81   : > { %v15135_v62 = vpop.permute.xlu1 %15134  ;;  %v29724_v19 = vld [vmem:[#allocation2 + $0xe1] sm:$0xff] }
 0xc82   : > { %15210 = vst.msk [vmem:[#allocation2 + $0x111] sm:$0xff] %vm15188_vm5, %v15135_v62  ;;  %v15133_v55 = vpop.permute.xlu0 %15132  ;;  %v29719_v60 = vld [vmem:[#allocation2 + $0xd9] sm:$0xff] }
 0xc83   : > { %15209 = vst.msk [vmem:[#allocation2 + $0x109] sm:$0xff] %vm15188_vm5, %v15133_v55  ;;  %23860 = vmatprep.mubr.msk.f32.mxu0 %vm171_vm1, %v29719_v60  ;;  %v29867_v62 = vld [vmem:[#allocation2 + $0xd8] sm:$0xff]  ;;  %v29871_v55 = vld [vmem:[#allocation2 + $0xe0] sm:$0xff] }
 0xc84   : > { %23861 = vmatmul.mubr.msk.f32.gmra.mrb[82].mxu0 %vm171_vm1, %v29724_v19 }
 0xc85   : > { %v15139_v57 = vpop.permute.xlu1 %15138  ;;  %v29734_v30 = vld [vmem:[#allocation2 + $0xf9] sm:$0xff] }
 0xc86   : > { %15212 = vst.msk [vmem:[#allocation2 + $0x129] sm:$0xff] %vm15188_vm5, %v15139_v57  ;;  %v15137_v63 = vpop.permute.xlu0 %15136  ;;  %v29729_v2 = vld [vmem:[#allocation2 + $0xf1] sm:$0xff] }
 0xc87   : > { %15211 = vst.msk [vmem:[#allocation2 + $0x121] sm:$0xff] %vm15188_vm5, %v15137_v63  ;;  %23863 = vmatprep.mubr.msk.f32.mxu0 %vm171_vm1, %v29729_v2  ;;  %v29875_v57 = vld [vmem:[#allocation2 + $0xf0] sm:$0xff]  ;;  %v29879_v63 = vld [vmem:[#allocation2 + $0xf8] sm:$0xff] }
 0xc88   : > { %23864 = vmatmul.mubr.msk.f32.gmra.mrb[84].mxu0 %vm171_vm1, %v29734_v30 }
 0xc89   : > { %v15143_v29 = vpop.permute.xlu1 %15142  ;;  %v29744_v47 = vld [vmem:[#allocation2 + $0x111] sm:$0xff] }
 0xc8a   : > { %15214 = vst.msk [vmem:[#allocation2 + $0x141] sm:$0xff] %vm15188_vm5, %v15143_v29  ;;  %v15141_v40 = vpop.permute.xlu0 %15140  ;;  %v29739_v56 = vld [vmem:[#allocation2 + $0x109] sm:$0xff] }
 0xc8b   : > { %15213 = vst.msk [vmem:[#allocation2 + $0x139] sm:$0xff] %vm15188_vm5, %v15141_v40  ;;  %23866 = vmatprep.mubr.msk.f32.mxu0 %vm171_vm1, %v29739_v56  ;;  %v29883_v29 = vld [vmem:[#allocation2 + $0x108] sm:$0xff]  ;;  %v29887_v40 = vld [vmem:[#allocation2 + $0x110] sm:$0xff] }
 0xc8c   : > { %23867 = vmatmul.mubr.msk.f32.gmra.mrb[86].mxu0 %vm171_vm1, %v29744_v47 }
 0xc8d   : > { %v15147_v58 = vpop.permute.xlu1 %15146  ;;  %v29754_v51 = vld [vmem:[#allocation2 + $0x129] sm:$0xff] }
 0xc8e   : > { %15216 = vst.msk [vmem:[#allocation2 + $0x159] sm:$0xff] %vm15188_vm5, %v15147_v58  ;;  %v15145_v20 = vpop.permute.xlu0 %15144  ;;  %v29749_v16 = vld [vmem:[#allocation2 + $0x121] sm:$0xff] }
 0xc8f   : > { %15215 = vst.msk [vmem:[#allocation2 + $0x151] sm:$0xff] %vm15188_vm5, %v15145_v20  ;;  %23869 = vmatprep.mubr.msk.f32.mxu0 %vm171_vm1, %v29749_v16  ;;  %v29891_v58 = vld [vmem:[#allocation2 + $0x120] sm:$0xff]  ;;  %v29895_v20 = vld [vmem:[#allocation2 + $0x128] sm:$0xff] }
 0xc90   : > { %23870 = vmatmul.mubr.msk.f32.gmra.mrb[88].mxu0 %vm171_vm1, %v29754_v51 }
 0xc91   : > { %v15151_v31 = vpop.permute.xlu1 %15150  ;;  %v29764_v46 = vld [vmem:[#allocation2 + $0x141] sm:$0xff] }
 0xc92   : > { %15218 = vst.msk [vmem:[#allocation2 + $0x171] sm:$0xff] %vm15188_vm5, %v15151_v31  ;;  %v15149_v39 = vpop.permute.xlu0 %15148  ;;  %v29759_v10 = vld [vmem:[#allocation2 + $0x139] sm:$0xff]  ;;  %31263 = vst [vmem:[#allocation13_spill] sm:$0xff] %v29764_v46 }
 0xc93   : > { %15217 = vst.msk [vmem:[#allocation2 + $0x169] sm:$0xff] %vm15188_vm5, %v15149_v39  ;;  %23872 = vmatprep.mubr.msk.f32.mxu0 %vm171_vm1, %v29759_v10  ;;  %v29899_v31 = vld [vmem:[#allocation2 + $0x138] sm:$0xff]  ;;  %v29903_v39 = vld [vmem:[#allocation2 + $0x140] sm:$0xff] }
 0xc94   : > { %23873 = vmatmul.mubr.msk.f32.gmra.mrb[90].mxu0 %vm171_vm1, %v29764_v46  ;;  %v29946_v46 = vld [vmem:[#allocation2 + $0x32] sm:$0xff] }
 0xc95   : > { %v15155_v5 = vpop.permute.xlu1 %15154  ;;  %v29774_v34 = vld [vmem:[#allocation2 + $0x159] sm:$0xff] }
 0xc96   : > { %15220 = vst.msk [vmem:[#allocation2 + $0x189] sm:$0xff] %vm15188_vm5, %v15155_v5  ;;  %v15153_v13 = vpop.permute.xlu0 %15152  ;;  %v29769_v1 = vld [vmem:[#allocation2 + $0x151] sm:$0xff]  ;;  %31265 = vst [vmem:[#allocation14_spill] sm:$0xff] %v29774_v34 }
 0xc97   : > { %31264 = vst [vmem:[#allocation28_spill] sm:$0xff] %v29769_v1  ;;  %15219 = vst.msk [vmem:[#allocation2 + $0x181] sm:$0xff] %vm15188_vm5, %v15153_v13  ;;  %23875 = vmatprep.mubr.msk.f32.mxu0 %vm171_vm1, %v29769_v1  ;;  %v29907_v5 = vld [vmem:[#allocation2 + $0x150] sm:$0xff]  ;;  %v29911_v13 = vld [vmem:[#allocation2 + $0x158] sm:$0xff] }
 0xc98   : > { %23876 = vmatmul.mubr.msk.f32.gmra.mrb[92].mxu0 %vm171_vm1, %v29774_v34  ;;  %v29934_v34 = vld [vmem:[#allocation2 + $0x1a] sm:$0xff]  ;;  %v29942_v1 = vld [vmem:[#allocation2 + $0x22] sm:$0xff] }
 0xc99   : > { %v29782_v25 = vld [vmem:[#allocation2 + $0x171] sm:$0xff] }
 0xc9a   : > { %v29778_v23 = vld [vmem:[#allocation2 + $0x169] sm:$0xff]  ;;  %31267 = vst [vmem:[#allocation36_spill] sm:$0xff] %v29782_v25 }
 0xc9b   : > { %31266 = vst [vmem:[#allocation34_spill] sm:$0xff] %v29778_v23  ;;  %23878 = vmatprep.mubr.msk.f32.mxu0 %vm171_vm1, %v29778_v23  ;;  %v20286_v23 = vld [vmem:[%s30628_s1 + $0x3c8] sm:$0xff] }
 0xc9c   : > { %23879 = vmatmul.mubr.msk.f32.gmra.mrb[94].mxu0 %vm171_vm1, %v29782_v25  ;;  %v20285_v25 = vld [vmem:[%s30628_s1 + $0x3c0] sm:$0xff] }
 0xc9d   : > { %23887 = vmatprep.mubr.msk.f32.mxu0 %vm171_vm1, %v15221_v38  ;;  %v29915_v38 = vld [vmem:[#allocation2 + $0x168] sm:$0xff] }
 0xca0   : > { %23888 = vmatmul.mubr.msk.f32.vlgmr.msra.gmra.mrb[64].mxu0 %vm171_vm1, %v15222_v8  ;;  %v15941_v8 = vld [vmem:[#allocation2 + $0x2] sm:$0xff] }
 0xca1   : > { %24414 = vmatpush3.bf16.msra.mxu0 %v29626_v14  ;;  %23890 = vmatprep.mubr.msk.f32.mxu0 %vm171_vm1, %v29797_v6  ;;  %v29815_v14 = vld [vmem:[#allocation2 + $0x38] sm:$0xff] }
 0xca2   : > { %23939 = vmatprep.subr.msk.mxu0 %vm456_vm0, %v20215_v0 }
 0xca4   : > { %23891 = vmatmul.mubr.msk.f32.gmra.mrb[66].mxu0 %vm171_vm1, %v29805_v22 }
 0xca5   : > { %23893 = vmatprep.mubr.msk.f32.mxu0 %vm171_vm1, %v29809_v7  ;;  %23940 = vmatpush3.msk.msra.mxu0 %vm456_vm0, %v20215_v0  ;;  %v29919_v0 = vld [vmem:[#allocation2 + $0x170] sm:$0xff] }
 0xca6   : > { %24416 = vmatprep.subr.bf16.mxu0 %v29803_v12 }
 0xca8   : > { %23894 = vmatmul.mubr.msk.f32.gmra.mrb[68].mxu0 %vm171_vm1, %v29815_v14 }
 0xca9   : > { %23896 = vmatprep.mubr.msk.f32.mxu0 %vm171_vm1, %v29819_v33 }
 0xcac   : > { %23897 = vmatmul.mubr.msk.f32.gmra.mrb[70].mxu0 %vm171_vm1, %v29823_v59 }
 0xcad   : > { %23899 = vmatprep.mubr.msk.f32.mxu0 %vm171_vm1, %v29827_v61 }
 0xcb0   : > { %23900 = vmatmul.mubr.msk.f32.gmra.mrb[72].mxu0 %vm171_vm1, %v29831_v36 }
 0xcb1   : > { %23902 = vmatprep.mubr.msk.f32.mxu0 %vm171_vm1, %v29835_v18 }
 0xcb4   : > { %23903 = vmatmul.mubr.msk.f32.gmra.mrb[74].mxu0 %vm171_vm1, %v29839_v24 }
 0xcb5   : > { %23905 = vmatprep.mubr.msk.f32.mxu0 %vm171_vm1, %v29843_v50 }
 0xcb8   : > { %23906 = vmatmul.mubr.msk.f32.gmra.mrb[76].mxu0 %vm171_vm1, %v29847_v49 }
 0xcb9   : > { %23908 = vmatprep.mubr.msk.f32.mxu0 %vm171_vm1, %v29851_v54 }
 0xcbc   : > { %23909 = vmatmul.mubr.msk.f32.gmra.mrb[78].mxu0 %vm171_vm1, %v29855_v26 }
 0xcbd   : > { %23911 = vmatprep.mubr.msk.f32.mxu0 %vm171_vm1, %v29859_v48 }
 0xcc0   : > { %23912 = vmatmul.mubr.msk.f32.gmra.mrb[80].mxu0 %vm171_vm1, %v29863_v53 }
 0xcc1   : > { %23914 = vmatprep.mubr.msk.f32.mxu0 %vm171_vm1, %v29867_v62 }
 0xcc4   : > { %23915 = vmatmul.mubr.msk.f32.gmra.mrb[82].mxu0 %vm171_vm1, %v29871_v55 }
 0xcc5   : > { %23917 = vmatprep.mubr.msk.f32.mxu0 %vm171_vm1, %v29875_v57 }
 0xcc8   : > { %23918 = vmatmul.mubr.msk.f32.gmra.mrb[84].mxu0 %vm171_vm1, %v29879_v63 }
 0xcc9   : > { %23920 = vmatprep.mubr.msk.f32.mxu0 %vm171_vm1, %v29883_v29 }
 0xccc   : > { %23921 = vmatmul.mubr.msk.f32.gmra.mrb[86].mxu0 %vm171_vm1, %v29887_v40 }
 0xccd   : > { %23923 = vmatprep.mubr.msk.f32.mxu0 %vm171_vm1, %v29891_v58 }
 0xcd0   : > { %23924 = vmatmul.mubr.msk.f32.gmra.mrb[88].mxu0 %vm171_vm1, %v29895_v20 }
 0xcd1   : > { %23926 = vmatprep.mubr.msk.f32.mxu0 %vm171_vm1, %v29899_v31 }
 0xcd4   : > { %23927 = vmatmul.mubr.msk.f32.gmra.mrb[90].mxu0 %vm171_vm1, %v29903_v39 }
 0xcd5   : > { %23929 = vmatprep.mubr.msk.f32.mxu0 %vm171_vm1, %v29907_v5 }
 0xcd8   : > { %23930 = vmatmul.mubr.msk.f32.gmra.mrb[92].mxu0 %vm171_vm1, %v29911_v13 }
 0xcd9   : > { %23932 = vmatprep.mubr.msk.f32.mxu0 %vm171_vm1, %v29915_v38 }
 0xcdc   : > { %23933 = vmatmul.mubr.msk.f32.gmra.mrb[94].mxu0 %vm171_vm1, %v29919_v0 }
 0xcdd   : > { %23941 = vmatprep.mubr.msk.f32.mxu0 %vm171_vm1, %v15941_v8  ;;  %v29940_v8 = vpack.c.bf16 %v20286_v23, %v20285_v25  ;;  %v29956_v23 = vld [vmem:[#allocation2 + $0x4a] sm:$0xff]  ;;  %v29960_v25 = vld [vmem:[#allocation2 + $0x52] sm:$0xff] }
 0xcde   : > { %31269 = vst [vmem:[#allocation29_spill] sm:$0xff] %v29956_v23  ;;  %31270 = vst [vmem:[#allocation16_spill] sm:$0xff] %v29960_v25 }
 0xce0   : > { %23942 = vmatmul.mubr.msk.f32.vlgmr.msra.gmra.mrb[64].mxu0 %vm171_vm1, %v15942_v52  ;;  %v29964_v52 = vld [vmem:[#allocation2 + $0x62] sm:$0xff] }
 0xce1   : > { %24418 = vmatpush3.bf16.msra.mxu0 %v29803_v12  ;;  %23944 = vmatprep.mubr.msk.f32.mxu0 %vm171_vm1, %v29934_v34  ;;  %v29952_v12 = vld [vmem:[#allocation2 + $0x3a] sm:$0xff]  ;;  %31271 = vst [vmem:[#allocation20_spill] sm:$0xff] %v29964_v52 }
 0xce2   : > { %23993 = vmatprep.subr.msk.mxu0 %vm456_vm0, %v20251_v17  ;;  %31268 = vst [vmem:[#allocation6_spill] sm:$0xff] %v29952_v12 }
 0xce4   : > { %23945 = vmatmul.mubr.msk.f32.gmra.mrb[66].mxu0 %vm171_vm1, %v29942_v1 }
 0xce5   : > { %23947 = vmatprep.mubr.msk.f32.mxu0 %vm171_vm1, %v29946_v46  ;;  %23994 = vmatpush3.msk.msra.mxu0 %vm456_vm0, %v20251_v17  ;;  %v29968_v17 = vld [vmem:[#allocation2 + $0x6a] sm:$0xff] }
 0xce6   : > { %24420 = vmatprep.subr.bf16.mxu0 %v29940_v8  ;;  %31272 = vst [vmem:[#allocation37_spill] sm:$0xff] %v29968_v17 }
 0xce8   : > { %23948 = vmatmul.mubr.msk.f32.gmra.mrb[68].mxu0 %vm171_vm1, %v29952_v12  ;;  %v29972_v12 = vld [vmem:[#allocation2 + $0x7a] sm:$0xff] }
 0xce9   : > { %23950 = vmatprep.mubr.msk.f32.mxu0 %vm171_vm1, %v29956_v23  ;;  %31273 = vst [vmem:[#allocation7_spill] sm:$0xff] %v29972_v12  ;;  %v29976_v23 = vld [vmem:[#allocation2 + $0x82] sm:$0xff] }
 0xcea   : > { %31274 = vst [vmem:[#allocation8_spill] sm:$0xff] %v29976_v23 }
 0xcec   : > { %23951 = vmatmul.mubr.msk.f32.gmra.mrb[70].mxu0 %vm171_vm1, %v29960_v25  ;;  %v29980_v25 = vld [vmem:[#allocation2 + $0x92] sm:$0xff] }
 0xced   : > { %23953 = vmatprep.mubr.msk.f32.mxu0 %vm171_vm1, %v29964_v52  ;;  %31275 = vst [vmem:[#allocation21_spill] sm:$0xff] %v29980_v25  ;;  %v29984_v52 = vld [vmem:[#allocation2 + $0x9a] sm:$0xff] }
 0xcee   : > { %31276 = vst [vmem:[#allocation11_spill] sm:$0xff] %v29984_v52 }
 0xcf0   : > { %23954 = vmatmul.mubr.msk.f32.gmra.mrb[72].mxu0 %vm171_vm1, %v29968_v17  ;;  %v29988_v17 = vld [vmem:[#allocation2 + $0xaa] sm:$0xff] }
 0xcf1   : > { %23956 = vmatprep.mubr.msk.f32.mxu0 %vm171_vm1, %v29972_v12  ;;  %31277 = vst [vmem:[#allocation12_spill] sm:$0xff] %v29988_v17  ;;  %v29992_v12 = vld [vmem:[#allocation2 + $0xb2] sm:$0xff] }
 0xcf2   : > { %31278 = vst [vmem:[#allocation30_spill] sm:$0xff] %v29992_v12 }
 0xcf4   : > { %23957 = vmatmul.mubr.msk.f32.gmra.mrb[74].mxu0 %vm171_vm1, %v29976_v23  ;;  %v29996_v23 = vld [vmem:[#allocation2 + $0xc2] sm:$0xff] }
 0xcf5   : > { %23959 = vmatprep.mubr.msk.f32.mxu0 %vm171_vm1, %v29980_v25  ;;  %31279 = vst [vmem:[#allocation10_spill] sm:$0xff] %v29996_v23  ;;  %v30000_v25 = vld [vmem:[#allocation2 + $0xca] sm:$0xff] }
 0xcf6   : > { %31280 = vst [vmem:[#allocation25_spill] sm:$0xff] %v30000_v25 }
 0xcf8   : > { %23960 = vmatmul.mubr.msk.f32.gmra.mrb[76].mxu0 %vm171_vm1, %v29984_v52  ;;  %v30004_v52 = vld [vmem:[#allocation2 + $0xda] sm:$0xff] }
 0xcf9   : > { %23962 = vmatprep.mubr.msk.f32.mxu0 %vm171_vm1, %v29988_v17  ;;  %31281 = vst [vmem:[#allocation26_spill] sm:$0xff] %v30004_v52  ;;  %v30008_v17 = vld [vmem:[#allocation2 + $0xe2] sm:$0xff] }
 0xcfa   : > { %31282 = vst [vmem:[#allocation27_spill] sm:$0xff] %v30008_v17 }
 0xcfc   : > { %23963 = vmatmul.mubr.msk.f32.gmra.mrb[78].mxu0 %vm171_vm1, %v29992_v12  ;;  %v30012_v12 = vld [vmem:[#allocation2 + $0xf2] sm:$0xff] }
 0xcfd   : > { %23965 = vmatprep.mubr.msk.f32.mxu0 %vm171_vm1, %v29996_v23  ;;  %31283 = vst [vmem:[#allocation15_spill] sm:$0xff] %v30012_v12  ;;  %v30016_v23 = vld [vmem:[#allocation2 + $0xfa] sm:$0xff] }
 0xcfe   : > { %31284 = vst [vmem:[#allocation32_spill] sm:$0xff] %v30016_v23 }
 0xd00   : > { %23966 = vmatmul.mubr.msk.f32.gmra.mrb[80].mxu0 %vm171_vm1, %v30000_v25  ;;  %v30020_v25 = vld [vmem:[#allocation2 + $0x10a] sm:$0xff] }
 0xd01   : > { %23968 = vmatprep.mubr.msk.f32.mxu0 %vm171_vm1, %v30004_v52  ;;  %31285 = vst [vmem:[#allocation17_spill] sm:$0xff] %v30020_v25  ;;  %v30024_v52 = vld [vmem:[#allocation2 + $0x112] sm:$0xff] }
 0xd02   : > { %31286 = vst [vmem:[#allocation33_spill] sm:$0xff] %v30024_v52 }
 0xd04   : > { %23969 = vmatmul.mubr.msk.f32.gmra.mrb[82].mxu0 %vm171_vm1, %v30008_v17  ;;  %v30028_v17 = vld [vmem:[#allocation2 + $0x122] sm:$0xff] }
 0xd05   : > { %23971 = vmatprep.mubr.msk.f32.mxu0 %vm171_vm1, %v30012_v12  ;;  %31287 = vst [vmem:[#allocation35_spill] sm:$0xff] %v30028_v17  ;;  %v30032_v12 = vld [vmem:[#allocation2 + $0x12a] sm:$0xff] }
 0xd06   : > { %31288 = vst [vmem:[#allocation31_spill] sm:$0xff] %v30032_v12 }
 0xd08   : > { %23972 = vmatmul.mubr.msk.f32.gmra.mrb[84].mxu0 %vm171_vm1, %v30016_v23  ;;  %v30036_v23 = vld [vmem:[#allocation2 + $0x13a] sm:$0xff] }
 0xd09   : > { %23974 = vmatprep.mubr.msk.f32.mxu0 %vm171_vm1, %v30020_v25  ;;  %31289 = vst [vmem:[#allocation3_spill] sm:$0xff] %v30036_v23  ;;  %v30040_v25 = vld [vmem:[#allocation2 + $0x142] sm:$0xff] }
 0xd0c   : > { %23975 = vmatmul.mubr.msk.f32.gmra.mrb[86].mxu0 %vm171_vm1, %v30024_v52  ;;  %v30044_v52 = vld [vmem:[#allocation2 + $0x152] sm:$0xff] }
 0xd0d   : > { %23977 = vmatprep.mubr.msk.f32.mxu0 %vm171_vm1, %v30028_v17  ;;  %31290 = vst [vmem:[#allocation18_spill] sm:$0xff] %v30044_v52  ;;  %v30048_v17 = vld [vmem:[#allocation2 + $0x15a] sm:$0xff] }
 0xd0e   : > { %31291 = vst [vmem:[#allocation4_spill] sm:$0xff] %v30048_v17 }
 0xd10   : > { %23978 = vmatmul.mubr.msk.f32.gmra.mrb[88].mxu0 %vm171_vm1, %v30032_v12  ;;  %v30052_v12 = vld [vmem:[#allocation2 + $0x16a] sm:$0xff] }
 0xd11   : > { %23980 = vmatprep.mubr.msk.f32.mxu0 %vm171_vm1, %v30036_v23  ;;  %31292 = vst [vmem:[#allocation19_spill] sm:$0xff] %v30052_v12  ;;  %v30056_v23 = vld [vmem:[#allocation2 + $0x172] sm:$0xff] }
 0xd12   : > { %31293 = vst [vmem:[#allocation5_spill] sm:$0xff] %v30056_v23 }
 0xd14   : > { %23981 = vmatmul.mubr.msk.f32.gmra.mrb[90].mxu0 %vm171_vm1, %v30040_v25 }
 0xd15   : > { %23983 = vmatprep.mubr.msk.f32.mxu0 %vm171_vm1, %v30044_v52  ;;  %v20287_v52 = vld [vmem:[%s30628_s1 + $0x3d0] sm:$0xf] }
 0xd18   : > { %23984 = vmatmul.mubr.msk.f32.gmra.mrb[92].mxu0 %vm171_vm1, %v30048_v17  ;;  %v20321_v17 = vld [vmem:[%s30628_s1 + $0x3d8] sm:$0xff] }
 0xd19   : > { %23986 = vmatprep.mubr.msk.f32.mxu0 %vm171_vm1, %v30052_v12  ;;  %v20322_v12 = vld [vmem:[%s30628_s1 + $0x3e0] sm:$0xff] }
 0xd1c   : > { %23987 = vmatmul.mubr.msk.f32.gmra.mrb[94].mxu0 %vm171_vm1, %v30056_v23 }
 0xd1d   : > { %23995 = vmatprep.mubr.msk.f32.mxu0 %vm171_vm1, %v29797_v6  ;;  %v24423_v6 = vpack.c.bf16 %v20322_v12, %v20321_v17  ;;  %v20323_v12 = vld [vmem:[%s30628_s1 + $0x3e8] sm:$0xf]  ;;  %v20358_v17 = vld [vmem:[%s30628_s1 + $0x3f8] sm:$0xff] }
 0xd20   : > { %23996 = vmatmul.mubr.msk.f32.vlgmr.msra.gmra.mrb[64].mxu0 %vm171_vm1, %v29805_v22  ;;  %v30132_v22 = vld [vmem:[#allocation2 + $0x180] sm:$0xff] }
 0xd21   : > { %24422 = vmatpush3.bf16.msra.mxu0 %v29940_v8  ;;  %23998 = vmatprep.mubr.msk.f32.mxu0 %vm171_vm1, %v29809_v7  ;;  %v30136_v8 = vld [vmem:[#allocation2 + $0x188] sm:$0xff] }
 0xd22   : > { %24047 = vmatprep.subr.msk.mxu0 %vm456_vm0, %v20287_v52 }
 0xd24   : > { %23999 = vmatmul.mubr.msk.f32.gmra.mrb[66].mxu0 %vm171_vm1, %v29815_v14 }
 0xd25   : > { %24001 = vmatprep.mubr.msk.f32.mxu0 %vm171_vm1, %v29819_v33  ;;  %24048 = vmatpush3.msk.msra.mxu0 %vm456_vm0, %v20287_v52  ;;  %v20357_v52 = vld [vmem:[%s30628_s1 + $0x3f0] sm:$0xff] }
 0xd26   : > { %24424 = vmatprep.subr.bf16.mxu0 %v24423_v6 }
 0xd28   : > { %24002 = vmatmul.mubr.msk.f32.gmra.mrb[68].mxu0 %vm171_vm1, %v29823_v59 }
 0xd29   : > { %24004 = vmatprep.mubr.msk.f32.mxu0 %vm171_vm1, %v29827_v61 }
 0xd2c   : > { %24005 = vmatmul.mubr.msk.f32.gmra.mrb[70].mxu0 %vm171_vm1, %v29831_v36 }
 0xd2d   : > { %24007 = vmatprep.mubr.msk.f32.mxu0 %vm171_vm1, %v29835_v18 }
 0xd30   : > { %24008 = vmatmul.mubr.msk.f32.gmra.mrb[72].mxu0 %vm171_vm1, %v29839_v24 }
 0xd31   : > { %24010 = vmatprep.mubr.msk.f32.mxu0 %vm171_vm1, %v29843_v50 }
 0xd34   : > { %24011 = vmatmul.mubr.msk.f32.gmra.mrb[74].mxu0 %vm171_vm1, %v29847_v49 }
 0xd35   : > { %24013 = vmatprep.mubr.msk.f32.mxu0 %vm171_vm1, %v29851_v54 }
 0xd38   : > { %24014 = vmatmul.mubr.msk.f32.gmra.mrb[76].mxu0 %vm171_vm1, %v29855_v26 }
 0xd39   : > { %24016 = vmatprep.mubr.msk.f32.mxu0 %vm171_vm1, %v29859_v48 }
 0xd3c   : > { %24017 = vmatmul.mubr.msk.f32.gmra.mrb[78].mxu0 %vm171_vm1, %v29863_v53 }
 0xd3d   : > { %24019 = vmatprep.mubr.msk.f32.mxu0 %vm171_vm1, %v29867_v62 }
 0xd40   : > { %24020 = vmatmul.mubr.msk.f32.gmra.mrb[80].mxu0 %vm171_vm1, %v29871_v55 }
 0xd41   : > { %24022 = vmatprep.mubr.msk.f32.mxu0 %vm171_vm1, %v29875_v57 }
 0xd44   : > { %24023 = vmatmul.mubr.msk.f32.gmra.mrb[82].mxu0 %vm171_vm1, %v29879_v63 }
 0xd45   : > { %24025 = vmatprep.mubr.msk.f32.mxu0 %vm171_vm1, %v29883_v29 }
 0xd48   : > { %24026 = vmatmul.mubr.msk.f32.gmra.mrb[84].mxu0 %vm171_vm1, %v29887_v40 }
 0xd49   : > { %24028 = vmatprep.mubr.msk.f32.mxu0 %vm171_vm1, %v29891_v58 }
 0xd4c   : > { %24029 = vmatmul.mubr.msk.f32.gmra.mrb[86].mxu0 %vm171_vm1, %v29895_v20 }
 0xd4d   : > { %24031 = vmatprep.mubr.msk.f32.mxu0 %vm171_vm1, %v29899_v31 }
 0xd50   : > { %24032 = vmatmul.mubr.msk.f32.gmra.mrb[88].mxu0 %vm171_vm1, %v29903_v39 }
 0xd51   : > { %24034 = vmatprep.mubr.msk.f32.mxu0 %vm171_vm1, %v29907_v5 }
 0xd54   : > { %24035 = vmatmul.mubr.msk.f32.gmra.mrb[90].mxu0 %vm171_vm1, %v29911_v13 }
 0xd55   : > { %24037 = vmatprep.mubr.msk.f32.mxu0 %vm171_vm1, %v29915_v38 }
 0xd58   : > { %24038 = vmatmul.mubr.msk.f32.gmra.mrb[92].mxu0 %vm171_vm1, %v29919_v0 }
 0xd59   : > { %24040 = vmatprep.mubr.msk.f32.mxu0 %vm171_vm1, %v30132_v22 }
 0xd5c   : > { %24041 = vmatmul.mubr.msk.f32.gmra.mrb[94].mxu0 %vm171_vm1, %v30136_v8 }
 0xd5d   : > { %24049 = vmatprep.mubr.msk.f32.mxu0 %vm171_vm1, %v29638_v15  ;;  %v24427_v15 = vpack.c.bf16 %v20358_v17, %v20357_v52  ;;  %v31309_v52 = vld [vmem:[#allocation30_spill] sm:$0xff] }
 0xd5e   : > { %v31310_v17 = vld [vmem:[#allocation10_spill] sm:$0xff] }
 0xd60   : > { %24050 = vmatmul.mubr.msk.f32.vlgmr.msra.gmra.mrb[64].mxu0 %vm171_vm1, %v29644_v35  ;;  %v31294_v35 = vld [vmem:[#allocation13_spill] sm:$0xff] }
 0xd61   : > { %24426 = vmatpush3.bf16.msra.mxu0 %v24423_v6  ;;  %24052 = vmatprep.mubr.msk.f32.mxu0 %vm171_vm1, %v29649_v9  ;;  %v31295_v9 = vld [vmem:[#allocation28_spill] sm:$0xff]  ;;  %v31307_v6 = vld [vmem:[#allocation11_spill] sm:$0xff] }
 0xd62   : > { %24101 = vmatprep.subr.msk.mxu0 %vm456_vm0, %v20323_v12 }
 0xd64   : > { %24053 = vmatmul.mubr.msk.f32.gmra.mrb[66].mxu0 %vm171_vm1, %v29654_v28  ;;  %v31296_v28 = vld [vmem:[#allocation14_spill] sm:$0xff] }
 0xd65   : > { %24055 = vmatprep.mubr.msk.f32.mxu0 %vm171_vm1, %v29659_v3  ;;  %24102 = vmatpush3.msk.msra.mxu0 %vm456_vm0, %v20323_v12  ;;  %v31297_v3 = vld [vmem:[#allocation34_spill] sm:$0xff]  ;;  %v31308_v12 = vld [vmem:[#allocation12_spill] sm:$0xff] }
 0xd66   : > { %24428 = vmatprep.subr.bf16.mxu0 %v24427_v15 }
 0xd68   : > { %24056 = vmatmul.mubr.msk.f32.gmra.mrb[68].mxu0 %vm171_vm1, %v29664_v37  ;;  %v31298_v37 = vld [vmem:[#allocation36_spill] sm:$0xff] }
 0xd69   : > { %24058 = vmatprep.mubr.msk.f32.mxu0 %vm171_vm1, %v29669_v43  ;;  %v30211_v43 = vld [vmem:[#allocation2 + $0x181] sm:$0xff] }
 0xd6c   : > { %24059 = vmatmul.mubr.msk.f32.gmra.mrb[70].mxu0 %vm171_vm1, %v29674_v11  ;;  %v30215_v11 = vld [vmem:[#allocation2 + $0x189] sm:$0xff] }
 0xd6d   : > { %24061 = vmatprep.mubr.msk.f32.mxu0 %vm171_vm1, %v29679_v45  ;;  %v20359_v45 = vld [vmem:[%s30628_s1 + $0x400] sm:$0xf] }
 0xd70   : > { %24062 = vmatmul.mubr.msk.f32.gmra.mrb[72].mxu0 %vm171_vm1, %v29684_v21  ;;  %v20393_v21 = vld [vmem:[%s30628_s1 + $0x408] sm:$0xff] }
 0xd71   : > { %24064 = vmatprep.mubr.msk.f32.mxu0 %vm171_vm1, %v29689_v27  ;;  %v20394_v27 = vld [vmem:[%s30628_s1 + $0x410] sm:$0xff] }
 0xd74   : > { %24065 = vmatmul.mubr.msk.f32.gmra.mrb[74].mxu0 %vm171_vm1, %v29694_v42  ;;  %v24431_v42 = vpack.c.bf16 %v20394_v27, %v20393_v21  ;;  %v31313_v21 = vld [vmem:[#allocation27_spill] sm:$0xff] }
 0xd75   : > { %24067 = vmatprep.mubr.msk.f32.mxu0 %vm171_vm1, %v29699_v41  ;;  %v31299_v41 = vld [vmem:[#allocation6_spill] sm:$0xff]  ;;  %v31314_v27 = vld [vmem:[#allocation15_spill] sm:$0xff] }
 0xd78   : > { %24068 = vmatmul.mubr.msk.f32.gmra.mrb[76].mxu0 %vm171_vm1, %v29704_v32  ;;  %v31300_v32 = vld [vmem:[#allocation29_spill] sm:$0xff] }
 0xd79   : > { %24070 = vmatprep.mubr.msk.f32.mxu0 %vm171_vm1, %v29709_v4  ;;  %v31301_v4 = vld [vmem:[#allocation16_spill] sm:$0xff] }
 0xd7c   : > { %24071 = vmatmul.mubr.msk.f32.gmra.mrb[78].mxu0 %vm171_vm1, %v29714_v44  ;;  %v31302_v44 = vld [vmem:[#allocation20_spill] sm:$0xff] }
 0xd7d   : > { %24073 = vmatprep.mubr.msk.f32.mxu0 %vm171_vm1, %v29719_v60  ;;  %v31303_v60 = vld [vmem:[#allocation37_spill] sm:$0xff] }
 0xd80   : > { %24074 = vmatmul.mubr.msk.f32.gmra.mrb[80].mxu0 %vm171_vm1, %v29724_v19  ;;  %v31304_v19 = vld [vmem:[#allocation7_spill] sm:$0xff] }
 0xd81   : > { %24076 = vmatprep.mubr.msk.f32.mxu0 %vm171_vm1, %v29729_v2 }
 0xd84   : > { %24077 = vmatmul.mubr.msk.f32.gmra.mrb[82].mxu0 %vm171_vm1, %v29734_v30 }
 0xd85   : > { %24079 = vmatprep.mubr.msk.f32.mxu0 %vm171_vm1, %v29739_v56 }
 0xd88   : > { %24080 = vmatmul.mubr.msk.f32.gmra.mrb[84].mxu0 %vm171_vm1, %v29744_v47 }
 0xd89   : > { %24082 = vmatprep.mubr.msk.f32.mxu0 %vm171_vm1, %v29749_v16 }
 0xd8c   : > { %24083 = vmatmul.mubr.msk.f32.gmra.mrb[86].mxu0 %vm171_vm1, %v29754_v51 }
 0xd8d   : > { %24085 = vmatprep.mubr.msk.f32.mxu0 %vm171_vm1, %v29759_v10 }
 0xd90   : > { %24086 = vmatmul.mubr.msk.f32.gmra.mrb[88].mxu0 %vm171_vm1, %v31294_v35 }
 0xd91   : > { %24088 = vmatprep.mubr.msk.f32.mxu0 %vm171_vm1, %v31295_v9 }
 0xd94   : > { %24089 = vmatmul.mubr.msk.f32.gmra.mrb[90].mxu0 %vm171_vm1, %v31296_v28 }
 0xd95   : > { %24091 = vmatprep.mubr.msk.f32.mxu0 %vm171_vm1, %v31297_v3 }
 0xd98   : > { %24092 = vmatmul.mubr.msk.f32.gmra.mrb[92].mxu0 %vm171_vm1, %v31298_v37 }
 0xd99   : > { %24094 = vmatprep.mubr.msk.f32.mxu0 %vm171_vm1, %v30211_v43 }
 0xd9c   : > { %24095 = vmatmul.mubr.msk.f32.gmra.mrb[94].mxu0 %vm171_vm1, %v30215_v11 }
 0xd9d   : > { %24103 = vmatprep.mubr.msk.f32.mxu0 %vm171_vm1, %v29934_v34  ;;  %v31306_v34 = vld [vmem:[#allocation21_spill] sm:$0xff] }
 0xda0   : > { %24104 = vmatmul.mubr.msk.f32.vlgmr.msra.gmra.mrb[64].mxu0 %vm171_vm1, %v29942_v1  ;;  %v31305_v1 = vld [vmem:[#allocation8_spill] sm:$0xff] }
 0xda1   : > { %24430 = vmatpush3.bf16.msra.mxu0 %v24427_v15  ;;  %24106 = vmatprep.mubr.msk.f32.mxu0 %vm171_vm1, %v29946_v46  ;;  %v31311_v15 = vld [vmem:[#allocation25_spill] sm:$0xff] }
 0xda2   : > { %24155 = vmatprep.subr.msk.mxu0 %vm456_vm0, %v20359_v45 }
 0xda4   : > { %24107 = vmatmul.mubr.msk.f32.gmra.mrb[66].mxu0 %vm171_vm1, %v31299_v41 }
 0xda5   : > { %24109 = vmatprep.mubr.msk.f32.mxu0 %vm171_vm1, %v31300_v32  ;;  %24156 = vmatpush3.msk.msra.mxu0 %vm456_vm0, %v20359_v45  ;;  %v31312_v45 = vld [vmem:[#allocation26_spill] sm:$0xff] }
 0xda6   : > { %24432 = vmatprep.subr.bf16.mxu0 %v24431_v42 }
 0xda8   : > { %24110 = vmatmul.mubr.msk.f32.gmra.mrb[68].mxu0 %vm171_vm1, %v31301_v4 }
 0xda9   : > { %24112 = vmatprep.mubr.msk.f32.mxu0 %vm171_vm1, %v31302_v44 }
 0xdac   : > { %24113 = vmatmul.mubr.msk.f32.gmra.mrb[70].mxu0 %vm171_vm1, %v31303_v60 }
 0xdad   : > { %24115 = vmatprep.mubr.msk.f32.mxu0 %vm171_vm1, %v31304_v19 }
 0xdb0   : > { %24116 = vmatmul.mubr.msk.f32.gmra.mrb[72].mxu0 %vm171_vm1, %v31305_v1 }
 0xdb1   : > { %24118 = vmatprep.mubr.msk.f32.mxu0 %vm171_vm1, %v31306_v34 }
 0xdb4   : > { %24119 = vmatmul.mubr.msk.f32.gmra.mrb[74].mxu0 %vm171_vm1, %v31307_v6  ;;  %v31315_v6 = vld [vmem:[#allocation32_spill] sm:$0xff] }
 0xdb5   : > { %24121 = vmatprep.mubr.msk.f32.mxu0 %vm171_vm1, %v31308_v12  ;;  %v31316_v12 = vld [vmem:[#allocation17_spill] sm:$0xff] }
 0xdb8   : > { %24122 = vmatmul.mubr.msk.f32.gmra.mrb[76].mxu0 %vm171_vm1, %v31309_v52  ;;  %v31317_v52 = vld [vmem:[#allocation33_spill] sm:$0xff] }
 0xdb9   : > { %24124 = vmatprep.mubr.msk.f32.mxu0 %vm171_vm1, %v31310_v17  ;;  %v31318_v17 = vld [vmem:[#allocation35_spill] sm:$0xff] }
 0xdbc   : > { %24125 = vmatmul.mubr.msk.f32.gmra.mrb[78].mxu0 %vm171_vm1, %v31311_v15  ;;  %v31319_v15 = vld [vmem:[#allocation31_spill] sm:$0xff] }
 0xdbd   : > { %24127 = vmatprep.mubr.msk.f32.mxu0 %vm171_vm1, %v31312_v45  ;;  %v31320_v45 = vld [vmem:[#allocation3_spill] sm:$0xff] }
 0xdc0   : > { %24128 = vmatmul.mubr.msk.f32.gmra.mrb[80].mxu0 %vm171_vm1, %v31313_v21 }
 0xdc1   : > { %24130 = vmatprep.mubr.msk.f32.mxu0 %vm171_vm1, %v31314_v27  ;;  %v31321_v27 = vld [vmem:[#allocation18_spill] sm:$0xff] }
 0xdc4   : > { %24131 = vmatmul.mubr.msk.f32.gmra.mrb[82].mxu0 %vm171_vm1, %v31315_v6  ;;  %v31322_v6 = vld [vmem:[#allocation4_spill] sm:$0xff] }
 0xdc5   : > { %24133 = vmatprep.mubr.msk.f32.mxu0 %vm171_vm1, %v31316_v12  ;;  %v31323_v12 = vld [vmem:[#allocation19_spill] sm:$0xff] }
 0xdc8   : > { %24134 = vmatmul.mubr.msk.f32.gmra.mrb[84].mxu0 %vm171_vm1, %v31317_v52 }
 0xdc9   : > { %24136 = vmatprep.mubr.msk.f32.mxu0 %vm171_vm1, %v31318_v17  ;;  %v30290_v17 = vld [vmem:[#allocation2 + $0x182] sm:$0xff] }
 0xdca   : > { %31324 = vst [vmem:[#allocation38_spill] sm:$0xff] %v30290_v17 }
 0xdcc   : > { %24137 = vmatmul.mubr.msk.f32.gmra.mrb[86].mxu0 %vm171_vm1, %v31319_v15 }
 0xdcd   : > { %24139 = vmatprep.mubr.msk.f32.mxu0 %vm171_vm1, %v31320_v45  ;;  %v30294_v45 = vld [vmem:[#allocation2 + $0x18a] sm:$0xff] }
 0xdd0   : > { %24140 = vmatmul.mubr.msk.f32.gmra.mrb[88].mxu0 %vm171_vm1, %v30040_v25 }
 0xdd1   : > { %24142 = vmatprep.mubr.msk.f32.mxu0 %vm171_vm1, %v31321_v27 }
 0xdd4   : > { %24143 = vmatmul.mubr.msk.f32.gmra.mrb[90].mxu0 %vm171_vm1, %v31322_v6 }
 0xdd5   : > { %24145 = vmatprep.mubr.msk.f32.mxu0 %vm171_vm1, %v31323_v12  ;;  %v20395_v12 = vld [vmem:[%s30628_s1 + $0x418] sm:$0xf] }
 0xdd8   : > { %24146 = vmatmul.mubr.msk.f32.gmra.mrb[92].mxu0 %vm171_vm1, %v30056_v23  ;;  %v20429_v23 = vld [vmem:[%s30628_s1 + $0x420] sm:$0xff] }
 0xdd9   : > { %24148 = vmatprep.mubr.msk.f32.mxu0 %vm171_vm1, %v30290_v17  ;;  %v20430_v17 = vld [vmem:[%s30628_s1 + $0x428] sm:$0xff] }
 0xddc   : > { %24149 = vmatmul.mubr.msk.f32.gmra.mrb[94].mxu0 %vm171_vm1, %v30294_v45 }
 0xddd   : > { %24157 = vmatprep.mubr.msk.f32.mxu0 %vm171_vm1, %v29809_v7  ;;  %v24435_v7 = vpack.c.bf16 %v20430_v17, %v20429_v23  ;;  %v18323_v23 = vld [vmem:[#allocation2 + $0x19a] sm:$0xff] }
 0xde0   : > { %24158 = vmatmul.mubr.msk.f32.vlgmr.msra.gmra.mrb[64].mxu0 %vm171_vm1, %v29815_v14  ;;  %v17539_v14 = vld [vmem:[#allocation2 + $0x198] sm:$0xff] }
 0xde1   : > { %24434 = vmatpush3.bf16.msra.mxu0 %v24431_v42  ;;  %24160 = vmatprep.mubr.msk.f32.mxu0 %vm171_vm1, %v29819_v33  ;;  %v17540_v33 = vld [vmem:[#allocation2 + $0x1a0] sm:$0xff] }
 0xde2   : > { %24209 = vmatprep.subr.msk.mxu0 %vm456_vm0, %v20395_v12 }
 0xde4   : > { %24161 = vmatmul.mubr.msk.f32.gmra.mrb[66].mxu0 %vm171_vm1, %v29823_v59  ;;  %v17901_v59 = vld [vmem:[#allocation2 + $0x31] sm:$0xff] }
 0xde5   : > { %24163 = vmatprep.mubr.msk.f32.mxu0 %vm171_vm1, %v29827_v61  ;;  %24210 = vmatpush3.msk.msra.mxu0 %vm456_vm0, %v20395_v12  ;;  %v17902_v61 = vld [vmem:[#allocation2 + $0x39] sm:$0xff] }
 0xde6   : > { %24436 = vmatprep.subr.bf16.mxu0 %v24435_v7 }
 0xde8   : > { %24164 = vmatmul.mubr.msk.f32.gmra.mrb[68].mxu0 %vm171_vm1, %v29831_v36  ;;  %v20431_v36 = vld [vmem:[%s30628_s1 + $0x430] sm:$0xf] }
 0xde9   : > { %24166 = vmatprep.mubr.msk.f32.mxu0 %vm171_vm1, %v29835_v18  ;;  %v17903_v18 = vld [vmem:[#allocation2 + $0x49] sm:$0xff] }
 0xdec   : > { %24167 = vmatmul.mubr.msk.f32.gmra.mrb[70].mxu0 %vm171_vm1, %v29839_v24  ;;  %v17904_v24 = vld [vmem:[#allocation2 + $0x51] sm:$0xff] }
 0xded   : > { %24169 = vmatprep.mubr.msk.f32.mxu0 %vm171_vm1, %v29843_v50  ;;  %v17905_v50 = vld [vmem:[#allocation2 + $0x61] sm:$0xff] }
 0xdf0   : > { %24170 = vmatmul.mubr.msk.f32.gmra.mrb[72].mxu0 %vm171_vm1, %v29847_v49  ;;  %v17906_v49 = vld [vmem:[#allocation2 + $0x69] sm:$0xff] }
 0xdf1   : > { %24172 = vmatprep.mubr.msk.f32.mxu0 %vm171_vm1, %v29851_v54  ;;  %v17907_v54 = vld [vmem:[#allocation2 + $0x79] sm:$0xff] }
 0xdf4   : > { %24173 = vmatmul.mubr.msk.f32.gmra.mrb[74].mxu0 %vm171_vm1, %v29855_v26  ;;  %v17908_v26 = vld [vmem:[#allocation2 + $0x81] sm:$0xff] }
 0xdf5   : > { %24175 = vmatprep.mubr.msk.f32.mxu0 %vm171_vm1, %v29859_v48  ;;  %v17909_v48 = vld [vmem:[#allocation2 + $0x91] sm:$0xff] }
 0xdf8   : > { %24176 = vmatmul.mubr.msk.f32.gmra.mrb[76].mxu0 %vm171_vm1, %v29863_v53  ;;  %v17910_v53 = vld [vmem:[#allocation2 + $0x99] sm:$0xff] }
 0xdf9   : > { %24178 = vmatprep.mubr.msk.f32.mxu0 %vm171_vm1, %v29867_v62  ;;  %v17911_v62 = vld [vmem:[#allocation2 + $0xa9] sm:$0xff] }
 0xdfc   : > { %24179 = vmatmul.mubr.msk.f32.gmra.mrb[78].mxu0 %vm171_vm1, %v29871_v55  ;;  %v17912_v55 = vld [vmem:[#allocation2 + $0xb1] sm:$0xff] }
 0xdfd   : > { %24181 = vmatprep.mubr.msk.f32.mxu0 %vm171_vm1, %v29875_v57  ;;  %v17913_v57 = vld [vmem:[#allocation2 + $0xc1] sm:$0xff] }
 0xe00   : > { %24182 = vmatmul.mubr.msk.f32.gmra.mrb[80].mxu0 %vm171_vm1, %v29879_v63  ;;  %v17914_v63 = vld [vmem:[#allocation2 + $0xc9] sm:$0xff] }
 0xe01   : > { %24184 = vmatprep.mubr.msk.f32.mxu0 %vm171_vm1, %v29883_v29  ;;  %v17915_v29 = vld [vmem:[#allocation2 + $0xd9] sm:$0xff] }
 0xe04   : > { %24185 = vmatmul.mubr.msk.f32.gmra.mrb[82].mxu0 %vm171_vm1, %v29887_v40  ;;  %v17916_v40 = vld [vmem:[#allocation2 + $0xe1] sm:$0xff] }
 0xe05   : > { %24187 = vmatprep.mubr.msk.f32.mxu0 %vm171_vm1, %v29891_v58  ;;  %v31331_v58 = vld [vmem:[#allocation15_spill] sm:$0xff] }
 0xe08   : > { %24188 = vmatmul.mubr.msk.f32.gmra.mrb[84].mxu0 %vm171_vm1, %v29895_v20  ;;  %v31332_v20 = vld [vmem:[#allocation32_spill] sm:$0xff] }
 0xe09   : > { %24190 = vmatprep.mubr.msk.f32.mxu0 %vm171_vm1, %v29899_v31  ;;  %v31333_v31 = vld [vmem:[#allocation17_spill] sm:$0xff] }
 0xe0c   : > { %24191 = vmatmul.mubr.msk.f32.gmra.mrb[86].mxu0 %vm171_vm1, %v29903_v39  ;;  %v31334_v39 = vld [vmem:[#allocation35_spill] sm:$0xff] }
 0xe0d   : > { %24193 = vmatprep.mubr.msk.f32.mxu0 %vm171_vm1, %v29907_v5  ;;  %v31335_v5 = vld [vmem:[#allocation3_spill] sm:$0xff] }
 0xe10   : > { %24194 = vmatmul.mubr.msk.f32.gmra.mrb[88].mxu0 %vm171_vm1, %v29911_v13  ;;  %v31336_v13 = vld [vmem:[#allocation19_spill] sm:$0xff] }
 0xe11   : > { %24196 = vmatprep.mubr.msk.f32.mxu0 %vm171_vm1, %v29915_v38  ;;  %v31337_v38 = vld [vmem:[#allocation5_spill] sm:$0xff] }
 0xe14   : > { %24197 = vmatmul.mubr.msk.f32.gmra.mrb[90].mxu0 %vm171_vm1, %v29919_v0  ;;  %v31338_v0 = vld [vmem:[#allocation38_spill] sm:$0xff] }
 0xe15   : > { %24199 = vmatprep.mubr.msk.f32.mxu0 %vm171_vm1, %v30132_v22  ;;  %v30487_v22 = vld [vmem:[%s30629_s2 + $0x4] ss:$0 sm:$0xff] }
 0xe18   : > { %24200 = vmatmul.mubr.msk.f32.gmra.mrb[92].mxu0 %vm171_vm1, %v30136_v8 }
 0xe19   : > { %24202 = vmatprep.mubr.msk.f32.mxu0 %vm171_vm1, %v17539_v14  ;;  %v18726_v14 = vld [vmem:[%s25874_s26 + $0x20] sm:$0xff] }
 0xe1c   : > { %24203 = vmatmul.mubr.msk.f32.gmra.mrb[94].mxu0 %vm171_vm1, %v17540_v33 }
 0xe1d   : > { %24211 = vmatprep.mubr.msk.f32.mxu0 %vm171_vm1, %v17901_v59 }
 0xe20   : > { %24212 = vmatmul.mubr.msk.f32.vlgmr.msra.gmra.mrb[64].mxu0 %vm171_vm1, %v17902_v61 }
 0xe21   : > { %24438 = vmatpush3.bf16.msra.mxu0 %v24435_v7  ;;  %24214 = vmatprep.mubr.msk.f32.mxu0 %vm171_vm1, %v17903_v18 }
 0xe22   : > { %24263 = vmatprep.subr.msk.mxu0 %vm456_vm0, %v20431_v36 }
 0xe24   : > { %24215 = vmatmul.mubr.msk.f32.gmra.mrb[66].mxu0 %vm171_vm1, %v17904_v24 }
 0xe25   : > { %24217 = vmatprep.mubr.msk.f32.mxu0 %vm171_vm1, %v17905_v50  ;;  %24264 = vmatpush3.msk.msra.mxu0 %vm456_vm0, %v20431_v36  ;;  %v18729_v50 = vld [vmem:[%s25874_s26 + $0x38] sm:$0xff] }
 0xe28   : > { %24218 = vmatmul.mubr.msk.f32.gmra.mrb[68].mxu0 %vm171_vm1, %v17906_v49 }
 0xe29   : > { %24220 = vmatprep.mubr.msk.f32.mxu0 %vm171_vm1, %v17907_v54 }
 0xe2c   : > { %24221 = vmatmul.mubr.msk.f32.gmra.mrb[70].mxu0 %vm171_vm1, %v17908_v26  ;;  %v18728_v26 = vld [vmem:[%s25874_s26 + $0x30] sm:$0xff] }
 0xe2d   : > { %24223 = vmatprep.mubr.msk.f32.mxu0 %vm171_vm1, %v17909_v48 }
 0xe30   : > { %24224 = vmatmul.mubr.msk.f32.gmra.mrb[72].mxu0 %vm171_vm1, %v17910_v53 }
 0xe31   : > { %24226 = vmatprep.mubr.msk.f32.mxu0 %vm171_vm1, %v17911_v62 }
 0xe34   : > { %24227 = vmatmul.mubr.msk.f32.gmra.mrb[74].mxu0 %vm171_vm1, %v17912_v55 }
 0xe35   : > { %24229 = vmatprep.mubr.msk.f32.mxu0 %vm171_vm1, %v17913_v57 }
 0xe38   : > { %24230 = vmatmul.mubr.msk.f32.gmra.mrb[76].mxu0 %vm171_vm1, %v17914_v63 }
 0xe39   : > { %24232 = vmatprep.mubr.msk.f32.mxu0 %vm171_vm1, %v17915_v29  ;;  %v18731_v29 = vld [vmem:[%s25874_s26 + $0x48] sm:$0xff] }
 0xe3c   : > { %24233 = vmatmul.mubr.msk.f32.gmra.mrb[78].mxu0 %vm171_vm1, %v17916_v40 }
 0xe3d   : > { %24235 = vmatprep.mubr.msk.f32.mxu0 %vm171_vm1, %v29729_v2  ;;  %v17931_v2 = vld [vmem:[#allocation2 + $0x199] sm:$0xff] }
 0xe40   : > { %24236 = vmatmul.mubr.msk.f32.gmra.mrb[80].mxu0 %vm171_vm1, %v29734_v30  ;;  %v17932_v30 = vld [vmem:[#allocation2 + $0x1a1] sm:$0xff] }
 0xe41   : > { %24238 = vmatprep.mubr.msk.f32.mxu0 %vm171_vm1, %v29739_v56  ;;  %v31325_v56 = vld [vmem:[#allocation11_spill] sm:$0xff] }
 0xe44   : > { %24239 = vmatmul.mubr.msk.f32.gmra.mrb[82].mxu0 %vm171_vm1, %v29744_v47  ;;  %v31326_v47 = vld [vmem:[#allocation12_spill] sm:$0xff] }
 0xe45   : > { %24241 = vmatprep.mubr.msk.f32.mxu0 %vm171_vm1, %v29749_v16  ;;  %v31327_v16 = vld [vmem:[#allocation30_spill] sm:$0xff] }
 0xe48   : > { %24242 = vmatmul.mubr.msk.f32.gmra.mrb[84].mxu0 %vm171_vm1, %v29754_v51  ;;  %v31328_v51 = vld [vmem:[#allocation10_spill] sm:$0xff] }
 0xe49   : > { %24244 = vmatprep.mubr.msk.f32.mxu0 %vm171_vm1, %v29759_v10  ;;  %v31329_v10 = vld [vmem:[#allocation25_spill] sm:$0xff] }
 0xe4c   : > { %24245 = vmatmul.mubr.msk.f32.gmra.mrb[86].mxu0 %vm171_vm1, %v31294_v35 }
 0xe4d   : > { %24247 = vmatprep.mubr.msk.f32.mxu0 %vm171_vm1, %v31295_v9 }
 0xe50   : > { %24248 = vmatmul.mubr.msk.f32.gmra.mrb[88].mxu0 %vm171_vm1, %v31296_v28  ;;  %v18723_v28 = vld [vmem:[%s25874_s26 + $0x8] sm:$0xff] }
 0xe51   : > { %24250 = vmatprep.mubr.msk.f32.mxu0 %vm171_vm1, %v31297_v3 }
 0xe54   : > { %24251 = vmatmul.mubr.msk.f32.gmra.mrb[90].mxu0 %vm171_vm1, %v31298_v37 }
 0xe55   : > { %24253 = vmatprep.mubr.msk.f32.mxu0 %vm171_vm1, %v30211_v43  ;;  %v18722_v43 = vld [vmem:[%s25874_s26] sm:$0xff] }
 0xe58   : > { %24254 = vmatmul.mubr.msk.f32.gmra.mrb[92].mxu0 %vm171_vm1, %v30215_v11 }
 0xe59   : > { %24256 = vmatprep.mubr.msk.f32.mxu0 %vm171_vm1, %v17931_v2 }
 0xe5c   : > { %24257 = vmatmul.mubr.msk.f32.gmra.mrb[94].mxu0 %vm171_vm1, %v17932_v30  ;;  %v18730_v30 = vld [vmem:[%s25874_s26 + $0x40] sm:$0xff] }
 0xe5d   : > { %24265 = vmatprep.mubr.msk.f32.mxu0 %vm171_vm1, %v29946_v46  ;;  %v31330_v46 = vld [vmem:[#allocation26_spill] sm:$0xff] }
 0xe60   : > { %24266 = vmatmul.mubr.msk.f32.vlgmr.msra.gmra.mrb[64].mxu0 %vm171_vm1, %v31299_v41 }
 0xe61   : > { %24268 = vmatprep.mubr.msk.f32.mxu0 %vm171_vm1, %v31300_v32 }
 0xe64   : > { %24269 = vmatmul.mubr.msk.f32.gmra.mrb[66].mxu0 %vm171_vm1, %v31301_v4 }
 0xe65   : > { %24271 = vmatprep.mubr.msk.f32.mxu0 %vm171_vm1, %v31302_v44 }
 0xe68   : > { %24272 = vmatmul.mubr.msk.f32.gmra.mrb[68].mxu0 %vm171_vm1, %v31303_v60  ;;  %v18725_v60 = vld [vmem:[%s25874_s26 + $0x18] sm:$0xff] }
 0xe69   : > { %24274 = vmatprep.mubr.msk.f32.mxu0 %vm171_vm1, %v31304_v19 }
 0xe6c   : > { %24275 = vmatmul.mubr.msk.f32.gmra.mrb[70].mxu0 %vm171_vm1, %v31305_v1 }
 0xe6d   : > { %24277 = vmatprep.mubr.msk.f32.mxu0 %vm171_vm1, %v31306_v34  ;;  %v18724_v34 = vld [vmem:[%s25874_s26 + $0x10] sm:$0xff] }
 0xe70   : > { %24278 = vmatmul.mubr.msk.f32.gmra.mrb[72].mxu0 %vm171_vm1, %v31325_v56 }
 0xe71   : > { %24280 = vmatprep.mubr.msk.f32.mxu0 %vm171_vm1, %v31326_v47 }
 0xe74   : > { %24281 = vmatmul.mubr.msk.f32.gmra.mrb[74].mxu0 %vm171_vm1, %v31327_v16 }
 0xe75   : > { %24283 = vmatprep.mubr.msk.f32.mxu0 %vm171_vm1, %v31328_v51 }
 0xe78   : > { %24284 = vmatmul.mubr.msk.f32.gmra.mrb[76].mxu0 %vm171_vm1, %v31329_v10 }
 0xe79   : > { %24286 = vmatprep.mubr.msk.f32.mxu0 %vm171_vm1, %v31330_v46 }
 0xe7c   : > { %24287 = vmatmul.mubr.msk.f32.gmra.mrb[78].mxu0 %vm171_vm1, %v31313_v21  ;;  %v18727_v21 = vld [vmem:[%s25874_s26 + $0x28] sm:$0xff] }
 0xe7d   : > { %24289 = vmatprep.mubr.msk.f32.mxu0 %vm171_vm1, %v31331_v58  ;;  %v18733_v58 = vld [vmem:[%s25874_s26 + $0x58] sm:$0xff] }
 0xe80   : > { %24290 = vmatmul.mubr.msk.f32.gmra.mrb[80].mxu0 %vm171_vm1, %v31332_v20 }
 0xe81   : > { %24292 = vmatprep.mubr.msk.f32.mxu0 %vm171_vm1, %v31333_v31 }
 0xe84   : > { %24293 = vmatmul.mubr.msk.f32.gmra.mrb[82].mxu0 %vm171_vm1, %v31317_v52 }
 0xe85   : > { %24295 = vmatprep.mubr.msk.f32.mxu0 %vm171_vm1, %v31334_v39  ;;  %v18732_v39 = vld [vmem:[%s25874_s26 + $0x50] sm:$0xff] }
 0xe88   : > { %24296 = vmatmul.mubr.msk.f32.gmra.mrb[84].mxu0 %vm171_vm1, %v31319_v15 }
 0xe89   : > { %24298 = vmatprep.mubr.msk.f32.mxu0 %vm171_vm1, %v31335_v5 }
 0xe8c   : > { %24299 = vmatmul.mubr.msk.f32.gmra.mrb[86].mxu0 %vm171_vm1, %v30040_v25  ;;  %v18324_v25 = vld [vmem:[#allocation2 + $0x1a2] sm:$0xff] }
 0xe8d   : > { %24301 = vmatprep.mubr.msk.f32.mxu0 %vm171_vm1, %v31321_v27 }
 0xe90   : > { %24302 = vmatmul.mubr.msk.f32.gmra.mrb[88].mxu0 %vm171_vm1, %v31322_v6 }
 0xe91   : > { %24304 = vmatprep.mubr.msk.f32.mxu0 %vm171_vm1, %v31336_v13 }
 0xe94   : > { %24305 = vmatmul.mubr.msk.f32.gmra.mrb[90].mxu0 %vm171_vm1, %v31337_v38 }
 0xe95   : > { %24307 = vmatprep.mubr.msk.f32.mxu0 %vm171_vm1, %v31338_v0 }
 0xe98   : > { %24308 = vmatmul.mubr.msk.f32.gmra.mrb[92].mxu0 %vm171_vm1, %v30294_v45 }
 0xe99   : > { %24310 = vmatprep.mubr.msk.f32.mxu0 %vm171_vm1, %v18323_v23 }
 0xe9c   : > { %24311 = vmatmul.mubr.msk.f32.gmra.mrb[94].mxu0 %vm171_vm1, %v18324_v25 }
 0xf33   : > { %v24267_v8 = vpop.f32.mrb[64].mxu0 }
 0xf34   : > { %v18691_v35 = vadd.f32 %v24267_v8, %v30487_v22  ;;  %v18494_v9 = vpop.f32.mrb[65].mxu0  ;;  %v18735_v8 = vld [vmem:[%s25874_s26 + $0x68] sm:$0xff] }
 0xf35   : > { %v18690_v3 = vadd.f32 %v30487_v22, %v18494_v9 }
 0xf36   : > { %v18755_v37 = vmul.f32 0.2, %v18691_v35 }
 0xf37   : > { %v18754_v11 = vmul.f32 0.2, %v18690_v3  ;;  %v24270_v42 = vpop.f32.mrb[66].mxu0 }
 0xf38   : > { %v18787_v41 = vadd.f32 %v18755_v37, %v18723_v28  ;;  %v18693_v32 = vadd.f32 %v24270_v42, %v30487_v22  ;;  %v18504_v4 = vpop.f32.mrb[67].mxu0  ;;  %v18734_v28 = vld [vmem:[%s25874_s26 + $0x60] sm:$0xff] }
 0xf39   : > { %v18786_v44 = vadd.f32 %v18754_v11, %v18722_v43  ;;  %v18692_v19 = vadd.f32 %v30487_v22, %v18504_v4 }
 0xf3a   : > { %18819 = vst.msk [vmem:[%s30498_s9 + $0x8] sm:$0xff] %vm260_vm3, %v18787_v41  ;;  %v18757_v1 = vmul.f32 0.2, %v18693_v32  ;;  %v18737_v32 = vld [vmem:[%s25874_s26 + $0x78] sm:$0xff] }
 0xf3b   : > { %18818 = vst.msk [vmem:[%s30498_s9] sm:$0xff] %vm260_vm3, %v18786_v44  ;;  %v18756_v6 = vmul.f32 0.2, %v18692_v19  ;;  %v24273_v12 = vpop.f32.mrb[68].mxu0 }
 0xf3c   : > { %v18789_v52 = vadd.f32 %v18757_v1, %v18725_v60  ;;  %v18695_v17 = vadd.f32 %v24273_v12, %v30487_v22  ;;  %v18514_v15 = vpop.f32.mrb[69].mxu0  ;;  %v18736_v60 = vld [vmem:[%s25874_s26 + $0x70] sm:$0xff] }
 0xf3d   : > { %v18788_v45 = vadd.f32 %v18756_v6, %v18724_v34  ;;  %v18694_v27 = vadd.f32 %v30487_v22, %v18514_v15 }
 0xf3e   : > { %18821 = vst.msk [vmem:[%s30498_s9 + $0x18] sm:$0xff] %vm260_vm3, %v18789_v52  ;;  %v18759_v7 = vmul.f32 0.2, %v18695_v17  ;;  %v18739_v17 = vld [vmem:[%s25874_s26 + $0x88] sm:$0xff] }
 0xf3f   : > { %18820 = vst.msk [vmem:[%s30498_s9 + $0x10] sm:$0xff] %vm260_vm3, %v18788_v45  ;;  %v18758_v33 = vmul.f32 0.2, %v18694_v27  ;;  %v24276_v59 = vpop.f32.mrb[70].mxu0 }
 0xf40   : > { %v18791_v61 = vadd.f32 %v18759_v7, %v18727_v21  ;;  %v18697_v36 = vadd.f32 %v24276_v59, %v30487_v22  ;;  %v18524_v18 = vpop.f32.mrb[71].mxu0  ;;  %v18738_v21 = vld [vmem:[%s25874_s26 + $0x80] sm:$0xff] }
 0xf41   : > { %v18790_v24 = vadd.f32 %v18758_v33, %v18726_v14  ;;  %v18696_v49 = vadd.f32 %v30487_v22, %v18524_v18 }
 0xf42   : > { %18823 = vst.msk [vmem:[%s30498_s9 + $0x28] sm:$0xff] %vm260_vm3, %v18791_v61  ;;  %v18761_v54 = vmul.f32 0.2, %v18697_v36  ;;  %v18741_v36 = vld [vmem:[%s25874_s26 + $0x98] sm:$0xff] }
 0xf43   : > { %18822 = vst.msk [vmem:[%s30498_s9 + $0x20] sm:$0xff] %vm260_vm3, %v18790_v24  ;;  %v18760_v48 = vmul.f32 0.2, %v18696_v49  ;;  %v24279_v53 = vpop.f32.mrb[72].mxu0 }
 0xf44   : > { %v18793_v62 = vadd.f32 %v18761_v54, %v18729_v50  ;;  %v18699_v55 = vadd.f32 %v24279_v53, %v30487_v22  ;;  %v18534_v57 = vpop.f32.mrb[73].mxu0  ;;  %v18740_v50 = vld [vmem:[%s25874_s26 + $0x90] sm:$0xff] }
 0xf45   : > { %v18792_v63 = vadd.f32 %v18760_v48, %v18728_v26  ;;  %v18698_v40 = vadd.f32 %v30487_v22, %v18534_v57 }
 0xf46   : > { %18825 = vst.msk [vmem:[%s30498_s9 + $0x38] sm:$0xff] %vm260_vm3, %v18793_v62  ;;  %v18763_v2 = vmul.f32 0.2, %v18699_v55  ;;  %v18743_v55 = vld [vmem:[%s25874_s26 + $0xa8] sm:$0xff] }
 0xf47   : > { %18824 = vst.msk [vmem:[%s30498_s9 + $0x30] sm:$0xff] %vm260_vm3, %v18792_v63  ;;  %v18762_v56 = vmul.f32 0.2, %v18698_v40  ;;  %v24282_v47 = vpop.f32.mrb[74].mxu0 }
 0xf48   : > { %v18795_v16 = vadd.f32 %v18763_v2, %v18731_v29  ;;  %v18701_v51 = vadd.f32 %v24282_v47, %v30487_v22  ;;  %v18544_v10 = vpop.f32.mrb[75].mxu0  ;;  %v18742_v29 = vld [vmem:[%s25874_s26 + $0xa0] sm:$0xff] }
 0xf49   : > { %v18794_v46 = vadd.f32 %v18762_v56, %v18730_v30  ;;  %v18700_v20 = vadd.f32 %v30487_v22, %v18544_v10 }
 0xf4a   : > { %18827 = vst.msk [vmem:[%s30498_s9 + $0x48] sm:$0xff] %vm260_vm3, %v18795_v16  ;;  %v18765_v31 = vmul.f32 0.2, %v18701_v51  ;;  %v18745_v51 = vld [vmem:[%s25874_s26 + $0xb8] sm:$0xff] }
 0xf4b   : > { %18826 = vst.msk [vmem:[%s30498_s9 + $0x40] sm:$0xff] %vm260_vm3, %v18794_v46  ;;  %v18764_v5 = vmul.f32 0.2, %v18700_v20  ;;  %v24285_v13 = vpop.f32.mrb[76].mxu0 }
 0xf4c   : > { %v18797_v38 = vadd.f32 %v18765_v31, %v18733_v58  ;;  %v18703_v0 = vadd.f32 %v24285_v13, %v30487_v22  ;;  %v18554_v23 = vpop.f32.mrb[77].mxu0  ;;  %v18744_v58 = vld [vmem:[%s25874_s26 + $0xb0] sm:$0xff] }
 0xf4d   : > { %v18796_v25 = vadd.f32 %v18764_v5, %v18732_v39  ;;  %v18702_v35 = vadd.f32 %v30487_v22, %v18554_v23 }
 0xf4e   : > { %18829 = vst.msk [vmem:[%s30498_s9 + $0x58] sm:$0xff] %vm260_vm3, %v18797_v38  ;;  %v18767_v9 = vmul.f32 0.2, %v18703_v0  ;;  %v18747_v0 = vld [vmem:[%s25874_s26 + $0xc8] sm:$0xff] }
 0xf4f   : > { %18828 = vst.msk [vmem:[%s30498_s9 + $0x50] sm:$0xff] %vm260_vm3, %v18796_v25  ;;  %v18766_v3 = vmul.f32 0.2, %v18702_v35  ;;  %v24288_v37 = vpop.f32.mrb[78].mxu0 }
 0xf50   : > { %v18799_v43 = vadd.f32 %v18767_v9, %v18735_v8  ;;  %v18705_v11 = vadd.f32 %v24288_v37, %v30487_v22  ;;  %v18564_v42 = vpop.f32.mrb[79].mxu0  ;;  %v18746_v8 = vld [vmem:[%s25874_s26 + $0xc0] sm:$0xff] }
 0xf51   : > { %v18798_v41 = vadd.f32 %v18766_v3, %v18734_v28  ;;  %v18704_v4 = vadd.f32 %v30487_v22, %v18564_v42 }
 0xf52   : > { %18831 = vst.msk [vmem:[%s30498_s9 + $0x68] sm:$0xff] %vm260_vm3, %v18799_v43  ;;  %v18769_v44 = vmul.f32 0.2, %v18705_v11  ;;  %v18749_v11 = vld [vmem:[%s25874_s26 + $0xd8] sm:$0xff] }
 0xf53   : > { %18830 = vst.msk [vmem:[%s30498_s9 + $0x60] sm:$0xff] %vm260_vm3, %v18798_v41  ;;  %v18768_v19 = vmul.f32 0.2, %v18704_v4  ;;  %v24291_v1 = vpop.f32.mrb[80].mxu0 }
 0xf54   : > { %v18801_v34 = vadd.f32 %v18769_v44, %v18737_v32  ;;  %v18707_v6 = vadd.f32 %v24291_v1, %v30487_v22  ;;  %v18574_v12 = vpop.f32.mrb[81].mxu0  ;;  %v18748_v32 = vld [vmem:[%s25874_s26 + $0xd0] sm:$0xff] }
 0xf55   : > { %v18800_v52 = vadd.f32 %v18768_v19, %v18736_v60  ;;  %v18706_v15 = vadd.f32 %v30487_v22, %v18574_v12 }
 0xf56   : > { %18833 = vst.msk [vmem:[%s30498_s9 + $0x78] sm:$0xff] %vm260_vm3, %v18801_v34  ;;  %v18771_v45 = vmul.f32 0.2, %v18707_v6  ;;  %v18751_v6 = vld [vmem:[%s25874_s26 + $0xe8] sm:$0xff] }
 0xf57   : > { %18832 = vst.msk [vmem:[%s30498_s9 + $0x70] sm:$0xff] %vm260_vm3, %v18800_v52  ;;  %v18770_v27 = vmul.f32 0.2, %v18706_v15  ;;  %v24294_v7 = vpop.f32.mrb[82].mxu0 }
 0xf58   : > { %v18803_v14 = vadd.f32 %v18771_v45, %v18739_v17  ;;  %v18709_v33 = vadd.f32 %v24294_v7, %v30487_v22  ;;  %v18584_v59 = vpop.f32.mrb[83].mxu0  ;;  %v18750_v17 = vld [vmem:[%s25874_s26 + $0xe0] sm:$0xff] }
 0xf59   : > { %v18802_v61 = vadd.f32 %v18770_v27, %v18738_v21  ;;  %v18708_v18 = vadd.f32 %v30487_v22, %v18584_v59 }
 0xf5a   : > { %18835 = vst.msk [vmem:[%s30498_s9 + $0x88] sm:$0xff] %vm260_vm3, %v18803_v14  ;;  %v18773_v24 = vmul.f32 0.2, %v18709_v33  ;;  %v18753_v33 = vld [vmem:[%s25874_s26 + $0xf8] sm:$0xff] }
 0xf5b   : > { %18834 = vst.msk [vmem:[%s30498_s9 + $0x80] sm:$0xff] %vm260_vm3, %v18802_v61  ;;  %v18772_v49 = vmul.f32 0.2, %v18708_v18  ;;  %v24297_v54 = vpop.f32.mrb[84].mxu0 }
 0xf5c   : > { %v18805_v26 = vadd.f32 %v18773_v24, %v18741_v36  ;;  %v18711_v48 = vadd.f32 %v24297_v54, %v30487_v22  ;;  %v18594_v53 = vpop.f32.mrb[85].mxu0  ;;  %v18752_v36 = vld [vmem:[%s25874_s26 + $0xf0] sm:$0xff] }
 0xf5d   : > { %v18804_v62 = vadd.f32 %v18772_v49, %v18740_v50  ;;  %v18710_v57 = vadd.f32 %v30487_v22, %v18594_v53 }
 0xf5e   : > { %18837 = vst.msk [vmem:[%s30498_s9 + $0x98] sm:$0xff] %vm260_vm3, %v18805_v26  ;;  %v18775_v63 = vmul.f32 0.2, %v18711_v48 }
 0xf5f   : > { %18836 = vst.msk [vmem:[%s30498_s9 + $0x90] sm:$0xff] %vm260_vm3, %v18804_v62  ;;  %v18774_v40 = vmul.f32 0.2, %v18710_v57  ;;  %v24300_v2 = vpop.f32.mrb[86].mxu0 }
 0xf60   : > { %v18807_v30 = vadd.f32 %v18775_v63, %v18743_v55  ;;  %v18713_v56 = vadd.f32 %v24300_v2, %v30487_v22  ;;  %v18604_v47 = vpop.f32.mrb[87].mxu0 }
 0xf61   : > { %v18806_v16 = vadd.f32 %v18774_v40, %v18742_v29  ;;  %v18712_v10 = vadd.f32 %v30487_v22, %v18604_v47 }
 0xf62   : > { %18839 = vst.msk [vmem:[%s30498_s9 + $0xa8] sm:$0xff] %vm260_vm3, %v18807_v30  ;;  %v18777_v46 = vmul.f32 0.2, %v18713_v56 }
 0xf63   : > { %18838 = vst.msk [vmem:[%s30498_s9 + $0xa0] sm:$0xff] %vm260_vm3, %v18806_v16  ;;  %v18776_v20 = vmul.f32 0.2, %v18712_v10  ;;  %v24303_v31 = vpop.f32.mrb[88].mxu0 }
 0xf64   : > { %v18809_v39 = vadd.f32 %v18777_v46, %v18745_v51  ;;  %v18715_v5 = vadd.f32 %v24303_v31, %v30487_v22  ;;  %v18614_v13 = vpop.f32.mrb[89].mxu0 }
 0xf65   : > { %v18808_v38 = vadd.f32 %v18776_v20, %v18744_v58  ;;  %v18714_v23 = vadd.f32 %v30487_v22, %v18614_v13 }
 0xf66   : > { %18841 = vst.msk [vmem:[%s30498_s9 + $0xb8] sm:$0xff] %vm260_vm3, %v18809_v39  ;;  %v18779_v25 = vmul.f32 0.2, %v18715_v5 }
 0xf67   : > { %18840 = vst.msk [vmem:[%s30498_s9 + $0xb0] sm:$0xff] %vm260_vm3, %v18808_v38  ;;  %v18778_v35 = vmul.f32 0.2, %v18714_v23  ;;  %v24306_v9 = vpop.f32.mrb[90].mxu0 }
 0xf68   : > { %v18811_v28 = vadd.f32 %v18779_v25, %v18747_v0  ;;  %v18717_v3 = vadd.f32 %v24306_v9, %v30487_v22  ;;  %v18624_v37 = vpop.f32.mrb[91].mxu0 }
 0xf69   : > { %v18810_v43 = vadd.f32 %v18778_v35, %v18746_v8  ;;  %v18716_v42 = vadd.f32 %v30487_v22, %v18624_v37 }
 0xf6a   : > { %18843 = vst.msk [vmem:[%s30498_s9 + $0xc8] sm:$0xff] %vm260_vm3, %v18811_v28  ;;  %v18781_v41 = vmul.f32 0.2, %v18717_v3 }
 0xf6b   : > { %18842 = vst.msk [vmem:[%s30498_s9 + $0xc0] sm:$0xff] %vm260_vm3, %v18810_v43  ;;  %v18780_v4 = vmul.f32 0.2, %v18716_v42  ;;  %v24309_v44 = vpop.f32.mrb[92].mxu0 }
 0xf6c   : > { %v18813_v60 = vadd.f32 %v18781_v41, %v18749_v11  ;;  %v18719_v19 = vadd.f32 %v24309_v44, %v30487_v22  ;;  %v18634_v1 = vpop.f32.mrb[93].mxu0 }
 0xf6d   : > { %v18812_v34 = vadd.f32 %v18780_v4, %v18748_v32  ;;  %v18718_v12 = vadd.f32 %v30487_v22, %v18634_v1 }
 0xf6e   : > { %18845 = vst.msk [vmem:[%s30498_s9 + $0xd8] sm:$0xff] %vm260_vm3, %v18813_v60  ;;  %v18783_v52 = vmul.f32 0.2, %v18719_v19 }
 0xf6f   : > { %18844 = vst.msk [vmem:[%s30498_s9 + $0xd0] sm:$0xff] %vm260_vm3, %v18812_v34  ;;  %v18782_v15 = vmul.f32 0.2, %v18718_v12  ;;  %v24312_v45 = vpop.f32.mrb[94].mxu0 }
 0xf70   : > { %v18815_v21 = vadd.f32 %v18783_v52, %v18751_v6  ;;  %v18721_v27 = vadd.f32 %v24312_v45, %v30487_v22  ;;  %v18644_v7 = vpop.f32.mrb[95].mxu0 }
 0xf71   : > { %v18814_v14 = vadd.f32 %v18782_v15, %v18750_v17  ;;  %v18720_v59 = vadd.f32 %v30487_v22, %v18644_v7 }
 0xf72   : > { %18847 = vst.msk [vmem:[%s30498_s9 + $0xe8] sm:$0xff] %vm260_vm3, %v18815_v21  ;;  %v18785_v61 = vmul.f32 0.2, %v18721_v27 }
 0xf73   : > { %18846 = vst.msk [vmem:[%s30498_s9 + $0xe0] sm:$0xff] %vm260_vm3, %v18814_v14  ;;  %v18784_v18 = vmul.f32 0.2, %v18720_v59 }
 0xf74   : > { %v18817_v24 = vadd.f32 %v18785_v61, %v18753_v33 }
 0xf75   : > { %v18816_v50 = vadd.f32 %v18784_v18, %v18752_v36 }
 0xf76   : > { %18849 = vst.msk [vmem:[%s30498_s9 + $0xf8] sm:$0xff] %vm260_vm3, %v18817_v24 }
 0xf77   : > { %18848 = vst.msk [vmem:[%s30498_s9 + $0xf0] sm:$0xff] %vm260_vm3, %v18816_v50 }
 0xf78 PF: > { %s13_s12 = sadd.s32 1, %s25741_s12  }
 0xf79   : > { %p10_p4 = scmp.ge.s32.totalorder %s13_s12, 4  }
 0xf7b   :  { %12 = sbr.rel (!%p10_p4) target bundleno = 1 (0x1), region = 108 }

</bundles_post_ra>
